<compile_context>
chip_gen: v7x
topology: tpu7x:2x2x1
jax: 0.10.0
libtpu: 0.0.40
codegen_flags: <defaults>
</compile_context>

<pallas_src>
import functools

import numpy as np
import jax
import jax.numpy as jnp
from jax.experimental import pallas as pl
from jax.experimental.pallas import tpu as pltpu

EPS = float(np.finfo(float).eps)   # matches np.finfo(float).eps in squash()
BN_EPS = 1e-5                      # nn.BatchNorm2d default eps
VMEM_LIMIT = 32 * 1024 * 1024      # explicit; per-group blocks are tiny (safe on v7x 64MiB)


def _compiler_params():
    return pltpu.CompilerParams(dimension_semantics=("parallel",),
                                vmem_limit_bytes=VMEM_LIMIT)


# --------------------------------------------------------------------------
# Pallas kernels
# --------------------------------------------------------------------------
def _conv_bn_relu_squash_kernel(x_ref, w_ref, b_ref, gam_ref, bet_ref, mask_ref, o_ref,
                                *, tap_offsets, q_tot, valid_count, relu):
    """Fused grouped conv (in-VMEM im2col over a flattened padded grid) + bias +
    BatchNorm2d (training-mode batch stats, masked to valid pixels) + ReLU + squash.

    x_ref   : (1, Cin_blk, Q+ext)  flattened zero-padded input (bf16 cast in-kernel)
    w_ref   : (1, D, K)            packed bf16 weights, K = n_taps*Cin_blk, cols=[tap,cin]
    b_ref / gam_ref / bet_ref : (1, D, 1) f32 bias / BN gamma / BN beta
    mask_ref: (1, Q)               1.0 on real output pixels, 0.0 on pad-border junk
    o_ref   : (1, D, Q)            squashed capsules (junk columns discarded by wrapper)
    """
    x = x_ref[0].astype(jnp.bfloat16)                       # MXU operand -> bf16
    cols = [x[:, off:off + q_tot] for off in tap_offsets]   # plain lane slices
    patches = cols[0] if len(cols) == 1 else jnp.concatenate(cols, axis=0)   # (K, Q)
    y = jnp.dot(w_ref[0], patches, preferred_element_type=jnp.float32)       # (D, Q)
    y = y + b_ref[0]

    # BatchNorm2d, training mode: per-channel batch statistics (biased variance),
    # computed over the valid (B*Ho*Wo) pixels only.
    mask = mask_ref[...]                                    # (1, Q)
    inv_n = 1.0 / valid_count
    mean = jnp.sum(y * mask, axis=1, keepdims=True) * inv_n
    diff = (y - mean) * mask
    var = jnp.sum(diff * diff, axis=1, keepdims=True) * inv_n
    y = (y - mean) * jax.lax.rsqrt(var + BN_EPS) * gam_ref[0] + bet_ref[0]
    if relu:
        y = jnp.maximum(y, 0.0)

    # capsule squash ('paper'): coeff = (|v|^2/(1+|v|^2)) / (|v|+eps) == |v|/(1+|v|^2)
    nsq = jnp.sum(y * y, axis=0, keepdims=True)             # cheap sublane reduce, (1, Q)
    # rsqrt goes to the EUP; reciprocal kept exact (approx=False) for reference parity.
    coeff = nsq * jax.lax.rsqrt(nsq + 1e-30) * pl.reciprocal(1.0 + nsq, approx=False)
    o_ref[0] = y * coeff


def _bn_relu_squash_kernel(x_ref, gam_ref, bet_ref, o_ref, *, relu):
    """Outer CapConv stage: BatchNorm2d (batch stats) + ReLU + conv_squash.
    x_ref: (1, D, M) clean (no junk columns), M = B*Ho*Wo lane dense."""
    y = x_ref[0]
    mean = jnp.mean(y, axis=1, keepdims=True)
    var = jnp.mean(jnp.square(y - mean), axis=1, keepdims=True)
    y = (y - mean) * jax.lax.rsqrt(var + BN_EPS) * gam_ref[0] + bet_ref[0]
    if relu:
        y = jnp.maximum(y, 0.0)
    nsq = jnp.sum(y * y, axis=0, keepdims=True)
    coeff = nsq * jax.lax.rsqrt(nsq + 1e-30) * pl.reciprocal(1.0 + nsq, approx=False)
    o_ref[0] = y * coeff


def _route_combine_kernel(m_ref, r_ref, wm_ref, bm_ref, wr_ref, br_ref, o_ref,
                          *, tap_offsets, center_offset, q_tot):
    """Both 3x3 grouped coeff convs + coeff-broadcast combine of capConvRoute4.

    m_ref / r_ref : (1, D, Q+ext) flattened, spatially padded-by-1, squashed main / res caps
    wm_ref/wr_ref : (1, 1, 9*D)   packed bf16 coeff-conv weights (cols = [tap, d])
    bm_ref/br_ref : (1, 1, 1)     f32 biases
    o_ref         : (1, D, Q)     main*main_coeff + res*res_coeff (junk cols discarded later)
    """
    mm = m_ref[0]
    rr = r_ref[0]
    mb = mm.astype(jnp.bfloat16)
    rb = rr.astype(jnp.bfloat16)
    mp = jnp.concatenate([mb[:, o:o + q_tot] for o in tap_offsets], axis=0)  # (9D, Q)
    rp = jnp.concatenate([rb[:, o:o + q_tot] for o in tap_offsets], axis=0)
    cm = jnp.dot(wm_ref[0], mp, preferred_element_type=jnp.float32) + bm_ref[0]  # (1, Q)
    cr = jnp.dot(wr_ref[0], rp, preferred_element_type=jnp.float32) + br_ref[0]
    cen_m = mm[:, center_offset:center_offset + q_tot]      # f32 un-padded capsules
    cen_r = rr[:, center_offset:center_offset + q_tot]
    o_ref[0] = cen_m * cm + cen_r * cr


# --------------------------------------------------------------------------
# Wrappers (layout glue in XLA, compute in Pallas)
# --------------------------------------------------------------------------
def _pack_weights(ws, caps_groups):
    """[(Cout, Cin_w, k, k), ...] -> (caps_groups, Cout//caps_groups, K), columns
    ordered [conv_i, dy, dx, cin] to match the in-kernel patch rows."""
    mats = []
    for w in ws:
        co, ci, kh, kw = w.shape
        mats.append(jnp.transpose(w, (0, 2, 3, 1)).reshape(co, kh * kw * ci))
    wm = mats[0] if len(mats) == 1 else jnp.concatenate(mats, axis=1)
    co, k = wm.shape
    return wm.reshape(caps_groups, co // caps_groups, k)


def conv_bn_relu_squash(x_caps, ws, bs, gamma, beta, *, ksizes, pads, stride,
                        caps_groups, conv_groups, relu=True):
    """Sum of parallel Conv2d's (basic_conv) + BN + ReLU + squash, fused.

    x_caps: (conv_groups, Cin_g, B, H, W)  ->  (caps_groups, D, B, Ho, Wo)."""
    assert stride == 1  # TODO(synk): strided tap windows for stride>1 (downsampling) configs.
    cg, cin_g, bsz, h, w = x_caps.shape
    ho = h + 2 * pads[0] - ksizes[0] + 1
    wo = w + 2 * pads[0] - ksizes[0] + 1
    for kk, pp in zip(ksizes, pads):
        assert h + 2 * pp - kk + 1 == ho
    pad_max = max(pads)
    hp, wp = h + 2 * pad_max, w + 2 * pad_max
    q_tot = bsz * hp * wp

    # tap offsets in flattened padded coordinates (output pixel q reads q + off)
    offsets = []
    for kk, pp in zip(ksizes, pads):
        base = pad_max - pp
        for dy in range(kk):
            for dx in range(kk):
                offsets.append((base + dy) * wp + (base + dx))
    ext = max(offsets)

    xp = jnp.pad(x_caps, ((0, 0), (0, 0), (0, 0), (pad_max, pad_max), (pad_max, pad_max)))
    x_flat = xp.reshape(cg, cin_g, q_tot)
    if ext > 0:
        x_flat = jnp.pad(x_flat, ((0, 0), (0, 0), (0, ext)))

    wpk = _pack_weights(ws, caps_groups).astype(jnp.bfloat16)       # (G, D, K)
    _, d, kdim = wpk.shape
    bsum = bs[0]
    for b_ in bs[1:]:
        bsum = bsum + b_
    b_r = bsum.reshape(caps_groups, d, 1).astype(jnp.float32)
    ga_r = gamma.reshape(caps_groups, d, 1).astype(jnp.float32)
    be_r = beta.reshape(caps_groups, d, 1).astype(jnp.float32)

    # validity mask on the flattened padded grid (True only at real output pixels)
    m_hw = ((jnp.arange(hp) < ho)[:, None] & (jnp.arange(wp) < wo)[None, :])
    mask = jnp.tile(m_hw.astype(jnp.float32).reshape(-1), bsz).reshape(1, q_tot)
    valid_count = float(bsz * ho * wo)

    if conv_groups == caps_groups:
        x_map = lambda gi: (gi, 0, 0)
    else:                                   # full-channel conv: same block every step
        x_map = lambda gi: (0, 0, 0)

    out = pl.pallas_call(
        functools.partial(_conv_bn_relu_squash_kernel, tap_offsets=tuple(offsets),
                          q_tot=q_tot, valid_count=valid_count, relu=relu),
        out_shape=jax.ShapeDtypeStruct((caps_groups, d, q_tot), jnp.float32),
        grid=(caps_groups,),
        in_specs=[pl.BlockSpec((1, cin_g, q_tot + ext), x_map),
                  pl.BlockSpec((1, d, kdim), lambda gi: (gi, 0, 0)),
                  pl.BlockSpec((1, d, 1), lambda gi: (gi, 0, 0)),
                  pl.BlockSpec((1, d, 1), lambda gi: (gi, 0, 0)),
                  pl.BlockSpec((1, d, 1), lambda gi: (gi, 0, 0)),
                  pl.BlockSpec((1, q_tot), lambda gi: (0, 0))],
        out_specs=pl.BlockSpec((1, d, q_tot), lambda gi: (gi, 0, 0)),
        compiler_params=_compiler_params(),
    )(x_flat, wpk, b_r, ga_r, be_r, mask)

    # discard pad-border junk columns -> (G, D, B, Ho, Wo)
    out = out.reshape(caps_groups, d, bsz, hp, wp)[:, :, :, :ho, :wo]
    return out, (ho, wo)


def route_combine(main_sq, res_sq, w_main, b_main, w_res, b_res):
    """capConvRoute4 tail: 3x3 grouped coeff convs on main/res capsules + combine."""
    g, d, bsz, ho, wo = main_sq.shape
    hp, wp = ho + 2, wo + 2
    q_tot = bsz * hp * wp
    offsets = [dy * wp + dx for dy in range(3) for dx in range(3)]
    ext = max(offsets)
    center = wp + 1

    def flat_pad(t):
        tp = jnp.pad(t, ((0, 0), (0, 0), (0, 0), (1, 1), (1, 1)))
        return jnp.pad(tp.reshape(g, d, q_tot), ((0, 0), (0, 0), (0, ext)))

    mflat = flat_pad(main_sq)
    rflat = flat_pad(res_sq)
    wm = _pack_weights([w_main], g).astype(jnp.bfloat16)     # (g, 1, 9*d)
    wr = _pack_weights([w_res], g).astype(jnp.bfloat16)
    bm = b_main.reshape(g, 1, 1).astype(jnp.float32)
    br = b_res.reshape(g, 1, 1).astype(jnp.float32)

    out = pl.pallas_call(
        functools.partial(_route_combine_kernel, tap_offsets=tuple(offsets),
                          center_offset=center, q_tot=q_tot),
        out_shape=jax.ShapeDtypeStruct((g, d, q_tot), jnp.float32),
        grid=(g,),
        in_specs=[pl.BlockSpec((1, d, q_tot + ext), lambda gi: (gi, 0, 0)),
                  pl.BlockSpec((1, d, q_tot + ext), lambda gi: (gi, 0, 0)),
                  pl.BlockSpec((1, 1, 9 * d), lambda gi: (gi, 0, 0)),
                  pl.BlockSpec((1, 1, 1), lambda gi: (gi, 0, 0)),
                  pl.BlockSpec((1, 1, 9 * d), lambda gi: (gi, 0, 0)),
                  pl.BlockSpec((1, 1, 1), lambda gi: (gi, 0, 0))],
        out_specs=pl.BlockSpec((1, d, q_tot), lambda gi: (gi, 0, 0)),
        compiler_params=_compiler_params(),
    )(mflat, rflat, wm, bm, wr, br)
    return out.reshape(g, d, bsz, hp, wp)[:, :, :, :ho, :wo]


def bn_relu_squash(x_caps, gamma, beta, *, relu=True):
    """Outer CapConv stage (BN + ReLU + conv_squash) on (G, D, B, Ho, Wo)."""
    g, d, bsz, ho, wo = x_caps.shape
    m = bsz * ho * wo
    x_flat = x_caps.reshape(g, d, m)
    ga = gamma.reshape(g, d, 1).astype(jnp.float32)
    be = beta.reshape(g, d, 1).astype(jnp.float32)
    out = pl.pallas_call(
        functools.partial(_bn_relu_squash_kernel, relu=relu),
        out_shape=jax.ShapeDtypeStruct((g, d, m), jnp.float32),
        grid=(g,),
        in_specs=[pl.BlockSpec((1, d, m), lambda gi: (gi, 0, 0)),
                  pl.BlockSpec((1, d, 1), lambda gi: (gi, 0, 0)),
                  pl.BlockSpec((1, d, 1), lambda gi: (gi, 0, 0))],
        out_specs=pl.BlockSpec((1, d, m), lambda gi: (gi, 0, 0)),
        compiler_params=_compiler_params(),
    )(x_flat, ga, be)
    return out.reshape(g, d, bsz, ho, wo)
    # TODO(synk): for large B*H*W the M axis should be tiled with a two-pass
    # (sum / sum-of-squares) BN accumulator across an "arbitrary" grid axis.


# --------------------------------------------------------------------------
# capConvRoute4 / CapConv / CapConv2 forward (manner='4', no residual, stride 1)
# --------------------------------------------------------------------------
def cap_conv_route4(p, x_caps, *, ksizes, pads, stride, groups):
    """x_caps: (groups, Cin_g, B, H, W) -> (groups, D, B, Ho, Wo)."""
    g, cin_g, bsz, h, w = x_caps.shape
    main_sq, _ = conv_bn_relu_squash(
        x_caps, p["main_w"], p["main_b"], p["main_bn_g"], p["main_bn_b"],
        ksizes=ksizes, pads=pads, stride=stride,
        caps_groups=groups, conv_groups=groups, relu=True)
    x_full = x_caps.reshape(1, g * cin_g, bsz, h, w)
    res_sq, _ = conv_bn_relu_squash(
        x_full, [p["res_w"]], [p["res_b"]], p["res_bn_g"], p["res_bn_b"],
        ksizes=(ksizes[0] + 4,), pads=(pads[0] + 2,), stride=stride,
        caps_groups=groups, conv_groups=1, relu=True)
    return route_combine(main_sq, res_sq,
                         p["main_coeff_w"], p["main_coeff_b"],
                         p["res_coeff_w"], p["res_coeff_b"])


def cap_conv_layer(p, x_caps, *, ksizes, pads, stride, groups):
    """One CapConv sub-layer (manner='4'): capConvRoute4 -> BN -> ReLU -> conv_squash."""
    # TODO(synk): residual / conv_adjust_blob_shape skip connections not implemented
    # (this script realises the residual=(False, False) configuration).
    y = cap_conv_route4(p["route"], x_caps, ksizes=ksizes, pads=pads,
                        stride=stride, groups=groups)
    return bn_relu_squash(y, p["bn_g"], p["bn_b"], relu=True)


def cap_conv2_forward(params, x, *, groups, iter_n):
    """CapConv2.forward for manner='4', no_downsample=True, wider_main_conv=False,
    residual=(False, False), ot_choice=None (the returned out_list is empty)."""
    bsz, c, h, w = x.shape
    x_caps = x.reshape(bsz, groups, c // groups, h, w).transpose(1, 2, 0, 3, 4)
    # main_conv: CapConv(N=1, ksize=(3,), pad=(1,), stride=1)
    y = cap_conv_layer(params["main"], x_caps, ksizes=(3,), pads=(1,), stride=1,
                       groups=groups)
    # sub_conv: CapConv(N=iter_N, ksize=(1,), pad=(0,), stride=1)
    for i in range(iter_n):
        y = cap_conv_layer(params["sub"][i], y, ksizes=(1,), pads=(0,), stride=1,
                           groups=groups)
    g, d, bsz2, ho, wo = y.shape
    return y.transpose(2, 0, 1, 3, 4).reshape(bsz2, g * d, ho, wo)


# --------------------------------------------------------------------------
# Deterministic parameter init (PyTorch-like uniform fan-in bound)
# --------------------------------------------------------------------------
def _conv_init(key, cout, cin, k):
    fan_in = cin * k * k
    bound = 1.0 / np.sqrt(fan_in)
    kw_, kb_ = jax.random.split(key)
    w = jax.random.uniform(kw_, (cout, cin, k, k), jnp.float32, -bound, bound)
    b = jax.random.uniform(kb_, (cout,), jnp.float32, -bound, bound)
    return w, b


def init_route4_params(key, ch_in, ch_out, ksizes, group):
    keys = iter(jax.random.split(key, 12))
    p = {}
    mw, mb = [], []
    for k in ksizes:
        w, b = _conv_init(next(keys), ch_out, ch_in // group, k)
        mw.append(w)
        mb.append(b)
    p["main_w"], p["main_b"] = mw, mb
    p["main_bn_g"] = jax.random.uniform(next(keys), (ch_out,), jnp.float32, 0.5, 1.5)
    p["main_bn_b"] = jax.random.uniform(next(keys), (ch_out,), jnp.float32, -0.1, 0.1)
    p["res_w"], p["res_b"] = _conv_init(next(keys), ch_out, ch_in, ksizes[0] + 4)
    p["res_bn_g"] = jax.random.uniform(next(keys), (ch_out,), jnp.float32, 0.5, 1.5)
    p["res_bn_b"] = jax.random.uniform(next(keys), (ch_out,), jnp.float32, -0.1, 0.1)
    p["main_coeff_w"], p["main_coeff_b"] = _conv_init(next(keys), group, ch_out // group, 3)
    p["res_coeff_w"], p["res_coeff_b"] = _conv_init(next(keys), group, ch_out // group, 3)
    return p


def init_layer_params(key, ch_in, ch_out, ksizes, group):
    k1, k2, k3 = jax.random.split(key, 3)
    return {"route": init_route4_params(k1, ch_in, ch_out, ksizes, group),
            "bn_g": jax.random.uniform(k2, (ch_out,), jnp.float32, 0.5, 1.5),
            "bn_b": jax.random.uniform(k3, (ch_out,), jnp.float32, -0.1, 0.1)}


def init_cap_conv2_params(key, ch_in, ch_out, group, iter_n):
    keys = jax.random.split(key, 1 + iter_n)
    return {"main": init_layer_params(keys[0], ch_in, ch_out, (3,), group),
            "sub": [init_layer_params(keys[1 + i], ch_out, ch_out, (1,), group)
                    for i in range(iter_n)]}


# --------------------------------------------------------------------------
# Pure-JAX reference (mirrors the PyTorch forward; convs use bf16 MXU operands
# with f32 accumulation, same as the Pallas kernels)
# --------------------------------------------------------------------------
def _ref_conv(x, w, b, stride, pad, groups):
    y = jax.lax.conv_general_dilated(
        x.astype(jnp.bfloat16), w.astype(jnp.bfloat16),
        window_strides=(stride, stride), padding=[(pad, pad), (pad, pad)],
        dimension_numbers=("NCHW", "OIHW", "NCHW"),
        feature_group_count=groups,
        preferred_element_type=jnp.float32)
    return y + b[None, :, None, None]


def _ref_bn(y, gamma, beta):
    mean = jnp.mean(y, axis=(0, 2, 3), keepdims=True)
    var = jnp.mean(jnp.square(y - mean), axis=(0, 2, 3), keepdims=True)
    return ((y - mean) * jax.lax.rsqrt(var + BN_EPS)
            * gamma[None, :, None, None] + beta[None, :, None, None])


def _ref_conv_squash(y, groups):
    bsz, c, hh, ww = y.shape
    d = c // groups
    v = y.reshape(bsz, groups, d, hh, ww).transpose(0, 1, 3, 4, 2).reshape(bsz, -1, d)
    nsq = jnp.sum(v * v, axis=2, keepdims=True)
    nrm = jnp.sqrt(nsq)
    coeff2 = (nsq / (1.0 + nsq)) / (nrm + EPS)
    v = v * coeff2
    return v.reshape(bsz, groups, hh, ww, d).transpose(0, 1, 4, 2, 3).reshape(bsz, c, hh, ww)


def _ref_route4(p, x, ksizes, pads, stride, groups):
    bsz = x.shape[0]
    main = None
    for i in range(len(ksizes)):
        y = _ref_conv(x, p["main_w"][i], p["main_b"][i], stride, pads[i], groups)
        main = y if main is None else main + y
    main = jnp.maximum(_ref_bn(main, p["main_bn_g"], p["main_bn_b"]), 0.0)
    main_out = _ref_conv_squash(main, groups)
    d = main.shape[1] // groups
    main_coeff = _ref_conv(main_out, p["main_coeff_w"], p["main_coeff_b"], 1, 1, groups)
    main_coeff = jnp.repeat(main_coeff[:, :, None], d, axis=2).reshape(
        bsz, -1, main_coeff.shape[2], main_coeff.shape[3])
    res = _ref_conv(x, p["res_w"], p["res_b"], stride, pads[0] + 2, 1)
    res = jnp.maximum(_ref_bn(res, p["res_bn_g"], p["res_bn_b"]), 0.0)
    res_out = _ref_conv_squash(res, groups)
    res_coeff = _ref_conv(res_out, p["res_coeff_w"], p["res_coeff_b"], 1, 1, groups)
    res_coeff = jnp.repeat(res_coeff[:, :, None], d, axis=2).reshape(
        bsz, -1, res_coeff.shape[2], res_coeff.shape[3])
    return main_out * main_coeff + res_out * res_coeff


def _ref_layer(p, x, ksizes, pads, stride, groups):
    y = _ref_route4(p["route"], x, ksizes, pads, stride, groups)
    y = jnp.maximum(_ref_bn(y, p["bn_g"], p["bn_b"]), 0.0)
    return _ref_conv_squash(y, groups)


def ref_cap_conv2(params, x, *, groups, iter_n):
    y = _ref_layer(params["main"], x, (3,), (1,), 1, groups)
    for i in range(iter_n):
        y = _ref_layer(params["sub"][i], y, (1,), (0,), 1, groups)
    return y


# --------------------------------------------------------------------------
if __name__ == "__main__":
    # CapConv2(ch_in=4, ch_out=16, groups=4, residual=(False, False), iter_N=1,
    #          no_downsample=True, wider_main_conv=False, manner='4', ot_choice=None)
    B, CH_IN, CH_OUT, H, W = 2, 4, 16, 16, 16
    GROUPS, ITER_N = 4, 1

    key = jax.random.PRNGKey(0)
    kx, kp = jax.random.split(key)
    x = jax.random.normal(kx, (B, CH_IN, H, W), dtype=jnp.float32)
    params = init_cap_conv2_params(kp, CH_IN, CH_OUT, GROUPS, ITER_N)

    fwd = jax.jit(functools.partial(cap_conv2_forward, groups=GROUPS, iter_n=ITER_N))
    out = jax.block_until_ready(fwd(params, x))
    assert out.shape == (B, CH_OUT, H, W), out.shape

    ref_fn = jax.jit(functools.partial(ref_cap_conv2, groups=GROUPS, iter_n=ITER_N))
    ref = jax.block_until_ready(ref_fn(params, x))

    # both paths use bf16 MXU operands with f32 accumulation; tolerance widened
    # accordingly (per review) since HIGHEST-precision matmuls were dropped.
    np.testing.assert_allclose(np.asarray(out), np.asarray(ref), rtol=2e-2, atol=2e-3)
    print("KERNEL_OK")
</pallas_src>

<mosaic_0001>
module attributes {stable_mosaic.version = 11 : i64} {
  func.func @_conv_bn_relu_squash_kernel(%arg0: i32, %arg1: memref<1x4x1106xf32, #tpu.memory_space<vmem>>, %arg2: memref<1x4x196xbf16, #tpu.memory_space<vmem>>, %arg3: memref<1x4x1xf32, #tpu.memory_space<vmem>>, %arg4: memref<1x4x1xf32, #tpu.memory_space<vmem>>, %arg5: memref<1x4x1xf32, #tpu.memory_space<vmem>>, %arg6: memref<1x968xf32, #tpu.memory_space<vmem>>, %arg7: memref<1x4x968xf32, #tpu.memory_space<vmem>>) attributes {dimension_semantics = [#tpu.dimension_semantics<parallel>], iteration_bounds = array<i64: 4>, scalar_prefetch = 0 : i64, scratch_operands = 0 : i64, tpu.core_type = #tpu.core_type<tc>, window_params = [{pipeline_mode = #tpu.pipeline_mode<synchronous>, transform_indices = @transform_0, window_bounds = array<i64: 1, 4, 1106>}, {transform_indices = @transform_1, window_bounds = array<i64: 1, 4, 196>}, {transform_indices = @transform_2, window_bounds = array<i64: 1, 4, 1>}, {transform_indices = @transform_3, window_bounds = array<i64: 1, 4, 1>}, {transform_indices = @transform_4, window_bounds = array<i64: 1, 4, 1>}, {pipeline_mode = #tpu.pipeline_mode<synchronous>, transform_indices = @transform_5, window_bounds = array<i64: 1, 968>}, {transform_indices = @transform_6, window_bounds = array<i64: 1, 4, 968>}]} {
    %c0 = arith.constant 0 : index
    %c0_0 = arith.constant 0 : index
    %c0_1 = arith.constant 0 : index
    %0 = vector.load %arg1[%c0, %c0_0, %c0_1] : memref<1x4x1106xf32, #tpu.memory_space<vmem>>, vector<1x4x1106xf32>
    %1 = vector.shape_cast %0 : vector<1x4x1106xf32> to vector<4x1106xf32>
    %2 = arith.truncf %1 : vector<4x1106xf32> to vector<4x1106xbf16>
    %3 = vector.extract_strided_slice %2 {offsets = [0, 0], sizes = [4, 968], strides = [1, 1]} : vector<4x1106xbf16> to vector<4x968xbf16>
    %4 = vector.extract_strided_slice %2 {offsets = [0, 1], sizes = [4, 968], strides = [1, 1]} : vector<4x1106xbf16> to vector<4x968xbf16>
    %5 = vector.extract_strided_slice %2 {offsets = [0, 2], sizes = [4, 968], strides = [1, 1]} : vector<4x1106xbf16> to vector<4x968xbf16>
    %6 = vector.extract_strided_slice %2 {offsets = [0, 3], sizes = [4, 968], strides = [1, 1]} : vector<4x1106xbf16> to vector<4x968xbf16>
    %7 = vector.extract_strided_slice %2 {offsets = [0, 4], sizes = [4, 968], strides = [1, 1]} : vector<4x1106xbf16> to vector<4x968xbf16>
    %8 = vector.extract_strided_slice %2 {offsets = [0, 5], sizes = [4, 968], strides = [1, 1]} : vector<4x1106xbf16> to vector<4x968xbf16>
    %9 = vector.extract_strided_slice %2 {offsets = [0, 6], sizes = [4, 968], strides = [1, 1]} : vector<4x1106xbf16> to vector<4x968xbf16>
    %10 = vector.extract_strided_slice %2 {offsets = [0, 22], sizes = [4, 968], strides = [1, 1]} : vector<4x1106xbf16> to vector<4x968xbf16>
    %11 = vector.extract_strided_slice %2 {offsets = [0, 23], sizes = [4, 968], strides = [1, 1]} : vector<4x1106xbf16> to vector<4x968xbf16>
    %12 = vector.extract_strided_slice %2 {offsets = [0, 24], sizes = [4, 968], strides = [1, 1]} : vector<4x1106xbf16> to vector<4x968xbf16>
    %13 = vector.extract_strided_slice %2 {offsets = [0, 25], sizes = [4, 968], strides = [1, 1]} : vector<4x1106xbf16> to vector<4x968xbf16>
    %14 = vector.extract_strided_slice %2 {offsets = [0, 26], sizes = [4, 968], strides = [1, 1]} : vector<4x1106xbf16> to vector<4x968xbf16>
    %15 = vector.extract_strided_slice %2 {offsets = [0, 27], sizes = [4, 968], strides = [1, 1]} : vector<4x1106xbf16> to vector<4x968xbf16>
    %16 = vector.extract_strided_slice %2 {offsets = [0, 28], sizes = [4, 968], strides = [1, 1]} : vector<4x1106xbf16> to vector<4x968xbf16>
    %17 = vector.extract_strided_slice %2 {offsets = [0, 44], sizes = [4, 968], strides = [1, 1]} : vector<4x1106xbf16> to vector<4x968xbf16>
    %18 = vector.extract_strided_slice %2 {offsets = [0, 45], sizes = [4, 968], strides = [1, 1]} : vector<4x1106xbf16> to vector<4x968xbf16>
    %19 = vector.extract_strided_slice %2 {offsets = [0, 46], sizes = [4, 968], strides = [1, 1]} : vector<4x1106xbf16> to vector<4x968xbf16>
    %20 = vector.extract_strided_slice %2 {offsets = [0, 47], sizes = [4, 968], strides = [1, 1]} : vector<4x1106xbf16> to vector<4x968xbf16>
    %21 = vector.extract_strided_slice %2 {offsets = [0, 48], sizes = [4, 968], strides = [1, 1]} : vector<4x1106xbf16> to vector<4x968xbf16>
    %22 = vector.extract_strided_slice %2 {offsets = [0, 49], sizes = [4, 968], strides = [1, 1]} : vector<4x1106xbf16> to vector<4x968xbf16>
    %23 = vector.extract_strided_slice %2 {offsets = [0, 50], sizes = [4, 968], strides = [1, 1]} : vector<4x1106xbf16> to vector<4x968xbf16>
    %24 = vector.extract_strided_slice %2 {offsets = [0, 66], sizes = [4, 968], strides = [1, 1]} : vector<4x1106xbf16> to vector<4x968xbf16>
    %25 = vector.extract_strided_slice %2 {offsets = [0, 67], sizes = [4, 968], strides = [1, 1]} : vector<4x1106xbf16> to vector<4x968xbf16>
    %26 = vector.extract_strided_slice %2 {offsets = [0, 68], sizes = [4, 968], strides = [1, 1]} : vector<4x1106xbf16> to vector<4x968xbf16>
    %27 = vector.extract_strided_slice %2 {offsets = [0, 69], sizes = [4, 968], strides = [1, 1]} : vector<4x1106xbf16> to vector<4x968xbf16>
    %28 = vector.extract_strided_slice %2 {offsets = [0, 70], sizes = [4, 968], strides = [1, 1]} : vector<4x1106xbf16> to vector<4x968xbf16>
    %29 = vector.extract_strided_slice %2 {offsets = [0, 71], sizes = [4, 968], strides = [1, 1]} : vector<4x1106xbf16> to vector<4x968xbf16>
    %30 = vector.extract_strided_slice %2 {offsets = [0, 72], sizes = [4, 968], strides = [1, 1]} : vector<4x1106xbf16> to vector<4x968xbf16>
    %31 = vector.extract_strided_slice %2 {offsets = [0, 88], sizes = [4, 968], strides = [1, 1]} : vector<4x1106xbf16> to vector<4x968xbf16>
    %32 = vector.extract_strided_slice %2 {offsets = [0, 89], sizes = [4, 968], strides = [1, 1]} : vector<4x1106xbf16> to vector<4x968xbf16>
    %33 = vector.extract_strided_slice %2 {offsets = [0, 90], sizes = [4, 968], strides = [1, 1]} : vector<4x1106xbf16> to vector<4x968xbf16>
    %34 = vector.extract_strided_slice %2 {offsets = [0, 91], sizes = [4, 968], strides = [1, 1]} : vector<4x1106xbf16> to vector<4x968xbf16>
    %35 = vector.extract_strided_slice %2 {offsets = [0, 92], sizes = [4, 968], strides = [1, 1]} : vector<4x1106xbf16> to vector<4x968xbf16>
    %36 = vector.extract_strided_slice %2 {offsets = [0, 93], sizes = [4, 968], strides = [1, 1]} : vector<4x1106xbf16> to vector<4x968xbf16>
    %37 = vector.extract_strided_slice %2 {offsets = [0, 94], sizes = [4, 968], strides = [1, 1]} : vector<4x1106xbf16> to vector<4x968xbf16>
    %38 = vector.extract_strided_slice %2 {offsets = [0, 110], sizes = [4, 968], strides = [1, 1]} : vector<4x1106xbf16> to vector<4x968xbf16>
    %39 = vector.extract_strided_slice %2 {offsets = [0, 111], sizes = [4, 968], strides = [1, 1]} : vector<4x1106xbf16> to vector<4x968xbf16>
    %40 = vector.extract_strided_slice %2 {offsets = [0, 112], sizes = [4, 968], strides = [1, 1]} : vector<4x1106xbf16> to vector<4x968xbf16>
    %41 = vector.extract_strided_slice %2 {offsets = [0, 113], sizes = [4, 968], strides = [1, 1]} : vector<4x1106xbf16> to vector<4x968xbf16>
    %42 = vector.extract_strided_slice %2 {offsets = [0, 114], sizes = [4, 968], strides = [1, 1]} : vector<4x1106xbf16> to vector<4x968xbf16>
    %43 = vector.extract_strided_slice %2 {offsets = [0, 115], sizes = [4, 968], strides = [1, 1]} : vector<4x1106xbf16> to vector<4x968xbf16>
    %44 = vector.extract_strided_slice %2 {offsets = [0, 116], sizes = [4, 968], strides = [1, 1]} : vector<4x1106xbf16> to vector<4x968xbf16>
    %45 = vector.extract_strided_slice %2 {offsets = [0, 132], sizes = [4, 968], strides = [1, 1]} : vector<4x1106xbf16> to vector<4x968xbf16>
    %46 = vector.extract_strided_slice %2 {offsets = [0, 133], sizes = [4, 968], strides = [1, 1]} : vector<4x1106xbf16> to vector<4x968xbf16>
    %47 = vector.extract_strided_slice %2 {offsets = [0, 134], sizes = [4, 968], strides = [1, 1]} : vector<4x1106xbf16> to vector<4x968xbf16>
    %48 = vector.extract_strided_slice %2 {offsets = [0, 135], sizes = [4, 968], strides = [1, 1]} : vector<4x1106xbf16> to vector<4x968xbf16>
    %49 = vector.extract_strided_slice %2 {offsets = [0, 136], sizes = [4, 968], strides = [1, 1]} : vector<4x1106xbf16> to vector<4x968xbf16>
    %50 = vector.extract_strided_slice %2 {offsets = [0, 137], sizes = [4, 968], strides = [1, 1]} : vector<4x1106xbf16> to vector<4x968xbf16>
    %51 = vector.extract_strided_slice %2 {offsets = [0, 138], sizes = [4, 968], strides = [1, 1]} : vector<4x1106xbf16> to vector<4x968xbf16>
    %52 = tpu.concatenate %3, %4, %5, %6, %7, %8, %9, %10, %11, %12, %13, %14, %15, %16, %17, %18 in 0 : vector<4x968xbf16>, vector<4x968xbf16>, vector<4x968xbf16>, vector<4x968xbf16>, vector<4x968xbf16>, vector<4x968xbf16>, vector<4x968xbf16>, vector<4x968xbf16>, vector<4x968xbf16>, vector<4x968xbf16>, vector<4x968xbf16>, vector<4x968xbf16>, vector<4x968xbf16>, vector<4x968xbf16>, vector<4x968xbf16>, vector<4x968xbf16> -> vector<64x968xbf16>
    %53 = tpu.concatenate %19, %20, %21, %22, %23, %24, %25, %26, %27, %28, %29, %30, %31, %32, %33, %34 in 0 : vector<4x968xbf16>, vector<4x968xbf16>, vector<4x968xbf16>, vector<4x968xbf16>, vector<4x968xbf16>, vector<4x968xbf16>, vector<4x968xbf16>, vector<4x968xbf16>, vector<4x968xbf16>, vector<4x968xbf16>, vector<4x968xbf16>, vector<4x968xbf16>, vector<4x968xbf16>, vector<4x968xbf16>, vector<4x968xbf16>, vector<4x968xbf16> -> vector<64x968xbf16>
    %54 = tpu.concatenate %35, %36, %37, %38, %39, %40, %41, %42, %43, %44, %45, %46, %47, %48, %49, %50 in 0 : vector<4x968xbf16>, vector<4x968xbf16>, vector<4x968xbf16>, vector<4x968xbf16>, vector<4x968xbf16>, vector<4x968xbf16>, vector<4x968xbf16>, vector<4x968xbf16>, vector<4x968xbf16>, vector<4x968xbf16>, vector<4x968xbf16>, vector<4x968xbf16>, vector<4x968xbf16>, vector<4x968xbf16>, vector<4x968xbf16>, vector<4x968xbf16> -> vector<64x968xbf16>
    %55 = tpu.concatenate %52, %53, %54, %51 in 0 : vector<64x968xbf16>, vector<64x968xbf16>, vector<64x968xbf16>, vector<4x968xbf16> -> vector<196x968xbf16>
    %c0_2 = arith.constant 0 : index
    %c0_3 = arith.constant 0 : index
    %c0_4 = arith.constant 0 : index
    %56 = vector.load %arg2[%c0_2, %c0_3, %c0_4] : memref<1x4x196xbf16, #tpu.memory_space<vmem>>, vector<1x4x196xbf16>
    %57 = vector.shape_cast %56 : vector<1x4x196xbf16> to vector<4x196xbf16>
    %cst = arith.constant dense<0.000000e+00> : vector<4x968xf32>
    %58 = tpu.matmul %57, %55, %cst {dimension_numbers = #tpu.dot_dimension_numbers<[1], [0], [0], [1], [0, 0, 1, 1], [], []>} : vector<4x196xbf16>, vector<196x968xbf16>, vector<4x968xf32> -> vector<4x968xf32>
    %c0_5 = arith.constant 0 : index
    %c0_6 = arith.constant 0 : index
    %c0_7 = arith.constant 0 : index
    %59 = vector.load %arg3[%c0_5, %c0_6, %c0_7] : memref<1x4x1xf32, #tpu.memory_space<vmem>>, vector<1x4x1xf32>
    %60 = vector.shape_cast %59 : vector<1x4x1xf32> to vector<4x1xf32>
    %61 = vector.broadcast %60 : vector<4x1xf32> to vector<4x968xf32>
    %62 = arith.addf %58, %61 : vector<4x968xf32>
    %c0_8 = arith.constant 0 : index
    %c0_9 = arith.constant 0 : index
    %63 = vector.load %arg6[%c0_8, %c0_9] : memref<1x968xf32, #tpu.memory_space<vmem>>, vector<1x968xf32>
    %64 = vector.broadcast %63 : vector<1x968xf32> to vector<4x968xf32>
    %65 = arith.mulf %62, %64 : vector<4x968xf32>
    %cst_10 = arith.constant dense<0.000000e+00> : vector<4xf32>
    %66 = vector.multi_reduction <add>, %65, %cst_10 [1] : vector<4x968xf32> to vector<4xf32>
    %67 = vector.shape_cast %66 : vector<4xf32> to vector<4x1xf32>
    %cst_11 = arith.constant 0.001953125 : f32
    %68 = vector.broadcast %cst_11 : f32 to vector<4x1xf32>
    %69 = arith.mulf %67, %68 : vector<4x1xf32>
    %70 = vector.broadcast %69 : vector<4x1xf32> to vector<4x968xf32>
    %71 = arith.subf %62, %70 : vector<4x968xf32>
    %72 = vector.broadcast %63 : vector<1x968xf32> to vector<4x968xf32>
    %73 = arith.mulf %71, %72 : vector<4x968xf32>
    %74 = arith.mulf %73, %73 : vector<4x968xf32>
    %cst_12 = arith.constant dense<0.000000e+00> : vector<4xf32>
    %75 = vector.multi_reduction <add>, %74, %cst_12 [1] : vector<4x968xf32> to vector<4xf32>
    %76 = vector.shape_cast %75 : vector<4xf32> to vector<4x1xf32>
    %cst_13 = arith.constant 0.001953125 : f32
    %77 = vector.broadcast %cst_13 : f32 to vector<4x1xf32>
    %78 = arith.mulf %76, %77 : vector<4x1xf32>
    %79 = vector.broadcast %69 : vector<4x1xf32> to vector<4x968xf32>
    %80 = arith.subf %62, %79 : vector<4x968xf32>
    %cst_14 = arith.constant 9.99999974E-6 : f32
    %81 = vector.broadcast %cst_14 : f32 to vector<4x1xf32>
    %82 = arith.addf %78, %81 : vector<4x1xf32>
    %83 = math.rsqrt %82 : vector<4x1xf32>
    %84 = vector.broadcast %83 : vector<4x1xf32> to vector<4x968xf32>
    %85 = arith.mulf %80, %84 : vector<4x968xf32>
    %c0_15 = arith.constant 0 : index
    %c0_16 = arith.constant 0 : index
    %c0_17 = arith.constant 0 : index
    %86 = vector.load %arg4[%c0_15, %c0_16, %c0_17] : memref<1x4x1xf32, #tpu.memory_space<vmem>>, vector<1x4x1xf32>
    %87 = vector.shape_cast %86 : vector<1x4x1xf32> to vector<4x1xf32>
    %88 = vector.broadcast %87 : vector<4x1xf32> to vector<4x968xf32>
    %89 = arith.mulf %85, %88 : vector<4x968xf32>
    %c0_18 = arith.constant 0 : index
    %c0_19 = arith.constant 0 : index
    %c0_20 = arith.constant 0 : index
    %90 = vector.load %arg5[%c0_18, %c0_19, %c0_20] : memref<1x4x1xf32, #tpu.memory_space<vmem>>, vector<1x4x1xf32>
    %91 = vector.shape_cast %90 : vector<1x4x1xf32> to vector<4x1xf32>
    %92 = vector.broadcast %91 : vector<4x1xf32> to vector<4x968xf32>
    %93 = arith.addf %89, %92 : vector<4x968xf32>
    %cst_21 = arith.constant 0.000000e+00 : f32
    %94 = vector.broadcast %cst_21 : f32 to vector<4x968xf32>
    %95 = arith.maximumf %93, %94 : vector<4x968xf32>
    %96 = arith.mulf %95, %95 : vector<4x968xf32>
    %cst_22 = arith.constant dense<0.000000e+00> : vector<968xf32>
    %97 = vector.multi_reduction <add>, %96, %cst_22 [0] : vector<4x968xf32> to vector<968xf32>
    %98 = vector.shape_cast %97 : vector<968xf32> to vector<1x968xf32>
    %cst_23 = arith.constant 1.000000e-30 : f32
    %99 = vector.broadcast %cst_23 : f32 to vector<1x968xf32>
    %100 = arith.addf %98, %99 : vector<1x968xf32>
    %101 = math.rsqrt %100 : vector<1x968xf32>
    %102 = arith.mulf %98, %101 : vector<1x968xf32>
    %cst_24 = arith.constant 1.000000e+00 : f32
    %103 = vector.broadcast %cst_24 : f32 to vector<1x968xf32>
    %104 = arith.addf %103, %98 : vector<1x968xf32>
    %105 = tpu.reciprocal %104 : vector<1x968xf32> -> vector<1x968xf32>
    %106 = arith.mulf %102, %105 : vector<1x968xf32>
    %107 = vector.broadcast %106 : vector<1x968xf32> to vector<4x968xf32>
    %108 = arith.mulf %95, %107 : vector<4x968xf32>
    %c0_25 = arith.constant 0 : index
    %c0_26 = arith.constant 0 : index
    %c0_27 = arith.constant 0 : index
    %109 = vector.load %arg7[%c0_25, %c0_26, %c0_27] : memref<1x4x968xf32, #tpu.memory_space<vmem>>, vector<1x4x968xf32>
    %110 = vector.shape_cast %109 : vector<1x4x968xf32> to vector<4x968xf32>
    %111 = vector.shape_cast %108 : vector<4x968xf32> to vector<1x4x968xf32>
    tpu.vector_store %arg7[%c0_25, %c0_26, %c0_27], %111 {strides = array<i32>} : memref<1x4x968xf32, #tpu.memory_space<vmem>>, vector<1x4x968xf32>,
    return
  }
  func.func @transform_0(%arg0: i32) -> (i32, i32, i32) {
    %c0_i32 = arith.constant 0 : i32
    %c0_i32_0 = arith.constant 0 : i32
    %c0_i32_1 = arith.constant 0 : i32
    %c0_i32_2 = arith.constant 0 : i32
    return %c0_i32, %c0_i32_0, %c0_i32_1 : i32, i32, i32
  }
  func.func @transform_1(%arg0: i32) -> (i32, i32, i32) {
    %c0_i32 = arith.constant 0 : i32
    %c0_i32_0 = arith.constant 0 : i32
    %c0_i32_1 = arith.constant 0 : i32
    return %arg0, %c0_i32, %c0_i32_0 : i32, i32, i32
  }
  func.func @transform_2(%arg0: i32) -> (i32, i32, i32) {
    %c0_i32 = arith.constant 0 : i32
    %c0_i32_0 = arith.constant 0 : i32
    %c0_i32_1 = arith.constant 0 : i32
    return %arg0, %c0_i32, %c0_i32_0 : i32, i32, i32
  }
  func.func @transform_3(%arg0: i32) -> (i32, i32, i32) {
    %c0_i32 = arith.constant 0 : i32
    %c0_i32_0 = arith.constant 0 : i32
    %c0_i32_1 = arith.constant 0 : i32
    return %arg0, %c0_i32, %c0_i32_0 : i32, i32, i32
  }
  func.func @transform_4(%arg0: i32) -> (i32, i32, i32) {
    %c0_i32 = arith.constant 0 : i32
    %c0_i32_0 = arith.constant 0 : i32
    %c0_i32_1 = arith.constant 0 : i32
    return %arg0, %c0_i32, %c0_i32_0 : i32, i32, i32
  }
  func.func @transform_5(%arg0: i32) -> (i32, i32) {
    %c0_i32 = arith.constant 0 : i32
    %c0_i32_0 = arith.constant 0 : i32
    %c0_i32_1 = arith.constant 0 : i32
    return %c0_i32, %c0_i32_0 : i32, i32
  }
  func.func @transform_6(%arg0: i32) -> (i32, i32, i32) {
    %c0_i32 = arith.constant 0 : i32
    %c0_i32_0 = arith.constant 0 : i32
    %c0_i32_1 = arith.constant 0 : i32
    return %arg0, %c0_i32, %c0_i32_0 : i32, i32, i32
  }
}

module attributes {stable_mosaic.version = 11 : i64} {
  func.func @_conv_bn_relu_squash_kernel(%arg0: i32, %arg1: memref<1x1x686xf32, #tpu.memory_space<vmem>>, %arg2: memref<1x4x9xbf16, #tpu.memory_space<vmem>>, %arg3: memref<1x4x1xf32, #tpu.memory_space<vmem>>, %arg4: memref<1x4x1xf32, #tpu.memory_space<vmem>>, %arg5: memref<1x4x1xf32, #tpu.memory_space<vmem>>, %arg6: memref<1x648xf32, #tpu.memory_space<vmem>>, %arg7: memref<1x4x648xf32, #tpu.memory_space<vmem>>) attributes {dimension_semantics = [#tpu.dimension_semantics<parallel>], iteration_bounds = array<i64: 4>, scalar_prefetch = 0 : i64, scratch_operands = 0 : i64, tpu.core_type = #tpu.core_type<tc>, window_params = [{transform_indices = @transform_0, window_bounds = array<i64: 1, 1, 686>}, {transform_indices = @transform_1, window_bounds = array<i64: 1, 4, 9>}, {transform_indices = @transform_2, window_bounds = array<i64: 1, 4, 1>}, {transform_indices = @transform_3, window_bounds = array<i64: 1, 4, 1>}, {transform_indices = @transform_4, window_bounds = array<i64: 1, 4, 1>}, {pipeline_mode = #tpu.pipeline_mode<synchronous>, transform_indices = @transform_5, window_bounds = array<i64: 1, 648>}, {transform_indices = @transform_6, window_bounds = array<i64: 1, 4, 648>}]} {
    %c0 = arith.constant 0 : index
    %c0_0 = arith.constant 0 : index
    %c0_1 = arith.constant 0 : index
    %0 = vector.load %arg1[%c0, %c0_0, %c0_1] : memref<1x1x686xf32, #tpu.memory_space<vmem>>, vector<1x1x686xf32>
    %1 = vector.shape_cast %0 : vector<1x1x686xf32> to vector<1x686xf32>
    %2 = arith.truncf %1 : vector<1x686xf32> to vector<1x686xbf16>
    %3 = vector.extract_strided_slice %2 {offsets = [0, 0], sizes = [1, 648], strides = [1, 1]} : vector<1x686xbf16> to vector<1x648xbf16>
    %4 = vector.extract_strided_slice %2 {offsets = [0, 1], sizes = [1, 648], strides = [1, 1]} : vector<1x686xbf16> to vector<1x648xbf16>
    %5 = vector.extract_strided_slice %2 {offsets = [0, 2], sizes = [1, 648], strides = [1, 1]} : vector<1x686xbf16> to vector<1x648xbf16>
    %6 = vector.extract_strided_slice %2 {offsets = [0, 18], sizes = [1, 648], strides = [1, 1]} : vector<1x686xbf16> to vector<1x648xbf16>
    %7 = vector.extract_strided_slice %2 {offsets = [0, 19], sizes = [1, 648], strides = [1, 1]} : vector<1x686xbf16> to vector<1x648xbf16>
    %8 = vector.extract_strided_slice %2 {offsets = [0, 20], sizes = [1, 648], strides = [1, 1]} : vector<1x686xbf16> to vector<1x648xbf16>
    %9 = vector.extract_strided_slice %2 {offsets = [0, 36], sizes = [1, 648], strides = [1, 1]} : vector<1x686xbf16> to vector<1x648xbf16>
    %10 = vector.extract_strided_slice %2 {offsets = [0, 37], sizes = [1, 648], strides = [1, 1]} : vector<1x686xbf16> to vector<1x648xbf16>
    %11 = vector.extract_strided_slice %2 {offsets = [0, 38], sizes = [1, 648], strides = [1, 1]} : vector<1x686xbf16> to vector<1x648xbf16>
    %12 = tpu.concatenate %3, %4, %5, %6, %7, %8, %9, %10, %11 in 0 : vector<1x648xbf16>, vector<1x648xbf16>, vector<1x648xbf16>, vector<1x648xbf16>, vector<1x648xbf16>, vector<1x648xbf16>, vector<1x648xbf16>, vector<1x648xbf16>, vector<1x648xbf16> -> vector<9x648xbf16>
    %c0_2 = arith.constant 0 : index
    %c0_3 = arith.constant 0 : index
    %c0_4 = arith.constant 0 : index
    %13 = vector.load %arg2[%c0_2, %c0_3, %c0_4] : memref<1x4x9xbf16, #tpu.memory_space<vmem>>, vector<1x4x9xbf16>
    %14 = vector.shape_cast %13 : vector<1x4x9xbf16> to vector<4x9xbf16>
    %cst = arith.constant dense<0.000000e+00> : vector<4x648xf32>
    %15 = tpu.matmul %14, %12, %cst {dimension_numbers = #tpu.dot_dimension_numbers<[1], [0], [0], [1], [0, 0, 1, 1], [], []>} : vector<4x9xbf16>, vector<9x648xbf16>, vector<4x648xf32> -> vector<4x648xf32>
    %c0_5 = arith.constant 0 : index
    %c0_6 = arith.constant 0 : index
    %c0_7 = arith.constant 0 : index
    %16 = vector.load %arg3[%c0_5, %c0_6, %c0_7] : memref<1x4x1xf32, #tpu.memory_space<vmem>>, vector<1x4x1xf32>
    %17 = vector.shape_cast %16 : vector<1x4x1xf32> to vector<4x1xf32>
    %18 = vector.broadcast %17 : vector<4x1xf32> to vector<4x648xf32>
    %19 = arith.addf %15, %18 : vector<4x648xf32>
    %c0_8 = arith.constant 0 : index
    %c0_9 = arith.constant 0 : index
    %20 = vector.load %arg6[%c0_8, %c0_9] : memref<1x648xf32, #tpu.memory_space<vmem>>, vector<1x648xf32>
    %21 = vector.broadcast %20 : vector<1x648xf32> to vector<4x648xf32>
    %22 = arith.mulf %19, %21 : vector<4x648xf32>
    %cst_10 = arith.constant dense<0.000000e+00> : vector<4xf32>
    %23 = vector.multi_reduction <add>, %22, %cst_10 [1] : vector<4x648xf32> to vector<4xf32>
    %24 = vector.shape_cast %23 : vector<4xf32> to vector<4x1xf32>
    %cst_11 = arith.constant 0.001953125 : f32
    %25 = vector.broadcast %cst_11 : f32 to vector<4x1xf32>
    %26 = arith.mulf %24, %25 : vector<4x1xf32>
    %27 = vector.broadcast %26 : vector<4x1xf32> to vector<4x648xf32>
    %28 = arith.subf %19, %27 : vector<4x648xf32>
    %29 = vector.broadcast %20 : vector<1x648xf32> to vector<4x648xf32>
    %30 = arith.mulf %28, %29 : vector<4x648xf32>
    %31 = arith.mulf %30, %30 : vector<4x648xf32>
    %cst_12 = arith.constant dense<0.000000e+00> : vector<4xf32>
    %32 = vector.multi_reduction <add>, %31, %cst_12 [1] : vector<4x648xf32> to vector<4xf32>
    %33 = vector.shape_cast %32 : vector<4xf32> to vector<4x1xf32>
    %cst_13 = arith.constant 0.001953125 : f32
    %34 = vector.broadcast %cst_13 : f32 to vector<4x1xf32>
    %35 = arith.mulf %33, %34 : vector<4x1xf32>
    %36 = vector.broadcast %26 : vector<4x1xf32> to vector<4x648xf32>
    %37 = arith.subf %19, %36 : vector<4x648xf32>
    %cst_14 = arith.constant 9.99999974E-6 : f32
    %38 = vector.broadcast %cst_14 : f32 to vector<4x1xf32>
    %39 = arith.addf %35, %38 : vector<4x1xf32>
    %40 = math.rsqrt %39 : vector<4x1xf32>
    %41 = vector.broadcast %40 : vector<4x1xf32> to vector<4x648xf32>
    %42 = arith.mulf %37, %41 : vector<4x648xf32>
    %c0_15 = arith.constant 0 : index
    %c0_16 = arith.constant 0 : index
    %c0_17 = arith.constant 0 : index
    %43 = vector.load %arg4[%c0_15, %c0_16, %c0_17] : memref<1x4x1xf32, #tpu.memory_space<vmem>>, vector<1x4x1xf32>
    %44 = vector.shape_cast %43 : vector<1x4x1xf32> to vector<4x1xf32>
    %45 = vector.broadcast %44 : vector<4x1xf32> to vector<4x648xf32>
    %46 = arith.mulf %42, %45 : vector<4x648xf32>
    %c0_18 = arith.constant 0 : index
    %c0_19 = arith.constant 0 : index
    %c0_20 = arith.constant 0 : index
    %47 = vector.load %arg5[%c0_18, %c0_19, %c0_20] : memref<1x4x1xf32, #tpu.memory_space<vmem>>, vector<1x4x1xf32>
    %48 = vector.shape_cast %47 : vector<1x4x1xf32> to vector<4x1xf32>
    %49 = vector.broadcast %48 : vector<4x1xf32> to vector<4x648xf32>
    %50 = arith.addf %46, %49 : vector<4x648xf32>
    %cst_21 = arith.constant 0.000000e+00 : f32
    %51 = vector.broadcast %cst_21 : f32 to vector<4x648xf32>
    %52 = arith.maximumf %50, %51 : vector<4x648xf32>
    %53 = arith.mulf %52, %52 : vector<4x648xf32>
    %cst_22 = arith.constant dense<0.000000e+00> : vector<648xf32>
    %54 = vector.multi_reduction <add>, %53, %cst_22 [0] : vector<4x648xf32> to vector<648xf32>
    %55 = vector.shape_cast %54 : vector<648xf32> to vector<1x648xf32>
    %cst_23 = arith.constant 1.000000e-30 : f32
    %56 = vector.broadcast %cst_23 : f32 to vector<1x648xf32>
    %57 = arith.addf %55, %56 : vector<1x648xf32>
    %58 = math.rsqrt %57 : vector<1x648xf32>
    %59 = arith.mulf %55, %58 : vector<1x648xf32>
    %cst_24 = arith.constant 1.000000e+00 : f32
    %60 = vector.broadcast %cst_24 : f32 to vector<1x648xf32>
    %61 = arith.addf %60, %55 : vector<1x648xf32>
    %62 = tpu.reciprocal %61 : vector<1x648xf32> -> vector<1x648xf32>
    %63 = arith.mulf %59, %62 : vector<1x648xf32>
    %64 = vector.broadcast %63 : vector<1x648xf32> to vector<4x648xf32>
    %65 = arith.mulf %52, %64 : vector<4x648xf32>
    %c0_25 = arith.constant 0 : index
    %c0_26 = arith.constant 0 : index
    %c0_27 = arith.constant 0 : index
    %66 = vector.load %arg7[%c0_25, %c0_26, %c0_27] : memref<1x4x648xf32, #tpu.memory_space<vmem>>, vector<1x4x648xf32>
    %67 = vector.shape_cast %66 : vector<1x4x648xf32> to vector<4x648xf32>
    %68 = vector.shape_cast %65 : vector<4x648xf32> to vector<1x4x648xf32>
    tpu.vector_store %arg7[%c0_25, %c0_26, %c0_27], %68 {strides = array<i32>} : memref<1x4x648xf32, #tpu.memory_space<vmem>>, vector<1x4x648xf32>,
    return
  }
  func.func @transform_0(%arg0: i32) -> (i32, i32, i32) {
    %c0_i32 = arith.constant 0 : i32
    %c0_i32_0 = arith.constant 0 : i32
    %c0_i32_1 = arith.constant 0 : i32
    return %arg0, %c0_i32, %c0_i32_0 : i32, i32, i32
  }
  func.func @transform_1(%arg0: i32) -> (i32, i32, i32) {
    %c0_i32 = arith.constant 0 : i32
    %c0_i32_0 = arith.constant 0 : i32
    %c0_i32_1 = arith.constant 0 : i32
    return %arg0, %c0_i32, %c0_i32_0 : i32, i32, i32
  }
  func.func @transform_2(%arg0: i32) -> (i32, i32, i32) {
    %c0_i32 = arith.constant 0 : i32
    %c0_i32_0 = arith.constant 0 : i32
    %c0_i32_1 = arith.constant 0 : i32
    return %arg0, %c0_i32, %c0_i32_0 : i32, i32, i32
  }
  func.func @transform_3(%arg0: i32) -> (i32, i32, i32) {
    %c0_i32 = arith.constant 0 : i32
    %c0_i32_0 = arith.constant 0 : i32
    %c0_i32_1 = arith.constant 0 : i32
    return %arg0, %c0_i32, %c0_i32_0 : i32, i32, i32
  }
  func.func @transform_4(%arg0: i32) -> (i32, i32, i32) {
    %c0_i32 = arith.constant 0 : i32
    %c0_i32_0 = arith.constant 0 : i32
    %c0_i32_1 = arith.constant 0 : i32
    return %arg0, %c0_i32, %c0_i32_0 : i32, i32, i32
  }
  func.func @transform_5(%arg0: i32) -> (i32, i32) {
    %c0_i32 = arith.constant 0 : i32
    %c0_i32_0 = arith.constant 0 : i32
    %c0_i32_1 = arith.constant 0 : i32
    return %c0_i32, %c0_i32_0 : i32, i32
  }
  func.func @transform_6(%arg0: i32) -> (i32, i32, i32) {
    %c0_i32 = arith.constant 0 : i32
    %c0_i32_0 = arith.constant 0 : i32
    %c0_i32_1 = arith.constant 0 : i32
    return %arg0, %c0_i32, %c0_i32_0 : i32, i32, i32
  }
}

module attributes {stable_mosaic.version = 11 : i64} {
  func.func @_route_combine_kernel(%arg0: i32, %arg1: memref<1x4x686xf32, #tpu.memory_space<vmem>>, %arg2: memref<1x4x686xf32, #tpu.memory_space<vmem>>, %arg3: memref<1x1x36xbf16, #tpu.memory_space<vmem>>, %arg4: memref<1x1x1xf32, #tpu.memory_space<vmem>>, %arg5: memref<1x1x36xbf16, #tpu.memory_space<vmem>>, %arg6: memref<1x1x1xf32, #tpu.memory_space<vmem>>, %arg7: memref<1x4x648xf32, #tpu.memory_space<vmem>>) attributes {dimension_semantics = [#tpu.dimension_semantics<parallel>], iteration_bounds = array<i64: 4>, scalar_prefetch = 0 : i64, scratch_operands = 0 : i64, tpu.core_type = #tpu.core_type<tc>, window_params = [{transform_indices = @transform_0, window_bounds = array<i64: 1, 4, 686>}, {transform_indices = @transform_1, window_bounds = array<i64: 1, 4, 686>}, {transform_indices = @transform_2, window_bounds = array<i64: 1, 1, 36>}, {transform_indices = @transform_3, window_bounds = array<i64: 1, 1, 1>}, {transform_indices = @transform_4, window_bounds = array<i64: 1, 1, 36>}, {transform_indices = @transform_5, window_bounds = array<i64: 1, 1, 1>}, {transform_indices = @transform_6, window_bounds = array<i64: 1, 4, 648>}]} {
    %c0 = arith.constant 0 : index
    %c0_0 = arith.constant 0 : index
    %c0_1 = arith.constant 0 : index
    %0 = vector.load %arg1[%c0, %c0_0, %c0_1] : memref<1x4x686xf32, #tpu.memory_space<vmem>>, vector<1x4x686xf32>
    %1 = vector.shape_cast %0 : vector<1x4x686xf32> to vector<4x686xf32>
    %c0_2 = arith.constant 0 : index
    %c0_3 = arith.constant 0 : index
    %c0_4 = arith.constant 0 : index
    %2 = vector.load %arg2[%c0_2, %c0_3, %c0_4] : memref<1x4x686xf32, #tpu.memory_space<vmem>>, vector<1x4x686xf32>
    %3 = vector.shape_cast %2 : vector<1x4x686xf32> to vector<4x686xf32>
    %4 = arith.truncf %1 : vector<4x686xf32> to vector<4x686xbf16>
    %5 = arith.truncf %3 : vector<4x686xf32> to vector<4x686xbf16>
    %6 = vector.extract_strided_slice %4 {offsets = [0, 0], sizes = [4, 648], strides = [1, 1]} : vector<4x686xbf16> to vector<4x648xbf16>
    %7 = vector.extract_strided_slice %4 {offsets = [0, 1], sizes = [4, 648], strides = [1, 1]} : vector<4x686xbf16> to vector<4x648xbf16>
    %8 = vector.extract_strided_slice %4 {offsets = [0, 2], sizes = [4, 648], strides = [1, 1]} : vector<4x686xbf16> to vector<4x648xbf16>
    %9 = vector.extract_strided_slice %4 {offsets = [0, 18], sizes = [4, 648], strides = [1, 1]} : vector<4x686xbf16> to vector<4x648xbf16>
    %10 = vector.extract_strided_slice %4 {offsets = [0, 19], sizes = [4, 648], strides = [1, 1]} : vector<4x686xbf16> to vector<4x648xbf16>
    %11 = vector.extract_strided_slice %4 {offsets = [0, 20], sizes = [4, 648], strides = [1, 1]} : vector<4x686xbf16> to vector<4x648xbf16>
    %12 = vector.extract_strided_slice %4 {offsets = [0, 36], sizes = [4, 648], strides = [1, 1]} : vector<4x686xbf16> to vector<4x648xbf16>
    %13 = vector.extract_strided_slice %4 {offsets = [0, 37], sizes = [4, 648], strides = [1, 1]} : vector<4x686xbf16> to vector<4x648xbf16>
    %14 = vector.extract_strided_slice %4 {offsets = [0, 38], sizes = [4, 648], strides = [1, 1]} : vector<4x686xbf16> to vector<4x648xbf16>
    %15 = tpu.concatenate %6, %7, %8, %9, %10, %11, %12, %13, %14 in 0 : vector<4x648xbf16>, vector<4x648xbf16>, vector<4x648xbf16>, vector<4x648xbf16>, vector<4x648xbf16>, vector<4x648xbf16>, vector<4x648xbf16>, vector<4x648xbf16>, vector<4x648xbf16> -> vector<36x648xbf16>
    %16 = vector.extract_strided_slice %5 {offsets = [0, 0], sizes = [4, 648], strides = [1, 1]} : vector<4x686xbf16> to vector<4x648xbf16>
    %17 = vector.extract_strided_slice %5 {offsets = [0, 1], sizes = [4, 648], strides = [1, 1]} : vector<4x686xbf16> to vector<4x648xbf16>
    %18 = vector.extract_strided_slice %5 {offsets = [0, 2], sizes = [4, 648], strides = [1, 1]} : vector<4x686xbf16> to vector<4x648xbf16>
    %19 = vector.extract_strided_slice %5 {offsets = [0, 18], sizes = [4, 648], strides = [1, 1]} : vector<4x686xbf16> to vector<4x648xbf16>
    %20 = vector.extract_strided_slice %5 {offsets = [0, 19], sizes = [4, 648], strides = [1, 1]} : vector<4x686xbf16> to vector<4x648xbf16>
    %21 = vector.extract_strided_slice %5 {offsets = [0, 20], sizes = [4, 648], strides = [1, 1]} : vector<4x686xbf16> to vector<4x648xbf16>
    %22 = vector.extract_strided_slice %5 {offsets = [0, 36], sizes = [4, 648], strides = [1, 1]} : vector<4x686xbf16> to vector<4x648xbf16>
    %23 = vector.extract_strided_slice %5 {offsets = [0, 37], sizes = [4, 648], strides = [1, 1]} : vector<4x686xbf16> to vector<4x648xbf16>
    %24 = vector.extract_strided_slice %5 {offsets = [0, 38], sizes = [4, 648], strides = [1, 1]} : vector<4x686xbf16> to vector<4x648xbf16>
    %25 = tpu.concatenate %16, %17, %18, %19, %20, %21, %22, %23, %24 in 0 : vector<4x648xbf16>, vector<4x648xbf16>, vector<4x648xbf16>, vector<4x648xbf16>, vector<4x648xbf16>, vector<4x648xbf16>, vector<4x648xbf16>, vector<4x648xbf16>, vector<4x648xbf16> -> vector<36x648xbf16>
    %c0_5 = arith.constant 0 : index
    %c0_6 = arith.constant 0 : index
    %c0_7 = arith.constant 0 : index
    %26 = vector.load %arg3[%c0_5, %c0_6, %c0_7] : memref<1x1x36xbf16, #tpu.memory_space<vmem>>, vector<1x1x36xbf16>
    %27 = vector.shape_cast %26 : vector<1x1x36xbf16> to vector<1x36xbf16>
    %cst = arith.constant dense<0.000000e+00> : vector<1x648xf32>
    %28 = tpu.matmul %27, %15, %cst {dimension_numbers = #tpu.dot_dimension_numbers<[1], [0], [0], [1], [0, 0, 1, 1], [], []>} : vector<1x36xbf16>, vector<36x648xbf16>, vector<1x648xf32> -> vector<1x648xf32>
    %c0_8 = arith.constant 0 : index
    %c0_9 = arith.constant 0 : index
    %c0_10 = arith.constant 0 : index
    %29 = vector.load %arg4[%c0_8, %c0_9, %c0_10] : memref<1x1x1xf32, #tpu.memory_space<vmem>>, vector<1x1x1xf32>
    %30 = vector.shape_cast %29 : vector<1x1x1xf32> to vector<1x1xf32>
    %31 = vector.broadcast %30 : vector<1x1xf32> to vector<1x648xf32>
    %32 = arith.addf %28, %31 : vector<1x648xf32>
    %c0_11 = arith.constant 0 : index
    %c0_12 = arith.constant 0 : index
    %c0_13 = arith.constant 0 : index
    %33 = vector.load %arg5[%c0_11, %c0_12, %c0_13] : memref<1x1x36xbf16, #tpu.memory_space<vmem>>, vector<1x1x36xbf16>
    %34 = vector.shape_cast %33 : vector<1x1x36xbf16> to vector<1x36xbf16>
    %cst_14 = arith.constant dense<0.000000e+00> : vector<1x648xf32>
    %35 = tpu.matmul %34, %25, %cst_14 {dimension_numbers = #tpu.dot_dimension_numbers<[1], [0], [0], [1], [0, 0, 1, 1], [], []>} : vector<1x36xbf16>, vector<36x648xbf16>, vector<1x648xf32> -> vector<1x648xf32>
    %c0_15 = arith.constant 0 : index
    %c0_16 = arith.constant 0 : index
    %c0_17 = arith.constant 0 : index
    %36 = vector.load %arg6[%c0_15, %c0_16, %c0_17] : memref<1x1x1xf32, #tpu.memory_space<vmem>>, vector<1x1x1xf32>
    %37 = vector.shape_cast %36 : vector<1x1x1xf32> to vector<1x1xf32>
    %38 = vector.broadcast %37 : vector<1x1xf32> to vector<1x648xf32>
    %39 = arith.addf %35, %38 : vector<1x648xf32>
    %40 = vector.extract_strided_slice %1 {offsets = [0, 19], sizes = [4, 648], strides = [1, 1]} : vector<4x686xf32> to vector<4x648xf32>
    %41 = vector.extract_strided_slice %3 {offsets = [0, 19], sizes = [4, 648], strides = [1, 1]} : vector<4x686xf32> to vector<4x648xf32>
    %42 = vector.broadcast %32 : vector<1x648xf32> to vector<4x648xf32>
    %43 = arith.mulf %40, %42 : vector<4x648xf32>
    %44 = vector.broadcast %39 : vector<1x648xf32> to vector<4x648xf32>
    %45 = arith.mulf %41, %44 : vector<4x648xf32>
    %46 = arith.addf %43, %45 : vector<4x648xf32>
    %c0_18 = arith.constant 0 : index
    %c0_19 = arith.constant 0 : index
    %c0_20 = arith.constant 0 : index
    %47 = vector.load %arg7[%c0_18, %c0_19, %c0_20] : memref<1x4x648xf32, #tpu.memory_space<vmem>>, vector<1x4x648xf32>
    %48 = vector.shape_cast %47 : vector<1x4x648xf32> to vector<4x648xf32>
    %49 = vector.shape_cast %46 : vector<4x648xf32> to vector<1x4x648xf32>
    tpu.vector_store %arg7[%c0_18, %c0_19, %c0_20], %49 {strides = array<i32>} : memref<1x4x648xf32, #tpu.memory_space<vmem>>, vector<1x4x648xf32>,
    return
  }
  func.func @transform_0(%arg0: i32) -> (i32, i32, i32) {
    %c0_i32 = arith.constant 0 : i32
    %c0_i32_0 = arith.constant 0 : i32
    %c0_i32_1 = arith.constant 0 : i32
    return %arg0, %c0_i32, %c0_i32_0 : i32, i32, i32
  }
  func.func @transform_1(%arg0: i32) -> (i32, i32, i32) {
    %c0_i32 = arith.constant 0 : i32
    %c0_i32_0 = arith.constant 0 : i32
    %c0_i32_1 = arith.constant 0 : i32
    return %arg0, %c0_i32, %c0_i32_0 : i32, i32, i32
  }
  func.func @transform_2(%arg0: i32) -> (i32, i32, i32) {
    %c0_i32 = arith.constant 0 : i32
    %c0_i32_0 = arith.constant 0 : i32
    %c0_i32_1 = arith.constant 0 : i32
    return %arg0, %c0_i32, %c0_i32_0 : i32, i32, i32
  }
  func.func @transform_3(%arg0: i32) -> (i32, i32, i32) {
    %c0_i32 = arith.constant 0 : i32
    %c0_i32_0 = arith.constant 0 : i32
    %c0_i32_1 = arith.constant 0 : i32
    return %arg0, %c0_i32, %c0_i32_0 : i32, i32, i32
  }
  func.func @transform_4(%arg0: i32) -> (i32, i32, i32) {
    %c0_i32 = arith.constant 0 : i32
    %c0_i32_0 = arith.constant 0 : i32
    %c0_i32_1 = arith.constant 0 : i32
    return %arg0, %c0_i32, %c0_i32_0 : i32, i32, i32
  }
  func.func @transform_5(%arg0: i32) -> (i32, i32, i32) {
    %c0_i32 = arith.constant 0 : i32
    %c0_i32_0 = arith.constant 0 : i32
    %c0_i32_1 = arith.constant 0 : i32
    return %arg0, %c0_i32, %c0_i32_0 : i32, i32, i32
  }
  func.func @transform_6(%arg0: i32) -> (i32, i32, i32) {
    %c0_i32 = arith.constant 0 : i32
    %c0_i32_0 = arith.constant 0 : i32
    %c0_i32_1 = arith.constant 0 : i32
    return %arg0, %c0_i32, %c0_i32_0 : i32, i32, i32
  }
}

module attributes {stable_mosaic.version = 11 : i64} {
  func.func @_bn_relu_squash_kernel(%arg0: i32, %arg1: memref<1x4x512xf32, #tpu.memory_space<vmem>>, %arg2: memref<1x4x1xf32, #tpu.memory_space<vmem>>, %arg3: memref<1x4x1xf32, #tpu.memory_space<vmem>>, %arg4: memref<1x4x512xf32, #tpu.memory_space<vmem>>) attributes {dimension_semantics = [#tpu.dimension_semantics<parallel>], iteration_bounds = array<i64: 4>, scalar_prefetch = 0 : i64, scratch_operands = 0 : i64, tpu.core_type = #tpu.core_type<tc>, window_params = [{transform_indices = @transform_0, window_bounds = array<i64: 1, 4, 512>}, {transform_indices = @transform_1, window_bounds = array<i64: 1, 4, 1>}, {transform_indices = @transform_2, window_bounds = array<i64: 1, 4, 1>}, {transform_indices = @transform_3, window_bounds = array<i64: 1, 4, 512>}]} {
    %c0 = arith.constant 0 : index
    %c0_0 = arith.constant 0 : index
    %c0_1 = arith.constant 0 : index
    %0 = vector.load %arg1[%c0, %c0_0, %c0_1] : memref<1x4x512xf32, #tpu.memory_space<vmem>>, vector<1x4x512xf32>
    %1 = vector.shape_cast %0 : vector<1x4x512xf32> to vector<4x512xf32>
    %cst = arith.constant dense<0.000000e+00> : vector<4xf32>
    %2 = vector.multi_reduction <add>, %1, %cst [1] : vector<4x512xf32> to vector<4xf32>
    %3 = vector.shape_cast %2 : vector<4xf32> to vector<4x1xf32>
    %cst_2 = arith.constant 5.120000e+02 : f32
    %4 = vector.broadcast %cst_2 : f32 to vector<4x1xf32>
    %5 = arith.divf %3, %4 : vector<4x1xf32>
    %6 = vector.broadcast %5 : vector<4x1xf32> to vector<4x512xf32>
    %7 = arith.subf %1, %6 : vector<4x512xf32>
    %8 = arith.mulf %7, %7 : vector<4x512xf32>
    %cst_3 = arith.constant dense<0.000000e+00> : vector<4xf32>
    %9 = vector.multi_reduction <add>, %8, %cst_3 [1] : vector<4x512xf32> to vector<4xf32>
    %10 = vector.shape_cast %9 : vector<4xf32> to vector<4x1xf32>
    %cst_4 = arith.constant 5.120000e+02 : f32
    %11 = vector.broadcast %cst_4 : f32 to vector<4x1xf32>
    %12 = arith.divf %10, %11 : vector<4x1xf32>
    %13 = vector.broadcast %5 : vector<4x1xf32> to vector<4x512xf32>
    %14 = arith.subf %1, %13 : vector<4x512xf32>
    %cst_5 = arith.constant 9.99999974E-6 : f32
    %15 = vector.broadcast %cst_5 : f32 to vector<4x1xf32>
    %16 = arith.addf %12, %15 : vector<4x1xf32>
    %17 = math.rsqrt %16 : vector<4x1xf32>
    %18 = vector.broadcast %17 : vector<4x1xf32> to vector<4x512xf32>
    %19 = arith.mulf %14, %18 : vector<4x512xf32>
    %c0_6 = arith.constant 0 : index
    %c0_7 = arith.constant 0 : index
    %c0_8 = arith.constant 0 : index
    %20 = vector.load %arg2[%c0_6, %c0_7, %c0_8] : memref<1x4x1xf32, #tpu.memory_space<vmem>>, vector<1x4x1xf32>
    %21 = vector.shape_cast %20 : vector<1x4x1xf32> to vector<4x1xf32>
    %22 = vector.broadcast %21 : vector<4x1xf32> to vector<4x512xf32>
    %23 = arith.mulf %19, %22 : vector<4x512xf32>
    %c0_9 = arith.constant 0 : index
    %c0_10 = arith.constant 0 : index
    %c0_11 = arith.constant 0 : index
    %24 = vector.load %arg3[%c0_9, %c0_10, %c0_11] : memref<1x4x1xf32, #tpu.memory_space<vmem>>, vector<1x4x1xf32>
    %25 = vector.shape_cast %24 : vector<1x4x1xf32> to vector<4x1xf32>
    %26 = vector.broadcast %25 : vector<4x1xf32> to vector<4x512xf32>
    %27 = arith.addf %23, %26 : vector<4x512xf32>
    %cst_12 = arith.constant 0.000000e+00 : f32
    %28 = vector.broadcast %cst_12 : f32 to vector<4x512xf32>
    %29 = arith.maximumf %27, %28 : vector<4x512xf32>
    %30 = arith.mulf %29, %29 : vector<4x512xf32>
    %cst_13 = arith.constant dense<0.000000e+00> : vector<512xf32>
    %31 = vector.multi_reduction <add>, %30, %cst_13 [0] : vector<4x512xf32> to vector<512xf32>
    %32 = vector.shape_cast %31 : vector<512xf32> to vector<1x512xf32>
    %cst_14 = arith.constant 1.000000e-30 : f32
    %33 = vector.broadcast %cst_14 : f32 to vector<1x512xf32>
    %34 = arith.addf %32, %33 : vector<1x512xf32>
    %35 = math.rsqrt %34 : vector<1x512xf32>
    %36 = arith.mulf %32, %35 : vector<1x512xf32>
    %cst_15 = arith.constant 1.000000e+00 : f32
    %37 = vector.broadcast %cst_15 : f32 to vector<1x512xf32>
    %38 = arith.addf %37, %32 : vector<1x512xf32>
    %39 = tpu.reciprocal %38 : vector<1x512xf32> -> vector<1x512xf32>
    %40 = arith.mulf %36, %39 : vector<1x512xf32>
    %41 = vector.broadcast %40 : vector<1x512xf32> to vector<4x512xf32>
    %42 = arith.mulf %29, %41 : vector<4x512xf32>
    %c0_16 = arith.constant 0 : index
    %c0_17 = arith.constant 0 : index
    %c0_18 = arith.constant 0 : index
    %43 = vector.load %arg4[%c0_16, %c0_17, %c0_18] : memref<1x4x512xf32, #tpu.memory_space<vmem>>, vector<1x4x512xf32>
    %44 = vector.shape_cast %43 : vector<1x4x512xf32> to vector<4x512xf32>
    %45 = vector.shape_cast %42 : vector<4x512xf32> to vector<1x4x512xf32>
    tpu.vector_store %arg4[%c0_16, %c0_17, %c0_18], %45 {strides = array<i32>} : memref<1x4x512xf32, #tpu.memory_space<vmem>>, vector<1x4x512xf32>,
    return
  }
  func.func @transform_0(%arg0: i32) -> (i32, i32, i32) {
    %c0_i32 = arith.constant 0 : i32
    %c0_i32_0 = arith.constant 0 : i32
    %c0_i32_1 = arith.constant 0 : i32
    return %arg0, %c0_i32, %c0_i32_0 : i32, i32, i32
  }
  func.func @transform_1(%arg0: i32) -> (i32, i32, i32) {
    %c0_i32 = arith.constant 0 : i32
    %c0_i32_0 = arith.constant 0 : i32
    %c0_i32_1 = arith.constant 0 : i32
    return %arg0, %c0_i32, %c0_i32_0 : i32, i32, i32
  }
  func.func @transform_2(%arg0: i32) -> (i32, i32, i32) {
    %c0_i32 = arith.constant 0 : i32
    %c0_i32_0 = arith.constant 0 : i32
    %c0_i32_1 = arith.constant 0 : i32
    return %arg0, %c0_i32, %c0_i32_0 : i32, i32, i32
  }
  func.func @transform_3(%arg0: i32) -> (i32, i32, i32) {
    %c0_i32 = arith.constant 0 : i32
    %c0_i32_0 = arith.constant 0 : i32
    %c0_i32_1 = arith.constant 0 : i32
    return %arg0, %c0_i32, %c0_i32_0 : i32, i32, i32
  }
}

module attributes {stable_mosaic.version = 11 : i64} {
  func.func @_conv_bn_relu_squash_kernel(%arg0: i32, %arg1: memref<1x16x884xf32, #tpu.memory_space<vmem>>, %arg2: memref<1x4x400xbf16, #tpu.memory_space<vmem>>, %arg3: memref<1x4x1xf32, #tpu.memory_space<vmem>>, %arg4: memref<1x4x1xf32, #tpu.memory_space<vmem>>, %arg5: memref<1x4x1xf32, #tpu.memory_space<vmem>>, %arg6: memref<1x800xf32, #tpu.memory_space<vmem>>, %arg7: memref<1x4x800xf32, #tpu.memory_space<vmem>>) attributes {dimension_semantics = [#tpu.dimension_semantics<parallel>], iteration_bounds = array<i64: 4>, scalar_prefetch = 0 : i64, scratch_operands = 0 : i64, tpu.core_type = #tpu.core_type<tc>, window_params = [{pipeline_mode = #tpu.pipeline_mode<synchronous>, transform_indices = @transform_0, window_bounds = array<i64: 1, 16, 884>}, {transform_indices = @transform_1, window_bounds = array<i64: 1, 4, 400>}, {transform_indices = @transform_2, window_bounds = array<i64: 1, 4, 1>}, {transform_indices = @transform_3, window_bounds = array<i64: 1, 4, 1>}, {transform_indices = @transform_4, window_bounds = array<i64: 1, 4, 1>}, {pipeline_mode = #tpu.pipeline_mode<synchronous>, transform_indices = @transform_5, window_bounds = array<i64: 1, 800>}, {transform_indices = @transform_6, window_bounds = array<i64: 1, 4, 800>}]} {
    %c0 = arith.constant 0 : index
    %c0_0 = arith.constant 0 : index
    %c0_1 = arith.constant 0 : index
    %0 = vector.load %arg1[%c0, %c0_0, %c0_1] : memref<1x16x884xf32, #tpu.memory_space<vmem>>, vector<1x16x884xf32>
    %1 = vector.shape_cast %0 : vector<1x16x884xf32> to vector<16x884xf32>
    %2 = arith.truncf %1 : vector<16x884xf32> to vector<16x884xbf16>
    %3 = vector.extract_strided_slice %2 {offsets = [0, 0], sizes = [16, 800], strides = [1, 1]} : vector<16x884xbf16> to vector<16x800xbf16>
    %4 = vector.extract_strided_slice %2 {offsets = [0, 1], sizes = [16, 800], strides = [1, 1]} : vector<16x884xbf16> to vector<16x800xbf16>
    %5 = vector.extract_strided_slice %2 {offsets = [0, 2], sizes = [16, 800], strides = [1, 1]} : vector<16x884xbf16> to vector<16x800xbf16>
    %6 = vector.extract_strided_slice %2 {offsets = [0, 3], sizes = [16, 800], strides = [1, 1]} : vector<16x884xbf16> to vector<16x800xbf16>
    %7 = vector.extract_strided_slice %2 {offsets = [0, 4], sizes = [16, 800], strides = [1, 1]} : vector<16x884xbf16> to vector<16x800xbf16>
    %8 = vector.extract_strided_slice %2 {offsets = [0, 20], sizes = [16, 800], strides = [1, 1]} : vector<16x884xbf16> to vector<16x800xbf16>
    %9 = vector.extract_strided_slice %2 {offsets = [0, 21], sizes = [16, 800], strides = [1, 1]} : vector<16x884xbf16> to vector<16x800xbf16>
    %10 = vector.extract_strided_slice %2 {offsets = [0, 22], sizes = [16, 800], strides = [1, 1]} : vector<16x884xbf16> to vector<16x800xbf16>
    %11 = vector.extract_strided_slice %2 {offsets = [0, 23], sizes = [16, 800], strides = [1, 1]} : vector<16x884xbf16> to vector<16x800xbf16>
    %12 = vector.extract_strided_slice %2 {offsets = [0, 24], sizes = [16, 800], strides = [1, 1]} : vector<16x884xbf16> to vector<16x800xbf16>
    %13 = vector.extract_strided_slice %2 {offsets = [0, 40], sizes = [16, 800], strides = [1, 1]} : vector<16x884xbf16> to vector<16x800xbf16>
    %14 = vector.extract_strided_slice %2 {offsets = [0, 41], sizes = [16, 800], strides = [1, 1]} : vector<16x884xbf16> to vector<16x800xbf16>
    %15 = vector.extract_strided_slice %2 {offsets = [0, 42], sizes = [16, 800], strides = [1, 1]} : vector<16x884xbf16> to vector<16x800xbf16>
    %16 = vector.extract_strided_slice %2 {offsets = [0, 43], sizes = [16, 800], strides = [1, 1]} : vector<16x884xbf16> to vector<16x800xbf16>
    %17 = vector.extract_strided_slice %2 {offsets = [0, 44], sizes = [16, 800], strides = [1, 1]} : vector<16x884xbf16> to vector<16x800xbf16>
    %18 = vector.extract_strided_slice %2 {offsets = [0, 60], sizes = [16, 800], strides = [1, 1]} : vector<16x884xbf16> to vector<16x800xbf16>
    %19 = vector.extract_strided_slice %2 {offsets = [0, 61], sizes = [16, 800], strides = [1, 1]} : vector<16x884xbf16> to vector<16x800xbf16>
    %20 = vector.extract_strided_slice %2 {offsets = [0, 62], sizes = [16, 800], strides = [1, 1]} : vector<16x884xbf16> to vector<16x800xbf16>
    %21 = vector.extract_strided_slice %2 {offsets = [0, 63], sizes = [16, 800], strides = [1, 1]} : vector<16x884xbf16> to vector<16x800xbf16>
    %22 = vector.extract_strided_slice %2 {offsets = [0, 64], sizes = [16, 800], strides = [1, 1]} : vector<16x884xbf16> to vector<16x800xbf16>
    %23 = vector.extract_strided_slice %2 {offsets = [0, 80], sizes = [16, 800], strides = [1, 1]} : vector<16x884xbf16> to vector<16x800xbf16>
    %24 = vector.extract_strided_slice %2 {offsets = [0, 81], sizes = [16, 800], strides = [1, 1]} : vector<16x884xbf16> to vector<16x800xbf16>
    %25 = vector.extract_strided_slice %2 {offsets = [0, 82], sizes = [16, 800], strides = [1, 1]} : vector<16x884xbf16> to vector<16x800xbf16>
    %26 = vector.extract_strided_slice %2 {offsets = [0, 83], sizes = [16, 800], strides = [1, 1]} : vector<16x884xbf16> to vector<16x800xbf16>
    %27 = vector.extract_strided_slice %2 {offsets = [0, 84], sizes = [16, 800], strides = [1, 1]} : vector<16x884xbf16> to vector<16x800xbf16>
    %28 = tpu.concatenate %3, %4, %5, %6, %7, %8, %9, %10, %11, %12, %13, %14, %15, %16, %17, %18 in 0 : vector<16x800xbf16>, vector<16x800xbf16>, vector<16x800xbf16>, vector<16x800xbf16>, vector<16x800xbf16>, vector<16x800xbf16>, vector<16x800xbf16>, vector<16x800xbf16>, vector<16x800xbf16>, vector<16x800xbf16>, vector<16x800xbf16>, vector<16x800xbf16>, vector<16x800xbf16>, vector<16x800xbf16>, vector<16x800xbf16>, vector<16x800xbf16> -> vector<256x800xbf16>
    %29 = tpu.concatenate %19, %20, %21, %22, %23, %24, %25, %26, %27 in 0 : vector<16x800xbf16>, vector<16x800xbf16>, vector<16x800xbf16>, vector<16x800xbf16>, vector<16x800xbf16>, vector<16x800xbf16>, vector<16x800xbf16>, vector<16x800xbf16>, vector<16x800xbf16> -> vector<144x800xbf16>
    %30 = tpu.concatenate %28, %29 in 0 : vector<256x800xbf16>, vector<144x800xbf16> -> vector<400x800xbf16>
    %c0_2 = arith.constant 0 : index
    %c0_3 = arith.constant 0 : index
    %c0_4 = arith.constant 0 : index
    %31 = vector.load %arg2[%c0_2, %c0_3, %c0_4] : memref<1x4x400xbf16, #tpu.memory_space<vmem>>, vector<1x4x400xbf16>
    %32 = vector.shape_cast %31 : vector<1x4x400xbf16> to vector<4x400xbf16>
    %cst = arith.constant dense<0.000000e+00> : vector<4x800xf32>
    %33 = tpu.matmul %32, %30, %cst {dimension_numbers = #tpu.dot_dimension_numbers<[1], [0], [0], [1], [0, 0, 1, 1], [], []>} : vector<4x400xbf16>, vector<400x800xbf16>, vector<4x800xf32> -> vector<4x800xf32>
    %c0_5 = arith.constant 0 : index
    %c0_6 = arith.constant 0 : index
    %c0_7 = arith.constant 0 : index
    %34 = vector.load %arg3[%c0_5, %c0_6, %c0_7] : memref<1x4x1xf32, #tpu.memory_space<vmem>>, vector<1x4x1xf32>
    %35 = vector.shape_cast %34 : vector<1x4x1xf32> to vector<4x1xf32>
    %36 = vector.broadcast %35 : vector<4x1xf32> to vector<4x800xf32>
    %37 = arith.addf %33, %36 : vector<4x800xf32>
    %c0_8 = arith.constant 0 : index
    %c0_9 = arith.constant 0 : index
    %38 = vector.load %arg6[%c0_8, %c0_9] : memref<1x800xf32, #tpu.memory_space<vmem>>, vector<1x800xf32>
    %39 = vector.broadcast %38 : vector<1x800xf32> to vector<4x800xf32>
    %40 = arith.mulf %37, %39 : vector<4x800xf32>
    %cst_10 = arith.constant dense<0.000000e+00> : vector<4xf32>
    %41 = vector.multi_reduction <add>, %40, %cst_10 [1] : vector<4x800xf32> to vector<4xf32>
    %42 = vector.shape_cast %41 : vector<4xf32> to vector<4x1xf32>
    %cst_11 = arith.constant 0.001953125 : f32
    %43 = vector.broadcast %cst_11 : f32 to vector<4x1xf32>
    %44 = arith.mulf %42, %43 : vector<4x1xf32>
    %45 = vector.broadcast %44 : vector<4x1xf32> to vector<4x800xf32>
    %46 = arith.subf %37, %45 : vector<4x800xf32>
    %47 = vector.broadcast %38 : vector<1x800xf32> to vector<4x800xf32>
    %48 = arith.mulf %46, %47 : vector<4x800xf32>
    %49 = arith.mulf %48, %48 : vector<4x800xf32>
    %cst_12 = arith.constant dense<0.000000e+00> : vector<4xf32>
    %50 = vector.multi_reduction <add>, %49, %cst_12 [1] : vector<4x800xf32> to vector<4xf32>
    %51 = vector.shape_cast %50 : vector<4xf32> to vector<4x1xf32>
    %cst_13 = arith.constant 0.001953125 : f32
    %52 = vector.broadcast %cst_13 : f32 to vector<4x1xf32>
    %53 = arith.mulf %51, %52 : vector<4x1xf32>
    %54 = vector.broadcast %44 : vector<4x1xf32> to vector<4x800xf32>
    %55 = arith.subf %37, %54 : vector<4x800xf32>
    %cst_14 = arith.constant 9.99999974E-6 : f32
    %56 = vector.broadcast %cst_14 : f32 to vector<4x1xf32>
    %57 = arith.addf %53, %56 : vector<4x1xf32>
    %58 = math.rsqrt %57 : vector<4x1xf32>
    %59 = vector.broadcast %58 : vector<4x1xf32> to vector<4x800xf32>
    %60 = arith.mulf %55, %59 : vector<4x800xf32>
    %c0_15 = arith.constant 0 : index
    %c0_16 = arith.constant 0 : index
    %c0_17 = arith.constant 0 : index
    %61 = vector.load %arg4[%c0_15, %c0_16, %c0_17] : memref<1x4x1xf32, #tpu.memory_space<vmem>>, vector<1x4x1xf32>
    %62 = vector.shape_cast %61 : vector<1x4x1xf32> to vector<4x1xf32>
    %63 = vector.broadcast %62 : vector<4x1xf32> to vector<4x800xf32>
    %64 = arith.mulf %60, %63 : vector<4x800xf32>
    %c0_18 = arith.constant 0 : index
    %c0_19 = arith.constant 0 : index
    %c0_20 = arith.constant 0 : index
    %65 = vector.load %arg5[%c0_18, %c0_19, %c0_20] : memref<1x4x1xf32, #tpu.memory_space<vmem>>, vector<1x4x1xf32>
    %66 = vector.shape_cast %65 : vector<1x4x1xf32> to vector<4x1xf32>
    %67 = vector.broadcast %66 : vector<4x1xf32> to vector<4x800xf32>
    %68 = arith.addf %64, %67 : vector<4x800xf32>
    %cst_21 = arith.constant 0.000000e+00 : f32
    %69 = vector.broadcast %cst_21 : f32 to vector<4x800xf32>
    %70 = arith.maximumf %68, %69 : vector<4x800xf32>
    %71 = arith.mulf %70, %70 : vector<4x800xf32>
    %cst_22 = arith.constant dense<0.000000e+00> : vector<800xf32>
    %72 = vector.multi_reduction <add>, %71, %cst_22 [0] : vector<4x800xf32> to vector<800xf32>
    %73 = vector.shape_cast %72 : vector<800xf32> to vector<1x800xf32>
    %cst_23 = arith.constant 1.000000e-30 : f32
    %74 = vector.broadcast %cst_23 : f32 to vector<1x800xf32>
    %75 = arith.addf %73, %74 : vector<1x800xf32>
    %76 = math.rsqrt %75 : vector<1x800xf32>
    %77 = arith.mulf %73, %76 : vector<1x800xf32>
    %cst_24 = arith.constant 1.000000e+00 : f32
    %78 = vector.broadcast %cst_24 : f32 to vector<1x800xf32>
    %79 = arith.addf %78, %73 : vector<1x800xf32>
    %80 = tpu.reciprocal %79 : vector<1x800xf32> -> vector<1x800xf32>
    %81 = arith.mulf %77, %80 : vector<1x800xf32>
    %82 = vector.broadcast %81 : vector<1x800xf32> to vector<4x800xf32>
    %83 = arith.mulf %70, %82 : vector<4x800xf32>
    %c0_25 = arith.constant 0 : index
    %c0_26 = arith.constant 0 : index
    %c0_27 = arith.constant 0 : index
    %84 = vector.load %arg7[%c0_25, %c0_26, %c0_27] : memref<1x4x800xf32, #tpu.memory_space<vmem>>, vector<1x4x800xf32>
    %85 = vector.shape_cast %84 : vector<1x4x800xf32> to vector<4x800xf32>
    %86 = vector.shape_cast %83 : vector<4x800xf32> to vector<1x4x800xf32>
    tpu.vector_store %arg7[%c0_25, %c0_26, %c0_27], %86 {strides = array<i32>} : memref<1x4x800xf32, #tpu.memory_space<vmem>>, vector<1x4x800xf32>,
    return
  }
  func.func @transform_0(%arg0: i32) -> (i32, i32, i32) {
    %c0_i32 = arith.constant 0 : i32
    %c0_i32_0 = arith.constant 0 : i32
    %c0_i32_1 = arith.constant 0 : i32
    %c0_i32_2 = arith.constant 0 : i32
    return %c0_i32, %c0_i32_0, %c0_i32_1 : i32, i32, i32
  }
  func.func @transform_1(%arg0: i32) -> (i32, i32, i32) {
    %c0_i32 = arith.constant 0 : i32
    %c0_i32_0 = arith.constant 0 : i32
    %c0_i32_1 = arith.constant 0 : i32
    return %arg0, %c0_i32, %c0_i32_0 : i32, i32, i32
  }
  func.func @transform_2(%arg0: i32) -> (i32, i32, i32) {
    %c0_i32 = arith.constant 0 : i32
    %c0_i32_0 = arith.constant 0 : i32
    %c0_i32_1 = arith.constant 0 : i32
    return %arg0, %c0_i32, %c0_i32_0 : i32, i32, i32
  }
  func.func @transform_3(%arg0: i32) -> (i32, i32, i32) {
    %c0_i32 = arith.constant 0 : i32
    %c0_i32_0 = arith.constant 0 : i32
    %c0_i32_1 = arith.constant 0 : i32
    return %arg0, %c0_i32, %c0_i32_0 : i32, i32, i32
  }
  func.func @transform_4(%arg0: i32) -> (i32, i32, i32) {
    %c0_i32 = arith.constant 0 : i32
    %c0_i32_0 = arith.constant 0 : i32
    %c0_i32_1 = arith.constant 0 : i32
    return %arg0, %c0_i32, %c0_i32_0 : i32, i32, i32
  }
  func.func @transform_5(%arg0: i32) -> (i32, i32) {
    %c0_i32 = arith.constant 0 : i32
    %c0_i32_0 = arith.constant 0 : i32
    %c0_i32_1 = arith.constant 0 : i32
    return %c0_i32, %c0_i32_0 : i32, i32
  }
  func.func @transform_6(%arg0: i32) -> (i32, i32, i32) {
    %c0_i32 = arith.constant 0 : i32
    %c0_i32_0 = arith.constant 0 : i32
    %c0_i32_1 = arith.constant 0 : i32
    return %arg0, %c0_i32, %c0_i32_0 : i32, i32, i32
  }
}

module attributes {stable_mosaic.version = 11 : i64} {
  func.func @_conv_bn_relu_squash_kernel(%arg0: i32, %arg1: memref<1x4x512xf32, #tpu.memory_space<vmem>>, %arg2: memref<1x4x4xbf16, #tpu.memory_space<vmem>>, %arg3: memref<1x4x1xf32, #tpu.memory_space<vmem>>, %arg4: memref<1x4x1xf32, #tpu.memory_space<vmem>>, %arg5: memref<1x4x1xf32, #tpu.memory_space<vmem>>, %arg6: memref<1x512xf32, #tpu.memory_space<vmem>>, %arg7: memref<1x4x512xf32, #tpu.memory_space<vmem>>) attributes {dimension_semantics = [#tpu.dimension_semantics<parallel>], iteration_bounds = array<i64: 4>, scalar_prefetch = 0 : i64, scratch_operands = 0 : i64, tpu.core_type = #tpu.core_type<tc>, window_params = [{transform_indices = @transform_0, window_bounds = array<i64: 1, 4, 512>}, {transform_indices = @transform_1, window_bounds = array<i64: 1, 4, 4>}, {transform_indices = @transform_2, window_bounds = array<i64: 1, 4, 1>}, {transform_indices = @transform_3, window_bounds = array<i64: 1, 4, 1>}, {transform_indices = @transform_4, window_bounds = array<i64: 1, 4, 1>}, {pipeline_mode = #tpu.pipeline_mode<synchronous>, transform_indices = @transform_5, window_bounds = array<i64: 1, 512>}, {transform_indices = @transform_6, window_bounds = array<i64: 1, 4, 512>}]} {
    %c0 = arith.constant 0 : index
    %c0_0 = arith.constant 0 : index
    %c0_1 = arith.constant 0 : index
    %0 = vector.load %arg1[%c0, %c0_0, %c0_1] : memref<1x4x512xf32, #tpu.memory_space<vmem>>, vector<1x4x512xf32>
    %1 = vector.shape_cast %0 : vector<1x4x512xf32> to vector<4x512xf32>
    %2 = arith.truncf %1 : vector<4x512xf32> to vector<4x512xbf16>
    %c0_2 = arith.constant 0 : index
    %c0_3 = arith.constant 0 : index
    %c0_4 = arith.constant 0 : index
    %3 = vector.load %arg2[%c0_2, %c0_3, %c0_4] : memref<1x4x4xbf16, #tpu.memory_space<vmem>>, vector<1x4x4xbf16>
    %4 = vector.shape_cast %3 : vector<1x4x4xbf16> to vector<4x4xbf16>
    %cst = arith.constant dense<0.000000e+00> : vector<4x512xf32>
    %5 = tpu.matmul %4, %2, %cst {dimension_numbers = #tpu.dot_dimension_numbers<[1], [0], [0], [1], [0, 0, 1, 1], [], []>} : vector<4x4xbf16>, vector<4x512xbf16>, vector<4x512xf32> -> vector<4x512xf32>
    %c0_5 = arith.constant 0 : index
    %c0_6 = arith.constant 0 : index
    %c0_7 = arith.constant 0 : index
    %6 = vector.load %arg3[%c0_5, %c0_6, %c0_7] : memref<1x4x1xf32, #tpu.memory_space<vmem>>, vector<1x4x1xf32>
    %7 = vector.shape_cast %6 : vector<1x4x1xf32> to vector<4x1xf32>
    %8 = vector.broadcast %7 : vector<4x1xf32> to vector<4x512xf32>
    %9 = arith.addf %5, %8 : vector<4x512xf32>
    %c0_8 = arith.constant 0 : index
    %c0_9 = arith.constant 0 : index
    %10 = vector.load %arg6[%c0_8, %c0_9] : memref<1x512xf32, #tpu.memory_space<vmem>>, vector<1x512xf32>
    %11 = vector.broadcast %10 : vector<1x512xf32> to vector<4x512xf32>
    %12 = arith.mulf %9, %11 : vector<4x512xf32>
    %cst_10 = arith.constant dense<0.000000e+00> : vector<4xf32>
    %13 = vector.multi_reduction <add>, %12, %cst_10 [1] : vector<4x512xf32> to vector<4xf32>
    %14 = vector.shape_cast %13 : vector<4xf32> to vector<4x1xf32>
    %cst_11 = arith.constant 0.001953125 : f32
    %15 = vector.broadcast %cst_11 : f32 to vector<4x1xf32>
    %16 = arith.mulf %14, %15 : vector<4x1xf32>
    %17 = vector.broadcast %16 : vector<4x1xf32> to vector<4x512xf32>
    %18 = arith.subf %9, %17 : vector<4x512xf32>
    %19 = vector.broadcast %10 : vector<1x512xf32> to vector<4x512xf32>
    %20 = arith.mulf %18, %19 : vector<4x512xf32>
    %21 = arith.mulf %20, %20 : vector<4x512xf32>
    %cst_12 = arith.constant dense<0.000000e+00> : vector<4xf32>
    %22 = vector.multi_reduction <add>, %21, %cst_12 [1] : vector<4x512xf32> to vector<4xf32>
    %23 = vector.shape_cast %22 : vector<4xf32> to vector<4x1xf32>
    %cst_13 = arith.constant 0.001953125 : f32
    %24 = vector.broadcast %cst_13 : f32 to vector<4x1xf32>
    %25 = arith.mulf %23, %24 : vector<4x1xf32>
    %26 = vector.broadcast %16 : vector<4x1xf32> to vector<4x512xf32>
    %27 = arith.subf %9, %26 : vector<4x512xf32>
    %cst_14 = arith.constant 9.99999974E-6 : f32
    %28 = vector.broadcast %cst_14 : f32 to vector<4x1xf32>
    %29 = arith.addf %25, %28 : vector<4x1xf32>
    %30 = math.rsqrt %29 : vector<4x1xf32>
    %31 = vector.broadcast %30 : vector<4x1xf32> to vector<4x512xf32>
    %32 = arith.mulf %27, %31 : vector<4x512xf32>
    %c0_15 = arith.constant 0 : index
    %c0_16 = arith.constant 0 : index
    %c0_17 = arith.constant 0 : index
    %33 = vector.load %arg4[%c0_15, %c0_16, %c0_17] : memref<1x4x1xf32, #tpu.memory_space<vmem>>, vector<1x4x1xf32>
    %34 = vector.shape_cast %33 : vector<1x4x1xf32> to vector<4x1xf32>
    %35 = vector.broadcast %34 : vector<4x1xf32> to vector<4x512xf32>
    %36 = arith.mulf %32, %35 : vector<4x512xf32>
    %c0_18 = arith.constant 0 : index
    %c0_19 = arith.constant 0 : index
    %c0_20 = arith.constant 0 : index
    %37 = vector.load %arg5[%c0_18, %c0_19, %c0_20] : memref<1x4x1xf32, #tpu.memory_space<vmem>>, vector<1x4x1xf32>
    %38 = vector.shape_cast %37 : vector<1x4x1xf32> to vector<4x1xf32>
    %39 = vector.broadcast %38 : vector<4x1xf32> to vector<4x512xf32>
    %40 = arith.addf %36, %39 : vector<4x512xf32>
    %cst_21 = arith.constant 0.000000e+00 : f32
    %41 = vector.broadcast %cst_21 : f32 to vector<4x512xf32>
    %42 = arith.maximumf %40, %41 : vector<4x512xf32>
    %43 = arith.mulf %42, %42 : vector<4x512xf32>
    %cst_22 = arith.constant dense<0.000000e+00> : vector<512xf32>
    %44 = vector.multi_reduction <add>, %43, %cst_22 [0] : vector<4x512xf32> to vector<512xf32>
    %45 = vector.shape_cast %44 : vector<512xf32> to vector<1x512xf32>
    %cst_23 = arith.constant 1.000000e-30 : f32
    %46 = vector.broadcast %cst_23 : f32 to vector<1x512xf32>
    %47 = arith.addf %45, %46 : vector<1x512xf32>
    %48 = math.rsqrt %47 : vector<1x512xf32>
    %49 = arith.mulf %45, %48 : vector<1x512xf32>
    %cst_24 = arith.constant 1.000000e+00 : f32
    %50 = vector.broadcast %cst_24 : f32 to vector<1x512xf32>
    %51 = arith.addf %50, %45 : vector<1x512xf32>
    %52 = tpu.reciprocal %51 : vector<1x512xf32> -> vector<1x512xf32>
    %53 = arith.mulf %49, %52 : vector<1x512xf32>
    %54 = vector.broadcast %53 : vector<1x512xf32> to vector<4x512xf32>
    %55 = arith.mulf %42, %54 : vector<4x512xf32>
    %c0_25 = arith.constant 0 : index
    %c0_26 = arith.constant 0 : index
    %c0_27 = arith.constant 0 : index
    %56 = vector.load %arg7[%c0_25, %c0_26, %c0_27] : memref<1x4x512xf32, #tpu.memory_space<vmem>>, vector<1x4x512xf32>
    %57 = vector.shape_cast %56 : vector<1x4x512xf32> to vector<4x512xf32>
    %58 = vector.shape_cast %55 : vector<4x512xf32> to vector<1x4x512xf32>
    tpu.vector_store %arg7[%c0_25, %c0_26, %c0_27], %58 {strides = array<i32>} : memref<1x4x512xf32, #tpu.memory_space<vmem>>, vector<1x4x512xf32>,
    return
  }
  func.func @transform_0(%arg0: i32) -> (i32, i32, i32) {
    %c0_i32 = arith.constant 0 : i32
    %c0_i32_0 = arith.constant 0 : i32
    %c0_i32_1 = arith.constant 0 : i32
    return %arg0, %c0_i32, %c0_i32_0 : i32, i32, i32
  }
  func.func @transform_1(%arg0: i32) -> (i32, i32, i32) {
    %c0_i32 = arith.constant 0 : i32
    %c0_i32_0 = arith.constant 0 : i32
    %c0_i32_1 = arith.constant 0 : i32
    return %arg0, %c0_i32, %c0_i32_0 : i32, i32, i32
  }
  func.func @transform_2(%arg0: i32) -> (i32, i32, i32) {
    %c0_i32 = arith.constant 0 : i32
    %c0_i32_0 = arith.constant 0 : i32
    %c0_i32_1 = arith.constant 0 : i32
    return %arg0, %c0_i32, %c0_i32_0 : i32, i32, i32
  }
  func.func @transform_3(%arg0: i32) -> (i32, i32, i32) {
    %c0_i32 = arith.constant 0 : i32
    %c0_i32_0 = arith.constant 0 : i32
    %c0_i32_1 = arith.constant 0 : i32
    return %arg0, %c0_i32, %c0_i32_0 : i32, i32, i32
  }
  func.func @transform_4(%arg0: i32) -> (i32, i32, i32) {
    %c0_i32 = arith.constant 0 : i32
    %c0_i32_0 = arith.constant 0 : i32
    %c0_i32_1 = arith.constant 0 : i32
    return %arg0, %c0_i32, %c0_i32_0 : i32, i32, i32
  }
  func.func @transform_5(%arg0: i32) -> (i32, i32) {
    %c0_i32 = arith.constant 0 : i32
    %c0_i32_0 = arith.constant 0 : i32
    %c0_i32_1 = arith.constant 0 : i32
    return %c0_i32, %c0_i32_0 : i32, i32
  }
  func.func @transform_6(%arg0: i32) -> (i32, i32, i32) {
    %c0_i32 = arith.constant 0 : i32
    %c0_i32_0 = arith.constant 0 : i32
    %c0_i32_1 = arith.constant 0 : i32
    return %arg0, %c0_i32, %c0_i32_0 : i32, i32, i32
  }
}

</mosaic_0001>

<bundles_post_ra>
// kernel: tile.22
= control target key start
LH: loop header
LB: loop body
LE: loop exit
PB: predicated region body
PF: predicated region fallthrough
CT: control target
= control target key end

     0   :  { %s58_s0 = inlined_call_operand.vmem [shape: f32[484], index: 0, kind: input, shape index: {}]   ;;  %s59_s1 = inlined_call_operand.vmem [shape: f32[2,484], index: 1, kind: output, shape index: {}]  }
   0x1   :  { %v4_v0 = vld [vmem:[%s58_s0] ss:$0 sm:$0xff]  ;;  %v18_v1 = vld [vmem:[%s58_s0 + $0x1] ss:$0 sm:$0xff]  ;;  %v20_v2 = vld [vmem:[%s58_s0 + $0x2] ss:$0 sm:$0xff] }
   0x2   :  { %5 = vst [vmem:[%s59_s1] sm:$0x3] %v4_v0  ;;  %19 = vst [vmem:[%s59_s1 + $0x2] sm:$0x3] %v18_v1  ;;  %v22_v3 = vld [vmem:[%s58_s0 + $0x3] ss:$0 sm:$0xff] }
   0x3   :  { %21 = vst [vmem:[%s59_s1 + $0x4] sm:$0x3] %v20_v2  ;;  %23 = vst [vmem:[%s59_s1 + $0x6] sm:$0x3] %v22_v3 }

// kernel: tile.23
= control target key start
LH: loop header
LB: loop body
LE: loop exit
PB: predicated region body
PF: predicated region fallthrough
CT: control target
= control target key end

     0   :  { %vm33_vm0 = vcmask 1043459   ;;  %vm35_vm1 = vcmask 228352   ;;  %vm22_vm2 = vcmask 818176   ;;  %vm39_vm3 = vcmask 588800   ;;  %s169_s0 = inlined_call_operand.vmem [shape: f32[2,484], index: 0, kind: input, shape index: {}]   ;;  %s170_s1 = inlined_call_operand.vmem [shape: f32[1,968], index: 1, kind: output, shape index: {}]  }
   0x1   :  { %v109_v0 = vld [vmem:[%s169_s0 + $0x6] sm:$0x3]  ;;  %v110_v1 = vld [vmem:[%s169_s0 + $0x4] sm:$0x3]  ;;  %v111_v2 = vld [vmem:[%s169_s0 + $0x2] sm:$0x3] }
   0x2   :  { %8 = vst [vmem:[#allocation1 + $0x18] sm:$0x3] %v109_v0  ;;  %13 = vst [vmem:[#allocation1 + $0x10] sm:$0x3] %v110_v1  ;;  %v18_v3 = vld [vmem:[%s169_s0] sm:$0x3] }
   0x3   :  { %17 = vst [vmem:[#allocation1 + $0x8] sm:$0x3] %v111_v2  ;;  %19 = vst [vmem:[#allocation1] sm:$0x3] %v18_v3  ;;  %s120_s0 = smov 100   ;;  %vm42_vm4 = vcmask 1048352  }
   0x9   :  { %v28_v4 = vld [vmem:[#allocation1 + $0x19] sm:$0x1]   ;;  %v21_v9 = vld [vmem:[#allocation1 + $0x18] sm:$0x1]  }
   0xa   :  { %v30_v5 = vld [vmem:[#allocation1 + $0x9] ss:$8 sm:$0x7]   ;;  %v32_v6 = vld [vmem:[#allocation1 - $0x2] sm:$0x8]  }
   0xb   :  { %v25_v7 = vld [vmem:[#allocation1] ss:$8 sm:$0x7]   ;;  %v34_v8 = vsel %vm33_vm0, %v32_v6, %v30_v5  ;;  %24 = vst.msk [vmem:[#allocation0 + $0x18] sm:$0x1] %vm22_vm2, %v21_v9  }
   0xc   :  { %26 = vst [vmem:[#allocation0] ss:$8 sm:$0x7] %v25_v7   ;;  %v36_v10 = vsel %vm35_vm1, %v34_v8, %v28_v4  ;;  %v48_v11 = vld [vmem:[#allocation1 + $0x1] ss:$8 sm:$0x7]  }
   0xd   :  { %37 = vrot.lane.b32.xlu0 %v36_v10, %s120_s0 }
  0x11   :  { %49 = vrot.lane.b32.xlu0 %v48_v11, %s120_s0 }
  0x13   :  { %v57_v12 = vld [vmem:[#allocation0] sm:$0x1]  ;;  %v61_v13 = vld [vmem:[#allocation0 + $0x8] sm:$0x1]  ;;  %v66_v14 = vld [vmem:[#allocation0 + $0x10] sm:$0x1] }
  0x14   :  { %59 = vst [vmem:[%s170_s1] sm:$0x1] %v57_v12  ;;  %112 = vst [vmem:[%s170_s1 + $0x1] sm:$0x1] %v61_v13 }
  0x15   :  { %113 = vst [vmem:[%s170_s1 + $0x2] sm:$0x1] %v66_v14 }
  0x7f   :  { %v38_v15 = vpop.permute.xlu0 %37  }
  0x80   :  { %41 = vst.msk [vmem:[#allocation0 + $0x38] sm:$0x1] %vm39_vm3, %v38_v15  }
  0x81   :  { %44 = vst.msk [vmem:[#allocation0 + $0x20] ss:$8 sm:$0x7] %vm42_vm4, %v38_v15   ;;  %46 = vst.msk [vmem:[#allocation0 + $0x15] sm:$0x8] %vm42_vm4, %v38_v15  }
  0x83   :  { %v50_v16 = vpop.permute.xlu0 %49  }
  0x84   :  { %53 = vst.msk [vmem:[#allocation0 + $0x20] ss:$8 sm:$0x7] %vm22_vm2, %v50_v16  }
  0x87   :  { %v96_v18 = vld [vmem:[#allocation0 + $0x38] sm:$0x1] }
  0x88   :  { %v72_v17 = vld [vmem:[#allocation0 + $0x18] sm:$0x1]  ;;  %118 = vst [vmem:[%s170_s1 + $0x7] sm:$0x1] %v96_v18 }
  0x89   :  { %114 = vst [vmem:[%s170_s1 + $0x3] sm:$0x1] %v72_v17 }
  0x8b   :  { %v78_v19 = vld [vmem:[#allocation0 + $0x20] sm:$0x1]  ;;  %v84_v20 = vld [vmem:[#allocation0 + $0x28] sm:$0x1]  ;;  %v90_v21 = vld [vmem:[#allocation0 + $0x30] sm:$0x1] }
  0x8c   :  { %115 = vst [vmem:[%s170_s1 + $0x4] sm:$0x1] %v78_v19  ;;  %116 = vst [vmem:[%s170_s1 + $0x5] sm:$0x1] %v84_v20 }
  0x8d   :  { %117 = vst [vmem:[%s170_s1 + $0x6] sm:$0x1] %v90_v21 }

// kernel: tile.18
= control target key start
LH: loop header
LB: loop body
LE: loop exit
PB: predicated region body
PF: predicated region fallthrough
CT: control target
= control target key end

     0   :  { %s46_s0 = inlined_call_operand.vmem [shape: f32[324], index: 0, kind: input, shape index: {}]   ;;  %s47_s1 = inlined_call_operand.vmem [shape: f32[2,324], index: 1, kind: output, shape index: {}]  }
   0x1   :  { %v4_v0 = vld [vmem:[%s46_s0] ss:$0 sm:$0xff]  ;;  %v14_v1 = vld [vmem:[%s46_s0 + $0x1] ss:$0 sm:$0xff]  ;;  %v16_v2 = vld [vmem:[%s46_s0 + $0x2] ss:$0 sm:$0xff] }
   0x2   :  { %5 = vst [vmem:[%s47_s1] sm:$0x3] %v4_v0  ;;  %15 = vst [vmem:[%s47_s1 + $0x2] sm:$0x3] %v14_v1 }
   0x3   :  { %17 = vst [vmem:[%s47_s1 + $0x4] sm:$0x3] %v16_v2 }

// kernel: tile.19
= control target key start
LH: loop header
LB: loop body
LE: loop exit
PB: predicated region body
PF: predicated region fallthrough
CT: control target
= control target key end

     0   :  { %vm30_vm0 = vcmask 1042434   ;;  %s20_s12 = smov 3  ;;  %vm32_vm1 = vcmask 490496   ;;  %vm17_vm2 = vcmask 556032   ;;  %s45_s13 = smov 3  ;;  %vm36_vm3 = vcmask 64512   ;;  %s140_s0 = inlined_call_operand.vmem [shape: f32[2,324], index: 0, kind: input, shape index: {}]   ;;  %s141_s1 = inlined_call_operand.vmem [shape: f32[1,648], index: 1, kind: output, shape index: {}]  }
   0x1   :  { %v92_v0 = vld [vmem:[%s140_s0 + $0x4] sm:$0x3]  ;;  %v93_v1 = vld [vmem:[%s140_s0 + $0x2] sm:$0x3]  ;;  %v13_v2 = vld [vmem:[%s140_s0] sm:$0x3] }
   0x2   :  { %8 = vst [vmem:[#allocation1 + $0x10] sm:$0x3] %v92_v0  ;;  %12 = vst [vmem:[#allocation1 + $0x8] sm:$0x3] %v93_v1  ;;  %s26_s0 = smov 3  ;;  %s100_s14 = smov 68  }
   0x3   :  { %14 = vst [vmem:[#allocation1] sm:$0x3] %v13_v2  ;;  %vm39_vm4 = vcmask 1048096  }
   0x9   :  { %v24_v3 = vld [vmem:[#allocation1 + $0x11] sm:$0x1]   ;;  %v29_v5 = vld [vmem:[#allocation1 + $0x7] sm:$0x4]   ;;  %v16_v8 = vld [vmem:[#allocation1 + $0x10] sm:$0x1]  }
   0xa   :  { %v27_v4 = vld [vmem:[#allocation1 + $0x11] ss:$-16 sm:%s26_s0]   ;;  %v21_v7 = vld [vmem:[#allocation1] ss:$8 sm:%s20_s12]   ;;  %19 = vst.msk [vmem:[#allocation0 + $0x10] sm:$0x1] %vm17_vm2, %v16_v8  }
   0xb   :  { %v31_v6 = vsel %vm30_vm0, %v29_v5, %v27_v4  ;;  %22 = vst [vmem:[#allocation0] ss:$8 sm:$0x3] %v21_v7   ;;  %v46_v10 = vld [vmem:[#allocation1 + $0x9] ss:$-8 sm:%s45_s13]  }
   0xc   :  { %v33_v9 = vsel %vm32_vm1, %v31_v6, %v24_v3 }
   0xd   :  { %34 = vrot.lane.b32.xlu0 %v33_v9, %s100_s14 }
  0x11   :  { %47 = vrot.lane.b32.xlu0 %v46_v10, %s100_s14 }
  0x12   :  { %v55_v11 = vld [vmem:[#allocation0] sm:$0x1]  ;;  %v59_v12 = vld [vmem:[#allocation0 + $0x8] sm:$0x1] }
  0x13   :  { %57 = vst [vmem:[%s141_s1] sm:$0x1] %v55_v11  ;;  %94 = vst [vmem:[%s141_s1 + $0x1] sm:$0x1] %v59_v12 }
  0x7f   :  { %v35_v13 = vpop.permute.xlu0 %34  }
  0x80   :  { %38 = vst.msk [vmem:[#allocation0 + $0x28] sm:$0x1] %vm36_vm3, %v35_v13  }
  0x81   :  { %41 = vst.msk [vmem:[#allocation0 + $0x20] ss:$-16 sm:$0x3] %vm39_vm4, %v35_v13   ;;  %43 = vst.msk [vmem:[#allocation0 + $0x16] sm:$0x4] %vm39_vm4, %v35_v13  }
  0x83   :  { %v48_v14 = vpop.permute.xlu0 %47  }
  0x84   :  { %51 = vst.msk [vmem:[#allocation0 + $0x20] ss:$-8 sm:$0x3] %vm17_vm2, %v48_v14  }
  0x87   :  { %v82_v16 = vld [vmem:[#allocation0 + $0x28] sm:$0x1] }
  0x88   :  { %v64_v15 = vld [vmem:[#allocation0 + $0x10] sm:$0x1]  ;;  %98 = vst [vmem:[%s141_s1 + $0x5] sm:$0x1] %v82_v16 }
  0x89   :  { %95 = vst [vmem:[%s141_s1 + $0x2] sm:$0x1] %v64_v15 }
  0x8b   :  { %v70_v17 = vld [vmem:[#allocation0 + $0x18] sm:$0x1]  ;;  %v76_v18 = vld [vmem:[#allocation0 + $0x20] sm:$0x1] }
  0x8c   :  { %96 = vst [vmem:[%s141_s1 + $0x3] sm:$0x1] %v70_v17  ;;  %97 = vst [vmem:[%s141_s1 + $0x4] sm:$0x1] %v76_v18 }

// kernel: cap_conv2_forward.9
= control target key start
LH: loop header
LB: loop body
LE: loop exit
PB: predicated region body
PF: predicated region fallthrough
CT: control target
= control target key end

     0   :  { %s2547_s21 = smov 0   ;;  %s4710_s0 = inlined_call_operand.vmem [shape: f32[1,4,1106], index: 0, kind: input, shape index: {}]   ;;  %s4711_s1 = inlined_call_operand.vmem [shape: bf16[4,4,196], index: 1, kind: input, shape index: {}]   ;;  %s4712_s2 = inlined_call_operand.vmem [shape: f32[4,4,1], index: 2, kind: input, shape index: {}]   ;;  %s4713_s3 = inlined_call_operand.vmem [shape: f32[4,4,1], index: 3, kind: input, shape index: {}]   ;;  %s4714_s4 = inlined_call_operand.vmem [shape: f32[4,4,1], index: 4, kind: input, shape index: {}]   ;;  %s4715_s5 = inlined_call_operand.vmem [shape: f32[1,968], index: 5, kind: input, shape index: {}]   ;;  %s4716_s6 = inlined_call_operand.vmem [shape: f32[4,4,968], index: 6, kind: output, shape index: {}]  }
   0x1 LB: > { %p2381_p0 = scmp.ge.s32.totalorder %s2483_s21, 1  ;;  %p239_p1 = scmp.lt.s32.totalorder %s2483_s21, 5  ;;  %s2483_s21 = sphi %s2547_s21, %s16_s21  }
   0x3   : > { %p240_p2 = pnand %p2381_p0, %p239_p1 }
   0x5   : > { %243 = sbr.rel (%p240_p2) target bundleno = 1288 (0x508), region = 44 }
   0xc   : > { %v305_v0 = vld [vmem:[%s4710_s0 + $0x8] sm:$0xff]  ;;  %v304_v1 = vld [vmem:[%s4710_s0] sm:$0xff]  ;;  %s2485_s27 = smov 127   ;;  %s2486_s28 = smov 126   ;;  %v306_v16 = vld [vmem:[%s4710_s0 + $0x10] sm:$0xff]  ;;  %vm4824_vm0 = vcmask 1039360  }
   0xd   : > { %v2561_v2 = vpack.c.bf16 %v305_v0, %v305_v0  ;;  %v2563_v3 = vpack.c.bf16 %v304_v1, %v304_v1  ;;  %v313_v4 = vcombine.high %v304_v1, %v304_v1  ;;  %v314_v5 = vcombine.high %v305_v0, %v305_v0  ;;  %s2487_s7 = smov 125   ;;  %s2488_s8 = smov 124  }
   0xe   : > { %v315_v19 = vcombine.high %v306_v16, %v306_v16  ;;  %v2630_v23 = vpack.c.bf16 %v306_v16, %v306_v16  ;;  %s2489_s9 = smov 108   ;;  %s2490_s10 = smov 107   ;;  %vm4821_vm1 = vcmask 1031168   ;;  %vm722_vm2 = vcmask 1041408  }
   0xf   : > { %4843 = vst [vmem:[#allocation2_spill] sm:$0xff] %v2561_v2  ;;  %v2566_v6 = vrot.slane %v2561_v2, 6  ;;  %v2569_v7 = vrot.slane %v2563_v3, 6  ;;  %v2571_v8 = vpack.c.bf16 %v313_v4, %v313_v4  ;;  %v2573_v9 = vpack.c.bf16 %v314_v5, %v314_v5  ;;  %s2491_s11 = smov 106   ;;  %s2492_s12 = smov 105  }
  0x10   : > { %v2590_v12 = vrot.slane %v2561_v2, 4  ;;  %v2600_v14 = vrot.slane %v2563_v3, 4  ;;  %v2613_v17 = vrot.slane %v2561_v2, 2  ;;  %v2623_v20 = vrot.slane %v2563_v3, 2  ;;  %4847 = vst [vmem:[#allocation6_spill] sm:$0xff] %v2630_v23  ;;  %s2493_s13 = smov 104  }
  0x11   : > { %4844 = vst [vmem:[#allocation3_spill] sm:$0xff] %v2571_v8  ;;  %4845 = vst [vmem:[#allocation4_spill] sm:$0xff] %v2573_v9  ;;  %350 = vrot.lane.b32.xlu0 %v2566_v6, %s2485_s27  ;;  %346 = vrot.lane.b32.xlu1 %v2569_v7, %s2485_s27  ;;  %v2580_v10 = vrot.slane %v2573_v9, 6  ;;  %v2583_v11 = vrot.slane %v2571_v8, 6  ;;  %v2593_v13 = vrot.slane %v2571_v8, 4  ;;  %v2603_v15 = vrot.slane %v2573_v9, 4 }
  0x12   : > { %v2616_v18 = vrot.slane %v2571_v8, 2  ;;  %v2626_v21 = vrot.slane %v2573_v9, 2  ;;  %v2628_v22 = vpack.c.bf16 %v315_v19, %v315_v19  ;;  %v2640_v25 = vrot.slane %v2630_v23, 6  ;;  %s2494_s14 = smov 103   ;;  %s2495_s15 = smov 102  }
  0x13   : > { %v2662_v27 = vrot.slane %v2630_v23, 4  ;;  %v2677_v28 = vrot.slane %v2630_v23, 2  ;;  %s2496_s16 = smov 86   ;;  %s2497_s17 = smov 85   ;;  %vm4787_vm3 = vcmask 1022976   ;;  %vm747_vm4 = vcmask 1043456  }
  0x14   : > { %4846 = vst [vmem:[#allocation5_spill] sm:$0xff] %v2628_v22  ;;  %v2637_v24 = vrot.slane %v2628_v22, 6  ;;  %v2659_v26 = vrot.slane %v2628_v22, 4  ;;  %v2684_v29 = vrot.slane %v2628_v22, 2  ;;  %vm764_vm5 = vcmask 1045504   ;;  %s2498_s18 = smov 84  }
  0x15   : > { %352 = vrot.lane.b32.xlu1 %v2580_v10, %s2485_s27  ;;  %348 = vrot.lane.b32.xlu0 %v2583_v11, %s2485_s27  ;;  %s2499_s19 = smov 83   ;;  %s2500_s20 = smov 110   ;;  %vm4798_vm6 = vcmask 883712   ;;  %vm4816_vm7 = vcmask 891904   ;;  %vm4796_vm8 = vcmask 875520   ;;  %vm4797_vm9 = vcmask 1014784  }
  0x16   : > { %4848 = vst [vmem:[#allocation7_spill] sm:$0xff] %v2637_v24  ;;  %4849 = vst [vmem:[#allocation8_spill] sm:$0xff] %v2659_v26  ;;  %s2501_s23 = smov 109   ;;  %s2502_s24 = smov 88   ;;  %vm4795_vm10 = vcmask 867328   ;;  %vm546_vm11 = vcmask 859136  }
  0x17   : > { %s2503_s25 = smov 87   ;;  %s2504_s26 = smov 123   ;;  %vm570_vm12 = vcmask 850944   ;;  %vm594_vm13 = vcmask 842752   ;;  %vm4794_vm14 = vcmask 1006592   ;;  %vm4793_vm15 = vcmask 998400  }
  0x18   : > { %s2505_s22 = smov 122   ;;  %s2506_s29 = smov 101  }
  0x19   : > { %382 = vrot.lane.b32.xlu1 %v2590_v12, %s2486_s28  ;;  %380 = vrot.lane.b32.xlu0 %v2593_v13, %s2486_s28  ;;  %s2507_s30 = smov 100  }
  0x1d   : > { %378 = vrot.lane.b32.xlu1 %v2600_v14, %s2486_s28  ;;  %384 = vrot.lane.b32.xlu0 %v2603_v15, %s2486_s28 }
  0x21   : > { %414 = vrot.lane.b32.xlu1 %v2613_v17, %s2487_s7  ;;  %412 = vrot.lane.b32.xlu0 %v2616_v18, %s2487_s7 }
  0x25   : > { %410 = vrot.lane.b32.xlu1 %v2623_v20, %s2487_s7  ;;  %416 = vrot.lane.b32.xlu0 %v2626_v21, %s2487_s7 }
  0x29   : > { %356 = vrot.lane.b32.xlu1 %v2637_v24, %s2485_s27  ;;  %354 = vrot.lane.b32.xlu0 %v2640_v25, %s2485_s27 }
  0x2d   : > { %438 = vrot.lane.b32.xlu1 %v2561_v2, %s2488_s8  ;;  %436 = vrot.lane.b32.xlu0 %v2571_v8, %s2488_s8 }
  0x31   : > { %985 = vrot.lane.b32.xlu1 %v2583_v11, %s2489_s9  ;;  %440 = vrot.lane.b32.xlu0 %v2573_v9, %s2488_s8 }
  0x35   : > { %989 = vrot.lane.b32.xlu1 %v2580_v10, %s2489_s9  ;;  %987 = vrot.lane.b32.xlu0 %v2566_v6, %s2489_s9 }
  0x39   : > { %388 = vrot.lane.b32.xlu1 %v2659_v26, %s2486_s28  ;;  %386 = vrot.lane.b32.xlu0 %v2662_v27, %s2486_s28 }
  0x3d   : > { %983 = vrot.lane.b32.xlu1 %v2569_v7, %s2489_s9  ;;  %434 = vrot.lane.b32.xlu0 %v2563_v3, %s2488_s8 }
  0x41   : > { %1015 = vrot.lane.b32.xlu1 %v2590_v12, %s2490_s10  ;;  %1013 = vrot.lane.b32.xlu0 %v2593_v13, %s2490_s10 }
  0x45   : > { %418 = vrot.lane.b32.xlu1 %v2677_v28, %s2487_s7  ;;  %1017 = vrot.lane.b32.xlu0 %v2603_v15, %s2490_s10 }
  0x49   : > { %508 = vrot.lane.b32.xlu1 %v2616_v18, %s2491_s11  ;;  %420 = vrot.lane.b32.xlu0 %v2684_v29, %s2487_s7 }
  0x4d   : > { %512 = vrot.lane.b32.xlu1 %v2626_v21, %s2491_s11  ;;  %510 = vrot.lane.b32.xlu0 %v2613_v17, %s2491_s11 }
  0x51   : > { %506 = vrot.lane.b32.xlu1 %v2623_v20, %s2491_s11  ;;  %1011 = vrot.lane.b32.xlu0 %v2600_v14, %s2490_s10 }
  0x55   : > { %444 = vrot.lane.b32.xlu1 %v2628_v22, %s2488_s8  ;;  %442 = vrot.lane.b32.xlu0 %v2630_v23, %s2488_s8 }
  0x59   : > { %534 = vrot.lane.b32.xlu1 %v2561_v2, %s2492_s12  ;;  %532 = vrot.lane.b32.xlu0 %v2571_v8, %s2492_s12 }
  0x5d   : > { %556 = vrot.lane.b32.xlu1 %v2583_v11, %s2493_s13  ;;  %536 = vrot.lane.b32.xlu0 %v2573_v9, %s2492_s12 }
  0x61   : > { %560 = vrot.lane.b32.xlu1 %v2580_v10, %s2493_s13  ;;  %558 = vrot.lane.b32.xlu0 %v2566_v6, %s2493_s13 }
  0x65   : > { %993 = vrot.lane.b32.xlu1 %v2637_v24, %s2489_s9  ;;  %991 = vrot.lane.b32.xlu0 %v2640_v25, %s2489_s9 }
  0x69   : > { %554 = vrot.lane.b32.xlu1 %v2569_v7, %s2493_s13  ;;  %530 = vrot.lane.b32.xlu0 %v2563_v3, %s2492_s12 }
  0x6d   : > { %582 = vrot.lane.b32.xlu1 %v2590_v12, %s2494_s14  ;;  %580 = vrot.lane.b32.xlu0 %v2593_v13, %s2494_s14 }
  0x71   : > { %1019 = vrot.lane.b32.xlu1 %v2662_v27, %s2490_s10  ;;  %584 = vrot.lane.b32.xlu0 %v2603_v15, %s2494_s14 }
  0x75   : > { %514 = vrot.lane.b32.xlu1 %v2677_v28, %s2491_s11  ;;  %1021 = vrot.lane.b32.xlu0 %v2659_v26, %s2490_s10 }
  0x79   : > { %578 = vrot.lane.b32.xlu1 %v2600_v14, %s2494_s14  ;;  %516 = vrot.lane.b32.xlu0 %v2684_v29, %s2491_s11 }
  0x7d   : > { %606 = vrot.lane.b32.xlu1 %v2613_v17, %s2495_s15  ;;  %604 = vrot.lane.b32.xlu0 %v2616_v18, %s2495_s15 }
  0x81   : > { %602 = vrot.lane.b32.xlu1 %v2623_v20, %s2495_s15  ;;  %608 = vrot.lane.b32.xlu0 %v2626_v21, %s2495_s15 }
  0x83   : > { %v2746_v30 = vpop.permute.xlu0 %350  ;;  %v347_v31 = vpop.permute.xlu1 %346 }
  0x85   : > { %540 = vrot.lane.b32.xlu1 %v2628_v22, %s2492_s12  ;;  %538 = vrot.lane.b32.xlu0 %v2630_v23, %s2492_s12 }
  0x87   : > { %v2752_v32 = vpop.permute.xlu1 %352  ;;  %v349_v33 = vpop.permute.xlu0 %348 }
  0x88   : > { %v364_v38 = vsel %vm4824_vm0, %v349_v33, %v2746_v30  ;;  %v363_v43 = vsel %vm4824_vm0, %v347_v31, %v349_v33  ;;  %v365_v19 = vsel %vm4824_vm0, %v2746_v30, %v2752_v32 }
  0x89   : > { %564 = vrot.lane.b32.xlu1 %v2637_v24, %s2493_s13  ;;  %562 = vrot.lane.b32.xlu0 %v2640_v25, %s2493_s13  ;;  %v728_v42 = vsel %vm722_vm2, %v2571_v8, %v364_v38  ;;  %v725_v50 = vsel %vm722_vm2, %v2563_v3, %v363_v43 }
  0x8b   : > { %v2758_v34 = vpop.permute.xlu1 %382  ;;  %v381_v35 = vpop.permute.xlu0 %380 }
  0x8c   : > { %v396_v39 = vsel %vm4821_vm1, %v381_v35, %v2758_v34 }
  0x8d   : > { %1058 = vrot.lane.b32.xlu1 %v2561_v2, %s2496_s16  ;;  %1056 = vrot.lane.b32.xlu0 %v2571_v8, %s2496_s16  ;;  %v2779_v45 = vsel %vm747_vm4, %v728_v42, %v396_v39 }
  0x8e   : > { %4850 = vst [vmem:[#allocation9_spill] sm:$0xff] %v2779_v45 }
  0x8f   : > { %v379_v36 = vpop.permute.xlu1 %378  ;;  %v2764_v37 = vpop.permute.xlu0 %384 }
  0x90   : > { %v395_v46 = vsel %vm4821_vm1, %v379_v36, %v381_v35  ;;  %v397_v33 = vsel %vm4821_vm1, %v2758_v34, %v2764_v37 }
  0x91   : > { %1083 = vrot.lane.b32.xlu1 %v2583_v11, %s2497_s17  ;;  %1060 = vrot.lane.b32.xlu0 %v2573_v9, %s2496_s16  ;;  %v2795_v52 = vsel %vm747_vm4, %v725_v50, %v395_v46 }
  0x92   : > { %4851 = vst [vmem:[#allocation10_spill] sm:$0xff] %v2795_v52 }
  0x93   : > { %v415_v40 = vpop.permute.xlu1 %414  ;;  %v413_v41 = vpop.permute.xlu0 %412 }
  0x94   : > { %v428_v44 = vsel %vm4787_vm3, %v413_v41, %v415_v40 }
  0x95   : > { %1087 = vrot.lane.b32.xlu1 %v2580_v10, %s2497_s17  ;;  %1085 = vrot.lane.b32.xlu0 %v2566_v6, %s2497_s17  ;;  %v2788_v47 = vsel %vm764_vm5, %v2779_v45, %v428_v44 }
  0x96   : > { %1823 = vmatprep.subr.bf16.mxu0 %v2788_v47 }
  0x97   : > { %v411_v48 = vpop.permute.xlu1 %410  ;;  %v417_v49 = vpop.permute.xlu0 %416 }
  0x98   : > { %v427_v51 = vsel %vm4787_vm3, %v411_v48, %v413_v41  ;;  %v731_v41 = vsel %vm722_vm2, %v2561_v2, %v365_v19 }
  0x99   : > { %588 = vrot.lane.b32.xlu1 %v2659_v26, %s2494_s14  ;;  %586 = vrot.lane.b32.xlu0 %v2662_v27, %s2494_s14  ;;  %v2803_v53 = vsel %vm764_vm5, %v2795_v52, %v427_v51 }
  0x9a   : > { %1824 = vmatpush1.bf16.msra.mxu0 %v2803_v53 }
  0x9b   : > { %v2806_v54 = vpop.permute.xlu1 %356  ;;  %v2808_v55 = vpop.permute.xlu0 %354 }
  0x9c   : > { %4852 = vst [vmem:[#allocation11_spill] sm:$0xff] %v2806_v54  ;;  %v366_v16 = vsel %vm4824_vm0, %v2752_v32, %v2808_v55  ;;  %v429_v32 = vsel %vm4787_vm3, %v415_v40, %v417_v49 }
  0x9d   : > { %678 = vrot.lane.b32.xlu1 %v2590_v12, %s2498_s18  ;;  %676 = vrot.lane.b32.xlu0 %v2593_v13, %s2498_s18  ;;  %v734_v30 = vsel %vm722_vm2, %v2573_v9, %v366_v16 }
  0x9f   : > { %v2814_v56 = vpop.permute.xlu1 %438  ;;  %v2816_v57 = vpop.permute.xlu0 %436 }
  0xa1   : > { %1054 = vrot.lane.b32.xlu1 %v2563_v3, %s2496_s16  ;;  %680 = vrot.lane.b32.xlu0 %v2603_v15, %s2498_s18 }
  0xa3   : > { %v2822_v58 = vpop.permute.xlu1 %985  ;;  %v2824_v59 = vpop.permute.xlu0 %440 }
  0xa5   : > { %610 = vrot.lane.b32.xlu1 %v2677_v28, %s2495_s15  ;;  %1081 = vrot.lane.b32.xlu0 %v2569_v7, %s2497_s17 }
  0xa7   : > { %v2830_v60 = vpop.permute.xlu1 %989  ;;  %v2832_v61 = vpop.permute.xlu0 %987 }
  0xa9   : > { %674 = vrot.lane.b32.xlu1 %v2600_v14, %s2498_s18  ;;  %612 = vrot.lane.b32.xlu0 %v2684_v29, %s2495_s15 }
  0xab   : > { %v2838_v62 = vpop.permute.xlu1 %388  ;;  %v2840_v63 = vpop.permute.xlu0 %386 }
  0xac   : > { %4853 = vst [vmem:[#allocation12_spill] sm:$0xff] %v2838_v62  ;;  %v398_v31 = vsel %vm4821_vm1, %v2764_v37, %v2840_v63  ;;  %v2897_v37 = vsel %vm747_vm4, %v731_v41, %v397_v33 }
  0xad   : > { %702 = vrot.lane.b32.xlu1 %v2613_v17, %s2499_s19  ;;  %700 = vrot.lane.b32.xlu0 %v2616_v18, %s2499_s19  ;;  %v2884_v39 = vsel %vm747_vm4, %v734_v30, %v398_v31  ;;  %4855 = vst [vmem:[#allocation14_spill] sm:$0xff] %v2897_v37  ;;  %v2902_v40 = vsel %vm764_vm5, %v2897_v37, %v429_v32 }
  0xae   : > { %4854 = vst [vmem:[#allocation13_spill] sm:$0xff] %v2884_v39 }
  0xaf   : > { %v2846_v0 = vpop.permute.xlu1 %983  ;;  %v2848_v1 = vpop.permute.xlu0 %434 }
  0xb1   : > { %698 = vrot.lane.b32.xlu1 %v2623_v20, %s2499_s19  ;;  %704 = vrot.lane.b32.xlu0 %v2626_v21, %s2499_s19 }
  0xb3   : > { %v2854_v4 = vpop.permute.xlu1 %1015  ;;  %v2856_v5 = vpop.permute.xlu0 %1013 }
  0xb5   : > { %1064 = vrot.lane.b32.xlu1 %v2628_v22, %s2496_s16  ;;  %1062 = vrot.lane.b32.xlu0 %v2630_v23, %s2496_s16 }
  0xb7   : > { %v2874_v35 = vpop.permute.xlu1 %418  ;;  %v2876_v36 = vpop.permute.xlu0 %1017 }
  0xb8   : > { %v430_v38 = vsel %vm4787_vm3, %v417_v49, %v2874_v35 }
  0xb9   : > { %1091 = vrot.lane.b32.xlu1 %v2637_v24, %s2497_s17  ;;  %1089 = vrot.lane.b32.xlu0 %v2640_v25, %s2497_s17  ;;  %v2894_v34 = vsel %vm764_vm5, %v2884_v39, %v430_v38 }
  0xba   : > { %1864 = vmatprep.subr.bf16.mxu1 %v2894_v34 }
  0xbb   : > { %v2904_v42 = vpop.permute.xlu1 %508  ;;  %1865 = vmatpush1.bf16.msra.mxu1 %v2902_v40  ;;  %v2907_v43 = vpop.permute.xlu0 %420 }
  0xbc   : > { %4856 = vst [vmem:[#allocation15_spill] sm:$0xff] %v2907_v43 }
  0xbd   : > { %684 = vrot.lane.b32.xlu1 %v2659_v26, %s2498_s18  ;;  %682 = vrot.lane.b32.xlu0 %v2662_v27, %s2498_s18 }
  0xbf   : > { %v2913_v44 = vpop.permute.xlu1 %512  ;;  %v2915_v46 = vpop.permute.xlu0 %510 }
  0xc1   : > { %708 = vrot.lane.b32.xlu1 %v2684_v29, %s2499_s19  ;;  %706 = vrot.lane.b32.xlu0 %v2677_v28, %s2499_s19 }
  0xc3   : > { %v2921_v48 = vpop.permute.xlu1 %506  ;;  %v2923_v49 = vpop.permute.xlu0 %1011 }
  0xc5   : > { %1214 = vrot.lane.b32.xlu1 %v2613_v17, %s2500_s20  ;;  %1212 = vrot.lane.b32.xlu0 %v2616_v18, %s2500_s20 }
  0xc7   : > { %v2929_v50 = vpop.permute.xlu1 %444  ;;  %v2931_v51 = vpop.permute.xlu0 %442 }
  0xc8   : > { %4857 = vst [vmem:[#allocation16_spill] sm:$0xff] %v2929_v50 }
  0xc9   : > { %1210 = vrot.lane.b32.xlu1 %v2623_v20, %s2500_s20  ;;  %1216 = vrot.lane.b32.xlu0 %v2626_v21, %s2500_s20 }
  0xcb   : > { %v2937_v16 = vpop.permute.xlu1 %534  ;;  %v2939_v19 = vpop.permute.xlu0 %532 }
  0xcd   : > { %1241 = vrot.lane.b32.xlu1 %v2561_v2, %s2501_s23  ;;  %1239 = vrot.lane.b32.xlu0 %v2571_v8, %s2501_s23 }
  0xcf   : > { %v2945_v31 = vpop.permute.xlu1 %556  ;;  %v2947_v33 = vpop.permute.xlu0 %536 }
  0xd0   : > { %4858 = vst [vmem:[#allocation17_spill] sm:$0xff] %v2947_v33 }
  0xd1   : > { %1237 = vrot.lane.b32.xlu1 %v2563_v3, %s2501_s23  ;;  %1243 = vrot.lane.b32.xlu0 %v2573_v9, %s2501_s23 }
  0xd3   : > { %v2953_v20 = vpop.permute.xlu1 %560  ;;  %v2955_v30 = vpop.permute.xlu0 %558 }
  0xd4   : > { %4859 = vst [vmem:[#allocation18_spill] sm:$0xff] %v2953_v20 }
  0xd5   : > { %1220 = vrot.lane.b32.xlu1 %v2684_v29, %s2500_s20  ;;  %1218 = vrot.lane.b32.xlu0 %v2677_v28, %s2500_s20 }
  0xd7   : > { %v2961_v32 = vpop.permute.xlu1 %993  ;;  %v2963_v38 = vpop.permute.xlu0 %991 }
  0xd8   : > { %4860 = vst [vmem:[#allocation19_spill] sm:$0xff] %v2961_v32 }
  0xd9   : > { %1247 = vrot.lane.b32.xlu1 %v2628_v22, %s2501_s23  ;;  %1245 = vrot.lane.b32.xlu0 %v2630_v23, %s2501_s23 }
  0xdb   : > { %v2969_v41 = vpop.permute.xlu1 %554  ;;  %v2971_v24 = vpop.permute.xlu0 %530 }
  0xdd   : > { %1266 = vrot.lane.b32.xlu1 %v2590_v12, %s2502_s24  ;;  %1264 = vrot.lane.b32.xlu0 %v2593_v13, %s2502_s24 }
  0xdf   : > { %v2977_v39 = vpop.permute.xlu1 %582  ;;  %v2979_v37 = vpop.permute.xlu0 %580 }
  0xe1   : > { %1288 = vrot.lane.b32.xlu1 %v2616_v18, %s2503_s25  ;;  %1268 = vrot.lane.b32.xlu0 %v2603_v15, %s2502_s24 }
  0xe3   : > { %v2985_v22 = vpop.permute.xlu1 %1019  ;;  %v2987_v52 = vpop.permute.xlu0 %584 }
  0xe4   : > { %4861 = vst [vmem:[#allocation20_spill] sm:$0xff] %v2987_v52 }
  0xe5   : > { %1292 = vrot.lane.b32.xlu1 %v2626_v21, %s2503_s25  ;;  %1290 = vrot.lane.b32.xlu0 %v2613_v17, %s2503_s25 }
  0xe7   : > { %v2993_v45 = vpop.permute.xlu1 %514  ;;  %v2995_v20 = vpop.permute.xlu0 %1021 }
  0xe8   : > { %4862 = vst [vmem:[#allocation21_spill] sm:$0xff] %v2993_v45  ;;  %4863 = vst [vmem:[#allocation22_spill] sm:$0xff] %v2995_v20 }
  0xe9   : > { %1272 = vrot.lane.b32.xlu1 %v2659_v26, %s2502_s24  ;;  %1270 = vrot.lane.b32.xlu0 %v2662_v27, %s2502_s24  ;;  %v307_v26 = vld [vmem:[%s4710_s0 + $0x18] sm:$0xff] }
  0xeb   : > { %v3001_v18 = vpop.permute.xlu1 %578  ;;  %v3003_v33 = vpop.permute.xlu0 %516 }
  0xec   : > { %4864 = vst [vmem:[#allocation23_spill] sm:$0xff] %v3003_v33 }
  0xed   : > { %1296 = vrot.lane.b32.xlu1 %v2684_v29, %s2503_s25  ;;  %1294 = vrot.lane.b32.xlu0 %v2677_v28, %s2503_s25  ;;  %v316_v28 = vcombine.high %v307_v26, %v307_v26 }
  0xef   : > { %v3009_v17 = vpop.permute.xlu1 %606  ;;  %v3011_v21 = vpop.permute.xlu0 %604  ;;  %v3036_v45 = vpack.c.bf16 %v316_v28, %v316_v28 }
  0xf1   : > { %462 = vrot.lane.b32.xlu1 %v2566_v6, %s2504_s26  ;;  %460 = vrot.lane.b32.xlu0 %v2583_v11, %s2504_s26  ;;  %4868 = vst [vmem:[#allocation27_spill] sm:$0xff] %v3036_v45 }
  0xf3   : > { %v3020_v52 = vpop.permute.xlu1 %602  ;;  %v3022_v29 = vpop.permute.xlu0 %608 }
  0xf4   : > { %4865 = vst [vmem:[#allocation24_spill] sm:$0xff] %v3022_v29  ;;  %v3038_v29 = vpack.c.bf16 %v307_v26, %v307_v26 }
  0xf5   : > { %484 = vrot.lane.b32.xlu1 %v2593_v13, %s2505_s22  ;;  %458 = vrot.lane.b32.xlu0 %v2569_v7, %s2504_s26 }
  0xf6   : > { %4869 = vst [vmem:[#allocation28_spill] sm:$0xff] %v3038_v29 }
  0xf7   : > { %v3028_v33 = vpop.permute.xlu1 %540  ;;  %v3030_v20 = vpop.permute.xlu0 %538 }
  0xf8   : > { %4866 = vst [vmem:[#allocation25_spill] sm:$0xff] %v3028_v33  ;;  %4867 = vst [vmem:[#allocation26_spill] sm:$0xff] %v3030_v20  ;;  %v3049_v33 = vrot.slane %v3036_v45, 6 }
  0xf9   : > { %482 = vrot.lane.b32.xlu1 %v2600_v14, %s2505_s22  ;;  %486 = vrot.lane.b32.xlu0 %v2590_v12, %s2505_s22  ;;  %v3052_v14 = vrot.slane %v3038_v29, 6 }
  0xfa   : > { %4872 = vst [vmem:[#allocation31_spill] sm:$0xff] %v3049_v33 }
  0xfb   : > { %v3040_v50 = vpop.permute.xlu1 %564  ;;  %v3042_v13 = vpop.permute.xlu0 %562  ;;  %4873 = vst [vmem:[#allocation32_spill] sm:$0xff] %v3052_v14 }
  0xfc   : > { %4870 = vst [vmem:[#allocation29_spill] sm:$0xff] %v3040_v50  ;;  %4871 = vst [vmem:[#allocation30_spill] sm:$0xff] %v3042_v13 }
  0xfd   : > { %466 = vrot.lane.b32.xlu1 %v2640_v25, %s2504_s26  ;;  %464 = vrot.lane.b32.xlu0 %v2580_v10, %s2504_s26 }
  0xff   : > { %v3054_v12 = vpop.permute.xlu1 %1058  ;;  %v3056_v26 = vpop.permute.xlu0 %1056 }
 0x100   : > { %4874 = vst [vmem:[#allocation33_spill] sm:$0xff] %v3054_v12  ;;  %4875 = vst [vmem:[#allocation34_spill] sm:$0xff] %v3056_v26  ;;  %v3071_v12 = vrot.slane %v3036_v45, 4  ;;  %v3074_v26 = vrot.slane %v3038_v29, 4 }
 0x101   : > { %360 = vrot.lane.b32.xlu1 %v3049_v33, %s2485_s27  ;;  %358 = vrot.lane.b32.xlu0 %v3052_v14, %s2485_s27 }
 0x103   : > { %v3062_v28 = vpop.permute.xlu1 %1083  ;;  %v3064_v50 = vpop.permute.xlu0 %1060 }
 0x104   : > { %4876 = vst [vmem:[#allocation35_spill] sm:$0xff] %v3062_v28  ;;  %4877 = vst [vmem:[#allocation36_spill] sm:$0xff] %v3064_v50 }
 0x105   : > { %490 = vrot.lane.b32.xlu1 %v2662_v27, %s2505_s22  ;;  %488 = vrot.lane.b32.xlu0 %v2603_v15, %s2505_s22  ;;  %v3085_v27 = vrot.slane %v3036_v45, 2  ;;  %v3088_v15 = vrot.slane %v3038_v29, 2 }
 0x107   : > { %v3076_v20 = vpop.permute.xlu1 %1087  ;;  %v3078_v13 = vpop.permute.xlu0 %1085 }
 0x108   : > { %4878 = vst [vmem:[#allocation37_spill] sm:$0xff] %v3076_v20  ;;  %4879 = vst [vmem:[#allocation38_spill] sm:$0xff] %v3078_v13 }
 0x109   : > { %392 = vrot.lane.b32.xlu1 %v3071_v12, %s2486_s28  ;;  %390 = vrot.lane.b32.xlu0 %v3074_v26, %s2486_s28 }
 0x10b   : > { %v3090_v50 = vpop.permute.xlu1 %588  ;;  %v3092_v28 = vpop.permute.xlu0 %586 }
 0x10c   : > { %4880 = vst [vmem:[#allocation39_spill] sm:$0xff] %v3090_v50  ;;  %4881 = vst [vmem:[#allocation40_spill] sm:$0xff] %v3092_v28 }
 0x10d   : > { %424 = vrot.lane.b32.xlu1 %v3085_v27, %s2487_s7  ;;  %422 = vrot.lane.b32.xlu0 %v3088_v15, %s2487_s7  ;;  %s2508_s7 = smov 82  }
 0x10f   : > { %v3098_v20 = vpop.permute.xlu1 %678  ;;  %v3100_v13 = vpop.permute.xlu0 %676 }
 0x110   : > { %4882 = vst [vmem:[#allocation41_spill] sm:$0xff] %v3098_v20  ;;  %4883 = vst [vmem:[#allocation42_spill] sm:$0xff] %v3100_v13 }
 0x111   : > { %630 = vrot.lane.b32.xlu1 %v2561_v2, %s2506_s29  ;;  %628 = vrot.lane.b32.xlu0 %v2571_v8, %s2506_s29 }
 0x113   : > { %v3106_v50 = vpop.permute.xlu1 %1054  ;;  %v3108_v28 = vpop.permute.xlu0 %680 }
 0x114   : > { %4884 = vst [vmem:[#allocation43_spill] sm:$0xff] %v3106_v50  ;;  %4885 = vst [vmem:[#allocation44_spill] sm:$0xff] %v3108_v28 }
 0x115   : > { %654 = vrot.lane.b32.xlu1 %v2566_v6, %s2507_s30  ;;  %652 = vrot.lane.b32.xlu0 %v2583_v11, %s2507_s30 }
 0x117   : > { %v3114_v20 = vpop.permute.xlu1 %610  ;;  %v3116_v13 = vpop.permute.xlu0 %1081 }
 0x118   : > { %4886 = vst [vmem:[#allocation45_spill] sm:$0xff] %v3116_v13 }
 0x119   : > { %448 = vrot.lane.b32.xlu1 %v3036_v45, %s2488_s8  ;;  %446 = vrot.lane.b32.xlu0 %v3038_v29, %s2488_s8 }
 0x11b   : > { %v3122_v2 = vpop.permute.xlu1 %674  ;;  %v3124_v8 = vpop.permute.xlu0 %612 }
 0x11c   : > { %4887 = vst [vmem:[#allocation46_spill] sm:$0xff] %v3122_v2  ;;  %4888 = vst [vmem:[#allocation47_spill] sm:$0xff] %v3124_v8 }
 0x11d   : > { %650 = vrot.lane.b32.xlu1 %v2569_v7, %s2507_s30  ;;  %626 = vrot.lane.b32.xlu0 %v2563_v3, %s2506_s29 }
 0x11f   : > { %v3130_v6 = vpop.permute.xlu1 %702  ;;  %v3132_v11 = vpop.permute.xlu0 %700 }
 0x121   : > { %997 = vrot.lane.b32.xlu1 %v3049_v33, %s2489_s9  ;;  %995 = vrot.lane.b32.xlu0 %v3052_v14, %s2489_s9 }
 0x123   : > { %v3138_v50 = vpop.permute.xlu1 %698  ;;  %v3140_v28 = vpop.permute.xlu0 %704 }
 0x124   : > { %4889 = vst [vmem:[#allocation48_spill] sm:$0xff] %v3138_v50  ;;  %4890 = vst [vmem:[#allocation49_spill] sm:$0xff] %v3140_v28 }
 0x125   : > { %1025 = vrot.lane.b32.xlu1 %v3071_v12, %s2490_s10  ;;  %1023 = vrot.lane.b32.xlu0 %v3074_v26, %s2490_s10 }
 0x127   : > { %v3146_v3 = vpop.permute.xlu1 %1064  ;;  %v3148_v7 = vpop.permute.xlu0 %1062 }
 0x128   : > { %4891 = vst [vmem:[#allocation50_spill] sm:$0xff] %v3146_v3  ;;  %4892 = vst [vmem:[#allocation51_spill] sm:$0xff] %v3148_v7 }
 0x129   : > { %520 = vrot.lane.b32.xlu1 %v3085_v27, %s2491_s11  ;;  %518 = vrot.lane.b32.xlu0 %v3088_v15, %s2491_s11 }
 0x12b   : > { %v3154_v13 = vpop.permute.xlu1 %1091  ;;  %v3156_v50 = vpop.permute.xlu0 %1089 }
 0x12c   : > { %4893 = vst [vmem:[#allocation52_spill] sm:$0xff] %v3154_v13  ;;  %4894 = vst [vmem:[#allocation53_spill] sm:$0xff] %v3156_v50 }
 0x12d   : > { %634 = vrot.lane.b32.xlu1 %v2630_v23, %s2506_s29  ;;  %632 = vrot.lane.b32.xlu0 %v2573_v9, %s2506_s29  ;;  %v308_v9 = vld [vmem:[%s4710_s0 + $0x20] sm:$0xf] }
 0x12f   : > { %v3162_v28 = vpop.permute.xlu1 %684  ;;  %v3164_v3 = vpop.permute.xlu0 %682 }
 0x130   : > { %4895 = vst [vmem:[#allocation54_spill] sm:$0xff] %v3162_v28  ;;  %4896 = vst [vmem:[#allocation55_spill] sm:$0xff] %v3164_v3 }
 0x131   : > { %658 = vrot.lane.b32.xlu1 %v2640_v25, %s2507_s30  ;;  %656 = vrot.lane.b32.xlu0 %v2580_v10, %s2507_s30  ;;  %v3189_v10 = vpack.c.bf16 %v308_v9, %v308_v9 }
 0x133   : > { %v3170_v7 = vpop.permute.xlu1 %708  ;;  %v3172_v13 = vpop.permute.xlu0 %706  ;;  %4901 = vst [vmem:[#allocation60_spill] sm:$0xff] %v3189_v10  ;;  %v3211_v9 = vrot.slane %v3189_v10, 4 }
 0x134   : > { %4897 = vst [vmem:[#allocation56_spill] sm:$0xff] %v3170_v7  ;;  %4898 = vst [vmem:[#allocation57_spill] sm:$0xff] %v3172_v13 }
 0x135   : > { %544 = vrot.lane.b32.xlu1 %v3036_v45, %s2492_s12  ;;  %542 = vrot.lane.b32.xlu0 %v3038_v29, %s2492_s12 }
 0x137   : > { %v3181_v28 = vpop.permute.xlu1 %1214  ;;  %v3183_v25 = vpop.permute.xlu0 %1212 }
 0x138   : > { %4899 = vst [vmem:[#allocation58_spill] sm:$0xff] %v3181_v28  ;;  %4900 = vst [vmem:[#allocation59_spill] sm:$0xff] %v3183_v25  ;;  %v3200_v25 = vrot.slane %v3189_v10, 6 }
 0x139   : > { %568 = vrot.lane.b32.xlu1 %v3049_v33, %s2493_s13  ;;  %566 = vrot.lane.b32.xlu0 %v3052_v14, %s2493_s13 }
 0x13b   : > { %v3191_v7 = vpop.permute.xlu1 %1210  ;;  %v3193_v13 = vpop.permute.xlu0 %1216 }
 0x13c   : > { %4902 = vst [vmem:[#allocation61_spill] sm:$0xff] %v3191_v7  ;;  %4903 = vst [vmem:[#allocation62_spill] sm:$0xff] %v3193_v13 }
 0x13d   : > { %592 = vrot.lane.b32.xlu1 %v3071_v12, %s2494_s14  ;;  %590 = vrot.lane.b32.xlu0 %v3074_v26, %s2494_s14 }
 0x13f   : > { %v3202_v28 = vpop.permute.xlu1 %1241  ;;  %v3204_v3 = vpop.permute.xlu0 %1239 }
 0x140   : > { %4904 = vst [vmem:[#allocation63_spill] sm:$0xff] %v3202_v28  ;;  %4905 = vst [vmem:[#allocation64_spill] sm:$0xff] %v3204_v3 }
 0x141   : > { %614 = vrot.lane.b32.xlu1 %v3088_v15, %s2495_s15  ;;  %999 = vrot.lane.b32.xlu0 %v3200_v25, %s2489_s9 }
 0x143   : > { %v3213_v13 = vpop.permute.xlu1 %1237  ;;  %v3215_v7 = vpop.permute.xlu0 %1243 }
 0x144   : > { %4906 = vst [vmem:[#allocation65_spill] sm:$0xff] %v3213_v13  ;;  %v3230_v13 = vrot.slane %v3189_v10, 2 }
 0x145   : > { %1027 = vrot.lane.b32.xlu1 %v3211_v9, %s2490_s10  ;;  %616 = vrot.lane.b32.xlu0 %v3085_v27, %s2495_s15 }
 0x147   : > { %v3221_v3 = vpop.permute.xlu1 %1220  ;;  %v3223_v28 = vpop.permute.xlu0 %1218 }
 0x148   : > { %4907 = vst [vmem:[#allocation66_spill] sm:$0xff] %v3221_v3  ;;  %4908 = vst [vmem:[#allocation67_spill] sm:$0xff] %v3223_v28  ;;  %v3239_v3 = vsel %vm4798_vm6, %v2830_v60, %v2963_v38 }
 0x149   : > { %1467 = vrot.lane.b32.xlu1 %v2902_v40, %s2508_s7  ;;  %1465 = vrot.lane.b32.xlu0 %v2788_v47, %s2508_s7  ;;  %v3247_v47 = vsel %vm4796_vm8, %v2876_v36, %v2985_v22 }
 0x14b   : > { %v3232_v50 = vpop.permute.xlu1 %1247  ;;  %v3234_v8 = vpop.permute.xlu0 %1245 }
 0x14c   : > { %4909 = vst [vmem:[#allocation68_spill] sm:$0xff] %v3232_v50  ;;  %4910 = vst [vmem:[#allocation69_spill] sm:$0xff] %v3234_v8  ;;  %v1259_v40 = vsel %vm4816_vm7, %v3215_v7, %v3234_v8 }
 0x14d   : > { %v1346_v50 = vsel %vm722_vm2, %v1259_v40, %v3239_v3  ;;  %1463 = vrot.lane.b32.xlu1 %v2803_v53, %s2508_s7  ;;  %1039 = vrot.lane.b32.xlu0 %v3230_v13, %s2491_s11 }
 0x14e   : > { %v3257_v28 = vsel %vm747_vm4, %v1346_v50, %v3247_v47 }
 0x14f   : > { %4911 = vst [vmem:[#allocation70_spill] sm:$0xff] %v3257_v28  ;;  %v3259_v2 = vpop.permute.xlu1 %1266  ;;  %v3261_v8 = vpop.permute.xlu0 %1264 }
 0x150   : > { %4912 = vst [vmem:[#allocation71_spill] sm:$0xff] %v3261_v8 }
 0x151   : > { %1068 = vrot.lane.b32.xlu1 %v3036_v45, %s2496_s16  ;;  %1066 = vrot.lane.b32.xlu0 %v3038_v29, %s2496_s16 }
 0x153   : > { %v3267_v40 = vpop.permute.xlu1 %1288  ;;  %v3269_v53 = vpop.permute.xlu0 %1268 }
 0x154   : > { %4913 = vst [vmem:[#allocation72_spill] sm:$0xff] %v3267_v40  ;;  %4914 = vst [vmem:[#allocation73_spill] sm:$0xff] %v3269_v53  ;;  %v3320_v53 = vsel %vm4797_vm9, %v2814_v56, %v2824_v59 }
 0x155   : > { %1095 = vrot.lane.b32.xlu1 %v3049_v33, %s2497_s17  ;;  %1093 = vrot.lane.b32.xlu0 %v3052_v14, %s2497_s17 }
 0x157   : > { %v3275_v50 = vpop.permute.xlu1 %1292  ;;  %v3277_v28 = vpop.permute.xlu0 %1290 }
 0x158   : > { %4915 = vst [vmem:[#allocation74_spill] sm:$0xff] %v3275_v50  ;;  %4916 = vst [vmem:[#allocation75_spill] sm:$0xff] %v3277_v28  ;;  %v367_v50 = vsel %vm4824_vm0, %v2808_v55, %v2806_v54  ;;  %v596_v28 = vsel %vm594_vm13, %v2979_v37, %v2977_v39 }
 0x159   : > { %688 = vrot.lane.b32.xlu1 %v3071_v12, %s2498_s18  ;;  %686 = vrot.lane.b32.xlu0 %v3074_v26, %s2498_s18 }
 0x15b   : > { %v3283_v8 = vpop.permute.xlu1 %1272  ;;  %v3285_v40 = vpop.permute.xlu0 %1270 }
 0x15c   : > { %4917 = vst [vmem:[#allocation76_spill] sm:$0xff] %v3283_v8  ;;  %4918 = vst [vmem:[#allocation77_spill] sm:$0xff] %v3285_v40  ;;  %v3305_v8 = vsel %vm4798_vm6, %v2822_v58, %v2832_v61  ;;  %v452_v40 = vsel %vm4797_vm9, %v2816_v57, %v2814_v56 }
 0x15d   : > { %1045 = vrot.lane.b32.xlu1 %v3200_v25, %s2493_s13  ;;  %1042 = vrot.lane.b32.xlu0 %v3189_v10, %s2492_s12  ;;  %v1117_v56 = vsel %vm722_vm2, %v452_v40, %v3305_v8 }
 0x15f   : > { %v3291_v33 = vpop.permute.xlu1 %1296  ;;  %v3293_v14 = vpop.permute.xlu0 %1294 }
 0x160   : > { %4919 = vst [vmem:[#allocation78_spill] sm:$0xff] %v3291_v33  ;;  %4920 = vst [vmem:[#allocation79_spill] sm:$0xff] %v3293_v14  ;;  %v399_v33 = vsel %vm4821_vm1, %v2840_v63, %v2838_v62  ;;  %v737_v14 = vsel %vm722_vm2, %v2630_v23, %v367_v50  ;;  %v3325_v63 = vsel %vm4796_vm8, %v2856_v5, %v2854_v4 }
 0x161   : > { %712 = vrot.lane.b32.xlu1 %v3085_v27, %s2499_s19  ;;  %710 = vrot.lane.b32.xlu0 %v3088_v15, %s2499_s19  ;;  %v3330_v62 = vsel %vm4798_vm6, %v2832_v61, %v2830_v60  ;;  %v431_v50 = vsel %vm4787_vm3, %v2874_v35, %v2907_v43  ;;  %v3338_v23 = vsel %vm4795_vm10, %v2904_v42, %v2915_v46  ;;  %vm4807_vm3 = vcmask 834560  }
 0x162   : > { %v3349_v60 = vsel %vm4796_vm8, %v2854_v4, %v2876_v36  ;;  %v3352_v61 = vsel %vm747_vm4, %v737_v14, %v399_v33  ;;  %v3357_v35 = vsel %vm4798_vm6, %v2846_v0, %v2822_v58  ;;  %v3365_v43 = vsel %vm4795_vm10, %v2915_v46, %v2913_v44 }
 0x163   : > { %v3310_v55 = vpop.permute.xlu1 %462  ;;  %v461_v54 = vpop.permute.xlu0 %460  ;;  %v1133_v33 = vsel %vm747_vm4, %v1117_v56, %v3325_v63  ;;  %v1119_v14 = vsel %vm722_vm2, %v3320_v53, %v3330_v62  ;;  %v3375_v58 = vsel %vm4796_vm8, %v2923_v49, %v2856_v5  ;;  %v3381_v0 = vsel %vm764_vm5, %v3352_v61, %v431_v50 }
 0x164   : > { %4921 = vst [vmem:[#allocation80_spill] sm:$0xff] %v3381_v0  ;;  %v1135_v5 = vsel %vm747_vm4, %v1119_v14, %v3349_v60  ;;  %v3396_v50 = vsel %vm4795_vm10, %v2921_v48, %v2904_v42  ;;  %v571_v42 = vsel %vm570_vm12, %v2969_v41, %v2945_v31 }
 0x165   : > { %1469 = vrot.lane.b32.xlu1 %v2894_v34, %s2508_s7  ;;  %1048 = vrot.lane.b32.xlu0 %v3211_v9, %s2494_s14  ;;  %v451_v34 = vsel %vm4797_vm9, %v2848_v1, %v2816_v57  ;;  %v1147_v57 = vsel %vm764_vm5, %v1133_v33, %v3338_v23  ;;  %v476_v1 = vsel %vm4794_vm14, %v461_v54, %v3310_v55  ;;  %s2510_s14 = smov 118  }
 0x166   : > { %v1115_v49 = vsel %vm722_vm2, %v451_v34, %v3357_v35  ;;  %v572_v33 = vsel %vm570_vm12, %v2945_v31, %v2955_v30 }
 0x167   : > { %v485_v4 = vpop.permute.xlu1 %484  ;;  %v459_v36 = vpop.permute.xlu0 %458  ;;  %v1131_v56 = vsel %vm747_vm4, %v1115_v49, %v3375_v58 }
 0x168   : > { %v475_v46 = vsel %vm4794_vm14, %v459_v36, %v461_v54  ;;  %v1148_v54 = vsel %vm764_vm5, %v1135_v5, %v3365_v43  ;;  %v548_v36 = vsel %vm546_vm11, %v2939_v19, %v2937_v16 }
 0x169   : > { %1481 = vrot.lane.b32.xlu1 %v1147_v57, %s2508_s7  ;;  %1471 = vrot.lane.b32.xlu0 %v3381_v0, %s2508_s7  ;;  %v794_v57 = vsel %vm722_vm2, %v452_v40, %v476_v1  ;;  %v791_v5 = vsel %vm722_vm2, %v451_v34, %v475_v46  ;;  %v547_v40 = vsel %vm546_vm11, %v2971_v24, %v2939_v19 }
 0x16a   : > { %v620_v34 = vsel %vm4807_vm3, %v3011_v21, %v3009_v17  ;;  %v3434_v46 = vsel %vm722_vm2, %v548_v36, %v572_v33  ;;  %v619_v19 = vsel %vm4807_vm3, %v3020_v52, %v3011_v21  ;;  %v3449_v33 = vsel %vm722_vm2, %v547_v40, %v571_v42 }
 0x16b   : > { %v483_v48 = vpop.permute.xlu1 %482  ;;  %v487_v14 = vpop.permute.xlu0 %486  ;;  %v880_v36 = vsel %vm747_vm4, %v3434_v46, %v596_v28  ;;  %v454_v42 = vsel %vm4797_vm9, %v2824_v59, %v2931_v51 }
 0x16c   : > { %v499_v49 = vsel %vm4793_vm15, %v483_v48, %v485_v4  ;;  %v500_v0 = vsel %vm4793_vm15, %v485_v4, %v487_v14  ;;  %v1146_v48 = vsel %vm764_vm5, %v1131_v56, %v3396_v50 }
 0x16d   : > { %1051 = vrot.lane.b32.xlu1 %v3230_v13, %s2495_s15  ;;  %1483 = vrot.lane.b32.xlu0 %v1148_v54, %s2508_s7  ;;  %v816_v31 = vsel %vm747_vm4, %v794_v57, %v500_v0  ;;  %v814_v41 = vsel %vm747_vm4, %v791_v5, %v499_v49  ;;  %v595_v0 = vsel %vm594_vm13, %v3001_v18, %v2979_v37  ;;  %v4923_v57 = vld [vmem:[#allocation16_spill] sm:$0xff] }
 0x16e   : > { %v833_v4 = vsel %vm764_vm5, %v816_v31, %v3338_v23  ;;  %v830_v1 = vsel %vm764_vm5, %v814_v41, %v3396_v50  ;;  %v897_v37 = vsel %vm764_vm5, %v880_v36, %v620_v34  ;;  %v878_v52 = vsel %vm747_vm4, %v3449_v33, %v595_v0  ;;  %v4925_v31 = vld [vmem:[#allocation17_spill] sm:$0xff]  ;;  %v4926_v41 = vld [vmem:[#allocation18_spill] sm:$0xff]  ;;  %v4929_v0 = vld [vmem:[#allocation23_spill] sm:$0xff] }
 0x16f   : > { %v3439_v54 = vpop.permute.xlu1 %466  ;;  %1825 = vmatprep.subr.bf16.mxu0 %v833_v4  ;;  %v465_v24 = vpop.permute.xlu0 %464  ;;  %v3460_v18 = vsel %vm4798_vm6, %v2963_v38, %v2961_v32  ;;  %v894_v56 = vsel %vm764_vm5, %v878_v52, %v619_v19  ;;  %v3473_v5 = vsel %vm4797_vm9, %v2931_v51, %v4923_v57  ;;  %v549_v59 = vsel %vm546_vm11, %v2937_v16, %v4925_v31  ;;  %v4927_v34 = vld [vmem:[#allocation21_spill] sm:$0xff]  ;;  %v4948_v57 = vld [vmem:[#allocation39_spill] sm:$0xff] }
 0x170   : > { %4922 = vst [vmem:[#allocation81_spill] sm:$0xff] %v3439_v54  ;;  %1826 = vmatpush1.bf16.msra.mxu0 %v830_v1  ;;  %4924 = vst [vmem:[#allocation82_spill] sm:$0xff] %v3473_v5  ;;  %v477_v38 = vsel %vm4794_vm14, %v3310_v55, %v465_v24  ;;  %v478_v49 = vsel %vm4794_vm14, %v465_v24, %v3439_v54  ;;  %v573_v51 = vsel %vm570_vm12, %v2955_v30, %v4926_v41  ;;  %v4928_v1 = vld [vmem:[#allocation22_spill] sm:$0xff]  ;;  %vm4814_vm14 = vcmask 818176  }
 0x171   : > { %1070 = vrot.lane.b32.xlu1 %v3189_v10, %s2496_s16  ;;  %1479 = vrot.lane.b32.xlu0 %v1146_v48, %s2508_s7  ;;  %v1121_v55 = vsel %vm722_vm2, %v454_v42, %v3239_v3  ;;  %v1123_v40 = vsel %vm722_vm2, %v3473_v5, %v3460_v18  ;;  %v3497_v4 = vsel %vm4795_vm10, %v2913_v44, %v4927_v34  ;;  %v4931_v3 = vld [vmem:[#allocation30_spill] sm:$0xff]  ;;  %v4933_v5 = vld [vmem:[#allocation40_spill] sm:$0xff]  ;;  %vm1099_vm9 = vcmask 695296  }
 0x172   : > { %1827 = vmatprep.subr.bf16.mxu0 %v897_v37  ;;  %v3502_v16 = vsel %vm4796_vm8, %v2985_v22, %v4928_v1  ;;  %v3507_v30 = vsel %vm4795_vm10, %v4927_v34, %v4929_v0  ;;  %v574_v24 = vsel %vm570_vm12, %v4926_v41, %v4931_v3  ;;  %v797_v44 = vsel %vm722_vm2, %v3320_v53, %v477_v38  ;;  %v4934_v34 = vld [vmem:[#allocation20_spill] sm:$0xff]  ;;  %v4946_v0 = vld [vmem:[#allocation33_spill] sm:$0xff] }
 0x173   : > { %v3462_v21 = vpop.permute.xlu1 %360  ;;  %v3464_v28 = vpop.permute.xlu0 %358  ;;  %4930 = vst [vmem:[#allocation17_spill] sm:$0xff] %v3507_v30  ;;  %v800_v36 = vsel %vm722_vm2, %v454_v42, %v478_v49  ;;  %v598_v54 = vsel %vm594_vm13, %v4934_v34, %v4933_v5  ;;  %v4935_v42 = vld [vmem:[#allocation26_spill] sm:$0xff]  ;;  %v4936_v38 = vld [vmem:[#allocation24_spill] sm:$0xff]  ;;  %vm690_vm10 = vcmask 687104   ;;  %vm714_vm8 = vcmask 678912  }
 0x174   : > { %1828 = vmatpush1.bf16.msra.mxu0 %v894_v56  ;;  %v622_v49 = vsel %vm4807_vm3, %v4936_v38, %v3114_v20  ;;  %vm1072_vm6 = vcmask 703488  }
 0x175   : > { %1108 = vrot.lane.b32.xlu1 %v3211_v9, %s2498_s18  ;;  %1097 = vrot.lane.b32.xlu0 %v3200_v25, %s2497_s17 }
 0x177   : > { %v3512_v19 = vpop.permute.xlu1 %490  ;;  %v489_v48 = vpop.permute.xlu0 %488 }
 0x178   : > { %4932 = vst [vmem:[#allocation18_spill] sm:$0xff] %v3512_v19  ;;  %v501_v22 = vsel %vm4793_vm15, %v487_v14, %v489_v48  ;;  %v502_v52 = vsel %vm4793_vm15, %v489_v48, %v3512_v19  ;;  %v550_v14 = vsel %vm546_vm11, %v4925_v31, %v4935_v42  ;;  %vm4815_vm15 = vcmask 826368  }
 0x179   : > { %1224 = vrot.lane.b32.xlu1 %v3085_v27, %s2500_s20  ;;  %1222 = vrot.lane.b32.xlu0 %v3088_v15, %s2500_s20  ;;  %v820_v41 = vsel %vm747_vm4, %v800_v36, %v502_v52  ;;  %v818_v53 = vsel %vm747_vm4, %v797_v44, %v501_v22  ;;  %v597_v36 = vsel %vm594_vm13, %v2977_v39, %v4934_v34 }
 0x17a   : > { %v839_v48 = vsel %vm764_vm5, %v820_v41, %v3497_v4  ;;  %v836_v19 = vsel %vm764_vm5, %v818_v53, %v3365_v43  ;;  %v3543_v44 = vsel %vm722_vm2, %v550_v14, %v574_v24  ;;  %v1139_v52 = vsel %vm747_vm4, %v1123_v40, %v3502_v16 }
 0x17b   : > { %v3545_v22 = vpop.permute.xlu1 %392  ;;  %1866 = vmatprep.subr.bf16.mxu1 %v839_v48  ;;  %v3547_v31 = vpop.permute.xlu0 %390  ;;  %v1137_v41 = vsel %vm747_vm4, %v1121_v55, %v3247_v47  ;;  %v621_v53 = vsel %vm4807_vm3, %v3009_v17, %v4936_v38  ;;  %v1150_v39 = vsel %vm764_vm5, %v1139_v52, %v3507_v30  ;;  %v884_v34 = vsel %vm747_vm4, %v3543_v44, %v598_v54  ;;  %v4938_v48 = vld [vmem:[#allocation41_spill] sm:$0xff] }
 0x17c   : > { %1867 = vmatpush1.bf16.msra.mxu1 %v836_v19  ;;  %v1149_v24 = vsel %vm764_vm5, %v1137_v41, %v3497_v4  ;;  %v3563_v14 = vsel %vm722_vm2, %v549_v59, %v573_v51  ;;  %v903_v47 = vsel %vm764_vm5, %v884_v34, %v622_v49  ;;  %v716_v41 = vsel %vm714_vm8, %v3132_v11, %v3130_v6 }
 0x17d   : > { %1487 = vrot.lane.b32.xlu1 %v1150_v39, %s2508_s7  ;;  %1485 = vrot.lane.b32.xlu0 %v1149_v24, %s2508_s7  ;;  %v882_v17 = vsel %vm747_vm4, %v3563_v14, %v597_v36  ;;  %v4939_v36 = vld [vmem:[#allocation42_spill] sm:$0xff] }
 0x17e   : > { %1868 = vmatprep.subr.bf16.mxu1 %v903_v47  ;;  %v900_v19 = vsel %vm764_vm5, %v882_v17, %v621_v53  ;;  %v692_v52 = vsel %vm690_vm10, %v4939_v36, %v4938_v48  ;;  %v4942_v17 = vld [vmem:[#allocation29_spill] sm:$0xff] }
 0x17f   : > { %v3570_v55 = vpop.permute.xlu1 %424  ;;  %v3572_v40 = vpop.permute.xlu0 %422 }
 0x180   : > { %4937 = vst [vmem:[#allocation21_spill] sm:$0xff] %v3570_v55  ;;  %1869 = vmatpush1.bf16.msra.mxu1 %v900_v19 }
 0x181   : > { %1499 = vrot.lane.b32.xlu1 %v900_v19, %s2508_s7  ;;  %1497 = vrot.lane.b32.xlu0 %v897_v37, %s2508_s7  ;;  %v575_v19 = vsel %vm570_vm12, %v4931_v3, %v4942_v17 }
 0x183   : > { %v3577_v54 = vpop.permute.xlu1 %630  ;;  %v629_v59 = vpop.permute.xlu0 %628 }
 0x184   : > { %v644_v49 = vsel %vm4815_vm15, %v629_v59, %v3577_v54 }
 0x185   : > { %1495 = vrot.lane.b32.xlu1 %v894_v56, %s2508_s7  ;;  %1111 = vrot.lane.b32.xlu0 %v3230_v13, %s2499_s19 }
 0x187   : > { %v3582_v51 = vpop.permute.xlu1 %654  ;;  %v653_v38 = vpop.permute.xlu0 %652 }
 0x188   : > { %v668_v37 = vsel %vm4814_vm14, %v653_v38, %v3582_v51 }
 0x189   : > { %v922_v56 = vsel %vm722_vm2, %v644_v49, %v668_v37  ;;  %1249 = vrot.lane.b32.xlu1 %v3038_v29, %s2501_s23  ;;  %1204 = vrot.lane.b32.xlu0 %v3200_v25, %s2485_s27  ;;  %v4943_v25 = vld [vmem:[#allocation25_spill] sm:$0xff]  ;;  %s2509_s27 = smov 36  }
 0x18a   : > { %v944_v53 = vsel %vm747_vm4, %v922_v56, %v692_v52  ;;  %v551_v49 = vsel %vm546_vm11, %v4935_v42, %v4943_v25  ;;  %v4944_v56 = vld [vmem:[#allocation38_spill] sm:$0xff]  ;;  %v4950_v25 = vld [vmem:[#allocation47_spill] sm:$0xff] }
 0x18b   : > { %v3600_v39 = vpop.permute.xlu1 %448  ;;  %v3602_v24 = vpop.permute.xlu0 %446  ;;  %v961_v34 = vsel %vm764_vm5, %v944_v53, %v716_v41  ;;  %v3616_v37 = vsel %vm722_vm2, %v551_v49, %v575_v19  ;;  %v4945_v53 = vld [vmem:[#allocation35_spill] sm:$0xff]  ;;  %v4949_v19 = vld [vmem:[#allocation46_spill] sm:$0xff] }
 0x18c   : > { %4940 = vst [vmem:[#allocation30_spill] sm:$0xff] %v3600_v39  ;;  %4941 = vst [vmem:[#allocation40_spill] sm:$0xff] %v3602_v24  ;;  %1829 = vmatprep.subr.bf16.mxu0 %v961_v34  ;;  %v1101_v3 = vsel %vm1099_vm9, %v4945_v53, %v4944_v56  ;;  %v4947_v39 = vld [vmem:[#allocation34_spill] sm:$0xff]  ;;  %v599_v24 = vsel %vm594_vm13, %v4933_v5, %v4948_v57  ;;  %v691_v49 = vsel %vm690_vm10, %v4949_v19, %v4939_v36  ;;  %v4951_v5 = vld [vmem:[#allocation37_spill] sm:$0xff] }
 0x18d   : > { %1207 = vrot.lane.b32.xlu1 %v3211_v9, %s2486_s28  ;;  %1251 = vrot.lane.b32.xlu0 %v3036_v45, %s2501_s23  ;;  %v1074_v1 = vsel %vm1072_vm6, %v4947_v39, %v4946_v0  ;;  %v623_v45 = vsel %vm4807_vm3, %v3114_v20, %v4950_v25  ;;  %v4953_v20 = vld [vmem:[#allocation45_spill] sm:$0xff]  ;;  %v4957_v57 = vld [vmem:[#allocation36_spill] sm:$0xff]  ;;  %vm1228_vm3 = vcmask 900096   ;;  %s5000_s28 = sadd.s32 4294967295, %s2483_s21  }
 0x18e   : > { %p281_p3 = scmp.lt.s32.totalorder %s5000_s28, 3  ;;  %s5001_s9 = smov %s5000_s28 }
 0x18f   : > { %v651_v17 = vpop.permute.xlu1 %650  ;;  %v627_v34 = vpop.permute.xlu0 %626 }
 0x190   : > { %v667_v32 = vsel %vm4814_vm14, %v651_v17, %v653_v38  ;;  %v643_v42 = vsel %vm4815_vm15, %v627_v34, %v629_v59  ;;  %v1102_v38 = vsel %vm1099_vm9, %v4944_v56, %v4951_v5  ;;  %v1167_v59 = vsel %vm722_vm2, %v1074_v1, %v1101_v3  ;;  %v4952_v17 = vld [vmem:[#allocation48_spill] sm:$0xff]  ;;  %s5114_s9 = smov (!%p281_p3, %s5001_s9), 3 }
 0x191   : > { %v919_v55 = vsel %vm722_vm2, %v643_v42, %v667_v32  ;;  %1501 = vrot.lane.b32.xlu1 %v903_v47, %s2508_s7  ;;  %1226 = vrot.lane.b32.xlu0 %v3230_v13, %s2500_s20  ;;  %v715_v34 = vsel %vm714_vm8, %v4952_v17, %v3132_v11  ;;  %v1100_v32 = vsel %vm1099_vm9, %v4953_v20, %v4945_v53  ;;  %v4955_v3 = vld [vmem:[#allocation44_spill] sm:$0xff]  ;;  %s3945_s10 = sshll.u32 %s5114_s9, 2 }
 0x192   : > { %v942_v19 = vsel %vm747_vm4, %v919_v55, %v691_v49  ;;  %v1187_v56 = vsel %vm747_vm4, %v1167_v59, %v692_v52  ;;  %v886_v1 = vsel %vm747_vm4, %v3616_v37, %v599_v24  ;;  %v693_v17 = vsel %vm690_vm10, %v4938_v48, %v4955_v3  ;;  %v4958_v52 = vld [vmem:[#allocation43_spill] sm:$0xff]  ;;  %v4959_v24 = vld [vmem:[#allocation49_spill] sm:$0xff]  ;;  %s285_s13 = scalar_lea.vmem %s4711_s1, %s3945_s10  ;;  %s289_s16 = scalar_lea.vmem %s4712_s2, %s3945_s10 }
 0x193   : > { %v3650_v47 = vpop.permute.xlu1 %997  ;;  %v3652_v42 = vpop.permute.xlu0 %995  ;;  %v958_v25 = vsel %vm764_vm5, %v942_v19, %v715_v34  ;;  %v3662_v55 = vsel %vm764_vm5, %v1187_v56, %v716_v41  ;;  %v3665_v20 = vsel %vm764_vm5, %v886_v1, %v623_v45  ;;  %v1075_v19 = vsel %vm1072_vm6, %v4946_v0, %v4957_v57 }
 0x194   : > { %4954 = vst [vmem:[#allocation20_spill] sm:$0xff] %v3650_v47  ;;  %1830 = vmatpush1.bf16.msra.mxu0 %v958_v25  ;;  %4956 = vst [vmem:[#allocation26_spill] sm:$0xff] %v3665_v20  ;;  %v1073_v59 = vsel %vm1072_vm6, %v4958_v52, %v4947_v39  ;;  %v717_v47 = vsel %vm714_vm8, %v3130_v6, %v4959_v24  ;;  %v1170_v45 = vsel %vm722_vm2, %v1075_v19, %v1102_v38  ;;  %v4964_v19 = vld [vmem:[#allocation55_spill] sm:$0xff] }
 0x195   : > { %1513 = vrot.lane.b32.xlu1 %v3662_v55, %s2508_s7  ;;  %1503 = vrot.lane.b32.xlu0 %v3665_v20, %s2508_s7  ;;  %v1164_v48 = vsel %vm722_vm2, %v1073_v59, %v1100_v32  ;;  %v1188_v56 = vsel %vm747_vm4, %v1170_v45, %v693_v17  ;;  %v694_v52 = vsel %vm690_vm10, %v4955_v3, %v4964_v19 }
 0x196   : > { %v1186_v0 = vsel %vm747_vm4, %v1164_v48, %v691_v49  ;;  %v3690_v1 = vsel %vm764_vm5, %v1188_v56, %v717_v47  ;;  %v4963_v49 = vld [vmem:[#allocation53_spill] sm:$0xff]  ;;  %v4966_v48 = vld [vmem:[#allocation51_spill] sm:$0xff] }
 0x197   : > { %v3683_v41 = vpop.permute.xlu1 %1025  ;;  %v3685_v25 = vpop.permute.xlu0 %1023  ;;  %v1195_v6 = vsel %vm764_vm5, %v1186_v0, %v715_v34  ;;  %v1103_v34 = vsel %vm1099_vm9, %v4951_v5, %v4963_v49  ;;  %v1076_v0 = vsel %vm1072_vm6, %v4957_v57, %v4966_v48  ;;  %v4967_v56 = vld [vmem:[#allocation57_spill] sm:$0xff]  ;;  %v4968_v5 = vld [vmem:[#allocation50_spill] sm:$0xff]  ;;  %v4969_v57 = vld [vmem:[#allocation52_spill] sm:$0xff] }
 0x198   : > { %4960 = vst [vmem:[#allocation24_spill] sm:$0xff] %v3683_v41  ;;  %v1173_v20 = vsel %vm722_vm2, %v1076_v0, %v1103_v34  ;;  %v1077_v3 = vsel %vm1072_vm6, %v4966_v48, %v4968_v5 }
 0x199   : > { %1511 = vrot.lane.b32.xlu1 %v1195_v6, %s2508_s7  ;;  %1515 = vrot.lane.b32.xlu0 %v3690_v1, %s2508_s7  ;;  %v718_v6 = vsel %vm714_vm8, %v4959_v24, %v4967_v56  ;;  %v4970_v24 = vld [vmem:[#allocation54_spill] sm:$0xff] }
 0x19a   : > { %v3732_v34 = vsel %vm690_vm10, %v4964_v19, %v4970_v24 }
 0x19b   : > { %v3695_v38 = vpop.permute.xlu1 %520  ;;  %v3697_v32 = vpop.permute.xlu0 %518  ;;  %4971 = vst [vmem:[#allocation35_spill] sm:$0xff] %v3732_v34 }
 0x19c   : > { %4961 = vst [vmem:[#allocation41_spill] sm:$0xff] %v3695_v38  ;;  %4962 = vst [vmem:[#allocation42_spill] sm:$0xff] %v3697_v32  ;;  %v1104_v38 = vsel %vm1099_vm9, %v4963_v49, %v4969_v57 }
 0x19d   : > { %1274 = vrot.lane.b32.xlu1 %v3074_v26, %s2502_s24  ;;  %1253 = vrot.lane.b32.xlu0 %v3189_v10, %s2501_s23  ;;  %v1189_v10 = vsel %vm747_vm4, %v1173_v20, %v694_v52  ;;  %s293_s23 = scalar_lea.vmem %s4713_s3, %s3945_s10 }
 0x19e   : > { %v3742_v5 = vsel %vm764_vm5, %v1189_v10, %v718_v6 }
 0x19f   : > { %v3709_v59 = vpop.permute.xlu1 %634  ;;  %v633_v45 = vpop.permute.xlu0 %632 }
 0x1a0   : > { %4965 = vst [vmem:[#allocation38_spill] sm:$0xff] %v3709_v59  ;;  %v645_v20 = vsel %vm4815_vm15, %v3577_v54, %v633_v45  ;;  %v646_v49 = vsel %vm4815_vm15, %v633_v45, %v3709_v59  ;;  %v1176_v54 = vsel %vm722_vm2, %v1077_v3, %v1104_v38  ;;  %vm1527_vm15 = vcmask 670720  }
 0x1a1   : > { %1298 = vrot.lane.b32.xlu1 %v3088_v15, %s2503_s25  ;;  %1276 = vrot.lane.b32.xlu0 %v3071_v12, %s2502_s24  ;;  %v4972_v15 = vld [vmem:[#allocation56_spill] sm:$0xff] }
 0x1a2   : > { %v3737_v0 = vsel %vm714_vm8, %v4967_v56, %v4972_v15  ;;  %v4975_v56 = vld [vmem:[#allocation58_spill] sm:$0xff]  ;;  %v4976_v15 = vld [vmem:[#allocation59_spill] sm:$0xff] }
 0x1a3   : > { %4973 = vst [vmem:[#allocation33_spill] sm:$0xff] %v3737_v0  ;;  %v3739_v32 = vpop.permute.xlu1 %658  ;;  %v657_v48 = vpop.permute.xlu0 %656  ;;  %v1230_v57 = vsel %vm1228_vm3, %v4976_v15, %v4975_v56 }
 0x1a4   : > { %4974 = vst [vmem:[#allocation34_spill] sm:$0xff] %v3739_v32  ;;  %v669_v19 = vsel %vm4814_vm14, %v3582_v51, %v657_v48  ;;  %v670_v24 = vsel %vm4814_vm14, %v657_v48, %v3739_v32  ;;  %vm4819_vm14 = vcmask 719872  }
 0x1a5   : > { %v925_v41 = vsel %vm722_vm2, %v645_v20, %v669_v19  ;;  %v928_v10 = vsel %vm722_vm2, %v646_v49, %v670_v24  ;;  %1517 = vrot.lane.b32.xlu1 %v3742_v5, %s2508_s7  ;;  %1300 = vrot.lane.b32.xlu0 %v3085_v27, %s2503_s25  ;;  %v1190_v24 = vsel %vm747_vm4, %v1176_v54, %v3732_v34  ;;  %v4977_v19 = vld [vmem:[#allocation9_spill] sm:$0xff]  ;;  %v4981_v54 = vld [vmem:[#allocation14_spill] sm:$0xff] }
 0x1a6   : > { %v948_v51 = vsel %vm747_vm4, %v928_v10, %v694_v52  ;;  %v946_v45 = vsel %vm747_vm4, %v925_v41, %v693_v17  ;;  %v1324_v27 = vsel %vm764_vm5, %v4977_v19, %v1230_v57  ;;  %v3776_v38 = vsel %vm764_vm5, %v1190_v24, %v3737_v0  ;;  %v4978_v17 = vld [vmem:[#allocation61_spill] sm:$0xff]  ;;  %v4979_v52 = vld [vmem:[#allocation62_spill] sm:$0xff]  ;;  %v4984_v19 = vld [vmem:[#allocation67_spill] sm:$0xff] }
 0x1a7   : > { %v3764_v48 = vpop.permute.xlu1 %544  ;;  %v3766_v32 = vpop.permute.xlu0 %542  ;;  %v967_v20 = vsel %vm764_vm5, %v948_v51, %v718_v6  ;;  %v964_v49 = vsel %vm764_vm5, %v946_v45, %v717_v47  ;;  %v1229_v41 = vsel %vm1228_vm3, %v4978_v17, %v4976_v15  ;;  %v1231_v6 = vsel %vm1228_vm3, %v4975_v56, %v4979_v52  ;;  %v4980_v57 = vld [vmem:[#allocation10_spill] sm:$0xff]  ;;  %v4982_v56 = vld [vmem:[#allocation63_spill] sm:$0xff]  ;;  %v4983_v51 = vld [vmem:[#allocation64_spill] sm:$0xff] }
 0x1a8   : > { %1870 = vmatprep.subr.bf16.mxu1 %v967_v20  ;;  %v1322_v10 = vsel %vm764_vm5, %v4980_v57, %v1229_v41  ;;  %v1326_v15 = vsel %vm764_vm5, %v4981_v54, %v1231_v6  ;;  %v1257_v45 = vsel %vm4816_vm7, %v4983_v51, %v4982_v56  ;;  %v1258_v20 = vsel %vm4816_vm7, %v4982_v56, %v3215_v7  ;;  %v4985_v17 = vld [vmem:[#allocation66_spill] sm:$0xff]  ;;  %v4986_v57 = vld [vmem:[#allocation65_spill] sm:$0xff] }
 0x1a9   : > { %1619 = vrot.lane.b32.xlu1 %v1324_v27, %s2509_s27  ;;  %1519 = vrot.lane.b32.xlu0 %v3776_v38, %s2508_s7  ;;  %v1232_v27 = vsel %vm1228_vm3, %v4979_v52, %v4984_v19  ;;  %v1233_v41 = vsel %vm1228_vm3, %v4984_v19, %v4985_v17  ;;  %v1342_v7 = vsel %vm722_vm2, %v1257_v45, %v3305_v8  ;;  %v4989_v45 = vld [vmem:[#allocation69_spill] sm:$0xff]  ;;  %v5036_v0 = vld [vmem:[#allocation30_spill] sm:$0xff] }
 0x1aa   : > { %1871 = vmatpush1.bf16.msra.mxu1 %v964_v49  ;;  %v1344_v6 = vsel %vm722_vm2, %v1258_v20, %v3330_v62  ;;  %v1256_v52 = vsel %vm4816_vm7, %v4986_v57, %v4983_v51  ;;  %v1359_v62 = vsel %vm747_vm4, %v1342_v7, %v3325_v63  ;;  %v4988_v51 = vld [vmem:[#allocation68_spill] sm:$0xff]  ;;  %v5039_v34 = vld [vmem:[#allocation42_spill] sm:$0xff] }
 0x1ab   : > { %v3787_v47 = vpop.permute.xlu1 %568  ;;  %v3789_v3 = vpop.permute.xlu0 %566  ;;  %v1360_v8 = vsel %vm747_vm4, %v1344_v6, %v3349_v60  ;;  %v1340_v56 = vsel %vm722_vm2, %v1256_v52, %v3357_v35  ;;  %v1369_v60 = vsel %vm764_vm5, %v1359_v62, %v3338_v23  ;;  %v4991_v6 = vld [vmem:[#allocation70_spill] sm:$0xff]  ;;  %v4994_v62 = vld [vmem:[#allocation73_spill] sm:$0xff] }
 0x1ac   : > { %v1358_v63 = vsel %vm747_vm4, %v1340_v56, %v3375_v58  ;;  %v1371_v57 = vsel %vm764_vm5, %v4991_v6, %v3497_v4  ;;  %v1282_v56 = vsel %vm4819_vm14, %v3259_v2, %v4994_v62  ;;  %v4997_v6 = vld [vmem:[#allocation76_spill] sm:$0xff] }
 0x1ad   : > { %1617 = vrot.lane.b32.xlu1 %v1322_v10, %s2509_s27  ;;  %1621 = vrot.lane.b32.xlu0 %v1326_v15, %s2509_s27  ;;  %v4987_v15 = vld [vmem:[#allocation13_spill] sm:$0xff]  ;;  %v1368_v52 = vsel %vm764_vm5, %v1358_v63, %v3396_v50 }
 0x1af   : > { %v3803_v24 = vpop.permute.xlu1 %592  ;;  %v3805_v49 = vpop.permute.xlu0 %590 }
 0x1b1   : > { %1302 = vrot.lane.b32.xlu1 %v3230_v13, %s2503_s25  ;;  %1278 = vrot.lane.b32.xlu0 %v3211_v9, %s2502_s24  ;;  %v1330_v13 = vsel %vm764_vm5, %v3352_v61, %v1233_v41  ;;  %v1328_v9 = vsel %vm764_vm5, %v4987_v15, %v1232_v27  ;;  %v1260_v61 = vsel %vm4816_vm7, %v4989_v45, %v4988_v51  ;;  %vm4817_vm7 = vcmask 711680  }
 0x1b2   : > { %v1370_v27 = vsel %vm764_vm5, %v1360_v8, %v3365_v43  ;;  %v1348_v35 = vsel %vm722_vm2, %v1260_v61, %v3460_v18  ;;  %v4990_v43 = vld [vmem:[#allocation71_spill] sm:$0xff]  ;;  %v4993_v18 = vld [vmem:[#allocation72_spill] sm:$0xff] }
 0x1b3   : > { %v3824_v10 = vpop.permute.xlu1 %614  ;;  %v3826_v54 = vpop.permute.xlu0 %999  ;;  %v1281_v23 = vsel %vm4819_vm14, %v4990_v43, %v3259_v2  ;;  %v1382_v2 = vsel %vm747_vm4, %v3449_v33, %v4990_v43  ;;  %v4998_v43 = vld [vmem:[#allocation79_spill] sm:$0xff] }
 0x1b4   : > { %v1384_v50 = vsel %vm747_vm4, %v3434_v46, %v1281_v23 }
 0x1b5   : > { %1625 = vrot.lane.b32.xlu1 %v1330_v13, %s2509_s27  ;;  %1623 = vrot.lane.b32.xlu0 %v1328_v9, %s2509_s27  ;;  %v4992_v13 = vld [vmem:[#allocation75_spill] sm:$0xff]  ;;  %v1362_v9 = vsel %vm747_vm4, %v1348_v35, %v3502_v16  ;;  %v1386_v35 = vsel %vm747_vm4, %v3563_v14, %v1282_v56  ;;  %v4999_v14 = vld [vmem:[#allocation78_spill] sm:$0xff] }
 0x1b6   : > { %v1305_v15 = vsel %vm4817_vm7, %v4993_v18, %v4992_v13  ;;  %v1372_v61 = vsel %vm764_vm5, %v1362_v9, %v3507_v30  ;;  %v5042_v30 = vld [vmem:[#allocation41_spill] sm:$0xff] }
 0x1b7   : > { %v3843_v20 = vpop.permute.xlu1 %1027  ;;  %v3845_v19 = vpop.permute.xlu0 %616  ;;  %v1402_v45 = vsel %vm764_vm5, %v1384_v50, %v1305_v15 }
 0x1b9   : > { %1639 = vrot.lane.b32.xlu1 %v1370_v27, %s2509_s27  ;;  %1637 = vrot.lane.b32.xlu0 %v1369_v60, %s2509_s27  ;;  %v4995_v60 = vld [vmem:[#allocation74_spill] sm:$0xff] }
 0x1ba   : > { %v1306_v16 = vsel %vm4817_vm7, %v4992_v13, %v4995_v60  ;;  %v1308_v13 = vsel %vm4817_vm7, %v4998_v43, %v4999_v14 }
 0x1bb   : > { %v3857_v41 = vpop.permute.xlu1 %1467  ;;  %v1466_v7 = vpop.permute.xlu0 %1465  ;;  %v1404_v33 = vsel %vm764_vm5, %v1386_v35, %v1306_v16  ;;  %v5005_v16 = vld [vmem:[#allocation4_spill] sm:$0xff] }
 0x1bc   : > { %v1529_v58 = vsel %vm1527_vm15, %v1466_v7, %v3857_v41 }
 0x1bd   : > { %1641 = vrot.lane.b32.xlu1 %v1371_v57, %s2509_s27  ;;  %1635 = vrot.lane.b32.xlu0 %v1368_v52, %s2509_s27  ;;  %v1400_v52 = vsel %vm764_vm5, %v1382_v2, %v4993_v18  ;;  %v5006_v2 = vld [vmem:[#allocation2_spill] sm:$0xff] }
 0x1be   : > { %1831 = vmatprep.subr.bf16.mxu0 %v1529_v58  ;;  %v1307_v58 = vsel %vm4817_vm7, %v4995_v60, %v4998_v43  ;;  %vm4818_vm7 = vcmask 556032  }
 0x1bf   : > { %v1464_v8 = vpop.permute.xlu1 %1463  ;;  %v3876_v4 = vpop.permute.xlu0 %1039 }
 0x1c0   : > { %v1528_v27 = vsel %vm1527_vm15, %v1464_v8, %v1466_v7  ;;  %v4996_v7 = vld [vmem:[#allocation77_spill] sm:$0xff] }
 0x1c1   : > { %1655 = vrot.lane.b32.xlu1 %v1402_v45, %s2509_s27  ;;  %1643 = vrot.lane.b32.xlu0 %v1372_v61, %s2509_s27  ;;  %v1283_v23 = vsel %vm4819_vm14, %v4994_v62, %v4996_v7  ;;  %v1284_v57 = vsel %vm4819_vm14, %v4996_v7, %v4997_v6 }
 0x1c2   : > { %1832 = vmatpush1.bf16.msra.mxu0 %v1528_v27  ;;  %v1390_v18 = vsel %vm747_vm4, %v3616_v37, %v1284_v57  ;;  %v1388_v8 = vsel %vm747_vm4, %v3543_v44, %v1283_v23  ;;  %v1419_v44 = vsel %vm722_vm2, %v4947_v39, %v4945_v53  ;;  %v3960_v27 = vld.sshfl [vmem:[%s285_s13] sm:$0x33 pattern:$0x76325410]  ;;  %v5008_v57 = vld [vmem:[#allocation5_spill] sm:$0xff] }
 0x1c3   : > { %v3895_v46 = vpop.permute.xlu1 %1068  ;;  %v3897_v63 = vpop.permute.xlu0 %1066  ;;  %v1408_v50 = vsel %vm764_vm5, %v1390_v18, %v1308_v13  ;;  %v1406_v62 = vsel %vm764_vm5, %v1388_v8, %v1307_v58  ;;  %5002 = vst [vmem:[#allocation46_spill] sm:$0xff] %v3960_v27  ;;  %v3966_v60 = vcombine.high %v3960_v27, %v3960_v27  ;;  %v5010_v13 = vld [vmem:[#allocation32_spill] sm:$0xff]  ;;  %v5011_v18 = vld [vmem:[#allocation7_spill] sm:$0xff] }
 0x1c5   : > { %1653 = vrot.lane.b32.xlu1 %v1400_v52, %s2509_s27  ;;  %1657 = vrot.lane.b32.xlu0 %v1404_v33, %s2509_s27  ;;  %5003 = vst [vmem:[#allocation37_spill] sm:$0xff] %v3966_v60 }
 0x1c6   : > { %2391 = vmatprep.mubr.msk.bf16.mxu0 %vm4818_vm7, %v3966_v60  ;;  %2393 = vmatprep.mubr.msk.bf16.mxu1 %vm4818_vm7, %v3966_v60  ;;  %vm5018_vm7 = vcmask 1022976  }
 0x1c7   : > { %v3918_v15 = vpop.permute.xlu1 %1095  ;;  %v3920_v9 = vpop.permute.xlu0 %1093  ;;  %vm5020_vm14 = vmmov %vm5018_vm7 }
 0x1c9   : > { %1661 = vrot.lane.b32.xlu1 %v1408_v50, %s2509_s27  ;;  %1659 = vrot.lane.b32.xlu0 %v1406_v62, %s2509_s27 }
 0x1cb   : > { %v3932_v56 = vpop.permute.xlu1 %688  ;;  %v3934_v45 = vpop.permute.xlu0 %686 }
 0x1cd   : > { %1675 = vrot.lane.b32.xlu1 %v3690_v1, %s2509_s27  ;;  %1673 = vrot.lane.b32.xlu0 %v3662_v55, %s2509_s27  ;;  %v1424_v1 = vsel %vm747_vm4, %v1419_v44, %v4939_v36 }
 0x1ce   : > { %v1428_v55 = vsel %vm764_vm5, %v1424_v1, %v3132_v11  ;;  %v5004_v11 = vld [vmem:[#allocation3_spill] sm:$0xff] }
 0x1cf   : > { %v3954_v37 = vpop.permute.xlu1 %1045  ;;  %v3956_v61 = vpop.permute.xlu0 %1042 }
 0x1d1   : > { %1677 = vrot.lane.b32.xlu1 %v3742_v5, %s2509_s27  ;;  %1671 = vrot.lane.b32.xlu0 %v1428_v55, %s2509_s27  ;;  %v5013_v55 = vld [vmem:[#allocation31_spill] sm:$0xff] }
 0x1d3   : > { %v3975_v36 = vpop.permute.xlu1 %712  ;;  %v3977_v39 = vpop.permute.xlu0 %710 }
 0x1d5   : > { %1754 = vrot.lane.b32.xlu1 %v5004_v11, %s2510_s14  ;;  %1679 = vrot.lane.b32.xlu0 %v3776_v38, %s2509_s27  ;;  %v5009_v38 = vld [vmem:[#allocation6_spill] sm:$0xff] }
 0x1d7   : > { %v1470_v53 = vpop.permute.xlu1 %1469  ;;  %v3983_v5 = vpop.permute.xlu0 %1048 }
 0x1d8   : > { %v1530_v52 = vsel %vm1527_vm15, %v3857_v41, %v1470_v53  ;;  %v5012_v41 = vld [vmem:[#allocation8_spill] sm:$0xff] }
 0x1d9   : > { %1758 = vrot.lane.b32.xlu1 %v5005_v16, %s2510_s14  ;;  %1756 = vrot.lane.b32.xlu0 %v5006_v2, %s2510_s14 }
 0x1db   : > { %v1482_v35 = vpop.permute.xlu1 %1481  ;;  %v3989_v7 = vpop.permute.xlu0 %1471 }
 0x1dc   : > { %5007 = vst [vmem:[#allocation48_spill] sm:$0xff] %v3989_v7  ;;  %v1531_v23 = vsel %vm1527_vm15, %v1470_v53, %v3989_v7 }
 0x1dd   : > { %1762 = vrot.lane.b32.xlu1 %v5008_v57, %s2510_s14  ;;  %1760 = vrot.lane.b32.xlu0 %v5009_v38, %s2510_s14  ;;  %v369_v38 = vsel %vm4824_vm0, %v3464_v28, %v3462_v21 }
 0x1de   : > { %1872 = vmatprep.subr.bf16.mxu1 %v1531_v23 }
 0x1df   : > { %1873 = vmatpush1.bf16.msra.mxu1 %v1530_v52  ;;  %v3999_v33 = vpop.permute.xlu1 %1051  ;;  %v1484_v43 = vpop.permute.xlu0 %1483  ;;  %v5016_v52 = vld [vmem:[#allocation12_spill] sm:$0xff] }
 0x1e0   : > { %v1536_v58 = vsel %vm1527_vm15, %v1482_v35, %v1484_v43 }
 0x1e1   : > { %470 = vrot.lane.b32.xlu1 %v5010_v13, %s2504_s26  ;;  %468 = vrot.lane.b32.xlu0 %v5011_v18, %s2504_s26 }
 0x1e2   : > { %1833 = vmatprep.subr.bf16.mxu0 %v1536_v58  ;;  %v400_v58 = vsel %vm4821_vm1, %v5016_v52, %v3547_v31  ;;  %v5022_v52 = vld [vmem:[#allocation19_spill] sm:$0xff] }
 0x1e3   : > { %v4006_v8 = vpop.permute.xlu1 %1070  ;;  %v1480_v50 = vpop.permute.xlu0 %1479 }
 0x1e4   : > { %v1535_v62 = vsel %vm1527_vm15, %v1480_v50, %v1482_v35  ;;  %v5015_v35 = vld [vmem:[#allocation11_spill] sm:$0xff] }
 0x1e5   : > { %494 = vrot.lane.b32.xlu1 %v3074_v26, %s2505_s22  ;;  %492 = vrot.lane.b32.xlu0 %v5012_v41, %s2505_s22  ;;  %v368_v23 = vsel %vm4824_vm0, %v5015_v35, %v3464_v28  ;;  %v5017_v50 = vld [vmem:[#allocation15_spill] sm:$0xff]  ;;  %v5019_v41 = vld [vmem:[#allocation21_spill] sm:$0xff] }
 0x1e6   : > { %1834 = vmatpush1.bf16.msra.mxu0 %v1535_v62  ;;  %v432_v62 = vsel %vm5018_vm7, %v5017_v50, %v3572_v40  ;;  %v433_v28 = vsel %vm5020_vm14, %v3572_v40, %v5019_v41  ;;  %vm5023_vm7 = vcmask 883712  }
 0x1e7   : > { %v4013_v44 = vpop.permute.xlu1 %1108  ;;  %v4015_v1 = vpop.permute.xlu0 %1097  ;;  %vm5025_vm14 = vmmov %vm5023_vm7 }
 0x1e9   : > { %496 = vrot.lane.b32.xlu1 %v3071_v12, %s2505_s22  ;;  %472 = vrot.lane.b32.xlu0 %v5013_v55, %s2504_s26  ;;  %s297_s26 = scalar_lea.vmem %s4714_s4, %s3945_s10 }
 0x1eb   : > { %v4021_v11 = vpop.permute.xlu1 %1224  ;;  %v4023_v53 = vpop.permute.xlu0 %1222 }
 0x1ed   : > { %638 = vrot.lane.b32.xlu1 %v3038_v29, %s2506_s29  ;;  %636 = vrot.lane.b32.xlu0 %v5008_v57, %s2506_s29 }
 0x1ef   : > { %v4029_v26 = vpop.permute.xlu1 %1487  ;;  %v1486_v16 = vpop.permute.xlu0 %1485 }
 0x1f0   : > { %5014 = vst [vmem:[#allocation45_spill] sm:$0xff] %v4029_v26  ;;  %v1538_v2 = vsel %vm1527_vm15, %v1486_v16, %v4029_v26  ;;  %v1537_v12 = vsel %vm1527_vm15, %v1484_v43, %v1486_v16  ;;  %v401_v43 = vsel %vm4821_vm1, %v3547_v31, %v3545_v22  ;;  %v743_v31 = vsel %vm722_vm2, %v3038_v29, %v369_v38  ;;  %v5034_v26 = vld [vmem:[#allocation24_spill] sm:$0xff] }
 0x1f1   : > { %662 = vrot.lane.b32.xlu1 %v5010_v13, %s2507_s30  ;;  %660 = vrot.lane.b32.xlu0 %v5011_v18, %s2507_s30  ;;  %v4069_v35 = vsel %vm747_vm4, %v743_v31, %v401_v43 }
 0x1f2   : > { %1874 = vmatprep.subr.bf16.mxu1 %v1538_v2  ;;  %v740_v2 = vsel %vm722_vm2, %v5008_v57, %v368_v23  ;;  %v4077_v57 = vsel %vm5023_vm7, %v5022_v52, %v3652_v42  ;;  %v5024_v23 = vld [vmem:[#allocation20_spill] sm:$0xff]  ;;  %v4088_v43 = vsel %vm764_vm5, %v4069_v35, %v433_v28  ;;  %vm5030_vm7 = vcmask 1014784   ;;  %v5032_v52 = vld [vmem:[#allocation22_spill] sm:$0xff] }
 0x1f3   : > { %1875 = vmatpush1.bf16.msra.mxu1 %v1537_v12  ;;  %v4050_v13 = vpop.permute.xlu1 %1499  ;;  %v1498_v18 = vpop.permute.xlu0 %1497  ;;  %v5021_v12 = vld [vmem:[#allocation27_spill] sm:$0xff]  ;;  %v4072_v40 = vsel %vm747_vm4, %v740_v2, %v400_v58  ;;  %v4082_v38 = vsel %vm5025_vm14, %v3652_v42, %v5024_v23  ;;  %5026 = vst [vmem:[#allocation44_spill] sm:$0xff] %v4088_v43  ;;  %v5029_v2 = vld [vmem:[#allocation16_spill] sm:$0xff]  ;;  %vm5033_vm14 = vcmask 875520   ;;  %vm5037_vm0 = vmmov %vm5030_vm7 }
 0x1f4   : > { %v1543_v16 = vsel %vm1527_vm15, %v1498_v18, %v4050_v13  ;;  %v4092_v58 = vsel %vm764_vm5, %v4072_v40, %v432_v62  ;;  %v4102_v42 = vsel %vm5033_vm14, %v5032_v52, %v3685_v25  ;;  %vm5035_vm1 = vmmov %vm5033_vm14 }
 0x1f5   : > { %664 = vrot.lane.b32.xlu1 %v5013_v55, %s2507_s30  ;;  %640 = vrot.lane.b32.xlu0 %v5021_v12, %s2506_s29  ;;  %5027 = vst [vmem:[#allocation36_spill] sm:$0xff] %v4092_v58  ;;  %v4107_v7 = vsel %vm5035_vm1, %v3685_v25, %v5034_v26  ;;  %vm5049_vm1 = vcmask 883712   ;;  %s2401_s29 = sshll.u32 %s5114_s9, 5 }
 0x1f6   : > { %1835 = vmatprep.subr.bf16.mxu0 %v1543_v16  ;;  %v5028_v16 = vld [vmem:[#allocation40_spill] sm:$0xff] }
 0x1f7   : > { %v1496_v55 = vpop.permute.xlu1 %1495  ;;  %v4084_v50 = vpop.permute.xlu0 %1111  ;;  %v4097_v31 = vsel %vm5030_vm7, %v5029_v2, %v5028_v16  ;;  %v4113_v62 = vsel %vm5037_vm0, %v5028_v16, %v5036_v0  ;;  %v5040_v2 = vld [vmem:[#allocation23_spill] sm:$0xff]  ;;  %vm5041_vm7 = vcmask 867328   ;;  %vm5048_vm0 = vcmask 834560  }
 0x1f8   : > { %5031 = vst [vmem:[#allocation43_spill] sm:$0xff] %v4097_v31  ;;  %v1542_v28 = vsel %vm1527_vm15, %v1496_v55, %v1498_v18  ;;  %5038 = vst [vmem:[#allocation49_spill] sm:$0xff] %v4113_v62  ;;  %v4118_v59 = vsel %vm5041_vm7, %v5040_v2, %v5039_v34  ;;  %v1125_v25 = vsel %vm722_vm2, %v4097_v31, %v4077_v57  ;;  %v5044_v55 = vld [vmem:[#allocation29_spill] sm:$0xff]  ;;  %v5045_v31 = vld [vmem:[#allocation39_spill] sm:$0xff] }
 0x1f9   : > { %vm5043_vm14 = vmmov %vm5041_vm7  ;;  %1475 = vrot.lane.b32.xlu1 %v4088_v43, %s2508_s7  ;;  %1473 = vrot.lane.b32.xlu0 %v4092_v58, %s2508_s7  ;;  %v1127_v18 = vsel %vm722_vm2, %v4113_v62, %v4082_v38  ;;  %v1141_v60 = vsel %vm747_vm4, %v1125_v25, %v4102_v42  ;;  %v600_v27 = vsel %vm594_vm13, %v5045_v31, %v3805_v49  ;;  %v5046_v58 = vld [vmem:[#allocation25_spill] sm:$0xff]  ;;  %v5047_v25 = vld [vmem:[#allocation47_spill] sm:$0xff]  ;;  %vm5051_vm7 = vcmask 875520  }
 0x1fa   : > { %v4123_v52 = vsel %vm5043_vm14, %v5039_v34, %v5042_v30  ;;  %1836 = vmatpush1.bf16.msra.mxu0 %v1542_v28  ;;  %v576_v34 = vsel %vm570_vm12, %v5044_v55, %v3789_v3  ;;  %v1143_v43 = vsel %vm747_vm4, %v1127_v18, %v4107_v7  ;;  %v1151_v55 = vsel %vm764_vm5, %v1141_v60, %v4118_v59  ;;  %vm5053_vm14 = vmmov %vm5048_vm0 }
 0x1fb   : > { %v4138_v16 = vpop.permute.xlu1 %1249  ;;  %v4140_v2 = vpop.permute.xlu0 %1204  ;;  %v1152_v28 = vsel %vm764_vm5, %v1143_v43, %v4123_v52  ;;  %v746_v62 = vsel %vm722_vm2, %v5021_v12, %v3462_v21  ;;  %v552_v18 = vsel %vm546_vm11, %v5046_v58, %v3766_v32  ;;  %v624_v29 = vsel %vm5048_vm0, %v5047_v25, %v3824_v10 }
 0x1fc   : > { %v577_v60 = vsel %vm570_vm12, %v3789_v3, %v3787_v47  ;;  %v4168_v43 = vsel %vm722_vm2, %v552_v18, %v576_v34  ;;  %v763_v31 = vsel %vm747_vm4, %v746_v62, %v3545_v22  ;;  %v601_v58 = vsel %vm594_vm13, %v3805_v49, %v3803_v24 }
 0x1fd   : > { %1491 = vrot.lane.b32.xlu1 %v1152_v28, %s2508_s7  ;;  %1489 = vrot.lane.b32.xlu0 %v1151_v55, %s2508_s7  ;;  %v4178_v28 = vsel %vm5049_vm1, %v5024_v23, %v3826_v54  ;;  %v888_v3 = vsel %vm747_vm4, %v4168_v43, %v600_v27  ;;  %v4188_v34 = vsel %vm764_vm5, %v763_v31, %v5019_v41  ;;  %vm5054_vm0 = vcmask 867328  }
 0x1fe   : > { %5050 = vst [vmem:[#allocation53_spill] sm:$0xff] %v4188_v34  ;;  %v553_v49 = vsel %vm546_vm11, %v3766_v32, %v3764_v48  ;;  %v4196_v23 = vsel %vm5051_vm7, %v5034_v26, %v3843_v20  ;;  %v4199_v62 = vsel %vm764_vm5, %v888_v3, %v624_v29  ;;  %v625_v27 = vsel %vm5053_vm14, %v3824_v10, %v3845_v19  ;;  %v5055_v10 = vld [vmem:[#allocation52_spill] sm:$0xff] }
 0x1ff   : > { %v4180_v55 = vpop.permute.xlu1 %1207  ;;  %v4182_v25 = vpop.permute.xlu0 %1251  ;;  %5052 = vst [vmem:[#allocation55_spill] sm:$0xff] %v4199_v62  ;;  %v4205_v18 = vsel %vm722_vm2, %v553_v49, %v577_v60  ;;  %v4210_v41 = vsel %vm5054_vm0, %v5042_v30, %v3876_v4  ;;  %v1129_v29 = vsel %vm722_vm2, %v5036_v0, %v4178_v28  ;;  %v1105_v26 = vsel %vm1099_vm9, %v5055_v10, %v3920_v9  ;;  %v5058_v0 = vld [vmem:[#allocation54_spill] sm:$0xff] }
 0x200   : > { %v890_v32 = vsel %vm747_vm4, %v4205_v18, %v601_v58  ;;  %v1106_v60 = vsel %vm1099_vm9, %v3920_v9, %v3918_v15  ;;  %v1145_v30 = vsel %vm747_vm4, %v1129_v29, %v4196_v23  ;;  %v4240_v10 = vsel %vm690_vm10, %v5058_v0, %v3934_v45 }
 0x201   : > { %1505 = vrot.lane.b32.xlu1 %v4199_v62, %s2508_s7  ;;  %1477 = vrot.lane.b32.xlu0 %v4188_v34, %s2508_s7  ;;  %v4230_v49 = vsel %vm764_vm5, %v890_v32, %v625_v27  ;;  %v5057_v62 = vld [vmem:[#allocation50_spill] sm:$0xff]  ;;  %v4245_v9 = vsel %vm690_vm10, %v3934_v45, %v3932_v56  ;;  %v1154_v27 = vsel %vm764_vm5, %v1145_v30, %v4210_v41  ;;  %v5059_v32 = vld [vmem:[#allocation56_spill] sm:$0xff]  ;;  %vm5070_vm1 = vcmask 711680  }
 0x202   : > { %5056 = vst [vmem:[#allocation51_spill] sm:$0xff] %v4230_v49  ;;  %v1078_v58 = vsel %vm1072_vm6, %v5057_v62, %v3897_v63  ;;  %v1079_v29 = vsel %vm1072_vm6, %v3897_v63, %v3895_v46  ;;  %v4255_v62 = vsel %vm714_vm8, %v5059_v32, %v3977_v39  ;;  %v4260_v0 = vsel %vm714_vm8, %v3977_v39, %v3975_v36  ;;  %vm5071_vm7 = vmmov %vm5070_vm1 }
 0x203   : > { %v1502_v31 = vpop.permute.xlu1 %1501  ;;  %v4227_v3 = vpop.permute.xlu0 %1226  ;;  %v1179_v30 = vsel %vm722_vm2, %v1078_v58, %v1105_v26  ;;  %v1182_v45 = vsel %vm722_vm2, %v1079_v29, %v1106_v60  ;;  %v1047_v63 = vsel %vm570_vm12, %v3787_v47, %v3954_v37  ;;  %v1044_v32 = vsel %vm546_vm11, %v3764_v48, %v3956_v61  ;;  %vm5061_vm12 = vmmov %vm5053_vm14 }
 0x204   : > { %v1050_v39 = vsel %vm594_vm13, %v3803_v24, %v3983_v5  ;;  %v1192_v26 = vsel %vm747_vm4, %v1182_v45, %v4245_v9  ;;  %v1191_v60 = vsel %vm747_vm4, %v1179_v30, %v4240_v10  ;;  %v1053_v58 = vsel %vm5061_vm12, %v3845_v19, %v3999_v33  ;;  %vm5072_vm0 = vmmov %vm5070_vm1 }
 0x205   : > { %1507 = vrot.lane.b32.xlu0 %v4230_v49, %s2508_s7  ;;  %1493 = vrot.lane.b32.xlu1 %v1154_v27, %s2508_s7  ;;  %v4287_v27 = vsel %vm764_vm5, %v1192_v26, %v4260_v0  ;;  %v4291_v5 = vsel %vm764_vm5, %v1191_v60, %v4255_v62  ;;  %v4296_v45 = vsel %vm722_vm2, %v1044_v32, %v1047_v63  ;;  %vm5068_vm11 = vcmask 719872  }
 0x206   : > { %v1107_v30 = vsel %vm1099_vm9, %v3918_v15, %v4015_v1  ;;  %v1234_v33 = vsel %vm1228_vm3, %v4985_v17, %v4023_v53  ;;  %v1159_v26 = vsel %vm747_vm4, %v4296_v45, %v1050_v39  ;;  %v1544_v63 = vsel %vm1527_vm15, %v4050_v13, %v1502_v31  ;;  %vm5069_vm13 = vmmov %vm5068_vm11 }
 0x207   : > { %v1514_v34 = vpop.permute.xlu1 %1513  ;;  %v4276_v49 = vpop.permute.xlu0 %1503  ;;  %v1080_v15 = vsel %vm1072_vm6, %v3895_v46, %v4006_v8  ;;  %v1110_v17 = vsel %vm690_vm10, %v3932_v56, %v4013_v44  ;;  %vm5062_vm6 = vcmask 891904   ;;  %vm5063_vm9 = vcmask 1039360   ;;  %vm5073_vm12 = vmmov %vm5068_vm11 }
 0x208   : > { %5060 = vst [vmem:[#allocation57_spill] sm:$0xff] %v4276_v49  ;;  %v1545_v29 = vsel %vm1527_vm15, %v1502_v31, %v4276_v49  ;;  %v1161_v49 = vsel %vm764_vm5, %v1159_v26, %v1053_v58  ;;  %v1185_v39 = vsel %vm722_vm2, %v1080_v15, %v1107_v30  ;;  %v1235_v31 = vsel %vm1228_vm3, %v4023_v53, %v4021_v11  ;;  %vm5064_vm10 = vmmov %vm5062_vm6 }
 0x209   : > { %1523 = vrot.lane.b32.xlu1 %v4287_v27, %s2508_s7  ;;  %1521 = vrot.lane.b32.xlu0 %v4291_v5, %s2508_s7  ;;  %v1262_v53 = vsel %vm5064_vm10, %v4138_v16, %v4182_v25  ;;  %vm1689_vm14 = vcmask 293888   ;;  %vm5082_vm10 = vcmask 1006592  }
 0x20a   : > { %1876 = vmatprep.subr.bf16.mxu1 %v1545_v29  ;;  %v1332_v29 = vsel %vm764_vm5, %v4072_v40, %v1234_v33  ;;  %v1261_v40 = vsel %vm5062_vm6, %v4988_v51, %v4138_v16  ;;  %v1334_v51 = vsel %vm764_vm5, %v4069_v35, %v1235_v31  ;;  %v5066_v35 = vld [vmem:[#allocation60_spill] sm:$0xff] }
 0x20b   : > { %1877 = vmatpush1.bf16.msra.mxu1 %v1544_v63  ;;  %v1512_v32 = vpop.permute.xlu1 %1511  ;;  %v4318_v60 = vpop.permute.xlu0 %1515  ;;  %v1113_v63 = vsel %vm714_vm8, %v3975_v36, %v4084_v50  ;;  %vm5065_vm8 = vcmask 1031168   ;;  %v1350_v16 = vsel %vm722_vm2, %v1261_v40, %v4077_v57  ;;  %v1316_v15 = vsel %vm722_vm2, %v5066_v35, %v4140_v2 }
 0x20c   : > { %v1550_v13 = vsel %vm1527_vm15, %v1514_v34, %v4318_v60  ;;  %v1549_v46 = vsel %vm1527_vm15, %v1512_v32, %v1514_v34  ;;  %v1206_v34 = vsel %vm5063_vm9, %v3462_v21, %v4140_v2  ;;  %v1209_v33 = vsel %vm5065_vm8, %v3545_v22, %v4180_v55  ;;  %vm5083_vm8 = vmmov %vm5082_vm10 }
 0x20d   : > { %1509 = vrot.lane.b32.xlu0 %v1161_v49, %s2508_s7  ;;  %1627 = vrot.lane.b32.xlu1 %v1332_v29, %s2509_s27  ;;  %v1194_v49 = vsel %vm747_vm4, %v1185_v39, %v1110_v17  ;;  %v1236_v21 = vsel %vm1228_vm3, %v4021_v11, %v4227_v3  ;;  %v1313_v22 = vsel %vm722_vm2, %v5021_v12, %v1206_v34  ;;  %vm5067_vm3 = vmmov %vm5062_vm6  ;;  %vm1770_vm6 = vcmask 965632  }
 0x20e   : > { %1837 = vmatprep.subr.bf16.mxu0 %v1550_v13  ;;  %v4351_v26 = vsel %vm764_vm5, %v1194_v49, %v1113_v63  ;;  %v1352_v17 = vsel %vm722_vm2, %v1262_v53, %v4082_v38  ;;  %v1318_v11 = vsel %vm747_vm4, %v1313_v22, %v1209_v33  ;;  %v1320_v32 = vsel %vm747_vm4, %v1316_v15, %v4180_v55 }
 0x20f   : > { %1838 = vmatpush1.bf16.msra.mxu0 %v1549_v46  ;;  %v1275_v58 = vpop.permute.xlu1 %1274  ;;  %v1254_v30 = vpop.permute.xlu0 %1253  ;;  %v1338_v13 = vsel %vm764_vm5, %v1320_v32, %v4227_v3  ;;  %v1336_v46 = vsel %vm764_vm5, %v1318_v11, %v1236_v21  ;;  %v1364_v38 = vsel %vm747_vm4, %v1352_v17, %v4107_v7  ;;  %v1363_v2 = vsel %vm747_vm4, %v1350_v16, %v4102_v42 }
 0x210   : > { %v1263_v39 = vsel %vm5067_vm3, %v4182_v25, %v1254_v30  ;;  %v1357_v25 = vsel %vm722_vm2, %v1254_v30, %v3826_v54  ;;  %v1374_v63 = vsel %vm764_vm5, %v1364_v38, %v4123_v52  ;;  %v1373_v40 = vsel %vm764_vm5, %v1363_v2, %v4118_v59 }
 0x211   : > { %1629 = vrot.lane.b32.xlu0 %v1334_v51, %s2509_s27  ;;  %1525 = vrot.lane.b32.xlu1 %v4351_v26, %s2508_s7  ;;  %v1354_v55 = vsel %vm722_vm2, %v1263_v39, %v4178_v28  ;;  %v1367_v7 = vsel %vm747_vm4, %v1357_v25, %v3843_v20  ;;  %v1285_v54 = vsel %vm5068_vm11, %v4997_v6, %v1275_v58  ;;  %vm5080_vm9 = vcmask 556032   ;;  %s302_s7 = scalar_lea.vmem %s4716_s6, %s2401_s29 }
 0x212   : > { %v1365_v42 = vsel %vm747_vm4, %v1354_v55, %v4196_v23  ;;  %v1377_v30 = vsel %vm764_vm5, %v1367_v7, %v3876_v4  ;;  %v1392_v6 = vsel %vm747_vm4, %v4168_v43, %v1285_v54  ;;  %v1380_v43 = vsel %vm722_vm2, %v3956_v61, %v3954_v37  ;;  %vm5085_vm3 = vmmov %vm5080_vm9 }
 0x213   : > { %v1299_v29 = vpop.permute.xlu1 %1298  ;;  %v1277_v57 = vpop.permute.xlu0 %1276  ;;  %v1375_v20 = vsel %vm764_vm5, %v1365_v42, %v4210_v41  ;;  %vm5089_vm11 = vcmask 998400  }
 0x214   : > { %v1286_v53 = vsel %vm5069_vm13, %v1275_v58, %v1277_v57  ;;  %v1309_v23 = vsel %vm5070_vm1, %v4999_v14, %v1299_v29  ;;  %vm5090_vm13 = vmmov %vm5089_vm11 }
 0x215   : > { %1633 = vrot.lane.b32.xlu1 %v1338_v13, %s2509_s27  ;;  %1631 = vrot.lane.b32.xlu0 %v1336_v46, %s2509_s27  ;;  %v1394_v41 = vsel %vm747_vm4, %v4205_v18, %v1286_v53  ;;  %v1410_v51 = vsel %vm764_vm5, %v1392_v6, %v1309_v23  ;;  %vm5092_vm1 = vmmov %vm5089_vm11 }
 0x217   : > { %v1518_v31 = vpop.permute.xlu1 %1517  ;;  %v1301_v3 = vpop.permute.xlu0 %1300 }
 0x218   : > { %v1310_v33 = vsel %vm5071_vm7, %v1299_v29, %v1301_v3  ;;  %v1551_v4 = vsel %vm1527_vm15, %v4318_v60, %v1518_v31  ;;  %vm5093_vm7 = vmmov %vm5083_vm8 }
 0x219   : > { %1647 = vrot.lane.b32.xlu1 %v1374_v63, %s2509_s27  ;;  %1645 = vrot.lane.b32.xlu0 %v1373_v40, %s2509_s27  ;;  %v1412_v21 = vsel %vm764_vm5, %v1394_v41, %v1310_v33 }
 0x21b   : > { %v1620_v28 = vpop.permute.xlu1 %1619  ;;  %v4398_v34 = vpop.permute.xlu0 %1519 }
 0x21c   : > { %v1552_v49 = vsel %vm1527_vm15, %v1518_v31, %v4398_v34 }
 0x21d   : > { %1651 = vrot.lane.b32.xlu1 %v1377_v30, %s2509_s27  ;;  %1649 = vrot.lane.b32.xlu0 %v1375_v20, %s2509_s27 }
 0x21e   : > { %1878 = vmatprep.subr.bf16.mxu1 %v1552_v49 }
 0x21f   : > { %1879 = vmatpush1.bf16.msra.mxu1 %v1551_v4  ;;  %v1618_v58 = vpop.permute.xlu1 %1617  ;;  %v1622_v14 = vpop.permute.xlu0 %1621 }
 0x220   : > { %v1691_v16 = vsel %vm1689_vm14, %v1620_v28, %v1622_v14  ;;  %v1690_v22 = vsel %vm1689_vm14, %v1618_v58, %v1620_v28 }
 0x221   : > { %1663 = vrot.lane.b32.xlu0 %v1410_v51, %s2509_s27  ;;  %1665 = vrot.lane.b32.xlu1 %v1412_v21, %s2509_s27 }
 0x222   : > { %1839 = vmatprep.subr.bf16.mxu0 %v1691_v16 }
 0x223   : > { %1840 = vmatpush1.bf16.msra.mxu0 %v1690_v22  ;;  %v1303_v18 = vpop.permute.xlu1 %1302  ;;  %v1279_v60 = vpop.permute.xlu0 %1278 }
 0x224   : > { %v1311_v15 = vsel %vm5072_vm0, %v1301_v3, %v1303_v18  ;;  %v1287_v17 = vsel %vm5073_vm12, %v1277_v57, %v1279_v60  ;;  %v1398_v11 = vsel %vm747_vm4, %v1380_v43, %v1279_v60  ;;  %v5075_v60 = vld [vmem:[#allocation36_spill] sm:$0xff]  ;;  %vm5100_vm0 = vcmask 826368  }
 0x225   : > { %v1396_v32 = vsel %vm747_vm4, %v4296_v45, %v1287_v17  ;;  %v1416_v39 = vsel %vm764_vm5, %v1398_v11, %v1303_v18  ;;  %v1422_v45 = vsel %vm722_vm2, %v4006_v8, %v4015_v1  ;;  %vm5101_vm12 = vmmov %vm5100_vm0 }
 0x226   : > { %1669 = vrot.lane.b32.xlu1 %v1416_v39, %s2509_s27  ;;  %v1414_v29 = vsel %vm764_vm5, %v1396_v32, %v1311_v15  ;;  %v1426_v2 = vsel %vm747_vm4, %v1422_v45, %v4013_v44  ;;  %v5076_v32 = vld [vmem:[#allocation46_spill] sm:$0xff]  ;;  %v5079_v45 = vld [vmem:[#allocation37_spill] sm:$0xff] }
 0x227   : > { %v4435_v13 = vpop.permute.xlu1 %1625  ;;  %1667 = vrot.lane.b32.xlu0 %v1414_v29, %s2509_s27  ;;  %v1624_v37 = vpop.permute.xlu0 %1623  ;;  %v1430_v25 = vsel %vm764_vm5, %v1426_v2, %v4084_v50  ;;  %v5074_v50 = vld [vmem:[#allocation28_spill] sm:$0xff] }
 0x228   : > { %v1693_v61 = vsel %vm1689_vm14, %v1624_v37, %v4435_v13  ;;  %v1692_v57 = vsel %vm1689_vm14, %v1622_v14, %v1624_v37  ;;  %v5077_v29 = vld [vmem:[#allocation80_spill] sm:$0xff] }
 0x229   : > { %1880 = vmatprep.subr.bf16.mxu1 %v1693_v61  ;;  %v5078_v61 = vld [vmem:[#allocation53_spill] sm:$0xff] }
 0x22a   : > { %1683 = vrot.lane.b32.xlu1 %v4287_v27, %s2509_s27  ;;  %1881 = vmatpush1.bf16.msra.mxu1 %v1692_v57 }
 0x22b   : > { %v1640_v46 = vpop.permute.xlu1 %1639  ;;  %1681 = vrot.lane.b32.xlu0 %v4291_v5, %s2509_s27  ;;  %v1638_v38 = vpop.permute.xlu0 %1637  ;;  %v2511_v5 = vmov 0  }
 0x22c   : > { %v1699_v55 = vsel %vm1689_vm14, %v1638_v38, %v1640_v46  ;;  %2437 = vset.pattern.permute.xlu1 %v2511_v5  ;;  %2438 = vset.pattern.permute.xlu0 %v2511_v5  ;;  %v5087_v5 = vld [vmem:[#allocation43_spill] sm:$0xff] }
 0x22d   : > { %1841 = vmatprep.subr.bf16.mxu0 %v1699_v55  ;;  %v5084_v55 = vld [vmem:[#allocation44_spill] sm:$0xff] }
 0x22e   : > { %1687 = vrot.lane.b32.xlu1 %v1430_v25, %s2509_s27 }
 0x22f   : > { %v1642_v8 = vpop.permute.xlu1 %1641  ;;  %1685 = vrot.lane.b32.xlu0 %v4351_v26, %s2509_s27  ;;  %v1636_v1 = vpop.permute.xlu0 %1635  ;;  %v1779_v26 = vld [vmem:[%s289_s16] sm:$0xf] }
 0x230   : > { %v1698_v27 = vsel %vm1689_vm14, %v1636_v1, %v1638_v38  ;;  %v1700_v63 = vsel %vm1689_vm14, %v1640_v46, %v1642_v8  ;;  %v5081_v46 = vld [vmem:[#allocation81_spill] sm:$0xff]  ;;  %v5086_v1 = vld [vmem:[#allocation82_spill] sm:$0xff] }
 0x231   : > { %1842 = vmatpush1.bf16.msra.mxu0 %v1698_v27 }
 0x232   : > { %1766 = vrot.lane.b32.xlu1 %v5021_v12, %s2510_s14 }
 0x233   : > { %v1656_v44 = vpop.permute.xlu1 %1655  ;;  %1764 = vrot.lane.b32.xlu0 %v5074_v50, %s2510_s14  ;;  %v4465_v31 = vpop.permute.xlu0 %1643  ;;  %v5088_v50 = vld [vmem:[#allocation18_spill] sm:$0xff] }
 0x234   : > { %v1701_v3 = vsel %vm1689_vm14, %v1642_v8, %v4465_v31 }
 0x235   : > { %1882 = vmatprep.subr.bf16.mxu1 %v1701_v3 }
 0x236   : > { %1883 = vmatpush1.bf16.msra.mxu1 %v1700_v63  ;;  %1782 = vperm.xlu1 %2437, %v1779_v26  }
 0x237   : > { %v1654_v40 = vpop.permute.xlu1 %1653  ;;  %1768 = vrot.lane.b32.xlu0 %v5066_v35, %s2510_s14  ;;  %v1658_v12 = vpop.permute.xlu0 %1657 }
 0x238   : > { %v1707_v7 = vsel %vm1689_vm14, %v1656_v44, %v1658_v12  ;;  %v1706_v42 = vsel %vm1689_vm14, %v1654_v40, %v1656_v44 }
 0x239   : > { %1843 = vmatprep.subr.bf16.mxu0 %v1707_v7  ;;  %v5091_v7 = vld [vmem:[#allocation17_spill] sm:$0xff] }
 0x23a   : > { %1844 = vmatpush1.bf16.msra.mxu0 %v1706_v42 }
 0x23b   : > { %v4474_v54 = vpop.permute.xlu1 %1661  ;;  %v1660_v28 = vpop.permute.xlu0 %1659 }
 0x23c   : > { %v1709_v53 = vsel %vm1689_vm14, %v1660_v28, %v4474_v54  ;;  %v1708_v30 = vsel %vm1689_vm14, %v1658_v12, %v1660_v28 }
 0x23d   : > { %1884 = vmatprep.subr.bf16.mxu1 %v1709_v53 }
 0x23e   : > { %1885 = vmatpush1.bf16.msra.mxu1 %v1708_v30 }
 0x23f   : > { %v1676_v20 = vpop.permute.xlu1 %1675  ;;  %v1674_v49 = vpop.permute.xlu0 %1673 }
 0x240   : > { %v1715_v35 = vsel %vm1689_vm14, %v1674_v49, %v1676_v20 }
 0x241   : > { %1845 = vmatprep.subr.bf16.mxu0 %v1715_v35 }
 0x243   : > { %v1678_v23 = vpop.permute.xlu1 %1677  ;;  %v1672_v33 = vpop.permute.xlu0 %1671 }
 0x244   : > { %v1714_v4 = vsel %vm1689_vm14, %v1672_v33, %v1674_v49  ;;  %v1716_v14 = vsel %vm1689_vm14, %v1676_v20, %v1678_v23  ;;  %v5094_v49 = vld [vmem:[#allocation30_spill] sm:$0xff] }
 0x245   : > { %1846 = vmatpush1.bf16.msra.mxu0 %v1714_v4  ;;  %v5096_v4 = vld [vmem:[#allocation55_spill] sm:$0xff] }
 0x247   : > { %v1755_v6 = vpop.permute.xlu1 %1754  ;;  %v4481_v41 = vpop.permute.xlu0 %1679 }
 0x248   : > { %v1717_v58 = vsel %vm1689_vm14, %v1678_v23, %v4481_v41  ;;  %v5095_v23 = vld [vmem:[#allocation49_spill] sm:$0xff] }
 0x249   : > { %1886 = vmatprep.subr.bf16.mxu1 %v1717_v58  ;;  %v5097_v58 = vld [vmem:[#allocation41_spill] sm:$0xff] }
 0x24a   : > { %1887 = vmatpush1.bf16.msra.mxu1 %v1716_v14 }
 0x24b   : > { %v1759_v51 = vpop.permute.xlu1 %1758  ;;  %v1757_v21 = vpop.permute.xlu0 %1756 }
 0x24c   : > { %v1771_v16 = vsel %vm1770_vm6, %v1755_v6, %v1757_v21  ;;  %v1772_v22 = vsel %vm1770_vm6, %v1757_v21, %v1759_v51  ;;  %v876_v6 = vsel %vm722_vm2, %v3764_v48, %v3787_v47 }
 0x24d   : > { %2390 = vmatprep.subr.msk.bf16.mxu0 %vm722_vm2, %v1772_v22  ;;  %v1800_v43 = vsel %vm722_vm2, %v1771_v16, 0 }
 0x24e   : > { %1848 = vmatpush1.bf16.msra.mxu0 %v1800_v43  ;;  %v892_v43 = vsel %vm747_vm4, %v876_v6, %v3803_v24  ;;  %v5105_v24 = vld [vmem:[#allocation51_spill] sm:$0xff] }
 0x24f   : > { %v4490_v18 = vpop.permute.xlu1 %1762  ;;  %1905 = vmatprep.subr.bf16.mxu0 %v5075_v60  ;;  %v1761_v15 = vpop.permute.xlu0 %1760  ;;  %v5098_v60 = vld [vmem:[#allocation26_spill] sm:$0xff]  ;;  %v915_v48 = vsel %vm764_vm5, %v892_v43, %v3845_v19 }
 0x250   : > { %v1773_v17 = vsel %vm1770_vm6, %v1759_v51, %v1761_v15  ;;  %v1774_v11 = vsel %vm1770_vm6, %v1761_v15, %v4490_v18 }
 0x251   : > { %2392 = vmatprep.subr.msk.bf16.mxu1 %vm722_vm2, %v1774_v11  ;;  %1856 = vmatmul.mubr.bf16.vlgmr.msra.gmra.mrb[0].mxu0 %v5076_v32  ;;  %v1806_v39 = vsel %vm722_vm2, %v1773_v17, 0  ;;  %v5099_v17 = vld [vmem:[#allocation38_spill] sm:$0xff] }
 0x252   : > { %1889 = vmatpush1.bf16.msra.mxu1 %v1806_v39  ;;  %1906 = vmatpush1.bf16.msra.mxu0 %v5077_v29  ;;  %v5102_v29 = vld [vmem:[#allocation34_spill] sm:$0xff] }
 0x253   : > { %v471_v37 = vpop.permute.xlu1 %470  ;;  %1946 = vmatprep.subr.bf16.mxu1 %v5078_v61  ;;  %v469_v57 = vpop.permute.xlu0 %468  ;;  %2395 = vmatprep.mubr.msk.bf16.mxu0 %vm5080_vm9, %v5079_v45  ;;  %vm5103_vm9 = vcmask 818176  }
 0x254   : > { %v479_v38 = vsel %vm5082_vm10, %v5081_v46, %v469_v57  ;;  %v480_v2 = vsel %vm5083_vm8, %v469_v57, %v471_v37  ;;  %vm5104_vm10 = vmmov %vm5103_vm9 }
 0x255   : > { %1897 = vmatmul.mubr.bf16.vlgmr.msra.gmra.mrb[0].mxu1 %v5076_v32  ;;  %v803_v27 = vsel %vm722_vm2, %v5086_v1, %v479_v38  ;;  %v806_v44 = vsel %vm722_vm2, %v5087_v5, %v480_v2  ;;  %vm5108_vm8 = vmmov %vm5103_vm9 }
 0x256   : > { %1947 = vmatpush1.bf16.msra.mxu1 %v5084_v55  ;;  %2397 = vmatprep.mubr.msk.bf16.mxu1 %vm5085_vm3, %v5079_v45  ;;  %v5106_v45 = vld [vmem:[#allocation35_spill] sm:$0xff]  ;;  %vm5109_vm3 = vmmov %vm5100_vm0 }
 0x257   : > { %v495_v25 = vpop.permute.xlu1 %494  ;;  %v493_v8 = vpop.permute.xlu0 %492 }
 0x258   : > { %v503_v26 = vsel %vm5089_vm11, %v5088_v50, %v493_v8  ;;  %v504_v3 = vsel %vm5090_vm13, %v493_v8, %v495_v25 }
 0x259   : > { %v822_v63 = vsel %vm747_vm4, %v803_v27, %v503_v26  ;;  %v824_v40 = vsel %vm747_vm4, %v806_v44, %v504_v3 }
 0x25a   : > { %v845_v12 = vsel %vm764_vm5, %v824_v40, %v4118_v59  ;;  %v842_v42 = vsel %vm764_vm5, %v822_v63, %v5091_v7  ;;  %v5110_v40 = vld [vmem:[#allocation48_spill] sm:$0xff] }
 0x25b   : > { %v497_v28 = vpop.permute.xlu1 %496  ;;  %v473_v53 = vpop.permute.xlu0 %472  ;;  %1907 = vmatprep.subr.bf16.mxu0 %v845_v12 }
 0x25c   : > { %v505_v30 = vsel %vm5092_vm1, %v495_v25, %v497_v28  ;;  %v481_v20 = vsel %vm5093_vm7, %v471_v37, %v473_v53  ;;  %v812_v35 = vsel %vm722_vm2, %v5094_v49, %v473_v53  ;;  %1908 = vmatpush1.bf16.msra.mxu0 %v842_v42  ;;  %v5107_v25 = vld [vmem:[#allocation33_spill] sm:$0xff] }
 0x25d   : > { %v809_v33 = vsel %vm722_vm2, %v5095_v23, %v481_v20  ;;  %1909 = vmatprep.subr.bf16.mxu0 %v5096_v4  ;;  %v828_v59 = vsel %vm747_vm4, %v812_v35, %v497_v28 }
 0x25e   : > { %v851_v14 = vsel %vm764_vm5, %v828_v59, %v5097_v58  ;;  %v826_v51 = vsel %vm747_vm4, %v809_v33, %v505_v30  ;;  %v5112_v33 = vld [vmem:[#allocation57_spill] sm:$0xff] }
 0x25f   : > { %v639_v21 = vpop.permute.xlu1 %638  ;;  %v637_v16 = vpop.permute.xlu0 %636  ;;  %1948 = vmatprep.subr.bf16.mxu1 %v851_v14  ;;  %v848_v22 = vsel %vm764_vm5, %v826_v51, %v4123_v52 }
 0x260   : > { %1910 = vmatpush1.bf16.msra.mxu0 %v5098_v60  ;;  %1949 = vmatpush1.bf16.msra.mxu1 %v848_v22  ;;  %v647_v11 = vsel %vm5100_vm0, %v5099_v17, %v637_v16  ;;  %v648_v39 = vsel %vm5101_vm12, %v637_v16, %v639_v21 }
 0x261   : > { %1950 = vmatprep.subr.bf16.mxu1 %v915_v48 }
 0x263   : > { %v663_v47 = vpop.permute.xlu1 %662  ;;  %v661_v15 = vpop.permute.xlu0 %660 }
 0x264   : > { %v671_v52 = vsel %vm5103_vm9, %v5102_v29, %v661_v15  ;;  %v672_v37 = vsel %vm5104_vm10, %v661_v15, %v663_v47  ;;  %1951 = vmatpush1.bf16.msra.mxu1 %v5105_v24 }
 0x265   : > { %v931_v61 = vsel %vm722_vm2, %v647_v11, %v671_v52  ;;  %v934_v57 = vsel %vm722_vm2, %v648_v39, %v672_v37 }
 0x266   : > { %v952_v19 = vsel %vm747_vm4, %v934_v57, %v4240_v10  ;;  %v950_v46 = vsel %vm747_vm4, %v931_v61, %v5106_v45 }
 0x267   : > { %v665_v38 = vpop.permute.xlu1 %664  ;;  %v641_v2 = vpop.permute.xlu0 %640  ;;  %v973_v55 = vsel %vm764_vm5, %v952_v19, %v4255_v62  ;;  %v970_v8 = vsel %vm764_vm5, %v950_v46, %v5107_v25 }
 0x268   : > { %v673_v1 = vsel %vm5108_vm8, %v663_v47, %v665_v38  ;;  %v649_v27 = vsel %vm5109_vm3, %v639_v21, %v641_v2  ;;  %v940_v5 = vsel %vm722_vm2, %v641_v2, %v665_v38  ;;  %1911 = vmatprep.subr.bf16.mxu0 %v973_v55 }
 0x269   : > { %v937_v10 = vsel %vm722_vm2, %v649_v27, %v673_v1  ;;  %1912 = vmatpush1.bf16.msra.mxu0 %v970_v8  ;;  %v956_v44 = vsel %vm747_vm4, %v940_v5, %v3932_v56 }
 0x26a   : > { %v979_v50 = vsel %vm764_vm5, %v956_v44, %v3975_v36  ;;  %v954_v62 = vsel %vm747_vm4, %v937_v10, %v4245_v9  ;;  %v5111_v36 = vld [vmem:[#allocation45_spill] sm:$0xff] }
 0x26b   : > { %v1476_v26 = vpop.permute.xlu1 %1475  ;;  %v1474_v3 = vpop.permute.xlu0 %1473  ;;  %1952 = vmatprep.subr.bf16.mxu1 %v979_v50  ;;  %v976_v63 = vsel %vm764_vm5, %v954_v62, %v4260_v0  ;;  %vm2283_vm5 = vcmask 588804  }
 0x26c   : > { %v1532_v12 = vsel %vm1527_vm15, %v5110_v40, %v1474_v3  ;;  %1953 = vmatpush1.bf16.msra.mxu1 %v976_v63  ;;  %v1533_v7 = vsel %vm1527_vm15, %v1474_v3, %v1476_v26 }
 0x26d   : > { %1913 = vmatprep.subr.bf16.mxu0 %v1533_v7 }
 0x26e   : > { %1914 = vmatpush1.bf16.msra.mxu0 %v1532_v12 }
 0x26f   : > { %v1492_v56 = vpop.permute.xlu1 %1491  ;;  %v1490_v42 = vpop.permute.xlu0 %1489 }
 0x270   : > { %v1539_v28 = vsel %vm1527_vm15, %v5111_v36, %v1490_v42  ;;  %v1540_v9 = vsel %vm1527_vm15, %v1490_v42, %v1492_v56 }
 0x271   : > { %1915 = vmatprep.subr.bf16.mxu0 %v1540_v9 }
 0x272   : > { %1916 = vmatpush1.bf16.msra.mxu0 %v1539_v28 }
 0x273   : > { %v1506_v53 = vpop.permute.xlu1 %1505  ;;  %v1478_v30 = vpop.permute.xlu0 %1477 }
 0x274   : > { %v1534_v0 = vsel %vm1527_vm15, %v1476_v26, %v1478_v30  ;;  %1954 = vmatprep.subr.bf16.mxu1 %v1478_v30  ;;  %v1546_v4 = vsel %vm1527_vm15, %v5112_v33, %v1506_v53  ;;  %v1987_v33 = vld [vmem:[%s4715_s5] sm:$0xff] }
 0x275   : > { %1955 = vmatpush1.bf16.msra.mxu1 %v1534_v0  ;;  %v1989_v0 = vlaneseq }
 0x277   : > { %v1494_v20 = vpop.permute.xlu1 %1493  ;;  %v1508_v49 = vpop.permute.xlu0 %1507 }
 0x278   : > { %v1541_v35 = vsel %vm1527_vm15, %v1492_v56, %v1494_v20  ;;  %1956 = vmatprep.subr.bf16.mxu1 %v1494_v20  ;;  %v1547_v23 = vsel %vm1527_vm15, %v1506_v53, %v1508_v49  ;;  %v1990_v20 = vshrl.u32 %v1989_v0, 7 }
 0x279   : > { %1917 = vmatprep.subr.bf16.mxu0 %v1547_v23  ;;  %1957 = vmatpush1.bf16.msra.mxu1 %v1541_v35 }
 0x27a   : > { %1918 = vmatpush1.bf16.msra.mxu0 %v1546_v4  ;;  %v1995_v35 = vsub.s32 1, %v1990_v20  ;;  %v1999_v4 = vsub.s32 2, %v1990_v20 }
 0x27b   : > { %v1524_v59 = vpop.permute.xlu1 %1523  ;;  %v1522_v6 = vpop.permute.xlu0 %1521 }
 0x27c   : > { %v1553_v58 = vsel %vm1527_vm15, %v4398_v34, %v1522_v6  ;;  %v1554_v14 = vsel %vm1527_vm15, %v1522_v6, %v1524_v59 }
 0x27d   : > { %1919 = vmatprep.subr.bf16.mxu0 %v1554_v14  ;;  %v2003_v14 = vsub.s32 3, %v1990_v20 }
 0x27e   : > { %1920 = vmatpush1.bf16.msra.mxu0 %v1553_v58  ;;  %v4624_v58 = vrot.slane %v1987_v33, %v1995_v35 }
 0x27f   : > { %v1628_v51 = vpop.permute.xlu1 %1627  ;;  %v1510_v21 = vpop.permute.xlu0 %1509 }
 0x280   : > { %v1548_v16 = vsel %vm1527_vm15, %v1508_v49, %v1510_v21  ;;  %1958 = vmatprep.subr.bf16.mxu1 %v1510_v21  ;;  %v1694_v34 = vsel %vm1689_vm14, %v4435_v13, %v1628_v51  ;;  %v1991_v49 = vsub.s32 0, %v1990_v20  ;;  %v2000_v21 = vrot.slane %v1987_v33, %v1999_v4 }
 0x281   : > { %1959 = vmatpush1.bf16.msra.mxu1 %v1548_v16 }
 0x282   : > { %v4622_v6 = vrot.slane %v1987_v33, %v1991_v49 }
 0x283   : > { %v1526_v22 = vpop.permute.xlu1 %1525  ;;  %v1630_v43 = vpop.permute.xlu0 %1629 }
 0x284   : > { %v1555_v60 = vsel %vm1527_vm15, %v1524_v59, %v1526_v22  ;;  %1960 = vmatprep.subr.bf16.mxu1 %v1526_v22  ;;  %v1695_v48 = vsel %vm1689_vm14, %v1628_v51, %v1630_v43  ;;  %vm2284_vm15 = vmor %vm2283_vm5, %vm747_vm4 }
 0x285   : > { %1921 = vmatprep.subr.bf16.mxu0 %v1695_v48  ;;  %1961 = vmatpush1.bf16.msra.mxu1 %v1555_v60 }
 0x286   : > { %1922 = vmatpush1.bf16.msra.mxu0 %v1694_v34 }
 0x287   : > { %v1634_v47 = vpop.permute.xlu1 %1633  ;;  %v1632_v15 = vpop.permute.xlu0 %1631 }
 0x288   : > { %v1696_v17 = vsel %vm1689_vm14, %v1630_v43, %v1632_v15  ;;  %v1697_v11 = vsel %vm1689_vm14, %v1632_v15, %v1634_v47  ;;  %v2004_v43 = vrot.slane %v1987_v33, %v2003_v14  ;;  %v2007_v15 = vsub.s32 4, %v1990_v20 }
 0x289   : > { %1962 = vmatprep.subr.bf16.mxu1 %v1697_v11  ;;  %v2011_v11 = vsub.s32 5, %v1990_v20 }
 0x28a   : > { %1963 = vmatpush1.bf16.msra.mxu1 %v1696_v17 }
 0x28b   : > { %v1648_v39 = vpop.permute.xlu1 %1647  ;;  %v1646_v29 = vpop.permute.xlu0 %1645 }
 0x28c   : > { %v1702_v52 = vsel %vm1689_vm14, %v4465_v31, %v1646_v29  ;;  %v1703_v37 = vsel %vm1689_vm14, %v1646_v29, %v1648_v39 }
 0x28d   : > { %1923 = vmatprep.subr.bf16.mxu0 %v1703_v37  ;;  %v2015_v37 = vsub.s32 6, %v1990_v20 }
 0x28e   : > { %1924 = vmatpush1.bf16.msra.mxu0 %v1702_v52  ;;  %v2008_v52 = vrot.slane %v1987_v33, %v2007_v15 }
 0x28f   : > { %v1652_v13 = vpop.permute.xlu1 %1651  ;;  %v1650_v24 = vpop.permute.xlu0 %1649 }
 0x290   : > { %v1704_v61 = vsel %vm1689_vm14, %v1648_v39, %v1650_v24  ;;  %v1705_v57 = vsel %vm1689_vm14, %v1650_v24, %v1652_v13 }
 0x291   : > { %1964 = vmatprep.subr.bf16.mxu1 %v1705_v57  ;;  %v2019_v57 = vsub.s32 7, %v1990_v20 }
 0x292   : > { %1965 = vmatpush1.bf16.msra.mxu1 %v1704_v61  ;;  %v2012_v61 = vrot.slane %v1987_v33, %v2011_v11 }
 0x293   : > { %v1666_v19 = vpop.permute.xlu1 %1665  ;;  %v1664_v45 = vpop.permute.xlu0 %1663 }
 0x294   : > { %v1710_v46 = vsel %vm1689_vm14, %v4474_v54, %v1664_v45  ;;  %v1711_v38 = vsel %vm1689_vm14, %v1664_v45, %v1666_v19 }
 0x295   : > { %1925 = vmatprep.subr.bf16.mxu0 %v1711_v38 }
 0x296   : > { %1926 = vmatpush1.bf16.msra.mxu0 %v1710_v46 }
 0x298   : > { %v1670_v31 = vpop.permute.xlu1 %1669 }
 0x299   : > { %v1668_v2 = vpop.permute.xlu0 %1667 }
 0x29a   : > { %v1712_v55 = vsel %vm1689_vm14, %v1666_v19, %v1668_v2  ;;  %v1713_v25 = vsel %vm1689_vm14, %v1668_v2, %v1670_v31 }
 0x29b   : > { %1966 = vmatprep.subr.bf16.mxu1 %v1713_v25  ;;  %v2016_v25 = vrot.slane %v1987_v33, %v2015_v37 }
 0x29c   : > { %v1684_v8 = vpop.permute.xlu1 %1683  ;;  %1967 = vmatpush1.bf16.msra.mxu1 %v1712_v55 }
 0x29d   : > { %v1682_v1 = vpop.permute.xlu0 %1681 }
 0x29e   : > { %v1718_v27 = vsel %vm1689_vm14, %v4481_v41, %v1682_v1  ;;  %v1719_v5 = vsel %vm1689_vm14, %v1682_v1, %v1684_v8 }
 0x29f   : > { %1927 = vmatprep.subr.bf16.mxu0 %v1719_v5  ;;  %v2020_v5 = vrot.slane %v1987_v33, %v2019_v57 }
 0x2a0   : > { %v1688_v54 = vpop.permute.xlu1 %1687  ;;  %1928 = vmatpush1.bf16.msra.mxu0 %v1718_v27 }
 0x2a1   : > { %v1686_v10 = vpop.permute.xlu0 %1685 }
 0x2a2   : > { %v1720_v44 = vsel %vm1689_vm14, %v1684_v8, %v1686_v10  ;;  %v1721_v50 = vsel %vm1689_vm14, %v1686_v10, %v1688_v54 }
 0x2a3   : > { %1968 = vmatprep.subr.bf16.mxu1 %v1721_v50 }
 0x2a4   : > { %1969 = vmatpush1.bf16.msra.mxu1 %v1720_v44  ;;  %v1767_v62 = vpop.permute.xlu1 %1766 }
 0x2a5   : > { %v1765_v26 = vpop.permute.xlu0 %1764 }
 0x2a6   : > { %v1775_v3 = vsel %vm1770_vm6, %v4490_v18, %v1765_v26  ;;  %v1776_v63 = vsel %vm1770_vm6, %v1765_v26, %v1767_v62 }
 0x2a7   : > { %v1812_v41 = vsel %vm722_vm2, %v1775_v3, 0  ;;  %2394 = vmatprep.subr.msk.bf16.mxu0 %vm722_vm2, %v1776_v63 }
 0x2a8   : > { %1930 = vmatpush1.bf16.msra.mxu0 %v1812_v41 }
 0x2a9   : > { %v1769_v40 = vpop.permute.xlu0 %1768 }
 0x2aa   : > { %v1777_v12 = vsel %vm1770_vm6, %v1767_v62, %v1769_v40  ;;  %2396 = vmatprep.subr.msk.bf16.mxu1 %vm722_vm2, %v1769_v40 }
 0x2ab   : > { %v1818_v7 = vsel %vm722_vm2, %v1777_v12, 0  ;;  %1938 = vmatmul.mubr.bf16.vlgmr.msra.gmra.mrb[4].mxu0 %v5076_v32  ;;  %vm2050_vm2 = vcmask 584704  }
 0x2ac   : > { %1971 = vmatpush1.bf16.msra.mxu1 %v1818_v7 }
 0x2af   : > { %1979 = vmatmul.mubr.bf16.vlgmr.msra.gmra.mrb[4].mxu1 %v5076_v32 }
 0x2b5   : > { %v1783_v23 = vpop.permute.xlu1 %1782 }
 0x324   : > { %v1857_v18 = vpop.f32.mrb[0].mxu0 }
 0x325   : > { %v1859_v56 = vpop.f32.mrb[1].mxu0  ;;  %v1858_v59 = vadd.f32 %v1857_v18, %v1783_v23 }
 0x326   : > { %v1861_v42 = vpop.f32.mrb[2].mxu0  ;;  %v1860_v32 = vadd.f32 %v1859_v56, %v1783_v23 }
 0x327   : > { %v1862_v36 = vpop.f32.mrb[3].mxu0  ;;  %v2029_v16 = vmul.f32 %v4622_v6, %v1858_v59 }
 0x328   : > { %v1898_v28 = vpop.f32.mrb[0].mxu1  ;;  %v2030_v22 = vmul.f32 %v4624_v58, %v1860_v32  ;;  %v2108_v36 = vld [vmem:[%s293_s23] sm:$0xf] }
 0x329   : > { %v1900_v9 = vpop.f32.mrb[1].mxu1  ;;  %v1899_v51 = vadd.f32 %v1898_v28, %v1783_v23  ;;  %v2037_v48 = vsel %vm747_vm4, %v2029_v16, 0.0 }
 0x32a   : > { %v1902_v53 = vpop.f32.mrb[2].mxu1  ;;  %v2038_v34 = vsel %vm747_vm4, %v2030_v22, 0.0  ;;  %v1901_v47 = vadd.f32 %v1900_v9, %v1783_v23 }
 0x32b   : > { %v1903_v30 = vpop.f32.mrb[3].mxu1  ;;  %v2031_v60 = vmul.f32 %v2000_v21, %v1899_v51  ;;  %v2039_v17 = vadd.f32 %v2038_v34, %v2037_v48 }
 0x32c   : > { %v2032_v29 = vmul.f32 %v2004_v43, %v1901_v47 }
 0x32d   : > { %v2040_v39 = vsel %vm747_vm4, %v2031_v60, 0.0 }
 0x32e   : > { %v2041_v13 = vadd.f32 %v2040_v39, %v2039_v17  ;;  %v2042_v19 = vsel %vm747_vm4, %v2032_v29, 0.0 }
 0x330   : > { %v2043_v8 = vadd.f32 %v2042_v19, %v2041_v13 }
 0x37e   : > { %v1939_v24 = vpop.f32.mrb[4].mxu0 }
 0x37f   : > { %v1940_v45 = vadd.f32 %v1939_v24, %v1783_v23  ;;  %v1941_v46 = vpop.f32.mrb[5].mxu0 }
 0x380   : > { %v1942_v38 = vadd.f32 %v1941_v46, %v1783_v23  ;;  %v1943_v31 = vpop.f32.mrb[6].mxu0 }
 0x381   : > { %v2033_v2 = vmul.f32 %v2008_v52, %v1940_v45  ;;  %v1944_v55 = vpop.f32.mrb[7].mxu0 }
 0x382   : > { %v2034_v1 = vmul.f32 %v2012_v61, %v1942_v38  ;;  %v1980_v27 = vpop.f32.mrb[4].mxu1 }
 0x383   : > { %v2044_v54 = vsel %vm747_vm4, %v2033_v2, 0.0  ;;  %v1981_v10 = vadd.f32 %v1980_v27, %v1783_v23  ;;  %v1982_v44 = vpop.f32.mrb[5].mxu1  ;;  %v2122_v2 = vld [vmem:[%s297_s26] sm:$0xf] }
 0x384   : > { %v2045_v50 = vadd.f32 %v2044_v54, %v2043_v8  ;;  %v2046_v62 = vsel %vm747_vm4, %v2034_v1, 0.0  ;;  %v1983_v26 = vadd.f32 %v1982_v44, %v1783_v23  ;;  %v1984_v3 = vpop.f32.mrb[6].mxu1 }
 0x385   : > { %v2035_v63 = vmul.f32 %v2016_v25, %v1981_v10  ;;  %v1985_v41 = vpop.f32.mrb[7].mxu1 }
 0x386   : > { %v2047_v40 = vadd.f32 %v2046_v62, %v2045_v50  ;;  %v2036_v12 = vmul.f32 %v2020_v5, %v1983_v26 }
 0x387   : > { %v2048_v7 = vsel %vm747_vm4, %v2035_v63, 0.0 }
 0x388   : > { %v2049_v18 = vadd.f32 %v2048_v7, %v2047_v40  ;;  %v2051_v56 = vsel %vm2050_vm2, %v2036_v12, 0.0 }
 0x38a   : > { %v2052_v42 = vadd.f32 %v2051_v56, %v2049_v18 }
 0x38c   : > { %2053 = vadd.xlane.f32.xlu0 %v2052_v42 }
 0x3a2   : > { %2111 = vperm.xlu0 %2438, %v2108_v36  }
 0x419   : > { %v2054_v28 = vpop.xlane.xlu0 %2053 }
 0x41a   : > { %v2055_v9 = vmul.f32 0.001953125, %v2054_v28 }
 0x41c   : > { %v2056_v53 = vsub.f32 %v1858_v59, %v2055_v9  ;;  %v2057_v30 = vsub.f32 %v1860_v32, %v2055_v9  ;;  %v2058_v0 = vsub.f32 %v1899_v51, %v2055_v9  ;;  %v2059_v20 = vsub.f32 %v1901_v47, %v2055_v9 }
 0x41d   : > { %v2060_v49 = vsub.f32 %v1940_v45, %v2055_v9  ;;  %v2061_v35 = vsub.f32 %v1942_v38, %v2055_v9  ;;  %v2062_v16 = vsub.f32 %v1981_v10, %v2055_v9  ;;  %v2063_v15 = vsub.f32 %v1983_v26, %v2055_v9 }
 0x41e   : > { %v2064_v23 = vmul.f32 %v2056_v53, %v4622_v6  ;;  %v2065_v33 = vmul.f32 %v2057_v30, %v4624_v58  ;;  %v2066_v4 = vmul.f32 %v2058_v0, %v2000_v21  ;;  %v2067_v14 = vmul.f32 %v2059_v20, %v2004_v43 }
 0x41f   : > { %v2068_v22 = vmul.f32 %v2060_v49, %v2008_v52  ;;  %v2069_v17 = vmul.f32 %v2061_v35, %v2012_v61  ;;  %v2070_v47 = vmul.f32 %v2062_v16, %v2016_v25  ;;  %v2071_v21 = vmul.f32 %v2063_v15, %v2020_v5 }
 0x420   : > { %v2072_v60 = vmul.f32 %v2064_v23, %v2064_v23  ;;  %v2073_v48 = vmul.f32 %v2065_v33, %v2065_v33  ;;  %v2074_v34 = vmul.f32 %v2066_v4, %v2066_v4  ;;  %v2075_v11 = vmul.f32 %v2067_v14, %v2067_v14 }
 0x421   : > { %v2076_v39 = vmul.f32 %v2068_v22, %v2068_v22  ;;  %v2077_v43 = vmul.f32 %v2069_v17, %v2069_v17  ;;  %v2078_v37 = vmul.f32 %v2070_v47, %v2070_v47  ;;  %v2079_v61 = vmul.f32 %v2071_v21, %v2071_v21  ;;  %v2112_v27 = vpop.permute.xlu0 %2111 }
 0x422   : > { %v2080_v59 = vsel %vm747_vm4, %v2072_v60, 0.0  ;;  %v2081_v32 = vsel %vm747_vm4, %v2073_v48, 0.0  ;;  %v2083_v6 = vsel %vm747_vm4, %v2074_v34, 0.0  ;;  %v2085_v29 = vsel %vm747_vm4, %v2075_v11, 0.0 }
 0x423   : > { %v2082_v51 = vadd.f32 %v2081_v32, %v2080_v59  ;;  %v2087_v13 = vsel %vm747_vm4, %v2076_v39, 0.0  ;;  %v2089_v57 = vsel %vm747_vm4, %v2077_v43, 0.0  ;;  %v2091_v45 = vsel %vm747_vm4, %v2078_v37, 0.0 }
 0x424   : > { %v2093_v38 = vsel %vm2050_vm2, %v2079_v61, 0.0 }
 0x425   : > { %v2084_v58 = vadd.f32 %v2083_v6, %v2082_v51 }
 0x427   : > { %v2086_v52 = vadd.f32 %v2085_v29, %v2084_v58 }
 0x429   : > { %v2088_v24 = vadd.f32 %v2087_v13, %v2086_v52 }
 0x42b   : > { %v2090_v19 = vadd.f32 %v2089_v57, %v2088_v24 }
 0x42d   : > { %v2092_v46 = vadd.f32 %v2091_v45, %v2090_v19 }
 0x42f   : > { %v2094_v31 = vadd.f32 %v2093_v38, %v2092_v46 }
 0x431   : > { %2095 = vadd.xlane.f32.xlu1 %v2094_v31 }
 0x442   : > { %2125 = vperm.xlu1 %2437, %v2122_v2  }
 0x4be   : > { %v2096_v55 = vpop.xlane.xlu1 %2095 }
 0x4bf   : > { %v2097_v25 = vmul.f32 0.001953125, %v2096_v55 }
 0x4c1   : > { %v2098_v8 = vadd.f32 1e-05, %v2097_v25 }
 0x4c2   : > { %v2126_v7 = vpop.permute.xlu1 %2125 }
 0x4c3   : > { %2443 = vrsqrt.f32 %v2098_v8 }
 0x4cd   : > { %v2444_v1 = vpop.eup %2443 }
 0x4ce   : > { %v2100_v5 = vmul.f32 %v2444_v1, %v2056_v53  ;;  %v2101_v54 = vmul.f32 %v2444_v1, %v2057_v30  ;;  %v2102_v10 = vmul.f32 %v2444_v1, %v2058_v0  ;;  %v2103_v44 = vmul.f32 %v2444_v1, %v2059_v20 }
 0x4cf   : > { %v2104_v50 = vmul.f32 %v2444_v1, %v2060_v49  ;;  %v2105_v62 = vmul.f32 %v2444_v1, %v2061_v35  ;;  %v2106_v26 = vmul.f32 %v2444_v1, %v2062_v16  ;;  %v2107_v3 = vmul.f32 %v2444_v1, %v2063_v15 }
 0x4d0   : > { %v2114_v63 = vmul.f32 %v2112_v27, %v2100_v5  ;;  %v2115_v41 = vmul.f32 %v2112_v27, %v2101_v54  ;;  %v2116_v40 = vmul.f32 %v2112_v27, %v2102_v10  ;;  %v2117_v12 = vmul.f32 %v2112_v27, %v2103_v44 }
 0x4d1   : > { %v2118_v18 = vmul.f32 %v2112_v27, %v2104_v50  ;;  %v2119_v56 = vmul.f32 %v2112_v27, %v2105_v62  ;;  %v2120_v42 = vmul.f32 %v2112_v27, %v2106_v26  ;;  %v2121_v36 = vmul.f32 %v2112_v27, %v2107_v3 }
 0x4d2   : > { %v2128_v28 = vadd.f32 %v2126_v7, %v2114_v63  ;;  %v2129_v9 = vadd.f32 %v2126_v7, %v2115_v41  ;;  %v2130_v23 = vadd.f32 %v2126_v7, %v2116_v40  ;;  %v2131_v53 = vadd.f32 %v2126_v7, %v2117_v12 }
 0x4d3   : > { %v2132_v30 = vadd.f32 %v2126_v7, %v2118_v18  ;;  %v2133_v0 = vadd.f32 %v2126_v7, %v2119_v56  ;;  %v2134_v20 = vadd.f32 %v2126_v7, %v2120_v42  ;;  %v2135_v49 = vadd.f32 %v2126_v7, %v2121_v36 }
 0x4d4   : > { %v4654_v35 = vmax.f32 %v2128_v28, 0.0  ;;  %v4656_v33 = vmax.f32 %v2129_v9, 0.0  ;;  %v4658_v4 = vmax.f32 %v2130_v23, 0.0  ;;  %v4660_v14 = vmax.f32 %v2131_v53, 0.0 }
 0x4d5   : > { %v4662_v16 = vmax.f32 %v2132_v30, 0.0  ;;  %v4664_v22 = vmax.f32 %v2133_v0, 0.0  ;;  %v4666_v60 = vmax.f32 %v2134_v20, 0.0  ;;  %v4668_v48 = vmax.f32 %v2135_v49, 0.0 }
 0x4d6   : > { %v2144_v34 = vmul.f32 %v4654_v35, %v4654_v35  ;;  %v2145_v15 = vmul.f32 %v4656_v33, %v4656_v33  ;;  %v2146_v17 = vmul.f32 %v4658_v4, %v4658_v4  ;;  %v2147_v11 = vmul.f32 %v4660_v14, %v4660_v14 }
 0x4d7   : > { %v2148_v59 = vmul.f32 %v4662_v16, %v4662_v16  ;;  %v2149_v32 = vmul.f32 %v4664_v22, %v4664_v22  ;;  %v2150_v51 = vmul.f32 %v4666_v60, %v4666_v60  ;;  %v2151_v47 = vmul.f32 %v4668_v48, %v4668_v48 }
 0x4d8   : > { %v2152_v39 = vsel %vm747_vm4, %v2144_v34, 0.0  ;;  %v2159_v6 = vsel %vm747_vm4, %v2145_v15, 0.0  ;;  %v2166_v58 = vsel %vm747_vm4, %v2146_v17, 0.0  ;;  %v2173_v21 = vsel %vm747_vm4, %v2147_v11, 0.0 }
 0x4d9   : > { %v2153_v43 = vrot.slane %v2152_v39, 4  ;;  %v2160_v29 = vrot.slane %v2159_v6, 4  ;;  %v2167_v52 = vrot.slane %v2166_v58, 4  ;;  %v2174_v37 = vrot.slane %v2173_v21, 4 }
 0x4da   : > { %v2180_v13 = vsel %vm747_vm4, %v2148_v59, 0.0  ;;  %v2187_v24 = vsel %vm747_vm4, %v2149_v32, 0.0  ;;  %v2194_v61 = vsel %vm747_vm4, %v2150_v51, 0.0  ;;  %v2201_v57 = vsel %vm2050_vm2, %v2151_v47, 0.0 }
 0x4db   : > { %v2154_v19 = vadd.f32 %v2153_v43, %v2152_v39  ;;  %v2161_v45 = vadd.f32 %v2160_v29, %v2159_v6  ;;  %v2168_v46 = vadd.f32 %v2167_v52, %v2166_v58  ;;  %v2175_v38 = vadd.f32 %v2174_v37, %v2173_v21 }
 0x4dc   : > { %v2181_v31 = vrot.slane %v2180_v13, 4  ;;  %v2188_v2 = vrot.slane %v2187_v24, 4  ;;  %v2195_v55 = vrot.slane %v2194_v61, 4  ;;  %v2202_v25 = vrot.slane %v2201_v57, 4 }
 0x4dd   : > { %v2155_v8 = vrot.slane %v2154_v19, 2  ;;  %v2162_v1 = vrot.slane %v2161_v45, 2  ;;  %v2169_v27 = vrot.slane %v2168_v46, 2  ;;  %v2176_v5 = vrot.slane %v2175_v38, 2 }
 0x4de   : > { %v2182_v54 = vadd.f32 %v2181_v31, %v2180_v13  ;;  %v2189_v10 = vadd.f32 %v2188_v2, %v2187_v24  ;;  %v2196_v44 = vadd.f32 %v2195_v55, %v2194_v61  ;;  %v2203_v50 = vadd.f32 %v2202_v25, %v2201_v57 }
 0x4df   : > { %v2156_v62 = vadd.f32 %v2155_v8, %v2154_v19  ;;  %v2163_v26 = vadd.f32 %v2162_v1, %v2161_v45  ;;  %v2170_v3 = vadd.f32 %v2169_v27, %v2168_v46  ;;  %v2177_v63 = vadd.f32 %v2176_v5, %v2175_v38 }
 0x4e0   : > { %v2183_v41 = vrot.slane %v2182_v54, 2  ;;  %v2190_v40 = vrot.slane %v2189_v10, 2  ;;  %v2197_v12 = vrot.slane %v2196_v44, 2  ;;  %v2204_v7 = vrot.slane %v2203_v50, 2 }
 0x4e1   : > { %v2157_v18 = vrot.slane %v2156_v62, 1  ;;  %v2164_v56 = vrot.slane %v2163_v26, 1  ;;  %v2171_v42 = vrot.slane %v2170_v3, 1  ;;  %v2178_v36 = vrot.slane %v2177_v63, 1 }
 0x4e2   : > { %v2184_v28 = vadd.f32 %v2183_v41, %v2182_v54  ;;  %v2191_v9 = vadd.f32 %v2190_v40, %v2189_v10  ;;  %v2198_v23 = vadd.f32 %v2197_v12, %v2196_v44  ;;  %v2205_v53 = vadd.f32 %v2204_v7, %v2203_v50 }
 0x4e3   : > { %v2158_v30 = vadd.f32 %v2157_v18, %v2156_v62  ;;  %v2165_v0 = vadd.f32 %v2164_v56, %v2163_v26  ;;  %v2172_v20 = vadd.f32 %v2171_v42, %v2170_v3  ;;  %v2179_v49 = vadd.f32 %v2178_v36, %v2177_v63 }
 0x4e4   : > { %v2185_v34 = vrot.slane %v2184_v28, 1  ;;  %v2192_v15 = vrot.slane %v2191_v9, 1  ;;  %v2199_v17 = vrot.slane %v2198_v23, 1  ;;  %v2206_v11 = vrot.slane %v2205_v53, 1 }
 0x4e5   : > { %v2208_v59 = vadd.f32 1e-30, %v2158_v30  ;;  %v2209_v32 = vadd.f32 1e-30, %v2165_v0  ;;  %v2210_v51 = vadd.f32 1e-30, %v2172_v20 }
 0x4e6   : > { %v2186_v47 = vadd.f32 %v2185_v34, %v2184_v28  ;;  %v2193_v39 = vadd.f32 %v2192_v15, %v2191_v9  ;;  %v2200_v6 = vadd.f32 %v2199_v17, %v2198_v23  ;;  %v2207_v58 = vadd.f32 %v2206_v11, %v2205_v53 }
 0x4e7   : > { %v2211_v21 = vadd.f32 1e-30, %v2179_v49  ;;  %2445 = vrsqrt.f32 %v2208_v59  ;;  %v2232_v13 = vadd.f32 1.0, %v2158_v30  ;;  %v2233_v24 = vadd.f32 1.0, %v2165_v0 }
 0x4e8   : > { %v2212_v43 = vadd.f32 1e-30, %v2186_v47  ;;  %v2213_v29 = vadd.f32 1e-30, %v2193_v39  ;;  %2447 = vrsqrt.f32 %v2209_v32  ;;  %v2214_v52 = vadd.f32 1e-30, %v2200_v6 }
 0x4e9   : > { %2449 = vrsqrt.f32 %v2210_v51  ;;  %v2215_v37 = vadd.f32 1e-30, %v2207_v58  ;;  %v2234_v61 = vadd.f32 1.0, %v2172_v20  ;;  %v2235_v57 = vadd.f32 1.0, %v2179_v49 }
 0x4ea   : > { %2451 = vrsqrt.f32 %v2211_v21  ;;  %v2236_v19 = vadd.f32 1.0, %v2186_v47  ;;  %v2237_v45 = vadd.f32 1.0, %v2193_v39  ;;  %v2238_v38 = vadd.f32 1.0, %v2200_v6 }
 0x4eb   : > { %2453 = vrsqrt.f32 %v2212_v43  ;;  %v2239_v2 = vadd.f32 1.0, %v2207_v58 }
 0x4ec   : > { %2455 = vrsqrt.f32 %v2213_v29 }
 0x4ed   : > { %2457 = vrsqrt.f32 %v2214_v52 }
 0x4ee   : > { %2459 = vrsqrt.f32 %v2215_v37 }
 0x4ef   : > { %2461 = vrcp.f32 %v2232_v13 }
 0x4f0   : > { %2463 = vrcp.f32 %v2233_v24 }
 0x4f1   : > { %v2446_v46 = vpop.eup %2445  ;;  %2465 = vrcp.f32 %v2234_v61 }
 0x4f2   : > { %v2448_v31 = vpop.eup %2447  ;;  %2467 = vrcp.f32 %v2235_v57  ;;  %v2224_v27 = vmul.f32 %v2446_v46, %v2158_v30 }
 0x4f3   : > { %v2450_v55 = vpop.eup %2449  ;;  %2469 = vrcp.f32 %v2236_v19  ;;  %v2225_v54 = vmul.f32 %v2448_v31, %v2165_v0 }
 0x4f4   : > { %v2452_v25 = vpop.eup %2451  ;;  %2471 = vrcp.f32 %v2237_v45  ;;  %v2226_v44 = vmul.f32 %v2450_v55, %v2172_v20 }
 0x4f5   : > { %v2454_v8 = vpop.eup %2453  ;;  %2473 = vrcp.f32 %v2238_v38  ;;  %v2227_v62 = vmul.f32 %v2452_v25, %v2179_v49 }
 0x4f6   : > { %v2456_v1 = vpop.eup %2455  ;;  %2475 = vrcp.f32 %v2239_v2  ;;  %v2228_v3 = vmul.f32 %v2454_v8, %v2186_v47 }
 0x4f7   : > { %v2458_v5 = vpop.eup %2457  ;;  %v2229_v40 = vmul.f32 %v2456_v1, %v2193_v39 }
 0x4f8   : > { %v2460_v10 = vpop.eup %2459  ;;  %v2230_v18 = vmul.f32 %v2458_v5, %v2200_v6 }
 0x4f9   : > { %v2462_v50 = vpop.eup %2461  ;;  %v2231_v28 = vmul.f32 %v2460_v10, %v2207_v58 }
 0x4fa   : > { %v2464_v26 = vpop.eup %2463  ;;  %v2248_v63 = vmul.f32 %v2462_v50, %v2224_v27 }
 0x4fb   : > { %v2466_v41 = vpop.eup %2465  ;;  %v2249_v12 = vmul.f32 %v2464_v26, %v2225_v54 }
 0x4fc   : > { %v2468_v7 = vpop.eup %2467  ;;  %v2250_v56 = vmul.f32 %v2466_v41, %v2226_v44  ;;  %v2256_v42 = vmul.f32 %v2248_v63, %v4654_v35 }
 0x4fd   : > { %v2470_v36 = vpop.eup %2469  ;;  %v2251_v9 = vmul.f32 %v2468_v7, %v2227_v62  ;;  %v2257_v23 = vmul.f32 %v2249_v12, %v4656_v33 }
 0x4fe   : > { %v2472_v53 = vpop.eup %2471  ;;  %v2252_v30 = vmul.f32 %v2470_v36, %v2228_v3  ;;  %v2258_v0 = vmul.f32 %v2250_v56, %v4658_v4 }
 0x4ff   : > { %v2474_v20 = vpop.eup %2473  ;;  %v2253_v49 = vmul.f32 %v2472_v53, %v2229_v40  ;;  %v2259_v34 = vmul.f32 %v2251_v9, %v4660_v14  ;;  %v2272_v15 = vcombine.low %v2256_v42, %v2257_v23 }
 0x500   : > { %v2476_v17 = vpop.eup %2475  ;;  %v2254_v35 = vmul.f32 %v2474_v20, %v2230_v18  ;;  %v2260_v11 = vmul.f32 %v2252_v30, %v4662_v16 }
 0x501   : > { %v2255_v59 = vmul.f32 %v2476_v17, %v2231_v28  ;;  %v2261_v33 = vmul.f32 %v2253_v49, %v4664_v22  ;;  %v2273_v32 = vcombine.low %v2258_v0, %v2259_v34  ;;  %2280 = vst [vmem:[%s302_s7] sm:$0xff] %v2272_v15 }
 0x502   : > { %v2262_v51 = vmul.f32 %v2254_v35, %v4666_v60 }
 0x503   : > { %v2263_v47 = vmul.f32 %v2255_v59, %v4668_v48  ;;  %v2274_v4 = vcombine.low %v2260_v11, %v2261_v33  ;;  %2281 = vst [vmem:[%s302_s7 + $0x8] sm:$0xff] %v2273_v32 }
 0x505   : > { %v2275_v14 = vcombine.low %v2262_v51, %v2263_v47  ;;  %2282 = vst [vmem:[%s302_s7 + $0x10] sm:$0xff] %v2274_v4 }
 0x507   : > { %2285 = vst.msk [vmem:[%s302_s7 + $0x18] sm:$0xff] %vm2284_vm15, %v2275_v14 }
 0x508 PF: > { %s16_s21 = sadd.s32 1, %s2483_s21  }
 0x509   : > { %p13_p4 = scmp.ge.s32.totalorder %s16_s21, 6  }
 0x50b   :  { %15 = sbr.rel (!%p13_p4) target bundleno = 1 (0x1), region = 83 }

// kernel: cap_conv2_forward.8
= control target key start
LH: loop header
LB: loop body
LE: loop exit
PB: predicated region body
PF: predicated region fallthrough
CT: control target
= control target key end

     0   :  { %s1368_s21 = smov 0   ;;  %s1852_s0 = inlined_call_operand.vmem [shape: f32[4,1,686], index: 0, kind: input, shape index: {}]   ;;  %s1853_s1 = inlined_call_operand.vmem [shape: bf16[4,4,9], index: 1, kind: input, shape index: {}]   ;;  %s1854_s2 = inlined_call_operand.vmem [shape: f32[4,4,1], index: 2, kind: input, shape index: {}]   ;;  %s1855_s3 = inlined_call_operand.vmem [shape: f32[4,4,1], index: 3, kind: input, shape index: {}]   ;;  %s1856_s4 = inlined_call_operand.vmem [shape: f32[4,4,1], index: 4, kind: input, shape index: {}]   ;;  %s1857_s5 = inlined_call_operand.vmem [shape: f32[1,648], index: 5, kind: input, shape index: {}]   ;;  %s1858_s6 = inlined_call_operand.vmem [shape: f32[4,4,648], index: 6, kind: output, shape index: {}]  }
   0x1 LB: > { %s1202_s22 = sadd.s32 4294967295, %s1321_s21   ;;  %p1206_p0 = scmp.ge.s32.totalorder %s1321_s21, 1  ;;  %s1321_s21 = sphi %s1368_s21, %s16_s21  }
   0x2   : > { %p247_p1 = scmp.lt.s32.totalorder %s1321_s21, 5 }
   0x4   : > { %p248_p2 = pnand %p1206_p0, %p247_p1 }
   0x5   : > { %p292_p3 = scmp.lt.s32.totalorder (!%p248_p2), %s1202_s22, 3  ;;  %v320_v0 = vlaneseq (!%p248_p2)  ;;  %s1323_s27 = smov (!%p248_p2), 126   ;;  %vm1859_vm0 = vcmask (!%p248_p2), 1039360   ;;  %vm590_vm1 = vcmask (!%p248_p2), 1040384   ;;  %vm591_vm2 = vsmask.f32 (!%p248_p2), 256 }
   0x6   : > { %251 = sbr.rel (%p248_p2) target bundleno = 814 (0x32e), region = 44  ;;  %s1324_s28 = smov (!%p248_p2), 127   ;;  %vm1860_vm3 = vcmask (!%p248_p2), 1031168   ;;  %vm1552_vm4 = vmand (!%p248_p2), %vm590_vm1, %vm591_vm2  ;;  %vm1862_vm5 = vcmask (!%p248_p2), 900096   ;;  %vm624_vm6 = vcmask (!%p248_p2), 1041408   ;;  %vm476_vm8 = vcmask (!%p248_p2), 891904  }
   0x7   : > { %v1378_v1 = vshrl.u32 (!%p248_p2), %v320_v0, 7  ;;  %s1325_s29 = smov (!%p248_p2), 109   ;;  %s1326_s30 = smov (!%p248_p2), 110   ;;  %vm625_vm7 = vsmask.f32 (!%p248_p2), 1280  ;;  %vm1861_vm9 = vcmask (!%p248_p2), 883712  }
   0x8   : > { %s1327_s7 = smov (!%p248_p2), 108   ;;  %s1328_s8 = smov (!%p248_p2), 92   ;;  %vm658_vm10 = vcmask (!%p248_p2), 1042432   ;;  %vm659_vm11 = vsmask.f32 (!%p248_p2), 2304  ;;  %vm1567_vm12 = vmand (!%p248_p2), %vm624_vm6, %vm625_vm7  ;;  %vm530_vm13 = vcmask (!%p248_p2), 752640  }
   0x9   : > { %v326_v2 = vsub.s32 (!%p248_p2), 1, %v1378_v1  ;;  %v330_v3 = vsub.s32 (!%p248_p2), 2, %v1378_v1  ;;  %v322_v4 = vsub.s32 (!%p248_p2), 0, %v1378_v1  ;;  %v334_v5 = vsub.s32 (!%p248_p2), 3, %v1378_v1  ;;  %s1329_s9 = smov (!%p248_p2), 91   ;;  %s1330_s10 = smov (!%p248_p2), 90  }
   0xa   : > { %v338_v6 = vsub.s32 (!%p248_p2), 4, %v1378_v1  ;;  %v342_v7 = vsub.s32 (!%p248_p2), 5, %v1378_v1  ;;  %vm554_vm14 = vcmask (!%p248_p2), 744448   ;;  %vm692_vm15 = vcmask (!%p248_p2), 1043456  }
   0xb   : > { %vm693_vm2 = vsmask.f32 (!%p248_p2), 3328  ;;  %vm584_vm7 = vcmask (!%p248_p2), 736256  }
   0xd   : > { %s1881_s22 = smov (!%p292_p3, %s1202_s22), 3 }
   0xe   : > { %s1217_s23 = smul.u32 6, %s1881_s22  ;;  %s1501_s11 = sshll.u32 %s1881_s22, 2 }
   0xf   : > { %s303_s14 = scalar_lea.vmem %s1854_s2, %s1501_s11  ;;  %s1207_s15 = sshll.u32 %s1881_s22, 1 }
  0x10   : > { %s295_s26 = scalar_lea.vmem %s1852_s0, %s1217_s23  ;;  %s299_s18 = scalar_lea.vmem %s1853_s1, %s1207_s15 }
  0x11   : > { %v318_v8 = vld [vmem:[%s295_s26] sm:$0x3f]  ;;  %s307_s25 = scalar_lea.vmem %s1855_s3, %s1501_s11 }
  0x12   : > { %v327_v9 = vrot.slane %v318_v8, %v326_v2  ;;  %v331_v10 = vrot.slane %v318_v8, %v330_v3  ;;  %v323_v11 = vrot.slane %v318_v8, %v322_v4  ;;  %v335_v12 = vrot.slane %v318_v8, %v334_v5  ;;  %v962_v1 = vld [vmem:[%s307_s25] sm:$0xf] }
  0x13   : > { %v339_v13 = vrot.slane %v318_v8, %v338_v6  ;;  %v343_v14 = vrot.slane %v318_v8, %v342_v7 }
  0x14   : > { %v1402_v15 = vpack.c.bf16 %v327_v9, %v327_v9  ;;  %v1404_v16 = vpack.c.bf16 %v331_v10, %v331_v10  ;;  %v1406_v17 = vpack.c.bf16 %v323_v11, %v323_v11  ;;  %v1408_v18 = vpack.c.bf16 %v335_v12, %v335_v12 }
  0x15   : > { %v1421_v26 = vpack.c.bf16 %v339_v13, %v339_v13  ;;  %v1423_v27 = vpack.c.bf16 %v343_v14, %v343_v14 }
  0x16   : > { %v405_v19 = vrot.slane %v1402_v15, 7  ;;  %v360_v20 = vshll.u32 %v1402_v15, 16  ;;  %v363_v21 = vshll.u32 %v1404_v16, 16  ;;  %v1414_v22 = vshll.u32 %v1406_v17, 16 }
  0x17   : > { %v1417_v23 = vshll.u32 %v1408_v18, 16  ;;  %v406_v25 = vrot.slane %v1404_v16, 7  ;;  %v459_v29 = vrot.slane %v1402_v15, 6  ;;  %v1430_v30 = vshll.u32 %v1421_v26, 16 }
  0x18   : > { %412 = vrot.lane.b32.xlu1 %v405_v19, %s1323_s27  ;;  %v1237_v24 = vpack.i.bf16 %v363_v21, %v360_v20  ;;  %v1433_v31 = vshll.u32 %v1423_v27, 16  ;;  %v404_v32 = vrot.slane %v1406_v17, 7  ;;  %v429_v34 = vrot.slane %v360_v20, 7 }
  0x19   : > { %v1242_v28 = vpack.i.bf16 %v1417_v23, %v1414_v22  ;;  %v430_v35 = vrot.slane %v363_v21, 7  ;;  %v460_v36 = vrot.slane %v1404_v16, 6  ;;  %v428_v37 = vrot.slane %v1414_v22, 7 }
  0x1a   : > { %1238 = vrot.lane.b32.xlu0 %v1237_v24, %s1324_s28  ;;  %v1247_v33 = vpack.i.bf16 %v1433_v31, %v1430_v30  ;;  %v431_v38 = vrot.slane %v1417_v23, 7  ;;  %v483_v40 = vrot.slane %v360_v20, 6  ;;  %v484_v41 = vrot.slane %v363_v21, 6 }
  0x1b   : > { %v1252_v39 = vpack.i.bf16 %v430_v35, %v429_v34  ;;  %v458_v44 = vrot.slane %v1406_v17, 6  ;;  %v408_v45 = vrot.slane %v1421_v26, 7  ;;  %v407_v46 = vrot.slane %v1408_v18, 7 }
  0x1c   : > { %414 = vrot.lane.b32.xlu1 %v406_v25, %s1323_s27  ;;  %v1257_v42 = vpack.i.bf16 %v431_v38, %v428_v37  ;;  %v1262_v43 = vpack.i.bf16 %v484_v41, %v483_v40  ;;  %v482_v47 = vrot.slane %v1414_v22, 6  ;;  %v485_v48 = vrot.slane %v1417_v23, 6 }
  0x1d   : > { %v513_v49 = vrot.slane %v1402_v15, 5  ;;  %v432_v50 = vrot.slane %v1430_v30, 7  ;;  %v433_v51 = vrot.slane %v1433_v31, 7  ;;  %v537_v54 = vrot.slane %v360_v20, 5 }
  0x1e   : > { %1243 = vrot.lane.b32.xlu0 %v1242_v28, %s1324_s28  ;;  %v1267_v52 = vpack.i.bf16 %v485_v48, %v482_v47  ;;  %v538_v55 = vrot.slane %v363_v21, 5  ;;  %v514_v56 = vrot.slane %v1404_v16, 5  ;;  %v512_v58 = vrot.slane %v1406_v17, 5 }
  0x1f   : > { %v1272_v53 = vpack.i.bf16 %v433_v51, %v432_v50  ;;  %v462_v59 = vrot.slane %v1421_v26, 6  ;;  %v461_v60 = vrot.slane %v1408_v18, 6  ;;  %v536_v61 = vrot.slane %v1414_v22, 5 }
  0x20   : > { %466 = vrot.lane.b32.xlu1 %v459_v29, %s1325_s29  ;;  %v1277_v57 = vpack.i.bf16 %v538_v55, %v537_v54  ;;  %v539_v62 = vrot.slane %v1417_v23, 5  ;;  %v567_v63 = vrot.slane %v1402_v15, 4  ;;  %v486_v8 = vrot.slane %v1430_v30, 6  ;;  %v721_v29 = vld [vmem:[%s303_s14] sm:$0xf] }
  0x21   : > { %v568_v9 = vrot.slane %v1404_v16, 4  ;;  %v515_v10 = vrot.slane %v1408_v18, 5  ;;  %v566_v11 = vrot.slane %v1406_v17, 4  ;;  %v409_v12 = vrot.slane %v1423_v27, 7 }
  0x22   : > { %410 = vrot.lane.b32.xlu0 %v404_v32, %s1323_s27  ;;  %v1282_v0 = vpack.i.bf16 %v539_v62, %v536_v61  ;;  %v516_v13 = vrot.slane %v1421_v26, 5  ;;  %v569_v14 = vrot.slane %v1408_v18, 4  ;;  %v540_v19 = vrot.slane %v1430_v30, 5 }
  0x23   : > { %v1331_v20 = vmov 0   ;;  %v463_v21 = vrot.slane %v1423_v27, 6  ;;  %v570_v22 = vrot.slane %v1421_v26, 4  ;;  %v517_v23 = vrot.slane %v1423_v27, 5 }
  0x24   : > { %1248 = vrot.lane.b32.xlu1 %v1247_v33, %s1324_s28  ;;  %778 = vmatprep.mubr.bf16.mxu0 %v1331_v20  ;;  %v487_v24 = vrot.slane %v1433_v31, 6  ;;  %v571_v25 = vrot.slane %v1423_v27, 4  ;;  %v541_v28 = vrot.slane %v1433_v31, 5  ;;  %s311_s28 = scalar_lea.vmem %s1856_s4, %s1501_s11 }
  0x25   : > { %819 = vmatprep.mubr.bf16.mxu1 %v1331_v20  ;;  %1287 = vset.pattern.permute.xlu0 %v1331_v20 }
  0x26   : > { %468 = vrot.lane.b32.xlu0 %v460_v36, %s1325_s29  ;;  %1288 = vset.pattern.permute.xlu1 %v1331_v20 }
  0x28   : > { %1253 = vrot.lane.b32.xlu1 %v1252_v39, %s1326_s30 }
  0x2a   : > { %1258 = vrot.lane.b32.xlu0 %v1257_v42, %s1326_s30 }
  0x2c   : > { %1263 = vrot.lane.b32.xlu1 %v1262_v43, %s1327_s7 }
  0x2e   : > { %464 = vrot.lane.b32.xlu0 %v458_v44, %s1325_s29 }
  0x30   : > { %418 = vrot.lane.b32.xlu1 %v408_v45, %s1323_s27 }
  0x32   : > { %416 = vrot.lane.b32.xlu0 %v407_v46, %s1323_s27 }
  0x34   : > { %520 = vrot.lane.b32.xlu1 %v513_v49, %s1328_s8 }
  0x36   : > { %1268 = vrot.lane.b32.xlu0 %v1267_v52, %s1327_s7 }
  0x38   : > { %1273 = vrot.lane.b32.xlu1 %v1272_v53, %s1326_s30 }
  0x3a   : > { %522 = vrot.lane.b32.xlu0 %v514_v56, %s1328_s8 }
  0x3c   : > { %1278 = vrot.lane.b32.xlu1 %v1277_v57, %s1329_s9 }
  0x3e   : > { %518 = vrot.lane.b32.xlu0 %v512_v58, %s1328_s8 }
  0x40   : > { %472 = vrot.lane.b32.xlu1 %v462_v59, %s1325_s29 }
  0x42   : > { %470 = vrot.lane.b32.xlu0 %v461_v60, %s1325_s29 }
  0x44   : > { %574 = vrot.lane.b32.xlu1 %v567_v63, %s1330_s10 }
  0x46   : > { %1283 = vrot.lane.b32.xlu0 %v1282_v0, %s1329_s9 }
  0x48   : > { %496 = vrot.lane.b32.xlu1 %v486_v8, %s1327_s7 }
  0x4a   : > { %576 = vrot.lane.b32.xlu0 %v568_v9, %s1330_s10 }
  0x4c   : > { %524 = vrot.lane.b32.xlu1 %v515_v10, %s1328_s8 }
  0x4e   : > { %572 = vrot.lane.b32.xlu0 %v566_v11, %s1330_s10 }
  0x50   : > { %420 = vrot.lane.b32.xlu1 %v409_v12, %s1323_s27 }
  0x52   : > { %526 = vrot.lane.b32.xlu0 %v516_v13, %s1328_s8 }
  0x54   : > { %578 = vrot.lane.b32.xlu1 %v569_v14, %s1330_s10 }
  0x56   : > { %550 = vrot.lane.b32.xlu0 %v540_v19, %s1329_s9 }
  0x58   : > { %474 = vrot.lane.b32.xlu1 %v463_v21, %s1325_s29  ;;  %s1218_s29 = smul.u32 24, %s1881_s22 }
  0x5a   : > { %580 = vrot.lane.b32.xlu0 %v570_v22, %s1330_s10 }
  0x5c   : > { %528 = vrot.lane.b32.xlu1 %v517_v23, %s1328_s8  ;;  %s316_s8 = scalar_lea.vmem %s1858_s6, %s1218_s29 }
  0x5e   : > { %498 = vrot.lane.b32.xlu0 %v487_v24, %s1327_s7 }
  0x60   : > { %582 = vrot.lane.b32.xlu1 %v571_v25, %s1330_s10 }
  0x62   : > { %552 = vrot.lane.b32.xlu0 %v541_v28, %s1329_s9 }
  0x66   : > { %724 = vperm.xlu0 %1287, %v721_v29  }
  0x8a   : > { %v413_v30 = vpop.permute.xlu1 %412 }
  0x8c   : > { %v1511_v32 = vpop.permute.xlu0 %1238 }
  0x8d   : > { %v1241_v47 = vunpack.i.h.bf16 %v1511_v32  ;;  %v1240_v48 = vunpack.i.l.bf16 %v1511_v32 }
  0x8e   : > { %v1513_v33 = vpop.permute.xlu1 %414 }
  0x8f   : > { %v388_v52 = vsel %vm1859_vm0, %v1240_v48, %v1241_v47  ;;  %v424_v58 = vsel %vm1860_vm3, %v413_v30, %v1513_v33 }
  0x90   : > { %v1515_v34 = vpop.permute.xlu0 %1243  ;;  %v594_v59 = vsel %vm1552_vm4, %v1402_v15, %v388_v52 }
  0x91   : > { %v1245_v51 = vunpack.i.l.bf16 %v1515_v34  ;;  %v606_v15 = vsel %vm590_vm1, %v594_v59, %v424_v58  ;;  %v869_v58 = vld [vmem:[%s1857_s5] sm:$0x3f] }
  0x92   : > { %v1517_v35 = vpop.permute.xlu1 %466 }
  0x93   : > { %v387_v60 = vsel %vm1859_vm0, %v1245_v51, %v1240_v48  ;;  %vm1595_vm0 = vmand %vm658_vm10, %vm659_vm11 }
  0x94   : > { %v411_v31 = vpop.permute.xlu0 %410  ;;  %v593_v14 = vsel %vm1552_vm4, %v1406_v17, %v387_v60  ;;  %v1246_v17 = vunpack.i.h.bf16 %v1515_v34  ;;  %vm1619_vm11 = vmand %vm692_vm15, %vm693_vm2  ;;  %vm1871_vm2 = vcmask 1039360  }
  0x95   : > { %v423_v13 = vsel %vm1860_vm3, %v411_v31, %v413_v30  ;;  %vm731_vm3 = vcmask 1044480   ;;  %v1332_v30 = vmov 65535  }
  0x96   : > { %v1519_v36 = vpop.permute.xlu1 %1248  ;;  %v732_v31 = vsel %vm692_vm15, 4294967295, %v1332_v30  ;;  %v602_v48 = vsel %vm590_vm1, %v593_v14, %v423_v13 }
  0x97   : > { %v1633_v14 = vsel %vm731_vm3, %v732_v31, 0  ;;  %vm1873_vm3 = vmmov %vm1871_vm2 }
  0x98   : > { %v1521_v37 = vpop.permute.xlu0 %468 }
  0x99   : > { %v478_v28 = vsel %vm476_vm8, %v1517_v35, %v1521_v37 }
  0x9a   : > { %v1523_v38 = vpop.permute.xlu1 %1253 }
  0x9b   : > { %v1256_v54 = vunpack.i.h.bf16 %v1523_v38  ;;  %v1255_v55 = vunpack.i.l.bf16 %v1523_v38 }
  0x9c   : > { %v1525_v39 = vpop.permute.xlu0 %1258 }
  0x9d   : > { %v448_v62 = vsel %vm1862_vm5, %v1255_v55, %v1256_v54  ;;  %v1260_v63 = vunpack.i.l.bf16 %v1525_v39 }
  0x9e   : > { %v1527_v40 = vpop.permute.xlu1 %1263  ;;  %v628_v19 = vsel %vm1567_vm12, %v606_v15, %v448_v62 }
  0x9f   : > { %v1266_v0 = vunpack.i.h.bf16 %v1527_v40  ;;  %v1265_v8 = vunpack.i.l.bf16 %v1527_v40  ;;  %v447_v21 = vsel %vm1862_vm5, %v1260_v63, %v1255_v55  ;;  %v640_v51 = vsel %vm624_vm6, %v628_v19, %v478_v28 }
  0xa0   : > { %v1529_v41 = vpop.permute.xlu0 %464  ;;  %v627_v60 = vsel %vm1567_vm12, %v602_v48, %v447_v21  ;;  %v389_v19 = vsel %vm1871_vm2, %v1241_v47, %v1246_v17  ;;  %v1261_v47 = vunpack.i.h.bf16 %v1525_v39  ;;  %vm727_vm2 = vcmask 72704  }
  0xa1   : > { %v502_v22 = vsel %vm1861_vm9, %v1265_v8, %v1266_v0  ;;  %v477_v59 = vsel %vm476_vm8, %v1529_v41, %v1517_v35  ;;  %v595_v30 = vsel %vm1552_vm4, %v1404_v16, %v389_v19 }
  0xa2   : > { %v1531_v42 = vpop.permute.xlu1 %418  ;;  %v662_v62 = vsel %vm1595_vm0, %v640_v51, %v502_v22 }
  0xa4   : > { %v1533_v43 = vpop.permute.xlu0 %416 }
  0xa6   : > { %v1535_v44 = vpop.permute.xlu1 %520 }
  0xa8   : > { %v1537_v45 = vpop.permute.xlu0 %1268 }
  0xa9   : > { %v1270_v23 = vunpack.i.l.bf16 %v1537_v45 }
  0xaa   : > { %v1539_v46 = vpop.permute.xlu1 %1273 }
  0xab   : > { %v501_v63 = vsel %vm1861_vm9, %v1270_v23, %v1265_v8  ;;  %v636_v8 = vsel %vm624_vm6, %v627_v60, %v477_v59  ;;  %vm1872_vm9 = vcmask 1031168   ;;  %v1275_v51 = vunpack.i.l.bf16 %v1539_v46 }
  0xac   : > { %v1543_v49 = vpop.permute.xlu0 %522  ;;  %v425_v22 = vsel %vm1872_vm9, %v1513_v33, %v1533_v43  ;;  %v1271_v59 = vunpack.i.h.bf16 %v1537_v45  ;;  %v426_v19 = vsel %vm1872_vm9, %v1533_v43, %v1531_v42 }
  0xad   : > { %v532_v29 = vsel %vm530_vm13, %v1535_v44, %v1543_v49  ;;  %v610_v31 = vsel %vm590_vm1, %v595_v30, %v425_v22  ;;  %v450_v45 = vsel %vm1862_vm5, %v1261_v47, %v1275_v51 }
  0xae   : > { %v1545_v50 = vpop.permute.xlu1 %1278  ;;  %v674_v15 = vsel %vm658_vm10, %v662_v62, %v532_v29  ;;  %v1250_v29 = vunpack.i.l.bf16 %v1519_v36 }
  0xaf   : > { %v1281_v10 = vunpack.i.h.bf16 %v1545_v50  ;;  %v1280_v11 = vunpack.i.l.bf16 %v1545_v50 }
  0xb0   : > { %v519_v56 = vpop.permute.xlu0 %518  ;;  %v390_v62 = vsel %vm1873_vm3, %v1246_v17, %v1250_v29  ;;  %vm1874_vm3 = vcmask 883712  }
  0xb1   : > { %v556_v34 = vsel %vm554_vm14, %v1280_v11, %v1281_v10  ;;  %v531_v35 = vsel %vm530_vm13, %v519_v56, %v1535_v44  ;;  %v661_v44 = vsel %vm1595_vm0, %v636_v8, %v501_v63  ;;  %v503_v43 = vsel %vm1874_vm3, %v1266_v0, %v1271_v59  ;;  %vm1875_vm9 = vmmov %vm1874_vm3 }
  0xb2   : > { %v1558_v57 = vpop.permute.xlu1 %472  ;;  %v696_v21 = vsel %vm1619_vm11, %v674_v15, %v556_v34  ;;  %v670_v33 = vsel %vm658_vm10, %v661_v44, %v531_v35  ;;  %v1251_v15 = vunpack.i.h.bf16 %v1519_v36  ;;  %v596_v36 = vsel %vm1552_vm4, %v1408_v18, %v390_v62 }
  0xb3   : > { %v614_v8 = vsel %vm590_vm1, %v596_v36, %v426_v19  ;;  %vm1877_vm3 = vcmask 1031168  }
  0xb4   : > { %v1577_v9 = vpop.permute.xlu0 %470  ;;  %v630_v40 = vsel %vm1567_vm12, %v614_v8, %v450_v45 }
  0xb6   : > { %v575_v12 = vpop.permute.xlu1 %574 }
  0xb8   : > { %v1599_v25 = vpop.permute.xlu0 %1283 }
  0xb9   : > { %v1285_v52 = vunpack.i.l.bf16 %v1599_v25 }
  0xba   : > { %v1612_v55 = vpop.permute.xlu1 %496 }
  0xbb   : > { %v555_v23 = vsel %vm554_vm14, %v1285_v52, %v1280_v11  ;;  %v479_v52 = vsel %vm476_vm8, %v1521_v37, %v1577_v9 }
  0xbc   : > { %v577_v13 = vpop.permute.xlu0 %576  ;;  %v695_v39 = vsel %vm1619_vm11, %v670_v33, %v555_v23 }
  0xbd   : > { %v586_v41 = vsel %vm584_vm7, %v575_v12, %v577_v13 }
  0xbe   : > { %v525_v28 = vpop.permute.xlu1 %524  ;;  %v707_v32 = vsel %vm692_vm15, %v696_v21, %v586_v41  ;;  %v480_v41 = vsel %vm476_vm8, %v1577_v9, %v1558_v57  ;;  %v1286_v21 = vunpack.i.h.bf16 %v1599_v25 }
  0xbf   : > { %v736_v56 = vand.u32 %v1633_v14, %v707_v32  ;;  %v533_v17 = vsel %vm530_vm13, %v1543_v49, %v525_v28  ;;  %v504_v49 = vsel %vm1875_vm9, %v1271_v59, %v1612_v55  ;;  %v648_v25 = vsel %vm624_vm6, %v630_v40, %v480_v41 }
  0xc0   : > { %v573_v11 = vpop.permute.xlu0 %572  ;;  %v557_v30 = vsel %vm554_vm14, %v1281_v10, %v1286_v21 }
  0xc1   : > { %v585_v48 = vsel %vm584_vm7, %v573_v11, %v575_v12  ;;  %746 = vmatprep.subr.bf16.mxu0 %v736_v56  ;;  %v449_v12 = vsel %vm1862_vm5, %v1256_v54, %v1261_v47  ;;  %v1684_v54 = vld [vmem:[%s299_s18] sm:$0x3]  ;;  %vm1876_vm5 = vcmask 1039360  }
  0xc2   : > { %v421_v34 = vpop.permute.xlu1 %420  ;;  %v704_v16 = vsel %vm692_vm15, %v695_v39, %v585_v48  ;;  %v629_v37 = vsel %vm1567_vm12, %v610_v31, %v449_v12  ;;  %v391_v18 = vsel %vm1876_vm5, %v1250_v29, %v1251_v15  ;;  %v1276_v29 = vunpack.i.h.bf16 %v1539_v46 }
  0xc3   : > { %v734_v60 = vand.u32 %v1633_v14, %v704_v16  ;;  %v644_v38 = vsel %vm624_vm6, %v629_v37, %v479_v52  ;;  %v427_v32 = vsel %vm1877_vm3, %v1531_v42, %v421_v34  ;;  %v597_v42 = vsel %vm1552_vm4, %v1421_v26, %v391_v18 }
  0xc4   : > { %v527_v63 = vpop.permute.xlu0 %526  ;;  %v663_v22 = vsel %vm1595_vm0, %v644_v38, %v503_v43  ;;  %v618_v10 = vsel %vm590_vm1, %v597_v42, %v427_v32  ;;  %vm1096_vm5 = vcmask 64516  }
  0xc5   : > { %747 = vmatpush1.bf16.msra.mxu0 %v734_v60  ;;  %v678_v0 = vsel %vm658_vm10, %v663_v22, %v533_v17  ;;  %v534_v9 = vsel %vm530_vm13, %v525_v28, %v527_v63  ;;  %v664_v28 = vsel %vm1595_vm0, %v648_v25, %v504_v49 }
  0xc6   : > { %v579_v35 = vpop.permute.xlu1 %578  ;;  %v682_v33 = vsel %vm658_vm10, %v664_v28, %v534_v9  ;;  %v697_v50 = vsel %vm1619_vm11, %v678_v0, %v557_v30  ;;  %v874_v0 = vrot.slane %v869_v58, %v322_v4  ;;  %v886_v30 = vrot.slane %v869_v58, %v334_v5 }
  0xc7   : > { %v587_v47 = vsel %vm584_vm7, %v577_v13, %v579_v35 }
  0xc8   : > { %v551_v23 = vpop.permute.xlu0 %550  ;;  %1212 = vmatmul.mubr.msk.bf16.vlgmr.msra.gmra.mrb[0].mxu0 %vm727_vm2, %v1684_v54 }
  0xc9   : > { %860 = vmatprep.mubr.bf16.mxu0 %v1331_v20  ;;  %v558_v44 = vsel %vm554_vm14, %v1286_v21, %v551_v23  ;;  %v598_v20 = vsel %vm1552_vm4, %v1423_v27, %v1251_v15  ;;  %v710_v27 = vsel %vm692_vm15, %v697_v50, %v587_v47  ;;  %vm1878_vm4 = vcmask 900096  }
  0xca   : > { %v475_v56 = vpop.permute.xlu1 %474  ;;  %v622_v13 = vsel %vm590_vm1, %v598_v20, %v421_v34  ;;  %v698_v31 = vsel %vm1619_vm11, %v682_v33, %v558_v44  ;;  %v451_v39 = vsel %vm1878_vm4, %v1275_v51, %v1276_v29  ;;  %v738_v60 = vand.u32 %v1633_v14, %v710_v27  ;;  %vm1879_vm1 = vmmov %vm1875_vm9 }
  0xcb   : > { %v481_v26 = vsel %vm476_vm8, %v1558_v57, %v475_v56  ;;  %v632_v52 = vsel %vm1567_vm12, %v622_v13, %v1276_v29  ;;  %v631_v16 = vsel %vm1567_vm12, %v618_v10, %v451_v39  ;;  %v894_v10 = vrot.slane %v869_v58, %v342_v7 }
  0xcc   : > { %v581_v46 = vpop.permute.xlu0 %580  ;;  %v656_v12 = vsel %vm624_vm6, %v632_v52, %v475_v56  ;;  %v652_v57 = vsel %vm624_vm6, %v631_v16, %v481_v26  ;;  %vm1097_vm6 = vmor %vm1096_vm5, %vm692_vm15 }
  0xcd   : > { %v588_v11 = vsel %vm584_vm7, %v579_v35, %v581_v46 }
  0xce   : > { %v529_v53 = vpop.permute.xlu1 %528  ;;  %v713_v48 = vsel %vm692_vm15, %v698_v31, %v588_v11 }
  0xcf   : > { %v740_v34 = vand.u32 %v1633_v14, %v713_v48  ;;  %v535_v15 = vsel %vm530_vm13, %v527_v63, %v529_v53 }
  0xd0   : > { %v499_v59 = vpop.permute.xlu0 %498 }
  0xd1   : > { %v505_v62 = vsel %vm1879_vm1, %v1612_v55, %v499_v59  ;;  %v666_v51 = vsel %vm1595_vm0, %v656_v12, %v499_v59  ;;  %787 = vmatprep.subr.bf16.mxu1 %v740_v34 }
  0xd2   : > { %v665_v37 = vsel %vm1595_vm0, %v652_v57, %v505_v62  ;;  %788 = vmatpush1.bf16.msra.mxu1 %v738_v60  ;;  %v583_v61 = vpop.permute.xlu1 %582  ;;  %v690_v19 = vsel %vm658_vm10, %v666_v51, %v529_v53  ;;  %vm916_vm0 = vcmask 60416  }
  0xd3   : > { %v686_v45 = vsel %vm658_vm10, %v665_v37, %v535_v15  ;;  %v589_v24 = vsel %vm584_vm7, %v581_v46, %v583_v61 }
  0xd4   : > { %v553_v38 = vpop.permute.xlu0 %552 }
  0xd5   : > { %v559_v17 = vsel %vm554_vm14, %v551_v23, %v553_v38  ;;  %v700_v55 = vsel %vm1619_vm11, %v690_v19, %v553_v38  ;;  %1213 = vmatmul.mubr.msk.bf16.vlgmr.msra.gmra.mrb[0].mxu1 %vm727_vm2, %v1684_v54 }
  0xd6   : > { %v699_v35 = vsel %vm1619_vm11, %v686_v45, %v559_v17  ;;  %v719_v63 = vsel %vm692_vm15, %v700_v55, %v583_v61 }
  0xd7   : > { %v716_v36 = vsel %vm692_vm15, %v699_v35, %v589_v24  ;;  %v744_v43 = vand.u32 %v1633_v14, %v719_v63 }
  0xd8   : > { %v742_v41 = vand.u32 %v1633_v14, %v716_v36  ;;  %v878_v14 = vrot.slane %v869_v58, %v326_v2 }
  0xd9   : > { %828 = vmatprep.subr.bf16.mxu0 %v744_v43 }
  0xda   : > { %829 = vmatpush1.bf16.msra.mxu0 %v742_v41 }
  0xdd   : > { %1214 = vmatmul.mubr.msk.bf16.vlgmr.msra.gmra.mrb[4].mxu0 %vm727_vm2, %v1684_v54  ;;  %v882_v54 = vrot.slane %v869_v58, %v330_v3  ;;  %v890_v3 = vrot.slane %v869_v58, %v338_v6 }
  0xe5   : > { %v725_v22 = vpop.permute.xlu0 %724 }
 0x19b   : > { %v780_v21 = vpop.f32.mrb[0].mxu0 }
 0x19c   : > { %v782_v8 = vpop.f32.mrb[1].mxu0  ;;  %v781_v18 = vadd.f32 %v780_v21, %v725_v22 }
 0x19d   : > { %v784_v49 = vpop.f32.mrb[2].mxu0  ;;  %v783_v40 = vadd.f32 %v782_v8, %v725_v22 }
 0x19e   : > { %v785_v23 = vpop.f32.mrb[3].mxu0  ;;  %v901_v9 = vmul.f32 %v874_v0, %v781_v18 }
 0x19f   : > { %v902_v25 = vmul.f32 %v878_v14, %v783_v40 }
 0x1a0   : > { %v907_v47 = vsel %vm692_vm15, %v901_v9, 0.0 }
 0x1a1   : > { %v908_v44 = vsel %vm692_vm15, %v902_v25, 0.0  ;;  %v974_v25 = vld [vmem:[%s311_s28] sm:$0xf] }
 0x1a2   : > { %v909_v2 = vadd.f32 %v908_v44, %v907_v47 }
 0x1a8   : > { %v821_v32 = vpop.f32.mrb[0].mxu1 }
 0x1a9   : > { %v822_v56 = vadd.f32 %v821_v32, %v725_v22  ;;  %v823_v29 = vpop.f32.mrb[1].mxu1 }
 0x1aa   : > { %v824_v28 = vadd.f32 %v823_v29, %v725_v22  ;;  %v825_v4 = vpop.f32.mrb[2].mxu1 }
 0x1ab   : > { %v903_v20 = vmul.f32 %v882_v54, %v822_v56  ;;  %v826_v42 = vpop.f32.mrb[3].mxu1 }
 0x1ac   : > { %v904_v33 = vmul.f32 %v886_v30, %v824_v28 }
 0x1ad   : > { %v910_v13 = vsel %vm692_vm15, %v903_v20, 0.0 }
 0x1ae   : > { %v911_v46 = vadd.f32 %v910_v13, %v909_v2  ;;  %v912_v11 = vsel %vm692_vm15, %v904_v33, 0.0 }
 0x1b0   : > { %v862_v50 = vpop.f32.mrb[4].mxu0  ;;  %v913_v52 = vadd.f32 %v912_v11, %v911_v46 }
 0x1b1   : > { %v863_v5 = vadd.f32 %v862_v50, %v725_v22  ;;  %v864_v31 = vpop.f32.mrb[5].mxu0 }
 0x1b2   : > { %v865_v27 = vadd.f32 %v864_v31, %v725_v22  ;;  %v866_v26 = vpop.f32.mrb[6].mxu0 }
 0x1b3   : > { %v905_v53 = vmul.f32 %v890_v3, %v863_v5  ;;  %v867_v48 = vpop.f32.mrb[7].mxu0 }
 0x1b4   : > { %v906_v39 = vmul.f32 %v894_v10, %v865_v27 }
 0x1b5   : > { %v914_v34 = vsel %vm692_vm15, %v905_v53, 0.0 }
 0x1b6   : > { %v915_v6 = vadd.f32 %v914_v34, %v913_v52  ;;  %v917_v16 = vsel %vm916_vm0, %v906_v39, 0.0 }
 0x1b8   : > { %v918_v12 = vadd.f32 %v917_v16, %v915_v6 }
 0x1ba   : > { %919 = vadd.xlane.f32.xlu1 %v918_v12 }
 0x1cb   : > { %965 = vperm.xlu1 %1288, %v962_v1  }
 0x247   : > { %v920_v7 = vpop.xlane.xlu1 %919 }
 0x248   : > { %v921_v59 = vmul.f32 0.001953125, %v920_v7 }
 0x24a   : > { %v922_v60 = vsub.f32 %v781_v18, %v921_v59  ;;  %v923_v57 = vsub.f32 %v783_v40, %v921_v59  ;;  %v924_v62 = vsub.f32 %v822_v56, %v921_v59  ;;  %v925_v51 = vsub.f32 %v824_v28, %v921_v59 }
 0x24b   : > { %v926_v37 = vsub.f32 %v863_v5, %v921_v59  ;;  %v927_v61 = vsub.f32 %v865_v27, %v921_v59  ;;  %v966_v56 = vpop.permute.xlu1 %965 }
 0x24c   : > { %v928_v15 = vmul.f32 %v922_v60, %v874_v0  ;;  %v929_v19 = vmul.f32 %v923_v57, %v878_v14  ;;  %v930_v38 = vmul.f32 %v924_v62, %v882_v54  ;;  %v931_v45 = vmul.f32 %v925_v51, %v886_v30 }
 0x24d   : > { %v932_v17 = vmul.f32 %v926_v37, %v890_v3  ;;  %v933_v63 = vmul.f32 %v927_v61, %v894_v10 }
 0x24e   : > { %v934_v55 = vmul.f32 %v928_v15, %v928_v15  ;;  %v935_v24 = vmul.f32 %v929_v19, %v929_v19  ;;  %v936_v35 = vmul.f32 %v930_v38, %v930_v38  ;;  %v937_v36 = vmul.f32 %v931_v45, %v931_v45 }
 0x24f   : > { %v938_v8 = vmul.f32 %v932_v17, %v932_v17  ;;  %v939_v58 = vmul.f32 %v933_v63, %v933_v63 }
 0x250   : > { %v940_v43 = vsel %vm692_vm15, %v934_v55, 0.0  ;;  %v941_v41 = vsel %vm692_vm15, %v935_v24, 0.0  ;;  %v943_v49 = vsel %vm692_vm15, %v936_v35, 0.0  ;;  %v945_v23 = vsel %vm692_vm15, %v937_v36, 0.0 }
 0x251   : > { %v942_v21 = vadd.f32 %v941_v41, %v940_v43  ;;  %v947_v40 = vsel %vm692_vm15, %v938_v8, 0.0  ;;  %v949_v14 = vsel %vm916_vm0, %v939_v58, 0.0 }
 0x253   : > { %v944_v22 = vadd.f32 %v943_v49, %v942_v21 }
 0x255   : > { %v946_v18 = vadd.f32 %v945_v23, %v944_v22 }
 0x257   : > { %v948_v0 = vadd.f32 %v947_v40, %v946_v18 }
 0x259   : > { %v950_v9 = vadd.f32 %v949_v14, %v948_v0 }
 0x25b   : > { %951 = vadd.xlane.f32.xlu0 %v950_v9 }
 0x271   : > { %977 = vperm.xlu0 %1287, %v974_v25  }
 0x2e8   : > { %v952_v54 = vpop.xlane.xlu0 %951 }
 0x2e9   : > { %v953_v32 = vmul.f32 0.001953125, %v952_v54 }
 0x2eb   : > { %v954_v47 = vadd.f32 1e-05, %v953_v32 }
 0x2ed   : > { %1289 = vrsqrt.f32 %v954_v47 }
 0x2f0   : > { %v978_v46 = vpop.permute.xlu0 %977 }
 0x2f7   : > { %v1290_v44 = vpop.eup %1289 }
 0x2f8   : > { %v956_v29 = vmul.f32 %v1290_v44, %v922_v60  ;;  %v957_v30 = vmul.f32 %v1290_v44, %v923_v57  ;;  %v958_v28 = vmul.f32 %v1290_v44, %v924_v62  ;;  %v959_v4 = vmul.f32 %v1290_v44, %v925_v51 }
 0x2f9   : > { %v960_v20 = vmul.f32 %v1290_v44, %v926_v37  ;;  %v961_v42 = vmul.f32 %v1290_v44, %v927_v61 }
 0x2fa   : > { %v968_v2 = vmul.f32 %v966_v56, %v956_v29  ;;  %v969_v13 = vmul.f32 %v966_v56, %v957_v30  ;;  %v970_v33 = vmul.f32 %v966_v56, %v958_v28  ;;  %v971_v3 = vmul.f32 %v966_v56, %v959_v4 }
 0x2fb   : > { %v972_v50 = vmul.f32 %v966_v56, %v960_v20  ;;  %v973_v10 = vmul.f32 %v966_v56, %v961_v42 }
 0x2fc   : > { %v980_v11 = vadd.f32 %v978_v46, %v968_v2  ;;  %v981_v5 = vadd.f32 %v978_v46, %v969_v13  ;;  %v982_v31 = vadd.f32 %v978_v46, %v970_v33  ;;  %v983_v27 = vadd.f32 %v978_v46, %v971_v3 }
 0x2fd   : > { %v984_v26 = vadd.f32 %v978_v46, %v972_v50  ;;  %v985_v53 = vadd.f32 %v978_v46, %v973_v10 }
 0x2fe   : > { %v1808_v48 = vmax.f32 %v980_v11, 0.0  ;;  %v1810_v39 = vmax.f32 %v981_v5, 0.0  ;;  %v1812_v52 = vmax.f32 %v982_v31, 0.0  ;;  %v1814_v34 = vmax.f32 %v983_v27, 0.0 }
 0x2ff   : > { %v1816_v6 = vmax.f32 %v984_v26, 0.0  ;;  %v1818_v16 = vmax.f32 %v985_v53, 0.0 }
 0x300   : > { %v992_v12 = vmul.f32 %v1808_v48, %v1808_v48  ;;  %v993_v1 = vmul.f32 %v1810_v39, %v1810_v39  ;;  %v994_v7 = vmul.f32 %v1812_v52, %v1812_v52  ;;  %v995_v59 = vmul.f32 %v1814_v34, %v1814_v34 }
 0x301   : > { %v996_v60 = vmul.f32 %v1816_v6, %v1816_v6  ;;  %v997_v57 = vmul.f32 %v1818_v16, %v1818_v16 }
 0x302   : > { %v998_v62 = vsel %vm692_vm15, %v992_v12, 0.0  ;;  %v1005_v51 = vsel %vm692_vm15, %v993_v1, 0.0  ;;  %v1012_v37 = vsel %vm692_vm15, %v994_v7, 0.0  ;;  %v1019_v61 = vsel %vm692_vm15, %v995_v59, 0.0 }
 0x303   : > { %v999_v15 = vrot.slane %v998_v62, 4  ;;  %v1006_v19 = vrot.slane %v1005_v51, 4  ;;  %v1013_v38 = vrot.slane %v1012_v37, 4  ;;  %v1020_v45 = vrot.slane %v1019_v61, 4 }
 0x304   : > { %v1026_v17 = vsel %vm692_vm15, %v996_v60, 0.0  ;;  %v1033_v55 = vsel %vm916_vm0, %v997_v57, 0.0 }
 0x305   : > { %v1000_v24 = vadd.f32 %v999_v15, %v998_v62  ;;  %v1007_v35 = vadd.f32 %v1006_v19, %v1005_v51  ;;  %v1014_v63 = vadd.f32 %v1013_v38, %v1012_v37  ;;  %v1021_v36 = vadd.f32 %v1020_v45, %v1019_v61 }
 0x306   : > { %v1027_v43 = vrot.slane %v1026_v17, 4  ;;  %v1034_v41 = vrot.slane %v1033_v55, 4 }
 0x307   : > { %v1001_v21 = vrot.slane %v1000_v24, 2  ;;  %v1008_v8 = vrot.slane %v1007_v35, 2  ;;  %v1015_v49 = vrot.slane %v1014_v63, 2  ;;  %v1022_v22 = vrot.slane %v1021_v36, 2 }
 0x308   : > { %v1028_v58 = vadd.f32 %v1027_v43, %v1026_v17  ;;  %v1035_v23 = vadd.f32 %v1034_v41, %v1033_v55 }
 0x309   : > { %v1002_v18 = vadd.f32 %v1001_v21, %v1000_v24  ;;  %v1009_v40 = vadd.f32 %v1008_v8, %v1007_v35  ;;  %v1016_v0 = vadd.f32 %v1015_v49, %v1014_v63  ;;  %v1023_v14 = vadd.f32 %v1022_v22, %v1021_v36 }
 0x30a   : > { %v1029_v9 = vrot.slane %v1028_v58, 2  ;;  %v1036_v25 = vrot.slane %v1035_v23, 2 }
 0x30b   : > { %v1003_v54 = vrot.slane %v1002_v18, 1  ;;  %v1010_v32 = vrot.slane %v1009_v40, 1  ;;  %v1017_v47 = vrot.slane %v1016_v0, 1  ;;  %v1024_v44 = vrot.slane %v1023_v14, 1 }
 0x30c   : > { %v1030_v56 = vadd.f32 %v1029_v9, %v1028_v58  ;;  %v1037_v29 = vadd.f32 %v1036_v25, %v1035_v23 }
 0x30d   : > { %v1004_v30 = vadd.f32 %v1003_v54, %v1002_v18  ;;  %v1011_v28 = vadd.f32 %v1010_v32, %v1009_v40  ;;  %v1018_v4 = vadd.f32 %v1017_v47, %v1016_v0  ;;  %v1025_v20 = vadd.f32 %v1024_v44, %v1023_v14 }
 0x30e   : > { %v1031_v42 = vrot.slane %v1030_v56, 1  ;;  %v1038_v2 = vrot.slane %v1037_v29, 1 }
 0x30f   : > { %v1040_v13 = vadd.f32 1e-30, %v1004_v30  ;;  %v1041_v33 = vadd.f32 1e-30, %v1011_v28  ;;  %v1042_v3 = vadd.f32 1e-30, %v1018_v4 }
 0x310   : > { %v1032_v46 = vadd.f32 %v1031_v42, %v1030_v56  ;;  %v1039_v50 = vadd.f32 %v1038_v2, %v1037_v29  ;;  %v1043_v10 = vadd.f32 1e-30, %v1025_v20  ;;  %v1058_v31 = vadd.f32 1.0, %v1004_v30 }
 0x311   : > { %1291 = vrsqrt.f32 %v1040_v13  ;;  %v1059_v27 = vadd.f32 1.0, %v1011_v28  ;;  %v1060_v26 = vadd.f32 1.0, %v1018_v4  ;;  %v1061_v53 = vadd.f32 1.0, %v1025_v20 }
 0x312   : > { %v1044_v11 = vadd.f32 1e-30, %v1032_v46  ;;  %v1045_v5 = vadd.f32 1e-30, %v1039_v50  ;;  %1293 = vrsqrt.f32 %v1041_v33  ;;  %v1062_v12 = vadd.f32 1.0, %v1032_v46 }
 0x313   : > { %1295 = vrsqrt.f32 %v1042_v3  ;;  %v1063_v1 = vadd.f32 1.0, %v1039_v50 }
 0x314   : > { %1297 = vrsqrt.f32 %v1043_v10 }
 0x315   : > { %1299 = vrsqrt.f32 %v1044_v11 }
 0x316   : > { %1301 = vrsqrt.f32 %v1045_v5 }
 0x317   : > { %1303 = vrcp.f32 %v1058_v31 }
 0x318   : > { %1305 = vrcp.f32 %v1059_v27 }
 0x319   : > { %1307 = vrcp.f32 %v1060_v26 }
 0x31a   : > { %1309 = vrcp.f32 %v1061_v53 }
 0x31b   : > { %v1292_v7 = vpop.eup %1291  ;;  %1311 = vrcp.f32 %v1062_v12 }
 0x31c   : > { %v1294_v59 = vpop.eup %1293  ;;  %1313 = vrcp.f32 %v1063_v1  ;;  %v1052_v62 = vmul.f32 %v1292_v7, %v1004_v30 }
 0x31d   : > { %v1296_v60 = vpop.eup %1295  ;;  %v1053_v37 = vmul.f32 %v1294_v59, %v1011_v28 }
 0x31e   : > { %v1298_v57 = vpop.eup %1297  ;;  %v1054_v15 = vmul.f32 %v1296_v60, %v1018_v4 }
 0x31f   : > { %v1300_v51 = vpop.eup %1299  ;;  %v1055_v38 = vmul.f32 %v1298_v57, %v1025_v20 }
 0x320   : > { %v1302_v61 = vpop.eup %1301  ;;  %v1056_v17 = vmul.f32 %v1300_v51, %v1032_v46 }
 0x321   : > { %v1304_v19 = vpop.eup %1303  ;;  %v1057_v35 = vmul.f32 %v1302_v61, %v1039_v50 }
 0x322   : > { %v1306_v45 = vpop.eup %1305  ;;  %v1070_v55 = vmul.f32 %v1304_v19, %v1052_v62 }
 0x323   : > { %v1308_v24 = vpop.eup %1307  ;;  %v1071_v63 = vmul.f32 %v1306_v45, %v1053_v37 }
 0x324   : > { %v1310_v36 = vpop.eup %1309  ;;  %v1072_v43 = vmul.f32 %v1308_v24, %v1054_v15  ;;  %v1076_v41 = vmul.f32 %v1070_v55, %v1808_v48 }
 0x325   : > { %v1312_v21 = vpop.eup %1311  ;;  %v1073_v8 = vmul.f32 %v1310_v36, %v1055_v38  ;;  %v1077_v49 = vmul.f32 %v1071_v63, %v1810_v39 }
 0x326   : > { %v1314_v22 = vpop.eup %1313  ;;  %v1074_v58 = vmul.f32 %v1312_v21, %v1056_v17  ;;  %v1078_v23 = vmul.f32 %v1072_v43, %v1812_v52 }
 0x327   : > { %v1075_v18 = vmul.f32 %v1314_v22, %v1057_v35  ;;  %v1079_v40 = vmul.f32 %v1073_v8, %v1814_v34  ;;  %v1088_v0 = vcombine.low %v1076_v41, %v1077_v49 }
 0x328   : > { %v1080_v14 = vmul.f32 %v1074_v58, %v1816_v6 }
 0x329   : > { %v1081_v48 = vmul.f32 %v1075_v18, %v1818_v16  ;;  %v1089_v9 = vcombine.low %v1078_v23, %v1079_v40  ;;  %1094 = vst [vmem:[%s316_s8] sm:$0xff] %v1088_v0 }
 0x32b   : > { %v1090_v39 = vcombine.low %v1080_v14, %v1081_v48  ;;  %1095 = vst [vmem:[%s316_s8 + $0x8] sm:$0xff] %v1089_v9 }
 0x32d   : > { %1098 = vst.msk [vmem:[%s316_s8 + $0x10] sm:$0xff] %vm1097_vm6, %v1090_v39 }
 0x32e PF: > { %s16_s21 = sadd.s32 1, %s1321_s21  }
 0x32f   : > { %p13_p4 = scmp.ge.s32.totalorder %s16_s21, 6  }
 0x331   :  { %15 = sbr.rel (!%p13_p4) target bundleno = 1 (0x1), region = 86 }

// kernel: cap_conv2_forward.10
= control target key start
LH: loop header
LB: loop body
LE: loop exit
PB: predicated region body
PF: predicated region fallthrough
CT: control target
= control target key end

     0   :  { %s1544_s21 = smov 0   ;;  %s2117_s0 = inlined_call_operand.vmem [shape: f32[4,4,686], index: 0, kind: input, shape index: {}]   ;;  %s2118_s1 = inlined_call_operand.vmem [shape: f32[4,4,686], index: 1, kind: input, shape index: {}]   ;;  %s2119_s2 = inlined_call_operand.vmem [shape: bf16[4,1,36], index: 2, kind: input, shape index: {}]   ;;  %s2120_s3 = inlined_call_operand.vmem [shape: f32[4,1,1], index: 3, kind: input, shape index: {}]   ;;  %s2121_s4 = inlined_call_operand.vmem [shape: bf16[4,1,36], index: 4, kind: input, shape index: {}]   ;;  %s2122_s5 = inlined_call_operand.vmem [shape: f32[4,1,1], index: 5, kind: input, shape index: {}]   ;;  %s2123_s6 = inlined_call_operand.vmem [shape: f32[4,4,648], index: 6, kind: output, shape index: {}]  }
   0x1 LB: > { %s1438_s22 = sadd.s32 4294967295, %s1497_s21   ;;  %p1442_p0 = scmp.ge.s32.totalorder %s1497_s21, 1  ;;  %s1497_s21 = sphi %s1544_s21, %s16_s21  }
   0x2   : > { %p254_p1 = scmp.lt.s32.totalorder %s1497_s21, 5 }
   0x4   : > { %p255_p2 = pnand %p1442_p0, %p254_p1 }
   0x5   : > { %p301_p3 = scmp.lt.s32.totalorder (!%p255_p2), %s1438_s22, 3  ;;  %s1499_s27 = smov (!%p255_p2), 127   ;;  %v1507_v41 = vmov (!%p255_p2), 0   ;;  %vm389_vm0 = vcmask (!%p255_p2), 1039360   ;;  %vm413_vm1 = vcmask (!%p255_p2), 1031168   ;;  %vm533_vm2 = vcmask (!%p255_p2), 1041408  }
   0x6   : > { %258 = sbr.rel (%p255_p2) target bundleno = 792 (0x318), region = 44  ;;  %s1500_s28 = smov (!%p255_p2), 126   ;;  %953 = vmatprep.mubr.bf16.mxu0 (!%p255_p2), %v1507_v41  ;;  %994 = vmatprep.mubr.bf16.mxu1 (!%p255_p2), %v1507_v41  ;;  %vm437_vm3 = vcmask (!%p255_p2), 900096   ;;  %vm552_vm4 = vcmask (!%p255_p2), 1043456   ;;  %vm565_vm5 = vcmask (!%p255_p2), 1045504   ;;  %vm473_vm6 = vcmask (!%p255_p2), 883712  }
   0x7   : > { %s1501_s29 = smov (!%p255_p2), 110   ;;  %s1502_s30 = smov (!%p255_p2), 109   ;;  %1479 = vset.pattern.permute.xlu0 (!%p255_p2), %v1507_v41  ;;  %1480 = vset.pattern.permute.xlu1 (!%p255_p2), %v1507_v41  ;;  %vm491_vm7 = vcmask (!%p255_p2), 752640   ;;  %vm455_vm8 = vcmask (!%p255_p2), 891904   ;;  %vm509_vm9 = vcmask (!%p255_p2), 744448   ;;  %vm527_vm10 = vcmask (!%p255_p2), 736256  }
   0x8   : > { %s1503_s7 = smov (!%p255_p2), 108   ;;  %s1504_s8 = smov (!%p255_p2), 92   ;;  %vm899_vm11 = vcmask (!%p255_p2), 293888   ;;  %vm1241_vm12 = vcmask (!%p255_p2), 154624   ;;  %vm1332_vm13 = vcmask (!%p255_p2), 64516  }
   0x9   : > { %s1505_s9 = smov (!%p255_p2), 91   ;;  %s1506_s13 = smov (!%p255_p2), 90   ;;  %vm1333_vm14 = vmor (!%p255_p2), %vm1332_vm13, %vm552_vm4 }
   0xd   : > { %s2125_s22 = smov (!%p301_p3, %s1438_s22), 3 }
   0xe   : > { %s1555_s23 = smul.u32 24, %s2125_s22  ;;  %s316_s16 = scalar_lea.vmem %s2120_s3, %s2125_s22 }
   0xf   : > { %s313_s19 = scalar_lea.vmem %s2119_s2, %s2125_s22  ;;  %s322_s25 = scalar_lea.vmem %s2122_s5, %s2125_s22 }
  0x10   : > { %s1561_s26 = scalar_lea.vmem %s2117_s0, %s1555_s23  ;;  %s1636_s12 = scalar_lea.vmem %s2118_s1, %s1555_s23 }
  0x11   : > { %v1564_v0 = vld [vmem:[%s1561_s26 + $0x10] sm:$0xff]  ;;  %v330_v1 = vld [vmem:[%s1561_s26 + $0x8] sm:$0xff]  ;;  %v329_v2 = vld [vmem:[%s1561_s26] sm:$0xff] }
  0x12   : > { %v1570_v3 = vpack.c.bf16 %v1564_v0, %v1564_v0  ;;  %v1572_v4 = vpack.c.bf16 %v330_v1, %v330_v1  ;;  %v339_v5 = vcombine.high %v330_v1, %v330_v1  ;;  %v1574_v6 = vpack.c.bf16 %v329_v2, %v329_v2  ;;  %v1641_v25 = vld [vmem:[%s1636_s12] sm:$0xff]  ;;  %v1649_v27 = vld [vmem:[%s1636_s12 + $0x8] sm:$0xff]  ;;  %v1725_v57 = vld [vmem:[%s1636_s12 + $0x10] sm:$0xff] }
  0x13   : > { %v338_v7 = vcombine.high %v329_v2, %v329_v2  ;;  %v353_v26 = vcombine.high %v1641_v25, %v1641_v25  ;;  %v1657_v28 = vpack.c.bf16 %v1649_v27, %v1649_v27  ;;  %v340_v30 = vcombine.high %v1564_v0, %v1564_v0 }
  0x14   : > { %v375_v8 = vrot.slane %v1570_v3, 6  ;;  %v373_v9 = vrot.slane %v1572_v4, 6  ;;  %v1578_v10 = vpack.c.bf16 %v339_v5, %v339_v5  ;;  %v371_v12 = vrot.slane %v1574_v6, 6 }
  0x15   : > { %v1584_v13 = vpack.c.bf16 %v338_v7, %v338_v7  ;;  %v397_v14 = vrot.slane %v1572_v4, 4  ;;  %v395_v18 = vrot.slane %v1574_v6, 4  ;;  %v399_v19 = vrot.slane %v1570_v3, 4 }
  0x16   : > { %385 = vrot.lane.b32.xlu1 %v375_v8, %s1499_s27  ;;  %381 = vrot.lane.b32.xlu0 %v373_v9, %s1499_s27  ;;  %v374_v11 = vrot.slane %v1578_v10, 6  ;;  %v398_v16 = vrot.slane %v1578_v10, 4  ;;  %v421_v20 = vrot.slane %v1572_v4, 2  ;;  %v423_v22 = vrot.slane %v1570_v3, 2 }
  0x17   : > { %v396_v15 = vrot.slane %v1584_v13, 4  ;;  %v372_v17 = vrot.slane %v1584_v13, 6  ;;  %v420_v21 = vrot.slane %v1584_v13, 2  ;;  %v422_v23 = vrot.slane %v1578_v10, 2 }
  0x18   : > { %v419_v24 = vrot.slane %v1574_v6, 2  ;;  %v1659_v29 = vpack.c.bf16 %v353_v26, %v353_v26  ;;  %v640_v31 = vrot.slane %v1657_v28, 6  ;;  %v1671_v33 = vpack.c.bf16 %v1641_v25, %v1641_v25 }
  0x19   : > { %v1673_v34 = vpack.c.bf16 %v340_v30, %v340_v30  ;;  %v663_v37 = vrot.slane %v1657_v28, 4  ;;  %v686_v42 = vrot.slane %v1657_v28, 2  ;;  %v354_v58 = vcombine.high %v1649_v27, %v1649_v27 }
  0x1a   : > { %383 = vrot.lane.b32.xlu1 %v374_v11, %s1499_s27  ;;  %377 = vrot.lane.b32.xlu0 %v371_v12, %s1499_s27  ;;  %v639_v32 = vrot.slane %v1659_v29, 6  ;;  %v638_v35 = vrot.slane %v1671_v33, 6  ;;  %v662_v38 = vrot.slane %v1659_v29, 4  ;;  %v661_v39 = vrot.slane %v1671_v33, 4 }
  0x1b   : > { %v376_v36 = vrot.slane %v1673_v34, 6  ;;  %v400_v40 = vrot.slane %v1673_v34, 4  ;;  %v685_v43 = vrot.slane %v1659_v29, 2  ;;  %v684_v44 = vrot.slane %v1671_v33, 2 }
  0x1c   : > { %v424_v45 = vrot.slane %v1673_v34, 2  ;;  %v1735_v60 = vpack.c.bf16 %v1725_v57, %v1725_v57  ;;  %v1738_v0 = vpack.c.bf16 %v354_v58, %v354_v58  ;;  %v355_v1 = vcombine.high %v1725_v57, %v1725_v57 }
  0x1e   : > { %405 = vrot.lane.b32.xlu0 %v397_v14, %s1500_s28  ;;  %403 = vrot.lane.b32.xlu1 %v396_v15, %s1500_s28  ;;  %v641_v26 = vrot.slane %v1738_v0, 6 }
  0x22   : > { %407 = vrot.lane.b32.xlu1 %v398_v16, %s1500_s28  ;;  %379 = vrot.lane.b32.xlu0 %v372_v17, %s1499_s27 }
  0x26   : > { %401 = vrot.lane.b32.xlu1 %v395_v18, %s1500_s28  ;;  %409 = vrot.lane.b32.xlu0 %v399_v19, %s1500_s28 }
  0x2a   : > { %429 = vrot.lane.b32.xlu1 %v421_v20, %s1501_s29  ;;  %427 = vrot.lane.b32.xlu0 %v420_v21, %s1501_s29 }
  0x2e   : > { %433 = vrot.lane.b32.xlu1 %v423_v22, %s1501_s29  ;;  %431 = vrot.lane.b32.xlu0 %v422_v23, %s1501_s29 }
  0x32   : > { %445 = vrot.lane.b32.xlu1 %v1584_v13, %s1502_s30  ;;  %425 = vrot.lane.b32.xlu0 %v419_v24, %s1501_s29 }
  0x36   : > { %449 = vrot.lane.b32.xlu1 %v1578_v10, %s1502_s30  ;;  %447 = vrot.lane.b32.xlu0 %v1572_v4, %s1502_s30 }
  0x3a   : > { %463 = vrot.lane.b32.xlu1 %v372_v17, %s1503_s7  ;;  %451 = vrot.lane.b32.xlu0 %v1570_v3, %s1502_s30 }
  0x3e   : > { %467 = vrot.lane.b32.xlu1 %v374_v11, %s1503_s7  ;;  %465 = vrot.lane.b32.xlu0 %v373_v9, %s1503_s7 }
  0x42   : > { %443 = vrot.lane.b32.xlu1 %v1574_v6, %s1502_s30  ;;  %469 = vrot.lane.b32.xlu0 %v375_v8, %s1503_s7 }
  0x46   : > { %481 = vrot.lane.b32.xlu1 %v396_v15, %s1504_s8  ;;  %461 = vrot.lane.b32.xlu0 %v371_v12, %s1503_s7 }
  0x4a   : > { %485 = vrot.lane.b32.xlu1 %v398_v16, %s1504_s8  ;;  %483 = vrot.lane.b32.xlu0 %v397_v14, %s1504_s8 }
  0x4e   : > { %479 = vrot.lane.b32.xlu1 %v395_v18, %s1504_s8  ;;  %487 = vrot.lane.b32.xlu0 %v399_v19, %s1504_s8  ;;  %v1763_v19 = vpack.c.bf16 %v355_v1, %v355_v1 }
  0x52   : > { %501 = vrot.lane.b32.xlu1 %v421_v20, %s1505_s9  ;;  %499 = vrot.lane.b32.xlu0 %v420_v21, %s1505_s9 }
  0x56   : > { %505 = vrot.lane.b32.xlu1 %v423_v22, %s1505_s9  ;;  %503 = vrot.lane.b32.xlu0 %v422_v23, %s1505_s9 }
  0x5a   : > { %515 = vrot.lane.b32.xlu1 %v1574_v6, %s1506_s13  ;;  %497 = vrot.lane.b32.xlu0 %v419_v24, %s1505_s9 }
  0x5e   : > { %519 = vrot.lane.b32.xlu1 %v1572_v4, %s1506_s13  ;;  %517 = vrot.lane.b32.xlu0 %v1584_v13, %s1506_s13 }
  0x62   : > { %523 = vrot.lane.b32.xlu1 %v1570_v3, %s1506_s13  ;;  %521 = vrot.lane.b32.xlu0 %v1578_v10, %s1506_s13 }
  0x66   : > { %648 = vrot.lane.b32.xlu1 %v640_v31, %s1499_s27  ;;  %646 = vrot.lane.b32.xlu0 %v639_v32, %s1499_s27 }
  0x6a   : > { %644 = vrot.lane.b32.xlu1 %v638_v35, %s1499_s27  ;;  %387 = vrot.lane.b32.xlu0 %v376_v36, %s1499_s27 }
  0x6e   : > { %671 = vrot.lane.b32.xlu1 %v663_v37, %s1500_s28  ;;  %669 = vrot.lane.b32.xlu0 %v662_v38, %s1500_s28 }
  0x72   : > { %667 = vrot.lane.b32.xlu1 %v661_v39, %s1500_s28  ;;  %411 = vrot.lane.b32.xlu0 %v400_v40, %s1500_s28 }
  0x76   : > { %694 = vrot.lane.b32.xlu1 %v686_v42, %s1501_s29  ;;  %692 = vrot.lane.b32.xlu0 %v685_v43, %s1501_s29 }
  0x7a   : > { %690 = vrot.lane.b32.xlu1 %v684_v44, %s1501_s29  ;;  %435 = vrot.lane.b32.xlu0 %v424_v45, %s1501_s29 }
  0x7e   : > { %711 = vrot.lane.b32.xlu1 %v1657_v28, %s1502_s30  ;;  %709 = vrot.lane.b32.xlu0 %v1659_v29, %s1502_s30 }
  0x82   : > { %728 = vrot.lane.b32.xlu1 %v640_v31, %s1503_s7  ;;  %726 = vrot.lane.b32.xlu0 %v639_v32, %s1503_s7 }
  0x86   : > { %471 = vrot.lane.b32.xlu1 %v376_v36, %s1503_s7  ;;  %453 = vrot.lane.b32.xlu0 %v1673_v34, %s1502_s30 }
  0x88   : > { %v1710_v46 = vpop.permute.xlu1 %385  ;;  %v382_v47 = vpop.permute.xlu0 %381 }
  0x8a   : > { %724 = vrot.lane.b32.xlu1 %v638_v35, %s1503_s7  ;;  %707 = vrot.lane.b32.xlu0 %v1671_v33, %s1502_s30 }
  0x8c   : > { %v384_v48 = vpop.permute.xlu1 %383  ;;  %v378_v49 = vpop.permute.xlu0 %377 }
  0x8d   : > { %v392_v2 = vsel %vm389_vm0, %v382_v47, %v384_v48  ;;  %v393_v5 = vsel %vm389_vm0, %v384_v48, %v1710_v46 }
  0x8e   : > { %745 = vrot.lane.b32.xlu1 %v663_v37, %s1504_s8  ;;  %743 = vrot.lane.b32.xlu0 %v662_v38, %s1504_s8  ;;  %v545_v17 = vsel %vm533_vm2, %v1578_v10, %v393_v5  ;;  %v542_v18 = vsel %vm533_vm2, %v1572_v4, %v392_v2  ;;  %v664_v37 = vrot.slane %v1738_v0, 4  ;;  %v643_v38 = vrot.slane %v1763_v19, 6 }
  0x90   : > { %v406_v50 = vpop.permute.xlu0 %405  ;;  %v404_v51 = vpop.permute.xlu1 %403 }
  0x91   : > { %v415_v61 = vsel %vm413_vm1, %v404_v51, %v406_v50 }
  0x92   : > { %741 = vrot.lane.b32.xlu1 %v661_v39, %s1504_s8  ;;  %489 = vrot.lane.b32.xlu0 %v400_v40, %s1504_s8 }
  0x94   : > { %v408_v52 = vpop.permute.xlu1 %407  ;;  %v380_v53 = vpop.permute.xlu0 %379 }
  0x95   : > { %v391_v54 = vsel %vm389_vm0, %v380_v53, %v382_v47  ;;  %v416_v9 = vsel %vm413_vm1, %v406_v50, %v408_v52  ;;  %v390_v14 = vsel %vm389_vm0, %v378_v49, %v380_v53  ;;  %v687_v47 = vrot.slane %v1738_v0, 2 }
  0x96   : > { %762 = vrot.lane.b32.xlu1 %v686_v42, %s1505_s9  ;;  %760 = vrot.lane.b32.xlu0 %v685_v43, %s1505_s9  ;;  %v539_v59 = vsel %vm533_vm2, %v1584_v13, %v391_v54  ;;  %v642_v13 = vrot.slane %v1735_v60, 6  ;;  %v558_v23 = vsel %vm552_vm4, %v542_v18, %v416_v9  ;;  %v536_v31 = vsel %vm533_vm2, %v1574_v6, %v390_v14 }
  0x97   : > { %v556_v8 = vsel %vm552_vm4, %v539_v59, %v415_v61  ;;  %v666_v6 = vrot.slane %v1763_v19, 4  ;;  %v665_v42 = vrot.slane %v1735_v60, 4  ;;  %v689_v50 = vrot.slane %v1763_v19, 2 }
  0x98   : > { %v402_v55 = vpop.permute.xlu1 %401  ;;  %v1722_v56 = vpop.permute.xlu0 %409 }
  0x99   : > { %v417_v11 = vsel %vm413_vm1, %v408_v52, %v1722_v56  ;;  %v414_v24 = vsel %vm413_vm1, %v402_v55, %v404_v51 }
  0x9a   : > { %758 = vrot.lane.b32.xlu1 %v684_v44, %s1505_s9  ;;  %507 = vrot.lane.b32.xlu0 %v424_v45, %s1505_s9  ;;  %v560_v22 = vsel %vm552_vm4, %v545_v17, %v417_v11  ;;  %v554_v35 = vsel %vm552_vm4, %v536_v31, %v414_v24  ;;  %v688_v45 = vrot.slane %v1735_v60, 2 }
  0x9c   : > { %v430_v62 = vpop.permute.xlu1 %429  ;;  %v428_v63 = vpop.permute.xlu0 %427 }
  0x9d   : > { %v439_v7 = vsel %vm437_vm3, %v428_v63, %v430_v62 }
  0x9e   : > { %775 = vrot.lane.b32.xlu1 %v1671_v33, %s1506_s13  ;;  %525 = vrot.lane.b32.xlu0 %v1673_v34, %s1506_s13  ;;  %v570_v12 = vsel %vm565_vm5, %v556_v8, %v439_v7 }
  0x9f   : > { %921 = vmatprep.subr.bf16.mxu0 %v570_v12 }
  0xa0   : > { %v1757_v15 = vpop.permute.xlu1 %433  ;;  %v432_v16 = vpop.permute.xlu0 %431 }
  0xa1   : > { %v440_v20 = vsel %vm437_vm3, %v430_v62, %v432_v16  ;;  %v441_v21 = vsel %vm437_vm3, %v432_v16, %v1757_v15 }
  0xa2   : > { %779 = vrot.lane.b32.xlu1 %v1657_v28, %s1506_s13  ;;  %777 = vrot.lane.b32.xlu0 %v1659_v29, %s1506_s13  ;;  %v576_v4 = vsel %vm565_vm5, %v560_v22, %v441_v21  ;;  %v573_v10 = vsel %vm565_vm5, %v558_v23, %v440_v20 }
  0xa3   : > { %962 = vmatprep.subr.bf16.mxu1 %v576_v4 }
  0xa4   : > { %v1778_v27 = vpop.permute.xlu1 %445  ;;  %963 = vmatpush1.bf16.msra.mxu1 %v573_v10  ;;  %v426_v30 = vpop.permute.xlu0 %425 }
  0xa5   : > { %v438_v32 = vsel %vm437_vm3, %v426_v30, %v428_v63 }
  0xa6   : > { %652 = vrot.lane.b32.xlu1 %v642_v13, %s1499_s27  ;;  %650 = vrot.lane.b32.xlu0 %v641_v26, %s1499_s27  ;;  %v567_v36 = vsel %vm565_vm5, %v554_v35, %v438_v32 }
  0xa7   : > { %922 = vmatpush1.bf16.msra.mxu0 %v567_v36 }
  0xa8   : > { %v450_v39 = vpop.permute.xlu1 %449  ;;  %v448_v40 = vpop.permute.xlu0 %447 }
  0xa9   : > { %v457_v1 = vsel %vm455_vm8, %v1778_v27, %v448_v40  ;;  %v458_v17 = vsel %vm455_vm8, %v448_v40, %v450_v39 }
  0xaa   : > { %673 = vrot.lane.b32.xlu1 %v664_v37, %s1500_s28  ;;  %654 = vrot.lane.b32.xlu0 %v643_v38, %s1499_s27 }
  0xac   : > { %v464_v43 = vpop.permute.xlu1 %463  ;;  %v1793_v44 = vpop.permute.xlu0 %451 }
  0xad   : > { %v459_v18 = vsel %vm455_vm8, %v450_v39, %v1793_v44 }
  0xae   : > { %677 = vrot.lane.b32.xlu1 %v666_v6, %s1500_s28  ;;  %675 = vrot.lane.b32.xlu0 %v665_v42, %s1500_s28 }
  0xb0   : > { %v468_v48 = vpop.permute.xlu1 %467  ;;  %v466_v49 = vpop.permute.xlu0 %465 }
  0xb1   : > { %v475_v62 = vsel %vm473_vm6, %v464_v43, %v466_v49  ;;  %v476_v8 = vsel %vm473_vm6, %v466_v49, %v468_v48  ;;  %v889_v49 = vld [vmem:[%s316_s16] sm:$0x1] }
  0xb2   : > { %698 = vrot.lane.b32.xlu1 %v688_v45, %s1501_s29  ;;  %696 = vrot.lane.b32.xlu0 %v687_v47, %s1501_s29  ;;  %v589_v2 = vsel %vm533_vm2, %v457_v1, %v475_v62  ;;  %v592_v20 = vsel %vm533_vm2, %v458_v17, %v476_v8 }
  0xb4   : > { %v444_v51 = vpop.permute.xlu1 %443  ;;  %v1802_v52 = vpop.permute.xlu0 %469 }
  0xb5   : > { %v477_v9 = vsel %vm473_vm6, %v468_v48, %v1802_v52  ;;  %v456_v36 = vsel %vm455_vm8, %v444_v51, %v1778_v27 }
  0xb6   : > { %713 = vrot.lane.b32.xlu1 %v1738_v0, %s1502_s30  ;;  %700 = vrot.lane.b32.xlu0 %v689_v50, %s1501_s29  ;;  %v595_v21 = vsel %vm533_vm2, %v459_v18, %v477_v9  ;;  %s319_s29 = scalar_lea.vmem %s2121_s4, %s2125_s22  ;;  %s1508_s22 = smov 19  }
  0xb8   : > { %v482_v53 = vpop.permute.xlu1 %481  ;;  %v462_v54 = vpop.permute.xlu0 %461 }
  0xb9   : > { %v474_v22 = vsel %vm473_vm6, %v462_v54, %v464_v43 }
  0xba   : > { %730 = vrot.lane.b32.xlu1 %v641_v26, %s1503_s7  ;;  %715 = vrot.lane.b32.xlu0 %v1735_v60, %s1502_s30 }
  0xbc   : > { %v486_v55 = vpop.permute.xlu1 %485  ;;  %v484_v58 = vpop.permute.xlu0 %483 }
  0xbd   : > { %v493_v63 = vsel %vm491_vm7, %v482_v53, %v484_v58 }
  0xbe   : > { %717 = vrot.lane.b32.xlu1 %v1763_v19, %s1502_s30  ;;  %732 = vrot.lane.b32.xlu0 %v642_v13, %s1503_s7  ;;  %v605_v12 = vsel %vm552_vm4, %v589_v2, %v493_v63  ;;  %v494_v13 = vsel %vm491_vm7, %v484_v58, %v486_v55  ;;  %v1045_v58 = vld [vmem:[%s322_s25] sm:$0x1] }
  0xbf   : > { %v607_v30 = vsel %vm552_vm4, %v592_v20, %v494_v13 }
  0xc0   : > { %v480_v59 = vpop.permute.xlu1 %479  ;;  %v1813_v61 = vpop.permute.xlu0 %487 }
  0xc1   : > { %v495_v14 = vsel %vm491_vm7, %v486_v55, %v1813_v61  ;;  %v492_v31 = vsel %vm491_vm7, %v480_v59, %v482_v53  ;;  %v1882_v53 = vld [vmem:[%s313_s19] sm:$0x1] }
  0xc2   : > { %747 = vrot.lane.b32.xlu1 %v664_v37, %s1504_s8  ;;  %734 = vrot.lane.b32.xlu0 %v643_v38, %s1503_s7  ;;  %v609_v26 = vsel %vm552_vm4, %v595_v21, %v495_v14  ;;  %v586_v37 = vsel %vm533_vm2, %v456_v36, %v474_v22 }
  0xc4   : > { %v502_v5 = vpop.permute.xlu1 %501  ;;  %v500_v7 = vpop.permute.xlu0 %499 }
  0xc5   : > { %v511_v11 = vsel %vm509_vm9, %v500_v7, %v502_v5 }
  0xc6   : > { %751 = vrot.lane.b32.xlu1 %v666_v6, %s1504_s8  ;;  %749 = vrot.lane.b32.xlu0 %v665_v42, %s1504_s8  ;;  %v618_v16 = vsel %vm565_vm5, %v605_v12, %v511_v11  ;;  %v603_v6 = vsel %vm552_vm4, %v586_v37, %v492_v31 }
  0xc7   : > { %923 = vmatprep.subr.bf16.mxu0 %v618_v16 }
  0xc8   : > { %v1839_v23 = vpop.permute.xlu1 %505  ;;  %v504_v24 = vpop.permute.xlu0 %503 }
  0xc9   : > { %v512_v4 = vsel %vm509_vm9, %v502_v5, %v504_v24  ;;  %v513_v10 = vsel %vm509_vm9, %v504_v24, %v1839_v23 }
  0xca   : > { %766 = vrot.lane.b32.xlu1 %v688_v45, %s1505_s9  ;;  %764 = vrot.lane.b32.xlu0 %v687_v47, %s1505_s9  ;;  %v624_v32 = vsel %vm565_vm5, %v609_v26, %v513_v10  ;;  %v621_v35 = vsel %vm565_vm5, %v607_v30, %v512_v4 }
  0xcb   : > { %964 = vmatprep.subr.bf16.mxu1 %v624_v32 }
  0xcc   : > { %v516_v38 = vpop.permute.xlu1 %515  ;;  %965 = vmatpush1.bf16.msra.mxu1 %v621_v35  ;;  %v498_v39 = vpop.permute.xlu0 %497 }
  0xcd   : > { %v510_v40 = vsel %vm509_vm9, %v498_v39, %v500_v7 }
  0xce   : > { %781 = vrot.lane.b32.xlu1 %v1738_v0, %s1506_s13  ;;  %768 = vrot.lane.b32.xlu0 %v689_v50, %s1505_s9  ;;  %v615_v42 = vsel %vm565_vm5, %v603_v6, %v510_v40 }
  0xcf   : > { %924 = vmatpush1.bf16.msra.mxu0 %v615_v42 }
  0xd0   : > { %v520_v27 = vpop.permute.xlu1 %519  ;;  %v518_v43 = vpop.permute.xlu0 %517 }
  0xd1   : > { %v528_v45 = vsel %vm527_vm10, %v516_v38, %v518_v43  ;;  %v529_v47 = vsel %vm527_vm10, %v518_v43, %v520_v27 }
  0xd2   : > { %785 = vrot.lane.b32.xlu1 %v1763_v19, %s1506_s13  ;;  %783 = vrot.lane.b32.xlu0 %v1735_v60, %s1506_s13  ;;  %v904_v48 = vsel %vm533_vm2, %v528_v45, 0 }
  0xd3   : > { %1446 = vmatprep.subr.msk.bf16.mxu0 %vm533_vm2, %v529_v47 }
  0xd4   : > { %926 = vmatpush1.bf16.msra.mxu0 %v904_v48  ;;  %v1880_v50 = vpop.permute.xlu1 %523  ;;  %v522_v51 = vpop.permute.xlu0 %521 }
  0xd5   : > { %v530_v54 = vsel %vm527_vm10, %v520_v27, %v522_v51  ;;  %v531_v55 = vsel %vm527_vm10, %v522_v51, %v1880_v50 }
  0xd6   : > { %1448 = vmatprep.subr.msk.bf16.mxu1 %vm533_vm2, %v531_v55  ;;  %v910_v59 = vsel %vm533_vm2, %v530_v54, 0  ;;  %892 = vperm.xlu0 %1479, %v889_v49  }
  0xd7   : > { %967 = vmatpush1.bf16.msra.mxu1 %v910_v59  ;;  %1447 = vmatmul.mubr.msk.bf16.vlgmr.msra.gmra.mrb[0].mxu0 %vm899_vm11, %v1882_v53 }
  0xd8   : > { %v1891_v62 = vpop.permute.xlu1 %648  ;;  %v647_v63 = vpop.permute.xlu0 %646  ;;  %1035 = vmatprep.mubr.bf16.mxu0 %v1507_v41  ;;  %1048 = vperm.xlu1 %1480, %v1045_v58  }
  0xd9   : > { %v657_v11 = vsel %vm389_vm0, %v647_v63, %v1891_v62 }
  0xda   : > { %1449 = vmatmul.mubr.msk.bf16.vlgmr.msra.gmra.mrb[0].mxu1 %vm899_vm11, %v1882_v53  ;;  %v797_v13 = vsel %vm533_vm2, %v1659_v29, %v657_v11 }
  0xdb   : > { %1108 = vmatprep.mubr.bf16.mxu1 %v1507_v41 }
  0xdc   : > { %v645_v1 = vpop.permute.xlu1 %644  ;;  %v388_v2 = vpop.permute.xlu0 %387 }
  0xdd   : > { %v656_v14 = vsel %vm389_vm0, %v645_v1, %v647_v63  ;;  %v394_v18 = vsel %vm389_vm0, %v1710_v46, %v388_v2  ;;  %v551_v10 = vsel %vm533_vm2, %v1673_v34, %v388_v2 }
  0xde   : > { %v794_v4 = vsel %vm533_vm2, %v1671_v33, %v656_v14  ;;  %v548_v46 = vsel %vm533_vm2, %v1570_v3, %v394_v18 }
  0xe0   : > { %v1897_v5 = vpop.permute.xlu1 %671  ;;  %v670_v7 = vpop.permute.xlu0 %669 }
  0xe1   : > { %v680_v12 = vsel %vm413_vm1, %v670_v7, %v1897_v5 }
  0xe2   : > { %v813_v22 = vsel %vm552_vm4, %v797_v13, %v680_v12 }
  0xe4   : > { %v668_v8 = vpop.permute.xlu1 %667  ;;  %v412_v9 = vpop.permute.xlu0 %411 }
  0xe5   : > { %v679_v20 = vsel %vm413_vm1, %v668_v8, %v670_v7  ;;  %v418_v24 = vsel %vm413_vm1, %v1722_v56, %v412_v9  ;;  %v564_v30 = vsel %vm552_vm4, %v551_v10, %v412_v9 }
  0xe6   : > { %v811_v26 = vsel %vm552_vm4, %v794_v4, %v679_v20  ;;  %v562_v56 = vsel %vm552_vm4, %v548_v46, %v418_v24 }
  0xe8   : > { %v1906_v16 = vpop.permute.xlu1 %694  ;;  %v693_v17 = vpop.permute.xlu0 %692 }
  0xe9   : > { %v703_v21 = vsel %vm437_vm3, %v693_v17, %v1906_v16 }
  0xea   : > { %v826_v29 = vsel %vm565_vm5, %v813_v22, %v703_v21 }
  0xeb   : > { %1076 = vmatprep.subr.bf16.mxu1 %v826_v29 }
  0xec   : > { %v691_v31 = vpop.permute.xlu1 %690  ;;  %v436_v32 = vpop.permute.xlu0 %435 }
  0xed   : > { %v702_v35 = vsel %vm437_vm3, %v691_v31, %v693_v17  ;;  %v442_v33 = vsel %vm437_vm3, %v1757_v15, %v436_v32  ;;  %v582_v36 = vsel %vm565_vm5, %v564_v30, %v436_v32 }
  0xee   : > { %1003 = vmatprep.subr.bf16.mxu0 %v582_v36  ;;  %v579_v34 = vsel %vm565_vm5, %v562_v56, %v442_v33  ;;  %v823_v3 = vsel %vm565_vm5, %v811_v26, %v702_v35 }
  0xef   : > { %1004 = vmatpush1.bf16.msra.mxu0 %v579_v34  ;;  %1077 = vmatpush1.bf16.msra.mxu1 %v823_v3 }
  0xf0   : > { %v1932_v37 = vpop.permute.xlu1 %711  ;;  %v710_v38 = vpop.permute.xlu0 %709 }
  0xf1   : > { %v720_v54 = vsel %vm455_vm8, %v710_v38, %v1932_v37 }
  0xf4   : > { %v1934_v39 = vpop.permute.xlu1 %728  ;;  %v727_v40 = vpop.permute.xlu0 %726 }
  0xf5   : > { %v737_v49 = vsel %vm473_vm6, %v727_v40, %v1934_v39 }
  0xf6   : > { %v845_v55 = vsel %vm533_vm2, %v720_v54, %v737_v49 }
  0xf8   : > { %v472_v6 = vpop.permute.xlu1 %471  ;;  %v454_v42 = vpop.permute.xlu0 %453 }
  0xf9   : > { %v478_v58 = vsel %vm473_vm6, %v1802_v52, %v472_v6  ;;  %v460_v7 = vsel %vm455_vm8, %v1793_v44, %v454_v42  ;;  %v601_v13 = vsel %vm533_vm2, %v454_v42, %v472_v6 }
  0xfa   : > { %v598_v17 = vsel %vm533_vm2, %v460_v7, %v478_v58 }
  0xfc   : > { %v725_v27 = vpop.permute.xlu1 %724  ;;  %v708_v43 = vpop.permute.xlu0 %707 }
  0xfd   : > { %v736_v59 = vsel %vm473_vm6, %v725_v27, %v727_v40  ;;  %v719_v63 = vsel %vm455_vm8, %v708_v43, %v710_v38 }
  0xfe   : > { %v842_v14 = vsel %vm533_vm2, %v719_v63, %v736_v59 }
 0x100   : > { %v1936_v15 = vpop.permute.xlu1 %745  ;;  %v744_v45 = vpop.permute.xlu0 %743 }
 0x101   : > { %v754_v51 = vsel %vm491_vm7, %v744_v45, %v1936_v15 }
 0x102   : > { %v861_v11 = vsel %vm552_vm4, %v845_v55, %v754_v51 }
 0x104   : > { %v742_v47 = vpop.permute.xlu1 %741  ;;  %v490_v48 = vpop.permute.xlu0 %489 }
 0x105   : > { %v753_v8 = vsel %vm491_vm7, %v742_v47, %v744_v45  ;;  %v496_v52 = vsel %vm491_vm7, %v1813_v61, %v490_v48  ;;  %v613_v18 = vsel %vm552_vm4, %v601_v13, %v490_v48 }
 0x106   : > { %v859_v44 = vsel %vm552_vm4, %v842_v14, %v753_v8  ;;  %v611_v22 = vsel %vm552_vm4, %v598_v17, %v496_v52 }
 0x108   : > { %v1949_v1 = vpop.permute.xlu1 %762  ;;  %v761_v2 = vpop.permute.xlu0 %760 }
 0x109   : > { %v771_v9 = vsel %vm509_vm9, %v761_v2, %v1949_v1 }
 0x10a   : > { %v874_v12 = vsel %vm565_vm5, %v861_v11, %v771_v9 }
 0x10b   : > { %1078 = vmatprep.subr.bf16.mxu1 %v874_v12 }
 0x10c   : > { %v759_v20 = vpop.permute.xlu1 %758  ;;  %v508_v21 = vpop.permute.xlu0 %507 }
 0x10d   : > { %v770_v24 = vsel %vm509_vm9, %v759_v20, %v761_v2  ;;  %v514_v61 = vsel %vm509_vm9, %v1839_v23, %v508_v21  ;;  %v630_v29 = vsel %vm565_vm5, %v613_v18, %v508_v21 }
 0x10e   : > { %1005 = vmatprep.subr.bf16.mxu0 %v630_v29  ;;  %v627_v4 = vsel %vm565_vm5, %v611_v22, %v514_v61  ;;  %v871_v10 = vsel %vm565_vm5, %v859_v44, %v770_v24 }
 0x10f   : > { %1006 = vmatpush1.bf16.msra.mxu0 %v627_v4  ;;  %1079 = vmatpush1.bf16.msra.mxu1 %v871_v10 }
 0x110   : > { %v776_v46 = vpop.permute.xlu1 %775  ;;  %v526_v26 = vpop.permute.xlu0 %525 }
 0x111   : > { %v532_v30 = vsel %vm527_vm10, %v1880_v50, %v526_v26  ;;  %1450 = vmatprep.subr.msk.bf16.mxu0 %vm533_vm2, %v526_v26  ;;  %v1989_v50 = vld [vmem:[%s319_s29] sm:$0x1] }
 0x112   : > { %v916_v31 = vsel %vm533_vm2, %v532_v30, 0 }
 0x113   : > { %1008 = vmatpush1.bf16.msra.mxu0 %v916_v31 }
 0x114   : > { %v1976_v23 = vpop.permute.xlu1 %779  ;;  %v778_v32 = vpop.permute.xlu0 %777 }
 0x115   : > { %v787_v56 = vsel %vm527_vm10, %v776_v46, %v778_v32  ;;  %v788_v35 = vsel %vm527_vm10, %v778_v32, %v1976_v23 }
 0x116   : > { %v1059_v33 = vsel %vm533_vm2, %v787_v56, 0  ;;  %1452 = vmatprep.subr.msk.bf16.mxu1 %vm533_vm2, %v788_v35  ;;  %1451 = vmatmul.mubr.msk.bf16.vlgmr.msra.gmra.mrb[4].mxu0 %vm899_vm11, %v1882_v53 }
 0x117   : > { %1081 = vmatpush1.bf16.msra.mxu1 %v1059_v33  ;;  %1149 = vmatprep.mubr.bf16.mxu0 %v1507_v41 }
 0x118   : > { %v653_v36 = vpop.permute.xlu1 %652  ;;  %v651_v34 = vpop.permute.xlu0 %650 }
 0x119   : > { %v658_v3 = vsel %vm389_vm0, %v1891_v62, %v651_v34  ;;  %v659_v45 = vsel %vm389_vm0, %v651_v34, %v653_v36 }
 0x11a   : > { %1453 = vmatmul.mubr.msk.bf16.vlgmr.msra.gmra.mrb[4].mxu1 %vm899_vm11, %v1989_v50  ;;  %v800_v53 = vsel %vm533_vm2, %v1657_v28, %v658_v3  ;;  %v803_v47 = vsel %vm533_vm2, %v1738_v0, %v659_v45 }
 0x11b   : > { %1190 = vmatprep.mubr.bf16.mxu1 %v1507_v41 }
 0x11c   : > { %v674_v38 = vpop.permute.xlu1 %673  ;;  %v655_v40 = vpop.permute.xlu0 %654 }
 0x11d   : > { %v681_v6 = vsel %vm413_vm1, %v1897_v5, %v674_v38  ;;  %v660_v49 = vsel %vm389_vm0, %v653_v36, %v655_v40  ;;  %v809_v0 = vsel %vm533_vm2, %v1763_v19, %v655_v40 }
 0x11e   : > { %v815_v42 = vsel %vm552_vm4, %v800_v53, %v681_v6  ;;  %v806_v59 = vsel %vm533_vm2, %v1735_v60, %v660_v49 }
 0x120   : > { %v678_v27 = vpop.permute.xlu1 %677  ;;  %v676_v43 = vpop.permute.xlu0 %675 }
 0x121   : > { %v682_v62 = vsel %vm413_vm1, %v674_v38, %v676_v43  ;;  %v683_v54 = vsel %vm413_vm1, %v676_v43, %v678_v27  ;;  %v821_v63 = vsel %vm552_vm4, %v809_v0, %v678_v27 }
 0x122   : > { %v817_v51 = vsel %vm552_vm4, %v803_v47, %v682_v62  ;;  %v819_v7 = vsel %vm552_vm4, %v806_v59, %v683_v54 }
 0x124   : > { %v699_v41 = vpop.permute.xlu1 %698  ;;  %v697_v48 = vpop.permute.xlu0 %696 }
 0x125   : > { %v704_v28 = vsel %vm437_vm3, %v1906_v16, %v697_v48  ;;  %v705_v5 = vsel %vm437_vm3, %v697_v48, %v699_v41 }
 0x126   : > { %v832_v55 = vsel %vm565_vm5, %v817_v51, %v705_v5  ;;  %v829_v58 = vsel %vm565_vm5, %v815_v42, %v704_v28 }
 0x127   : > { %1117 = vmatprep.subr.bf16.mxu0 %v832_v55 }
 0x128   : > { %v714_v16 = vpop.permute.xlu1 %713  ;;  %1118 = vmatpush1.bf16.msra.mxu0 %v829_v58  ;;  %v701_v2 = vpop.permute.xlu0 %700 }
 0x129   : > { %v706_v8 = vsel %vm437_vm3, %v699_v41, %v701_v2  ;;  %v838_v9 = vsel %vm565_vm5, %v821_v63, %v701_v2  ;;  %v721_v60 = vsel %vm455_vm8, %v1932_v37, %v714_v16 }
 0x12a   : > { %1158 = vmatprep.subr.bf16.mxu1 %v838_v9  ;;  %v835_v11 = vsel %vm565_vm5, %v819_v7, %v706_v8 }
 0x12b   : > { %1159 = vmatpush1.bf16.msra.mxu1 %v835_v11 }
 0x12c   : > { %v731_v19 = vpop.permute.xlu1 %730  ;;  %v716_v52 = vpop.permute.xlu0 %715 }
 0x12d   : > { %v738_v12 = vsel %vm473_vm6, %v1934_v39, %v731_v19  ;;  %v722_v37 = vsel %vm455_vm8, %v714_v16, %v716_v52 }
 0x12e   : > { %v848_v13 = vsel %vm533_vm2, %v721_v60, %v738_v12 }
 0x130   : > { %v718_v14 = vpop.permute.xlu1 %717  ;;  %v733_v17 = vpop.permute.xlu0 %732 }
 0x131   : > { %v739_v22 = vsel %vm473_vm6, %v731_v19, %v733_v17  ;;  %v723_v35 = vsel %vm455_vm8, %v716_v52, %v718_v14 }
 0x132   : > { %v851_v29 = vsel %vm533_vm2, %v722_v37, %v739_v22 }
 0x134   : > { %v748_v44 = vpop.permute.xlu1 %747  ;;  %v735_v18 = vpop.permute.xlu0 %734 }
 0x135   : > { %v755_v24 = vsel %vm491_vm7, %v1936_v15, %v748_v44  ;;  %v740_v39 = vsel %vm473_vm6, %v733_v17, %v735_v18  ;;  %v857_v33 = vsel %vm533_vm2, %v718_v14, %v735_v18 }
 0x136   : > { %v863_v46 = vsel %vm552_vm4, %v848_v13, %v755_v24  ;;  %v854_v36 = vsel %vm533_vm2, %v723_v35, %v740_v39 }
 0x138   : > { %v752_v20 = vpop.permute.xlu1 %751  ;;  %v750_v21 = vpop.permute.xlu0 %749 }
 0x139   : > { %v756_v61 = vsel %vm491_vm7, %v748_v44, %v750_v21  ;;  %v757_v15 = vsel %vm491_vm7, %v750_v21, %v752_v20  ;;  %v869_v34 = vsel %vm552_vm4, %v857_v33, %v752_v20 }
 0x13a   : > { %v865_v31 = vsel %vm552_vm4, %v851_v29, %v756_v61  ;;  %v867_v38 = vsel %vm552_vm4, %v854_v36, %v757_v15 }
 0x13c   : > { %v767_v4 = vpop.permute.xlu1 %766  ;;  %v765_v10 = vpop.permute.xlu0 %764 }
 0x13d   : > { %v772_v26 = vsel %vm509_vm9, %v1949_v1, %v765_v10  ;;  %v773_v30 = vsel %vm509_vm9, %v765_v10, %v767_v4 }
 0x13e   : > { %v880_v32 = vsel %vm565_vm5, %v865_v31, %v773_v30  ;;  %v877_v56 = vsel %vm565_vm5, %v863_v46, %v772_v26 }
 0x13f   : > { %1119 = vmatprep.subr.bf16.mxu0 %v880_v32 }
 0x140   : > { %v782_v1 = vpop.permute.xlu1 %781  ;;  %1120 = vmatpush1.bf16.msra.mxu0 %v877_v56  ;;  %v769_v3 = vpop.permute.xlu0 %768 }
 0x141   : > { %v774_v40 = vsel %vm509_vm9, %v767_v4, %v769_v3  ;;  %v886_v53 = vsel %vm565_vm5, %v869_v34, %v769_v3  ;;  %v789_v42 = vsel %vm527_vm10, %v1976_v23, %v782_v1  ;;  %v895_v23 = vlaneseq }
 0x142   : > { %1160 = vmatprep.subr.bf16.mxu1 %v886_v53  ;;  %v883_v6 = vsel %vm565_vm5, %v867_v38, %v774_v40  ;;  %v1065_v47 = vsel %vm533_vm2, %v789_v42, 0 }
 0x143   : > { %1161 = vmatpush1.bf16.msra.mxu1 %v883_v6  ;;  %v896_v48 = vshrl.u32 %v895_v23, 7 }
 0x144   : > { %v786_v27 = vpop.permute.xlu1 %785  ;;  %v784_v43 = vpop.permute.xlu0 %783 }
 0x145   : > { %v790_v45 = vsel %vm527_vm10, %v782_v1, %v784_v43  ;;  %v791_v62 = vsel %vm527_vm10, %v784_v43, %v786_v27  ;;  %1456 = vmatprep.subr.msk.bf16.mxu1 %vm533_vm2, %v786_v27  ;;  %v2063_v49 = vsub.s32 0, %v896_v48 }
 0x146   : > { %v1071_v41 = vsel %vm533_vm2, %v791_v62, 0  ;;  %1454 = vmatprep.subr.msk.bf16.mxu0 %vm533_vm2, %v790_v45 }
 0x147   : > { %1122 = vmatpush1.bf16.msra.mxu0 %v1065_v47  ;;  %1163 = vmatpush1.bf16.msra.mxu1 %v1071_v41 }
 0x14a   : > { %1455 = vmatmul.mubr.msk.bf16.vlgmr.msra.gmra.mrb[8].mxu0 %vm899_vm11, %v1989_v50  ;;  %1457 = vmatmul.mubr.msk.bf16.vlgmr.msra.gmra.mrb[8].mxu1 %vm899_vm11, %v1989_v50 }
 0x155   : > { %v893_v28 = vpop.permute.xlu0 %892 }
 0x156   : > { %v898_v5 = vrot.slane %v893_v28, %v2063_v49 }
 0x157   : > { %v1049_v13 = vpop.permute.xlu1 %1048 }
 0x158   : > { %v1054_v17 = vrot.slane %v1049_v13, %v2063_v49 }
 0x1aa   : > { %v955_v51 = vpop.f32.mrb[0].mxu0 }
 0x1ab   : > { %v956_v54 = vadd.f32 %v955_v51, %v898_v5  ;;  %v957_v55 = vpop.f32.mrb[1].mxu0 }
 0x1ac   : > { %v958_v58 = vadd.f32 %v957_v55, %v898_v5  ;;  %v959_v0 = vpop.f32.mrb[2].mxu0 }
 0x1ad   : > { %v996_v59 = vpop.f32.mrb[0].mxu1  ;;  %v1202_v63 = vrot.slane %v956_v54, %v2063_v49  ;;  %v960_v16 = vpop.f32.mrb[3].mxu0  ;;  %v1487_v54 = vld [vmem:[%s1561_s26] sm:$0xff] }
 0x1ae   : > { %v997_v2 = vadd.f32 %v996_v59, %v898_v5  ;;  %v998_v7 = vpop.f32.mrb[1].mxu1  ;;  %v1206_v50 = vrot.slane %v958_v58, %v2063_v49 }
 0x1af   : > { %v999_v8 = vadd.f32 %v998_v7, %v898_v5  ;;  %v1000_v9 = vpop.f32.mrb[2].mxu1 }
 0x1b0   : > { %v1210_v11 = vrot.slane %v997_v2, %v2063_v49  ;;  %v1229_v19 = vcombine.low %v1202_v63, %v1206_v50  ;;  %v1001_v52 = vpop.f32.mrb[3].mxu1 }
 0x1b1   : > { %v1214_v60 = vrot.slane %v999_v8, %v2063_v49 }
 0x1b2   : > { %1232 = vrot.lane.b32.xlu1 %v1229_v19, %s1508_s22 }
 0x1b3   : > { %v1230_v12 = vcombine.low %v1210_v11, %v1214_v60 }
 0x1b5   : > { %1234 = vrot.lane.b32.xlu0 %v1230_v12, %s1508_s22 }
 0x1e9   : > { %v1037_v14 = vpop.f32.mrb[4].mxu0 }
 0x1ea   : > { %v1038_v44 = vadd.f32 %v1037_v14, %v898_v5  ;;  %v1039_v18 = vpop.f32.mrb[5].mxu0  ;;  %v1488_v14 = vld [vmem:[%s1561_s26 + $0x10] sm:$0xff] }
 0x1eb   : > { %v1040_v20 = vadd.f32 %v1039_v18, %v898_v5  ;;  %v1041_v21 = vpop.f32.mrb[6].mxu0 }
 0x1ec   : > { %v1218_v22 = vrot.slane %v1038_v44, %v2063_v49  ;;  %v1042_v24 = vpop.f32.mrb[7].mxu0  ;;  %v1489_v44 = vld [vmem:[%s1561_s26 + $0x8] sm:$0xff]  ;;  %s327_s26 = scalar_lea.vmem %s2123_s6, %s1555_s23 }
 0x1ed   : > { %v1110_v61 = vpop.f32.mrb[4].mxu1  ;;  %v1222_v37 = vrot.slane %v1040_v20, %v2063_v49  ;;  %v1490_v20 = vld [vmem:[%s1636_s12 + $0x8] sm:$0xff] }
 0x1ee   : > { %v1111_v29 = vadd.f32 %v1110_v61, %v1054_v17  ;;  %v1112_v39 = vpop.f32.mrb[5].mxu1 }
 0x1ef   : > { %v1113_v4 = vadd.f32 %v1112_v39, %v1054_v17  ;;  %v1231_v10 = vcombine.low %v1218_v22, %v1222_v37  ;;  %v1114_v46 = vpop.f32.mrb[6].mxu1 }
 0x1f0   : > { %v1256_v26 = vrot.slane %v1111_v29, %v2063_v49  ;;  %v1115_v30 = vpop.f32.mrb[7].mxu1 }
 0x1f1   : > { %v1260_v31 = vrot.slane %v1113_v4, %v2063_v49  ;;  %1236 = vrot.lane.b32.xlu1 %v1231_v10, %s1508_s22 }
 0x1f3   : > { %v1283_v15 = vcombine.low %v1256_v26, %v1260_v31 }
 0x1f5   : > { %1286 = vrot.lane.b32.xlu0 %v1283_v15, %s1508_s22 }
 0x21d   : > { %v1151_v32 = vpop.f32.mrb[8].mxu0  ;;  %v1192_v56 = vpop.f32.mrb[8].mxu1 }
 0x21e   : > { %v1152_v35 = vadd.f32 %v1151_v32, %v1054_v17  ;;  %v1193_v33 = vadd.f32 %v1192_v56, %v1054_v17  ;;  %v1153_v36 = vpop.f32.mrb[9].mxu0  ;;  %v1194_v34 = vpop.f32.mrb[9].mxu1 }
 0x21f   : > { %v1154_v1 = vadd.f32 %v1153_v36, %v1054_v17  ;;  %v1195_v3 = vadd.f32 %v1194_v34, %v1054_v17  ;;  %v1155_v38 = vpop.f32.mrb[10].mxu0  ;;  %v1196_v40 = vpop.f32.mrb[10].mxu1 }
 0x220   : > { %v1264_v53 = vrot.slane %v1152_v35, %v2063_v49  ;;  %v1272_v6 = vrot.slane %v1193_v33, %v2063_v49  ;;  %v1156_v42 = vpop.f32.mrb[11].mxu0  ;;  %v1197_v27 = vpop.f32.mrb[11].mxu1 }
 0x221   : > { %v1268_v43 = vrot.slane %v1154_v1, %v2063_v49  ;;  %v1276_v45 = vrot.slane %v1195_v3, %v2063_v49 }
 0x223   : > { %v1284_v62 = vcombine.low %v1264_v53, %v1268_v43  ;;  %v1285_v47 = vcombine.low %v1272_v6, %v1276_v45 }
 0x224   : > { %v1233_v41 = vpop.permute.xlu1 %1232 }
 0x225   : > { %1290 = vrot.lane.b32.xlu0 %v1285_v47, %s1508_s22  ;;  %1288 = vrot.lane.b32.xlu1 %v1284_v62, %s1508_s22  ;;  %v1238_v48 = vrot.slane %v1233_v41, 4 }
 0x227   : > { %v1235_v23 = vpop.permute.xlu0 %1234  ;;  %v1242_v28 = vsel %vm1241_vm12, %v1238_v48, %v1233_v41 }
 0x228   : > { %v1250_v55 = vmul.f32 %v1487_v54, %v1242_v28  ;;  %v1239_v63 = vrot.slane %v1235_v23, 4 }
 0x22a   : > { %v1243_v2 = vsel %vm552_vm4, %v1238_v48, %v1239_v63 }
 0x263   : > { %v1237_v59 = vpop.permute.xlu1 %1236 }
 0x264   : > { %v1240_v16 = vrot.slane %v1237_v59, 4 }
 0x266   : > { %v1245_v7 = vsel %vm552_vm4, %v1239_v63, %v1240_v16 }
 0x267   : > { %v1287_v5 = vpop.permute.xlu0 %1286  ;;  %v1246_v19 = vsel %vm1241_vm12, %v1245_v7, %v1237_v59 }
 0x268   : > { %v1292_v51 = vrot.slane %v1287_v5, 4  ;;  %v1252_v17 = vmul.f32 %v1488_v14, %v1246_v19 }
 0x26a   : > { %v1295_v58 = vsel %vm1241_vm12, %v1292_v51, %v1287_v5 }
 0x26b   : > { %v1303_v49 = vmul.f32 %v1295_v58, %v1641_v25  ;;  %v1244_v25 = vsel %vm1241_vm12, %v1243_v2, %v1235_v23 }
 0x26c   : > { %v1251_v18 = vmul.f32 %v1489_v44, %v1244_v25 }
 0x26d   : > { %v1306_v0 = vadd.f32 %v1303_v49, %v1250_v55 }
 0x26f   : > { %1312 = vrot.lane.b32.xlu1 %v1306_v0, %s1502_s30 }
 0x297   : > { %v1291_v50 = vpop.permute.xlu0 %1290  ;;  %v1289_v8 = vpop.permute.xlu1 %1288 }
 0x298   : > { %v1294_v9 = vrot.slane %v1291_v50, 4  ;;  %v1293_v11 = vrot.slane %v1289_v8, 4 }
 0x29a   : > { %v1296_v52 = vsel %vm552_vm4, %v1292_v51, %v1293_v11  ;;  %v1298_v60 = vsel %vm552_vm4, %v1293_v11, %v1294_v9 }
 0x29b   : > { %v1297_v12 = vsel %vm1241_vm12, %v1296_v52, %v1289_v8  ;;  %v1299_v13 = vsel %vm1241_vm12, %v1298_v60, %v1291_v50 }
 0x29c   : > { %v1304_v21 = vmul.f32 %v1490_v20, %v1297_v12  ;;  %v1305_v22 = vmul.f32 %v1299_v13, %v1725_v57 }
 0x29e   : > { %v1307_v24 = vadd.f32 %v1304_v21, %v1251_v18  ;;  %v1308_v61 = vadd.f32 %v1305_v22, %v1252_v17 }
 0x2a0   : > { %1316 = vrot.lane.b32.xlu1 %v1308_v61, %s1502_s30  ;;  %1314 = vrot.lane.b32.xlu0 %v1307_v24, %s1502_s30 }
 0x2e1   : > { %v1313_v37 = vpop.permute.xlu1 %1312 }
 0x2e2   : > { %v1318_v4 = vrot.slane %v1313_v37, 4 }
 0x312   : > { %v1315_v29 = vpop.permute.xlu0 %1314  ;;  %v1317_v39 = vpop.permute.xlu1 %1316 }
 0x313   : > { %v1319_v10 = vrot.slane %v1315_v29, 4  ;;  %v1320_v46 = vrot.slane %v1317_v39, 4 }
 0x315   : > { %v1321_v57 = vsel %vm552_vm4, %v1318_v4, %v1319_v10  ;;  %v1324_v26 = vsel %vm552_vm4, %v1319_v10, %v1320_v46  ;;  %v1326_v30 = vsel %vm455_vm8, %v1317_v39, %v1320_v46 }
 0x316   : > { %v1323_v31 = vsel %vm455_vm8, %v1313_v37, %v1321_v57  ;;  %v1325_v15 = vsel %vm455_vm8, %v1315_v29, %v1324_v26  ;;  %1334 = vst.msk [vmem:[%s327_s26 + $0x10] sm:$0xff] %vm1333_vm14, %v1326_v30 }
 0x317   : > { %1330 = vst [vmem:[%s327_s26] sm:$0xff] %v1323_v31  ;;  %1331 = vst [vmem:[%s327_s26 + $0x8] sm:$0xff] %v1325_v15 }
 0x318 PF: > { %s16_s21 = sadd.s32 1, %s1497_s21  }
 0x319   : > { %p13_p4 = scmp.ge.s32.totalorder %s16_s21, 6  }
 0x31b   :  { %15 = sbr.rel (!%p13_p4) target bundleno = 1 (0x1), region = 89 }

// kernel: cap_conv2_forward.11
= control target key start
LH: loop header
LB: loop body
LE: loop exit
PB: predicated region body
PF: predicated region fallthrough
CT: control target
= control target key end

     0   :  { %s527_s12 = smov 0   ;;  %s580_s0 = inlined_call_operand.vmem [shape: f32[4,4,512], index: 0, kind: input, shape index: {}]   ;;  %s581_s1 = inlined_call_operand.vmem [shape: f32[4,4,1], index: 1, kind: input, shape index: {}]   ;;  %s582_s2 = inlined_call_operand.vmem [shape: f32[4,4,1], index: 2, kind: input, shape index: {}]   ;;  %s583_s3 = inlined_call_operand.vmem [shape: f32[4,4,512], index: 3, kind: output, shape index: {}]  }
   0x1 LB: > { %s450_s13 = sadd.s32 4294967295, %s503_s12   ;;  %p454_p0 = scmp.ge.s32.totalorder %s503_s12, 1  ;;  %s503_s12 = sphi %s527_s12, %s13_s12  }
   0x2   : > { %p155_p1 = scmp.lt.s32.totalorder %s503_s12, 5 }
   0x4   : > { %p156_p2 = pnand %p454_p0, %p155_p1 }
   0x5   : > { %p187_p3 = scmp.lt.s32.totalorder (!%p156_p2), %s450_s13, 3  ;;  %vm213_vm0 = vcmask (!%p156_p2), 1043456   ;;  %v505_v11 = vmov (!%p156_p2), 0   ;;  %v506_v14 = vmov (!%p156_p2), 839922192   ;;  %v229_v16 = vlaneseq (!%p156_p2) }
   0x6   : > { %159 = sbr.rel (%p156_p2) target bundleno = 394 (0x18a), region = 32  ;;  %475 = vset.pattern.permute.xlu1 (!%p156_p2), %v505_v11  ;;  %476 = vset.pattern.permute.xlu0 (!%p156_p2), %v505_v11  ;;  %v227_v15 = vunpack.c.l.s4 (!%p156_p2), %v506_v14 }
   0x7   : > { %v230_v18 = vshrl.u32 (!%p156_p2), %v229_v16, 7 }
   0x8   : > { %v228_v17 = vunpack.c.0.s8 (!%p156_p2), %v227_v15 }
   0xa   : > { %v231_v19 = vsub.s32 (!%p156_p2), %v228_v17, %v230_v18 }
   0xd   : > { %s585_s13 = smov (!%p187_p3, %s450_s13), 3 }
   0xe   : > { %s463_s14 = sshll.u32 %s585_s13, 4  ;;  %s457_s18 = sshll.u32 %s585_s13, 2 }
   0xf   : > { %s191_s17 = scalar_lea.vmem %s580_s0, %s463_s14  ;;  %s195_s21 = scalar_lea.vmem %s581_s1, %s457_s18 }
  0x10   : > { %v205_v0 = vld [vmem:[%s191_s17] sm:$0xff]  ;;  %v206_v1 = vld [vmem:[%s191_s17 + $0x8] sm:$0xff]  ;;  %s199_s24 = scalar_lea.vmem %s582_s2, %s457_s18  ;;  %s204_s27 = scalar_lea.vmem %s583_s3, %s463_s14 }
  0x11   : > { %v209_v2 = vcombine.high %v205_v0, %v205_v0  ;;  %v210_v3 = vcombine.high %v206_v1, %v206_v1  ;;  %v214_v4 = vsel %vm213_vm0, %v205_v0, 0.0  ;;  %v217_v6 = vsel %vm213_vm0, %v206_v1, 0.0  ;;  %v267_v12 = vld [vmem:[%s195_s21] sm:$0xf] }
  0x12   : > { %270 = vperm.xlu1 %475, %v267_v12   ;;  %v282_v13 = vld [vmem:[%s199_s24] sm:$0xf] }
  0x13   : > { %v215_v5 = vsel %vm213_vm0, %v209_v2, 0.0  ;;  %v219_v8 = vsel %vm213_vm0, %v210_v3, 0.0 }
  0x14   : > { %v216_v7 = vadd.f32 %v215_v5, %v214_v4 }
  0x16   : > { %v218_v9 = vadd.f32 %v217_v6, %v216_v7  ;;  %285 = vperm.xlu1 %475, %v282_v13  }
  0x18   : > { %v220_v10 = vadd.f32 %v219_v8, %v218_v9 }
  0x1a   : > { %221 = vadd.xlane.f32.xlu0 %v220_v10 }
  0x91   : > { %v271_v39 = vpop.permute.xlu1 %270 }
  0x92   : > { %v278_v45 = vrot.slane %v271_v39, %v231_v19 }
  0x95   : > { %v286_v42 = vpop.permute.xlu1 %285 }
  0x96   : > { %v293_v48 = vrot.slane %v286_v42, %v231_v19 }
  0xa7   : > { %v222_v20 = vpop.xlane.xlu0 %221 }
  0xa8   : > { %v224_v21 = vmul.f32 0.001953125, %v222_v20 }
  0xaa   : > { %v232_v22 = vrot.slane %v224_v21, %v231_v19 }
  0xac   : > { %v234_v23 = vsub.f32 %v205_v0, %v232_v22  ;;  %v235_v24 = vsub.f32 %v206_v1, %v232_v22 }
  0xae   : > { %v236_v25 = vmul.f32 %v234_v23, %v234_v23  ;;  %v237_v26 = vmul.f32 %v235_v24, %v235_v24 }
  0xb0   : > { %v240_v27 = vcombine.high %v236_v25, %v236_v25  ;;  %v241_v28 = vcombine.high %v237_v26, %v237_v26  ;;  %v244_v29 = vsel %vm213_vm0, %v236_v25, 0.0  ;;  %v247_v32 = vsel %vm213_vm0, %v237_v26, 0.0 }
  0xb2   : > { %v245_v30 = vsel %vm213_vm0, %v240_v27, 0.0  ;;  %v249_v34 = vsel %vm213_vm0, %v241_v28, 0.0 }
  0xb3   : > { %v246_v31 = vadd.f32 %v245_v30, %v244_v29 }
  0xb5   : > { %v248_v33 = vadd.f32 %v247_v32, %v246_v31 }
  0xb7   : > { %v250_v35 = vadd.f32 %v249_v34, %v248_v33 }
  0xb9   : > { %251 = vadd.xlane.f32.xlu0 %v250_v35 }
 0x146   : > { %v252_v36 = vpop.xlane.xlu0 %251 }
 0x147   : > { %v253_v37 = vmul.f32 0.001953125, %v252_v36 }
 0x149   : > { %v254_v38 = vadd.f32 1e-05, %v253_v37 }
 0x14b   : > { %479 = vrsqrt.f32 %v254_v38 }
 0x155   : > { %v480_v40 = vpop.eup %479 }
 0x156   : > { %v263_v41 = vrot.slane %v480_v40, %v231_v19 }
 0x158   : > { %v265_v43 = vmul.f32 %v263_v41, %v234_v23  ;;  %v266_v44 = vmul.f32 %v263_v41, %v235_v24 }
 0x15a   : > { %v280_v46 = vmul.f32 %v278_v45, %v265_v43  ;;  %v281_v47 = vmul.f32 %v278_v45, %v266_v44 }
 0x15c   : > { %v295_v49 = vadd.f32 %v293_v48, %v280_v46  ;;  %v296_v50 = vadd.f32 %v293_v48, %v281_v47 }
 0x15e   : > { %v558_v51 = vmax.f32 %v295_v49, 0.0  ;;  %v560_v52 = vmax.f32 %v296_v50, 0.0 }
 0x160   : > { %v299_v53 = vmul.f32 %v558_v51, %v558_v51  ;;  %v300_v54 = vmul.f32 %v560_v52, %v560_v52 }
 0x162   : > { %v303_v55 = vcombine.high %v299_v53, %v299_v53  ;;  %v304_v56 = vcombine.high %v300_v54, %v300_v54  ;;  %v307_v57 = vsel %vm213_vm0, %v299_v53, 0.0  ;;  %v321_v58 = vsel %vm213_vm0, %v300_v54, 0.0 }
 0x163   : > { %v308_v59 = vrot.slane %v307_v57, 4  ;;  %v322_v60 = vrot.slane %v321_v58, 4 }
 0x164   : > { %v314_v61 = vsel %vm213_vm0, %v303_v55, 0.0  ;;  %v328_v62 = vsel %vm213_vm0, %v304_v56, 0.0 }
 0x165   : > { %v309_v63 = vadd.f32 %v308_v59, %v307_v57  ;;  %v315_v0 = vrot.slane %v314_v61, 4  ;;  %v323_v1 = vadd.f32 %v322_v60, %v321_v58  ;;  %v329_v2 = vrot.slane %v328_v62, 4 }
 0x167   : > { %v310_v3 = vrot.slane %v309_v63, 2  ;;  %v316_v4 = vadd.f32 %v315_v0, %v314_v61  ;;  %v324_v5 = vrot.slane %v323_v1, 2  ;;  %v330_v6 = vadd.f32 %v329_v2, %v328_v62 }
 0x169   : > { %v311_v7 = vadd.f32 %v310_v3, %v309_v63  ;;  %v317_v8 = vrot.slane %v316_v4, 2  ;;  %v325_v9 = vadd.f32 %v324_v5, %v323_v1  ;;  %v331_v10 = vrot.slane %v330_v6, 2 }
 0x16b   : > { %v312_v11 = vrot.slane %v311_v7, 1  ;;  %v318_v12 = vadd.f32 %v317_v8, %v316_v4  ;;  %v326_v13 = vrot.slane %v325_v9, 1  ;;  %v332_v14 = vadd.f32 %v331_v10, %v330_v6 }
 0x16d   : > { %v313_v15 = vadd.f32 %v312_v11, %v311_v7  ;;  %v319_v16 = vrot.slane %v318_v12, 1  ;;  %v327_v17 = vadd.f32 %v326_v13, %v325_v9  ;;  %v333_v18 = vrot.slane %v332_v14, 1 }
 0x16f   : > { %v320_v19 = vadd.f32 %v319_v16, %v318_v12  ;;  %v334_v20 = vadd.f32 %v333_v18, %v332_v14  ;;  %v335_v21 = vadd.f32 1e-30, %v313_v15  ;;  %v337_v22 = vadd.f32 1e-30, %v327_v17 }
 0x170   : > { %v347_v25 = vadd.f32 1.0, %v313_v15  ;;  %v349_v27 = vadd.f32 1.0, %v327_v17 }
 0x171   : > { %v336_v23 = vadd.f32 1e-30, %v320_v19  ;;  %v338_v24 = vadd.f32 1e-30, %v334_v20  ;;  %481 = vrsqrt.f32 %v335_v21  ;;  %v348_v26 = vadd.f32 1.0, %v320_v19 }
 0x172   : > { %483 = vrsqrt.f32 %v337_v22  ;;  %v350_v28 = vadd.f32 1.0, %v334_v20 }
 0x173   : > { %485 = vrsqrt.f32 %v336_v23 }
 0x174   : > { %487 = vrsqrt.f32 %v338_v24 }
 0x175   : > { %489 = vrcp.f32 %v347_v25 }
 0x176   : > { %491 = vrcp.f32 %v348_v26 }
 0x177   : > { %493 = vrcp.f32 %v349_v27 }
 0x178   : > { %495 = vrcp.f32 %v350_v28 }
 0x17b   : > { %v482_v29 = vpop.eup %481 }
 0x17c   : > { %v484_v30 = vpop.eup %483  ;;  %v343_v32 = vmul.f32 %v482_v29, %v313_v15 }
 0x17d   : > { %v486_v31 = vpop.eup %485  ;;  %v345_v36 = vmul.f32 %v484_v30, %v327_v17 }
 0x17e   : > { %v488_v33 = vpop.eup %487  ;;  %v344_v34 = vmul.f32 %v486_v31, %v320_v19 }
 0x17f   : > { %v490_v35 = vpop.eup %489  ;;  %v346_v37 = vmul.f32 %v488_v33, %v334_v20 }
 0x180   : > { %v492_v38 = vpop.eup %491  ;;  %v355_v40 = vmul.f32 %v490_v35, %v343_v32 }
 0x181   : > { %v494_v39 = vpop.eup %493  ;;  %v356_v41 = vmul.f32 %v492_v38, %v344_v34 }
 0x182   : > { %v496_v42 = vpop.eup %495  ;;  %v357_v43 = vmul.f32 %v494_v39, %v345_v36 }
 0x183   : > { %v358_v44 = vmul.f32 %v496_v42, %v346_v37  ;;  %v363_v45 = vcombine.low %v355_v40, %v356_v41 }
 0x185   : > { %v364_v46 = vcombine.low %v357_v43, %v358_v44  ;;  %v367_v47 = vmul.f32 %v363_v45, %v558_v51 }
 0x187   : > { %v368_v48 = vmul.f32 %v364_v46, %v560_v52  ;;  %369 = vst [vmem:[%s204_s27] sm:$0xff] %v367_v47 }
 0x189   : > { %370 = vst [vmem:[%s204_s27 + $0x8] sm:$0xff] %v368_v48 }
 0x18a PF: > { %s13_s12 = sadd.s32 1, %s503_s12  }
 0x18b   : > { %p10_p4 = scmp.ge.s32.totalorder %s13_s12, 6  }
 0x18d   :  { %12 = sbr.rel (!%p10_p4) target bundleno = 1 (0x1), region = 68 }

// kernel: tile.30
= control target key start
LH: loop header
LB: loop body
LE: loop exit
PB: predicated region body
PF: predicated region fallthrough
CT: control target
= control target key end

     0   :  { %s58_s0 = inlined_call_operand.vmem [shape: f32[400], index: 0, kind: input, shape index: {}]   ;;  %s59_s1 = inlined_call_operand.vmem [shape: f32[2,400], index: 1, kind: output, shape index: {}]  }
   0x1   :  { %v4_v0 = vld [vmem:[%s58_s0] ss:$0 sm:$0xff]  ;;  %v18_v1 = vld [vmem:[%s58_s0 + $0x1] ss:$0 sm:$0xff]  ;;  %v20_v2 = vld [vmem:[%s58_s0 + $0x2] ss:$0 sm:$0xff] }
   0x2   :  { %5 = vst [vmem:[%s59_s1] sm:$0x3] %v4_v0  ;;  %19 = vst [vmem:[%s59_s1 + $0x2] sm:$0x3] %v18_v1  ;;  %v22_v3 = vld [vmem:[%s58_s0 + $0x3] ss:$0 sm:$0xff] }
   0x3   :  { %21 = vst [vmem:[%s59_s1 + $0x4] sm:$0x3] %v20_v2  ;;  %23 = vst [vmem:[%s59_s1 + $0x6] sm:$0x3] %v22_v3 }

// kernel: tile.31
= control target key start
LH: loop header
LB: loop body
LE: loop exit
PB: predicated region body
PF: predicated region fallthrough
CT: control target
= control target key end

     0   :  { %vm31_vm0 = vcmask 916480   ;;  %vm46_vm1 = vcmask 1042434   ;;  %vm22_vm2 = vcmask 130048   ;;  %s113_s14 = smov 16   ;;  %vm38_vm3 = vcmask 261248   ;;  %s159_s0 = inlined_call_operand.vmem [shape: f32[2,400], index: 0, kind: input, shape index: {}]   ;;  %s160_s1 = inlined_call_operand.vmem [shape: f32[1,800], index: 1, kind: output, shape index: {}]  }
   0x1   :  { %v103_v0 = vld [vmem:[%s159_s0 + $0x6] sm:$0x3]  ;;  %v104_v1 = vld [vmem:[%s159_s0 + $0x4] sm:$0x3]  ;;  %v105_v2 = vld [vmem:[%s159_s0 + $0x2] sm:$0x3] }
   0x2   :  { %8 = vst [vmem:[#allocation1 + $0x18] sm:$0x3] %v103_v0  ;;  %13 = vst [vmem:[#allocation1 + $0x10] sm:$0x3] %v104_v1  ;;  %v18_v3 = vld [vmem:[%s159_s0] sm:$0x3] }
   0x3   :  { %17 = vst [vmem:[#allocation1 + $0x8] sm:$0x3] %v105_v2  ;;  %19 = vst [vmem:[#allocation1] sm:$0x3] %v18_v3  ;;  %s42_s0 = smov 3  ;;  %vm50_vm4 = vcmask 1047680  }
   0x9   :  { %v30_v4 = vld [vmem:[#allocation1 + $0x19] sm:$0x1]   ;;  %v21_v6 = vld [vmem:[#allocation1 + $0x18] sm:$0x1]  }
   0xa   :  { %v43_v5 = vld [vmem:[#allocation1 + $0x9] ss:$8 sm:%s42_s0]   ;;  %v25_v7 = vld [vmem:[#allocation1] ss:$8 sm:$0x7]  }
   0xb   :  { %v28_v8 = vld [vmem:[#allocation1 + $0x1] ss:$8 sm:$0x7]   ;;  %24 = vst.msk [vmem:[#allocation0 + $0x18] sm:$0x1] %vm22_vm2, %v21_v6  }
   0xc   :  { %26 = vst [vmem:[#allocation0] ss:$8 sm:$0x7] %v25_v7   ;;  %v32_v9 = vsel %vm31_vm0, %v30_v4, %v28_v8  ;;  %v45_v10 = vld [vmem:[#allocation1 - $0x1] sm:$0x4]  }
   0xd   :  { %33 = vrot.lane.b32.xlu0 %v32_v9, %s113_s14  ;;  %v47_v11 = vsel %vm46_vm1, %v45_v10, %v43_v5 }
  0x11   :  { %48 = vrot.lane.b32.xlu0 %v47_v11, %s113_s14 }
  0x13   :  { %v58_v12 = vld [vmem:[#allocation0] sm:$0x1]  ;;  %v62_v13 = vld [vmem:[#allocation0 + $0x8] sm:$0x1]  ;;  %v67_v14 = vld [vmem:[#allocation0 + $0x10] sm:$0x1] }
  0x14   :  { %60 = vst [vmem:[%s160_s1] sm:$0x1] %v58_v12  ;;  %106 = vst [vmem:[%s160_s1 + $0x1] sm:$0x1] %v62_v13 }
  0x15   :  { %107 = vst [vmem:[%s160_s1 + $0x2] sm:$0x1] %v67_v14 }
  0x7f   :  { %v34_v15 = vpop.permute.xlu0 %33  }
  0x80   :  { %37 = vst.msk [vmem:[#allocation0 + $0x20] ss:$8 sm:$0x7] %vm22_vm2, %v34_v15  }
  0x81   :  { %40 = vst.msk [vmem:[#allocation0 + $0x30] sm:$0x1] %vm38_vm3, %v34_v15  }
  0x83   :  { %v49_v16 = vpop.permute.xlu0 %48  }
  0x84   :  { %52 = vst.msk [vmem:[#allocation0 + $0x20] ss:$8 sm:$0x3] %vm50_vm4, %v49_v16   ;;  %54 = vst.msk [vmem:[#allocation0 + $0x16] sm:$0x4] %vm50_vm4, %v49_v16  }
  0x88   :  { %v91_v17 = vld [vmem:[#allocation0 + $0x30] sm:$0x1] }
  0x89   :  { %111 = vst [vmem:[%s160_s1 + $0x6] sm:$0x1] %v91_v17 }
  0x8b   :  { %v73_v18 = vld [vmem:[#allocation0 + $0x18] sm:$0x1]  ;;  %v79_v19 = vld [vmem:[#allocation0 + $0x20] sm:$0x1]  ;;  %v85_v20 = vld [vmem:[#allocation0 + $0x28] sm:$0x1] }
  0x8c   :  { %108 = vst [vmem:[%s160_s1 + $0x3] sm:$0x1] %v73_v18  ;;  %109 = vst [vmem:[%s160_s1 + $0x4] sm:$0x1] %v79_v19 }
  0x8d   :  { %110 = vst [vmem:[%s160_s1 + $0x5] sm:$0x1] %v85_v20 }

// kernel: cap_conv2_forward.12
= control target key start
LH: loop header
LB: loop body
LE: loop exit
PB: predicated region body
PF: predicated region fallthrough
CT: control target
= control target key end

     0   :  { %s797_s21 = smov 0   ;;  %s879_s0 = inlined_call_operand.vmem [shape: f32[4,4,512], index: 0, kind: input, shape index: {}]   ;;  %s880_s1 = inlined_call_operand.vmem [shape: bf16[4,4,4], index: 1, kind: input, shape index: {}]   ;;  %s881_s2 = inlined_call_operand.vmem [shape: f32[4,4,1], index: 2, kind: input, shape index: {}]   ;;  %s882_s3 = inlined_call_operand.vmem [shape: f32[4,4,1], index: 3, kind: input, shape index: {}]   ;;  %s883_s4 = inlined_call_operand.vmem [shape: f32[4,4,1], index: 4, kind: input, shape index: {}]   ;;  %s884_s5 = inlined_call_operand.vmem [shape: f32[1,512], index: 5, kind: input, shape index: {}]   ;;  %s885_s6 = inlined_call_operand.vmem [shape: f32[4,4,512], index: 6, kind: output, shape index: {}]  }
   0x1 LB: > { %s701_s22 = sadd.s32 4294967295, %s759_s21   ;;  %p705_p0 = scmp.ge.s32.totalorder %s759_s21, 1  ;;  %s759_s21 = sphi %s797_s21, %s16_s21  }
   0x2   : > { %p248_p1 = scmp.lt.s32.totalorder %s759_s21, 5 }
   0x4   : > { %p249_p2 = pnand %p705_p0, %p248_p1 }
   0x5   : > { %p294_p3 = scmp.lt.s32.totalorder (!%p249_p2), %s701_s22, 3  ;;  %v761_v0 = vmov (!%p249_p2), 0   ;;  %vm344_vm0 = vcmask (!%p249_p2), 1041408   ;;  %vm340_vm1 = vcmask (!%p249_p2), 31744   ;;  %v441_v14 = vlaneseq (!%p249_p2)  ;;  %v439_v17 = vld [vmem:[%s884_s5] sm:$0xf] (!%p249_p2) }
   0x6   : > { %252 = sbr.rel (%p249_p2) target bundleno = 613 (0x265), region = 44  ;;  %389 = vmatprep.mubr.bf16.mxu0 (!%p249_p2), %v761_v0  ;;  %430 = vmatprep.mubr.bf16.mxu1 (!%p249_p2), %v761_v0  ;;  %vm465_vm2 = vcmask (!%p249_p2), 1043456  }
   0x7   : > { %731 = vset.pattern.permute.xlu0 (!%p249_p2), %v761_v0  ;;  %732 = vset.pattern.permute.xlu1 (!%p249_p2), %v761_v0  ;;  %v442_v15 = vshrl.u32 (!%p249_p2), %v441_v14, 7 }
   0x9   : > { %v443_v16 = vsub.s32 (!%p249_p2), 0, %v442_v15  ;;  %v451_v18 = vsub.s32 (!%p249_p2), 2, %v442_v15  ;;  %v447_v19 = vsub.s32 (!%p249_p2), 1, %v442_v15  ;;  %v455_v21 = vsub.s32 (!%p249_p2), 3, %v442_v15 }
   0xb   : > { %v444_v22 = vrot.slane (!%p249_p2), %v439_v17, %v443_v16  ;;  %v452_v25 = vrot.slane (!%p249_p2), %v439_v17, %v451_v18  ;;  %v448_v26 = vrot.slane (!%p249_p2), %v439_v17, %v447_v19  ;;  %v456_v33 = vrot.slane (!%p249_p2), %v439_v17, %v455_v21 }
   0xd   : > { %s887_s22 = smov (!%p294_p3, %s701_s22), 3 }
   0xe   : > { %s720_s23 = sshll.u32 %s887_s22, 4  ;;  %s708_s27 = sshll.u32 %s887_s22, 1 }
   0xf   : > { %s298_s26 = scalar_lea.vmem %s879_s0, %s720_s23  ;;  %s815_s28 = sshll.u32 %s887_s22, 2 }
  0x10   : > { %v321_v1 = vld [vmem:[%s298_s26] sm:$0xff]  ;;  %v322_v2 = vld [vmem:[%s298_s26 + $0x8] sm:$0xff]  ;;  %s306_s7 = scalar_lea.vmem %s881_s2, %s815_s28  ;;  %s302_s10 = scalar_lea.vmem %s880_s1, %s708_s27 }
  0x11   : > { %v325_v3 = vcombine.high %v321_v1, %v321_v1  ;;  %v326_v4 = vcombine.high %v322_v2, %v322_v2  ;;  %v329_v5 = vpack.c.bf16 %v321_v1, %v321_v1  ;;  %v331_v6 = vpack.c.bf16 %v322_v2, %v322_v2  ;;  %v334_v7 = vld [vmem:[%s306_s7] sm:$0xf]  ;;  %s310_s13 = scalar_lea.vmem %s882_s3, %s815_s28  ;;  %s314_s18 = scalar_lea.vmem %s883_s4, %s815_s28 }
  0x12   : > { %337 = vperm.xlu0 %731, %v334_v7   ;;  %v333_v12 = vld [vmem:[%s302_s10] sm:$0x3]  ;;  %s319_s24 = scalar_lea.vmem %s885_s6, %s720_s23 }
  0x13   : > { %v330_v8 = vpack.c.bf16 %v325_v3, %v325_v3  ;;  %v332_v9 = vpack.c.bf16 %v326_v4, %v326_v4  ;;  %v346_v10 = vsel %vm344_vm0, %v329_v5, 0  ;;  %v352_v11 = vsel %vm344_vm0, %v331_v6, 0  ;;  %v504_v13 = vld [vmem:[%s310_s13] sm:$0xf] }
  0x14   : > { %507 = vperm.xlu1 %732, %v504_v13   ;;  %v514_v6 = vld [vmem:[%s314_s18] sm:$0xf] }
  0x15   : > { %714 = vmatprep.subr.msk.bf16.mxu0 %vm344_vm0, %v330_v8  ;;  %716 = vmatprep.subr.msk.bf16.mxu1 %vm344_vm0, %v332_v9 }
  0x16   : > { %358 = vmatpush1.bf16.msra.mxu0 %v346_v10  ;;  %399 = vmatpush1.bf16.msra.mxu1 %v352_v11 }
  0x19   : > { %715 = vmatmul.mubr.msk.bf16.vlgmr.msra.gmra.mrb[0].mxu0 %vm340_vm1, %v333_v12  ;;  %717 = vmatmul.mubr.msk.bf16.vlgmr.msra.gmra.mrb[0].mxu1 %vm340_vm1, %v333_v12 }
  0x91   : > { %v338_v20 = vpop.permute.xlu0 %337 }
  0x93   : > { %v508_v7 = vpop.permute.xlu1 %507 }
  0xec   : > { %v391_v23 = vpop.f32.mrb[0].mxu0  ;;  %v432_v24 = vpop.f32.mrb[0].mxu1 }
  0xed   : > { %v392_v27 = vadd.f32 %v391_v23, %v338_v20  ;;  %v433_v28 = vadd.f32 %v432_v24, %v338_v20  ;;  %v393_v29 = vpop.f32.mrb[1].mxu0  ;;  %v434_v30 = vpop.f32.mrb[1].mxu1 }
  0xee   : > { %v394_v31 = vadd.f32 %v393_v29, %v338_v20  ;;  %v435_v32 = vadd.f32 %v434_v30, %v338_v20  ;;  %v395_v34 = vpop.f32.mrb[2].mxu0  ;;  %v436_v35 = vpop.f32.mrb[2].mxu1 }
  0xef   : > { %v461_v36 = vmul.f32 %v444_v22, %v392_v27  ;;  %v396_v37 = vpop.f32.mrb[3].mxu0  ;;  %v437_v38 = vpop.f32.mrb[3].mxu1  ;;  %v463_v39 = vmul.f32 %v452_v25, %v433_v28 }
  0xf0   : > { %v462_v40 = vmul.f32 %v448_v26, %v394_v31  ;;  %v464_v43 = vmul.f32 %v456_v33, %v435_v32 }
  0xf1   : > { %v466_v41 = vsel %vm465_vm2, %v461_v36, 0.0  ;;  %v469_v45 = vsel %vm465_vm2, %v463_v39, 0.0 }
  0xf2   : > { %v467_v42 = vsel %vm465_vm2, %v462_v40, 0.0  ;;  %v471_v47 = vsel %vm465_vm2, %v464_v43, 0.0 }
  0xf3   : > { %v468_v44 = vadd.f32 %v467_v42, %v466_v41 }
  0xf5   : > { %v470_v46 = vadd.f32 %v469_v45, %v468_v44 }
  0xf7   : > { %v472_v48 = vadd.f32 %v471_v47, %v470_v46 }
  0xf9   : > { %473 = vadd.xlane.f32.xlu0 %v472_v48 }
 0x186   : > { %v474_v49 = vpop.xlane.xlu0 %473 }
 0x187   : > { %v475_v50 = vmul.f32 0.001953125, %v474_v49 }
 0x189   : > { %v476_v51 = vsub.f32 %v392_v27, %v475_v50  ;;  %v477_v52 = vsub.f32 %v394_v31, %v475_v50  ;;  %v478_v53 = vsub.f32 %v433_v28, %v475_v50  ;;  %v479_v54 = vsub.f32 %v435_v32, %v475_v50 }
 0x18b   : > { %v480_v55 = vmul.f32 %v476_v51, %v444_v22  ;;  %v481_v56 = vmul.f32 %v477_v52, %v448_v26  ;;  %v482_v57 = vmul.f32 %v478_v53, %v452_v25  ;;  %v483_v58 = vmul.f32 %v479_v54, %v456_v33 }
 0x18d   : > { %v484_v59 = vmul.f32 %v480_v55, %v480_v55  ;;  %v485_v60 = vmul.f32 %v481_v56, %v481_v56  ;;  %v486_v61 = vmul.f32 %v482_v57, %v482_v57  ;;  %v487_v62 = vmul.f32 %v483_v58, %v483_v58 }
 0x18f   : > { %v488_v63 = vsel %vm465_vm2, %v484_v59, 0.0  ;;  %v489_v0 = vsel %vm465_vm2, %v485_v60, 0.0  ;;  %v491_v2 = vsel %vm465_vm2, %v486_v61, 0.0  ;;  %v493_v4 = vsel %vm465_vm2, %v487_v62, 0.0 }
 0x190   : > { %v490_v1 = vadd.f32 %v489_v0, %v488_v63 }
 0x192   : > { %v492_v3 = vadd.f32 %v491_v2, %v490_v1 }
 0x194   : > { %v494_v5 = vadd.f32 %v493_v4, %v492_v3 }
 0x196   : > { %495 = vadd.xlane.f32.xlu1 %v494_v5 }
 0x1a7   : > { %517 = vperm.xlu1 %732, %v514_v6  }
 0x223   : > { %v496_v8 = vpop.xlane.xlu1 %495 }
 0x224   : > { %v497_v9 = vmul.f32 0.001953125, %v496_v8 }
 0x226   : > { %v498_v10 = vadd.f32 1e-05, %v497_v9 }
 0x227   : > { %v518_v20 = vpop.permute.xlu1 %517 }
 0x228   : > { %735 = vrsqrt.f32 %v498_v10 }
 0x232   : > { %v736_v11 = vpop.eup %735 }
 0x233   : > { %v500_v12 = vmul.f32 %v736_v11, %v476_v51  ;;  %v501_v13 = vmul.f32 %v736_v11, %v477_v52  ;;  %v502_v14 = vmul.f32 %v736_v11, %v478_v53  ;;  %v503_v15 = vmul.f32 %v736_v11, %v479_v54 }
 0x235   : > { %v510_v16 = vmul.f32 %v508_v7, %v500_v12  ;;  %v511_v17 = vmul.f32 %v508_v7, %v501_v13  ;;  %v512_v18 = vmul.f32 %v508_v7, %v502_v14  ;;  %v513_v19 = vmul.f32 %v508_v7, %v503_v15 }
 0x237   : > { %v520_v21 = vadd.f32 %v518_v20, %v510_v16  ;;  %v521_v22 = vadd.f32 %v518_v20, %v511_v17  ;;  %v522_v23 = vadd.f32 %v518_v20, %v512_v18  ;;  %v523_v24 = vadd.f32 %v518_v20, %v513_v19 }
 0x239   : > { %v847_v25 = vmax.f32 %v520_v21, 0.0  ;;  %v849_v26 = vmax.f32 %v521_v22, 0.0  ;;  %v851_v27 = vmax.f32 %v522_v23, 0.0  ;;  %v853_v28 = vmax.f32 %v523_v24, 0.0 }
 0x23b   : > { %v528_v29 = vmul.f32 %v847_v25, %v847_v25  ;;  %v529_v30 = vmul.f32 %v849_v26, %v849_v26  ;;  %v530_v31 = vmul.f32 %v851_v27, %v851_v27  ;;  %v531_v32 = vmul.f32 %v853_v28, %v853_v28 }
 0x23d   : > { %v532_v33 = vsel %vm465_vm2, %v528_v29, 0.0  ;;  %v539_v34 = vsel %vm465_vm2, %v529_v30, 0.0  ;;  %v546_v35 = vsel %vm465_vm2, %v530_v31, 0.0  ;;  %v553_v36 = vsel %vm465_vm2, %v531_v32, 0.0 }
 0x23e   : > { %v533_v37 = vrot.slane %v532_v33, 4  ;;  %v540_v38 = vrot.slane %v539_v34, 4  ;;  %v547_v39 = vrot.slane %v546_v35, 4  ;;  %v554_v40 = vrot.slane %v553_v36, 4 }
 0x240   : > { %v534_v41 = vadd.f32 %v533_v37, %v532_v33  ;;  %v541_v42 = vadd.f32 %v540_v38, %v539_v34  ;;  %v548_v43 = vadd.f32 %v547_v39, %v546_v35  ;;  %v555_v44 = vadd.f32 %v554_v40, %v553_v36 }
 0x242   : > { %v535_v45 = vrot.slane %v534_v41, 2  ;;  %v542_v46 = vrot.slane %v541_v42, 2  ;;  %v549_v47 = vrot.slane %v548_v43, 2  ;;  %v556_v48 = vrot.slane %v555_v44, 2 }
 0x244   : > { %v536_v49 = vadd.f32 %v535_v45, %v534_v41  ;;  %v543_v50 = vadd.f32 %v542_v46, %v541_v42  ;;  %v550_v51 = vadd.f32 %v549_v47, %v548_v43  ;;  %v557_v52 = vadd.f32 %v556_v48, %v555_v44 }
 0x246   : > { %v537_v53 = vrot.slane %v536_v49, 1  ;;  %v544_v54 = vrot.slane %v543_v50, 1  ;;  %v551_v55 = vrot.slane %v550_v51, 1  ;;  %v558_v56 = vrot.slane %v557_v52, 1 }
 0x248   : > { %v538_v57 = vadd.f32 %v537_v53, %v536_v49  ;;  %v545_v58 = vadd.f32 %v544_v54, %v543_v50  ;;  %v552_v59 = vadd.f32 %v551_v55, %v550_v51  ;;  %v559_v60 = vadd.f32 %v558_v56, %v557_v52 }
 0x24a   : > { %v560_v61 = vadd.f32 1e-30, %v538_v57  ;;  %v561_v62 = vadd.f32 1e-30, %v545_v58  ;;  %v562_v63 = vadd.f32 1e-30, %v552_v59 }
 0x24b   : > { %v563_v0 = vadd.f32 1e-30, %v559_v60  ;;  %v572_v1 = vadd.f32 1.0, %v538_v57  ;;  %v573_v2 = vadd.f32 1.0, %v545_v58  ;;  %v574_v3 = vadd.f32 1.0, %v552_v59 }
 0x24c   : > { %737 = vrsqrt.f32 %v560_v61  ;;  %v575_v4 = vadd.f32 1.0, %v559_v60 }
 0x24d   : > { %739 = vrsqrt.f32 %v561_v62 }
 0x24e   : > { %741 = vrsqrt.f32 %v562_v63 }
 0x24f   : > { %743 = vrsqrt.f32 %v563_v0 }
 0x250   : > { %745 = vrcp.f32 %v572_v1 }
 0x251   : > { %747 = vrcp.f32 %v573_v2 }
 0x252   : > { %749 = vrcp.f32 %v574_v3 }
 0x253   : > { %751 = vrcp.f32 %v575_v4 }
 0x256   : > { %v738_v5 = vpop.eup %737 }
 0x257   : > { %v740_v6 = vpop.eup %739  ;;  %v568_v7 = vmul.f32 %v738_v5, %v538_v57 }
 0x258   : > { %v742_v8 = vpop.eup %741  ;;  %v569_v9 = vmul.f32 %v740_v6, %v545_v58 }
 0x259   : > { %v744_v10 = vpop.eup %743  ;;  %v570_v11 = vmul.f32 %v742_v8, %v552_v59 }
 0x25a   : > { %v746_v12 = vpop.eup %745  ;;  %v571_v13 = vmul.f32 %v744_v10, %v559_v60 }
 0x25b   : > { %v748_v14 = vpop.eup %747  ;;  %v580_v15 = vmul.f32 %v746_v12, %v568_v7 }
 0x25c   : > { %v750_v16 = vpop.eup %749  ;;  %v581_v17 = vmul.f32 %v748_v14, %v569_v9 }
 0x25d   : > { %v752_v18 = vpop.eup %751  ;;  %v582_v19 = vmul.f32 %v750_v16, %v570_v11  ;;  %v584_v20 = vmul.f32 %v580_v15, %v847_v25 }
 0x25e   : > { %v583_v21 = vmul.f32 %v752_v18, %v571_v13  ;;  %v585_v22 = vmul.f32 %v581_v17, %v849_v26 }
 0x25f   : > { %v586_v23 = vmul.f32 %v582_v19, %v851_v27 }
 0x260   : > { %v587_v24 = vmul.f32 %v583_v21, %v853_v28  ;;  %v592_v29 = vcombine.low %v584_v20, %v585_v22 }
 0x262   : > { %v593_v30 = vcombine.low %v586_v23, %v587_v24  ;;  %596 = vst [vmem:[%s319_s24] sm:$0xff] %v592_v29 }
 0x264   : > { %597 = vst [vmem:[%s319_s24 + $0x8] sm:$0xff] %v593_v30 }
 0x265 PF: > { %s16_s21 = sadd.s32 1, %s759_s21  }
 0x266   : > { %p13_p4 = scmp.ge.s32.totalorder %s16_s21, 6  }
 0x268   :  { %15 = sbr.rel (!%p13_p4) target bundleno = 1 (0x1), region = 86 }

// kernel: cap_conv2_forward.13
= control target key start
LH: loop header
LB: loop body
LE: loop exit
PB: predicated region body
PF: predicated region fallthrough
CT: control target
= control target key end

     0   :  { %s1909_s21 = smov 0   ;;  %s2992_s0 = inlined_call_operand.vmem [shape: f32[1,16,884], index: 0, kind: input, shape index: {}]   ;;  %s2993_s1 = inlined_call_operand.vmem [shape: bf16[4,4,400], index: 1, kind: input, shape index: {}]   ;;  %s2994_s2 = inlined_call_operand.vmem [shape: f32[4,4,1], index: 2, kind: input, shape index: {}]   ;;  %s2995_s3 = inlined_call_operand.vmem [shape: f32[4,4,1], index: 3, kind: input, shape index: {}]   ;;  %s2996_s4 = inlined_call_operand.vmem [shape: f32[4,4,1], index: 4, kind: input, shape index: {}]   ;;  %s2997_s5 = inlined_call_operand.vmem [shape: f32[1,800], index: 5, kind: input, shape index: {}]   ;;  %s2998_s6 = inlined_call_operand.vmem [shape: f32[4,4,800], index: 6, kind: output, shape index: {}]  }
   0x1 LB: > { %s1728_s22 = sadd.s32 4294967295, %s1853_s21   ;;  %p1732_p0 = scmp.ge.s32.totalorder %s1853_s21, 1  ;;  %s1853_s21 = sphi %s1909_s21, %s16_s21  }
   0x2   : > { %p239_p1 = scmp.lt.s32.totalorder %s1853_s21, 5 }
   0x4   : > { %p240_p2 = pnand %p1732_p0, %p239_p1 }
   0x5   : > { %v305_v0 = vld [vmem:[%s2992_s0 + $0x8] sm:$0xff] (!%p240_p2)  ;;  %v312_v1 = vld [vmem:[%s2992_s0 + $0x40] sm:$0xff] (!%p240_p2)  ;;  %v311_v4 = vld [vmem:[%s2992_s0 + $0x38] sm:$0xff] (!%p240_p2)  ;;  %s1855_s15 = smov (!%p240_p2), 127   ;;  %s1856_s16 = smov (!%p240_p2), 126   ;;  %vm346_vm0 = vcmask (!%p240_p2), 1039360   ;;  %v1029_v27 = vlaneseq (!%p240_p2) }
   0x6   : > { %243 = sbr.rel (%p240_p2) target bundleno = 1123 (0x463), region = 44  ;;  %v304_v2 = vld [vmem:[%s2992_s0] sm:$0xff] (!%p240_p2)  ;;  %v1926_v3 = vpack.c.bf16 (!%p240_p2), %v312_v1, %v305_v0  ;;  %v306_v5 = vld [vmem:[%s2992_s0 + $0x10] sm:$0xff] (!%p240_p2)  ;;  %v313_v6 = vld [vmem:[%s2992_s0 + $0x48] sm:$0xff] (!%p240_p2)  ;;  %s1857_s17 = smov (!%p240_p2), 125   ;;  %vm374_vm1 = vcmask (!%p240_p2), 1031168  }
   0x7   : > { %v1937_v7 = vpack.c.bf16 (!%p240_p2), %v311_v4, %v304_v2  ;;  %v307_v8 = vld [vmem:[%s2992_s0 + $0x18] sm:$0xff] (!%p240_p2)  ;;  %v314_v9 = vld [vmem:[%s2992_s0 + $0x50] sm:$0xff] (!%p240_p2)  ;;  %v1947_v10 = vpack.c.bf16 (!%p240_p2), %v313_v6, %v306_v5  ;;  %s1858_s18 = smov (!%p240_p2), 124   ;;  %s1859_s19 = smov (!%p240_p2), 108   ;;  %v308_v12 = vld [vmem:[%s2992_s0 + $0x20] sm:$0xff] (!%p240_p2)  ;;  %v2121_v31 = vshrl.u32 (!%p240_p2), %v1029_v27, 7 }
   0x8   : > { %334 = vrot.lane.b32.xlu0 (!%p240_p2), %v1926_v3, %s1855_s15  ;;  %v1949_v11 = vpack.c.bf16 (!%p240_p2), %v314_v9, %v307_v8  ;;  %1049 = vmatprep.subr.bf16.mxu0 (!%p240_p2), %v1926_v3  ;;  %s1860_s20 = smov (!%p240_p2), 109   ;;  %s1861_s23 = smov (!%p240_p2), 107   ;;  %v315_v13 = vld [vmem:[%s2992_s0 + $0x58] sm:$0xff] (!%p240_p2)  ;;  %v309_v15 = vld [vmem:[%s2992_s0 + $0x28] sm:$0xff] (!%p240_p2)  ;;  %v316_v16 = vld [vmem:[%s2992_s0 + $0x60] sm:$0xff] (!%p240_p2)  ;;  %vm3000_vm2 = vcmask (!%p240_p2), 1022976  }
   0x9   : > { %332 = vrot.lane.b32.xlu1 (!%p240_p2), %v1937_v7, %s1855_s15  ;;  %1050 = vmatpush1.bf16.msra.mxu0 (!%p240_p2), %v1937_v7  ;;  %s1862_s24 = smov (!%p240_p2), 106   ;;  %s1863_s25 = smov (!%p240_p2), 105   ;;  %v2033_v14 = vpack.c.bf16 (!%p240_p2), %v315_v13, %v308_v12  ;;  %v2055_v17 = vpack.c.bf16 (!%p240_p2), %v316_v16, %v309_v15  ;;  %v1870_v25 = vmov (!%p240_p2), 1983009808   ;;  %vm2999_vm3 = vcmask (!%p240_p2), 1014784  }
   0xa   : > { %1131 = vmatprep.subr.bf16.mxu1 (!%p240_p2), %v1949_v11  ;;  %s1864_s26 = smov (!%p240_p2), 104   ;;  %s1865_s7 = smov (!%p240_p2), 88   ;;  %v1027_v26 = vunpack.c.l.s4 (!%p240_p2), %v1870_v25  ;;  %vm458_vm4 = vcmask (!%p240_p2), 883712   ;;  %vm486_vm5 = vcmask (!%p240_p2), 875520   ;;  %vm514_vm6 = vcmask (!%p240_p2), 867328  }
   0xb   : > { %1132 = vmatpush1.bf16.msra.mxu1 (!%p240_p2), %v1947_v10  ;;  %s1866_s12 = smov (!%p240_p2), 87   ;;  %s1867_s13 = smov (!%p240_p2), 86   ;;  %vm542_vm7 = vcmask (!%p240_p2), 859136   ;;  %vm766_vm8 = vcmask (!%p240_p2), 891904   ;;  %vm570_vm9 = vcmask (!%p240_p2), 850944   ;;  %vm598_vm10 = vcmask (!%p240_p2), 719872  }
   0xc   : > { %336 = vrot.lane.b32.xlu0 (!%p240_p2), %v1947_v10, %s1855_s15  ;;  %s1868_s14 = smov (!%p240_p2), 85   ;;  %s1869_s27 = smov (!%p240_p2), 84   ;;  %v1028_v30 = vunpack.c.0.s8 (!%p240_p2), %v1027_v26  ;;  %vm626_vm11 = vcmask (!%p240_p2), 711680   ;;  %vm654_vm12 = vcmask (!%p240_p2), 703488   ;;  %vm682_vm13 = vcmask (!%p240_p2), 695296  }
   0xd   : > { %362 = vrot.lane.b32.xlu1 %v1926_v3, %s1856_s16  ;;  %p281_p3 = scmp.lt.s32.totalorder %s1728_s22, 3  ;;  %s1871_s9 = smov 68   ;;  %vm710_vm14 = vcmask 687104   ;;  %vm738_vm15 = vcmask 556032  }
   0xe   : > { %v2130_v33 = vsub.s32 %v1028_v30, %v2121_v31  ;;  %s1872_s10 = smov 67  }
   0xf   : > { %s3005_s22 = smov (!%p281_p3, %s1728_s22), 3 }
  0x10   : > { %364 = vrot.lane.b32.xlu0 %v1947_v10, %s1856_s16  ;;  %s1745_s28 = sshll.u32 %s3005_s22, 3 }
  0x11   : > { %338 = vrot.lane.b32.xlu1 %v1949_v11, %s1855_s15  ;;  %s285_s8 = scalar_lea.vmem %s2993_s1, %s1745_s28 }
  0x12   : > { %v2135_v36 = vld [vmem:[%s285_s8] sm:$0xff] }
  0x13   : > { %v2142_v37 = vrot.slane %v2135_v36, %v2130_v33 }
  0x14   : > { %360 = vrot.lane.b32.xlu0 %v1937_v7, %s1856_s16 }
  0x15   : > { %390 = vrot.lane.b32.xlu1 %v1926_v3, %s1857_s17  ;;  %v2150_v39 = vcombine.high %v2142_v37, %v2142_v37 }
  0x17   : > { %1081 = vmatprep.mubr.bf16.mxu0 %v2150_v39  ;;  %1163 = vmatprep.mubr.bf16.mxu1 %v2150_v39 }
  0x18   : > { %392 = vrot.lane.b32.xlu0 %v1947_v10, %s1857_s17 }
  0x19   : > { %366 = vrot.lane.b32.xlu1 %v1949_v11, %s1856_s16 }
  0x1c   : > { %388 = vrot.lane.b32.xlu0 %v1937_v7, %s1857_s17 }
  0x1d   : > { %418 = vrot.lane.b32.xlu1 %v1926_v3, %s1858_s18 }
  0x20   : > { %420 = vrot.lane.b32.xlu0 %v1947_v10, %s1858_s18 }
  0x21   : > { %394 = vrot.lane.b32.xlu1 %v1949_v11, %s1857_s17 }
  0x24   : > { %416 = vrot.lane.b32.xlu0 %v1937_v7, %s1858_s18 }
  0x25   : > { %446 = vrot.lane.b32.xlu1 %v1926_v3, %s1859_s19 }
  0x28   : > { %448 = vrot.lane.b32.xlu0 %v1947_v10, %s1859_s19 }
  0x29   : > { %444 = vrot.lane.b32.xlu1 %v1937_v7, %s1859_s19 }
  0x2c   : > { %754 = vrot.lane.b32.xlu0 %v1926_v3, %s1860_s20 }
  0x2d   : > { %756 = vrot.lane.b32.xlu1 %v1947_v10, %s1860_s20 }
  0x30   : > { %758 = vrot.lane.b32.xlu0 %v1949_v11, %s1860_s20 }
  0x31   : > { %752 = vrot.lane.b32.xlu1 %v1937_v7, %s1860_s20 }
  0x34   : > { %474 = vrot.lane.b32.xlu0 %v1926_v3, %s1861_s23 }
  0x35   : > { %476 = vrot.lane.b32.xlu1 %v1947_v10, %s1861_s23 }
  0x38   : > { %450 = vrot.lane.b32.xlu0 %v1949_v11, %s1859_s19 }
  0x39   : > { %472 = vrot.lane.b32.xlu1 %v1937_v7, %s1861_s23 }
  0x3c   : > { %502 = vrot.lane.b32.xlu0 %v1926_v3, %s1862_s24 }
  0x3d   : > { %504 = vrot.lane.b32.xlu1 %v1947_v10, %s1862_s24 }
  0x40   : > { %478 = vrot.lane.b32.xlu0 %v1949_v11, %s1861_s23 }
  0x41   : > { %500 = vrot.lane.b32.xlu1 %v1937_v7, %s1862_s24 }
  0x44   : > { %530 = vrot.lane.b32.xlu0 %v1926_v3, %s1863_s25 }
  0x45   : > { %532 = vrot.lane.b32.xlu1 %v1947_v10, %s1863_s25 }
  0x48   : > { %506 = vrot.lane.b32.xlu0 %v1949_v11, %s1862_s24 }
  0x49   : > { %528 = vrot.lane.b32.xlu1 %v1937_v7, %s1863_s25 }
  0x4c   : > { %558 = vrot.lane.b32.xlu0 %v1926_v3, %s1864_s26 }
  0x4d   : > { %560 = vrot.lane.b32.xlu1 %v1947_v10, %s1864_s26 }
  0x50   : > { %534 = vrot.lane.b32.xlu0 %v1949_v11, %s1863_s25 }
  0x51   : > { %556 = vrot.lane.b32.xlu1 %v1937_v7, %s1864_s26 }
  0x54   : > { %340 = vrot.lane.b32.xlu0 %v2033_v14, %s1855_s15 }
  0x55   : > { %586 = vrot.lane.b32.xlu1 %v1926_v3, %s1865_s7 }
  0x58   : > { %588 = vrot.lane.b32.xlu0 %v1947_v10, %s1865_s7 }
  0x59   : > { %584 = vrot.lane.b32.xlu1 %v1937_v7, %s1865_s7 }
  0x5c   : > { %368 = vrot.lane.b32.xlu0 %v2033_v14, %s1856_s16 }
  0x5d   : > { %614 = vrot.lane.b32.xlu1 %v1926_v3, %s1866_s12 }
  0x60   : > { %616 = vrot.lane.b32.xlu0 %v1947_v10, %s1866_s12 }
  0x61   : > { %342 = vrot.lane.b32.xlu1 %v2055_v17, %s1855_s15 }
  0x64   : > { %612 = vrot.lane.b32.xlu0 %v1937_v7, %s1866_s12 }
  0x65   : > { %396 = vrot.lane.b32.xlu1 %v2033_v14, %s1857_s17 }
  0x68   : > { %642 = vrot.lane.b32.xlu0 %v1926_v3, %s1867_s13 }
  0x69   : > { %644 = vrot.lane.b32.xlu1 %v1947_v10, %s1867_s13 }
  0x6c   : > { %370 = vrot.lane.b32.xlu0 %v2055_v17, %s1856_s16 }
  0x6d   : > { %640 = vrot.lane.b32.xlu1 %v1937_v7, %s1867_s13 }
  0x70   : > { %422 = vrot.lane.b32.xlu0 %v1949_v11, %s1858_s18 }
  0x71   : > { %424 = vrot.lane.b32.xlu1 %v2033_v14, %s1858_s18 }
  0x74   : > { %670 = vrot.lane.b32.xlu0 %v1926_v3, %s1868_s14 }
  0x75   : > { %672 = vrot.lane.b32.xlu1 %v1947_v10, %s1868_s14 }
  0x78   : > { %398 = vrot.lane.b32.xlu0 %v2055_v17, %s1857_s17 }
  0x79   : > { %668 = vrot.lane.b32.xlu1 %v1937_v7, %s1868_s14 }
  0x7a   : > { %v335_v18 = vpop.permute.xlu0 %334 }
  0x7b   : > { %v333_v19 = vpop.permute.xlu1 %332 }
  0x7c   : > { %452 = vrot.lane.b32.xlu0 %v2033_v14, %s1859_s19  ;;  %v2099_v23 = vsel %vm346_vm0, %v333_v19, %v335_v18 }
  0x7d   : > { %698 = vrot.lane.b32.xlu1 %v1926_v3, %s1869_s27 }
  0x7e   : > { %v2089_v20 = vpop.permute.xlu0 %336 }
  0x7f   : > { %v363_v21 = vpop.permute.xlu1 %362  ;;  %v2093_v22 = vsel %vm346_vm0, %v335_v18, %v2089_v20 }
  0x80   : > { %700 = vrot.lane.b32.xlu0 %v1947_v10, %s1869_s27  ;;  %1051 = vmatprep.subr.bf16.mxu0 %v2093_v22 }
  0x81   : > { %696 = vrot.lane.b32.xlu1 %v1937_v7, %s1869_s27  ;;  %1052 = vmatpush1.bf16.msra.mxu0 %v2099_v23 }
  0x82   : > { %v2106_v24 = vpop.permute.xlu0 %364 }
  0x83   : > { %v2108_v28 = vpop.permute.xlu1 %338  ;;  %v2112_v29 = vsel %vm374_vm1, %v363_v21, %v2106_v24 }
  0x84   : > { %760 = vrot.lane.b32.xlu0 %v2033_v14, %s1860_s20  ;;  %1053 = vmatprep.subr.bf16.mxu0 %v2112_v29  ;;  %v2208_v57 = vsel %vm346_vm0, %v2089_v20, %v2108_v28 }
  0x85   : > { %762 = vrot.lane.b32.xlu1 %v2055_v17, %s1860_s20 }
  0x86   : > { %v361_v32 = vpop.permute.xlu0 %360 }
  0x87   : > { %v391_v34 = vpop.permute.xlu1 %390  ;;  %v2133_v35 = vsel %vm374_vm1, %v361_v32, %v363_v21 }
  0x88   : > { %480 = vrot.lane.b32.xlu0 %v2033_v14, %s1861_s23  ;;  %1054 = vmatpush1.bf16.msra.mxu0 %v2133_v35 }
  0x89   : > { %726 = vrot.lane.b32.xlu1 %v1926_v3, %s1871_s9 }
  0x8a   : > { %v2146_v38 = vpop.permute.xlu0 %392 }
  0x8b   : > { %v2152_v40 = vpop.permute.xlu1 %366  ;;  %v2156_v41 = vsel %vm3000_vm2, %v391_v34, %v2146_v38 }
  0x8c   : > { %728 = vrot.lane.b32.xlu0 %v1947_v10, %s1871_s9  ;;  %1055 = vmatprep.subr.bf16.mxu0 %v2156_v41  ;;  %v2236_v1 = vsel %vm374_vm1, %v2106_v24, %v2152_v40 }
  0x8d   : > { %454 = vrot.lane.b32.xlu1 %v2055_v17, %s1859_s19 }
  0x8e   : > { %v389_v42 = vpop.permute.xlu0 %388 }
  0x8f   : > { %v419_v43 = vpop.permute.xlu1 %418  ;;  %v2166_v44 = vsel %vm3000_vm2, %v389_v42, %v391_v34 }
  0x90   : > { %724 = vrot.lane.b32.xlu0 %v1937_v7, %s1871_s9  ;;  %1056 = vmatpush1.bf16.msra.mxu0 %v2166_v44 }
  0x91   : > { %508 = vrot.lane.b32.xlu1 %v2033_v14, %s1862_s24 }
  0x92   : > { %v2173_v45 = vpop.permute.xlu0 %420 }
  0x93   : > { %v2175_v46 = vpop.permute.xlu1 %394  ;;  %v432_v47 = vsel %vm2999_vm3, %v419_v43, %v2173_v45 }
  0x94   : > { %775 = vrot.lane.b32.xlu0 %v1926_v3, %s1872_s10  ;;  %1057 = vmatprep.subr.bf16.mxu0 %v432_v47  ;;  %v2272_v12 = vsel %vm3000_vm2, %v2146_v38, %v2175_v46 }
  0x95   : > { %777 = vrot.lane.b32.xlu1 %v1947_v10, %s1872_s10 }
  0x96   : > { %v417_v48 = vpop.permute.xlu0 %416 }
  0x97   : > { %v447_v49 = vpop.permute.xlu1 %446  ;;  %v431_v50 = vsel %vm2999_vm3, %v417_v48, %v419_v43 }
  0x98   : > { %482 = vrot.lane.b32.xlu0 %v2055_v17, %s1861_s23  ;;  %1058 = vmatpush1.bf16.msra.mxu0 %v431_v50 }
  0x99   : > { %773 = vrot.lane.b32.xlu1 %v1937_v7, %s1872_s10 }
  0x9a   : > { %v2188_v51 = vpop.permute.xlu0 %448 }
  0x9b   : > { %v445_v52 = vpop.permute.xlu1 %444  ;;  %v2192_v53 = vsel %vm458_vm4, %v447_v49, %v2188_v51 }
  0x9c   : > { %536 = vrot.lane.b32.xlu0 %v2033_v14, %s1863_s25  ;;  %1059 = vmatprep.subr.bf16.mxu0 %v2192_v53  ;;  %v2198_v54 = vsel %vm458_vm4, %v445_v52, %v447_v49 }
  0x9d   : > { %789 = vrot.lane.b32.xlu1 %v2093_v22, %s1872_s10  ;;  %1060 = vmatpush1.bf16.msra.mxu0 %v2198_v54 }
  0x9e   : > { %v2203_v55 = vpop.permute.xlu0 %754 }
  0x9f   : > { %v757_v56 = vpop.permute.xlu1 %756 }
  0xa0   : > { %791 = vrot.lane.b32.xlu0 %v2208_v57, %s1872_s10  ;;  %v768_v21 = vsel %vm766_vm8, %v2203_v55, %v757_v56 }
  0xa1   : > { %510 = vrot.lane.b32.xlu1 %v2055_v17, %s1862_s24 }
  0xa2   : > { %v2214_v58 = vpop.permute.xlu0 %758 }
  0xa3   : > { %v753_v59 = vpop.permute.xlu1 %752  ;;  %v769_v22 = vsel %vm766_vm8, %v757_v56, %v2214_v58 }
  0xa4   : > { %787 = vrot.lane.b32.xlu0 %v2099_v23, %s1872_s10  ;;  %v767_v26 = vsel %vm766_vm8, %v753_v59, %v2203_v55 }
  0xa5   : > { %562 = vrot.lane.b32.xlu1 %v1949_v11, %s1864_s26 }
  0xa6   : > { %v475_v60 = vpop.permute.xlu0 %474 }
  0xa7   : > { %v2220_v61 = vpop.permute.xlu1 %476 }
  0xa8   : > { %564 = vrot.lane.b32.xlu0 %v2033_v14, %s1864_s26  ;;  %v2226_v62 = vsel %vm486_vm5, %v475_v60, %v2220_v61 }
  0xa9   : > { %803 = vrot.lane.b32.xlu1 %v2112_v29, %s1872_s10  ;;  %1061 = vmatprep.subr.bf16.mxu0 %v2226_v62 }
  0xaa   : > { %v2231_v63 = vpop.permute.xlu0 %450 }
  0xab   : > { %v473_v0 = vpop.permute.xlu1 %472  ;;  %v2329_v38 = vsel %vm458_vm4, %v2188_v51, %v2231_v63 }
  0xac   : > { %805 = vrot.lane.b32.xlu0 %v2236_v1, %s1872_s10  ;;  %v2241_v2 = vsel %vm486_vm5, %v473_v0, %v475_v60 }
  0xad   : > { %538 = vrot.lane.b32.xlu1 %v2055_v17, %s1863_s25  ;;  %1062 = vmatpush1.bf16.msra.mxu0 %v2241_v2 }
  0xae   : > { %v503_v3 = vpop.permute.xlu0 %502 }
  0xaf   : > { %v2246_v4 = vpop.permute.xlu1 %504 }
  0xb0   : > { %801 = vrot.lane.b32.xlu0 %v2133_v35, %s1872_s10  ;;  %v2252_v5 = vsel %vm514_vm6, %v503_v3, %v2246_v4 }
  0xb1   : > { %590 = vrot.lane.b32.xlu1 %v1949_v11, %s1865_s7  ;;  %1063 = vmatprep.subr.bf16.mxu0 %v2252_v5 }
  0xb2   : > { %v2257_v6 = vpop.permute.xlu0 %478 }
  0xb3   : > { %v501_v7 = vpop.permute.xlu1 %500 }
  0xb4   : > { %592 = vrot.lane.b32.xlu0 %v2033_v14, %s1865_s7  ;;  %v2262_v8 = vsel %vm514_vm6, %v501_v7, %v503_v3  ;;  %v310_v7 = vld [vmem:[%s2992_s0 + $0x30] sm:$0xff] }
  0xb5   : > { %817 = vrot.lane.b32.xlu1 %v2156_v41, %s1872_s10  ;;  %1064 = vmatpush1.bf16.msra.mxu0 %v2262_v8 }
  0xb6   : > { %v531_v9 = vpop.permute.xlu0 %530 }
  0xb7   : > { %v2267_v10 = vpop.permute.xlu1 %532 }
  0xb8   : > { %819 = vrot.lane.b32.xlu0 %v2272_v12, %s1872_s10  ;;  %v2278_v13 = vsel %vm542_vm7, %v531_v9, %v2267_v10 }
  0xb9   : > { %815 = vrot.lane.b32.xlu1 %v2166_v44, %s1872_s10  ;;  %1065 = vmatprep.subr.bf16.mxu0 %v2278_v13 }
  0xba   : > { %v2283_v15 = vpop.permute.xlu0 %506 }
  0xbb   : > { %v529_v16 = vpop.permute.xlu1 %528  ;;  %v2393_v59 = vsel %vm514_vm6, %v2246_v4, %v2283_v15 }
  0xbc   : > { %618 = vrot.lane.b32.xlu0 %v1949_v11, %s1866_s12  ;;  %v2288_v18 = vsel %vm542_vm7, %v529_v16, %v531_v9 }
  0xbd   : > { %620 = vrot.lane.b32.xlu1 %v2033_v14, %s1866_s12  ;;  %1066 = vmatpush1.bf16.msra.mxu0 %v2288_v18 }
  0xbe   : > { %v559_v19 = vpop.permute.xlu0 %558 }
  0xbf   : > { %v2293_v20 = vpop.permute.xlu1 %560 }
  0xc0   : > { %831 = vrot.lane.b32.xlu0 %v768_v21, %s1872_s10  ;;  %v572_v23 = vsel %vm570_vm9, %v559_v19, %v2293_v20 }
  0xc1   : > { %833 = vrot.lane.b32.xlu1 %v769_v22, %s1872_s10  ;;  %1067 = vmatprep.subr.bf16.mxu0 %v572_v23 }
  0xc2   : > { %v2303_v24 = vpop.permute.xlu0 %534 }
  0xc3   : > { %v557_v25 = vpop.permute.xlu1 %556  ;;  %v2415_v4 = vsel %vm542_vm7, %v2267_v10, %v2303_v24 }
  0xc4   : > { %829 = vrot.lane.b32.xlu0 %v767_v26, %s1872_s10  ;;  %v571_v27 = vsel %vm570_vm9, %v557_v25, %v559_v19 }
  0xc5   : > { %646 = vrot.lane.b32.xlu1 %v1949_v11, %s1867_s13  ;;  %1068 = vmatpush1.bf16.msra.mxu0 %v571_v27 }
  0xc6   : > { %v2311_v29 = vpop.permute.xlu0 %340 }
  0xc7   : > { %v587_v30 = vpop.permute.xlu1 %586  ;;  %v2316_v32 = vsel %vm346_vm0, %v2108_v28, %v2311_v29 }
  0xc8   : > { %1133 = vmatprep.subr.bf16.mxu1 %v2316_v32  ;;  %648 = vrot.lane.b32.xlu0 %v2033_v14, %s1867_s13 }
  0xc9   : > { %845 = vrot.lane.b32.xlu1 %v2192_v53, %s1872_s10  ;;  %1134 = vmatpush1.bf16.msra.mxu1 %v2208_v57 }
  0xca   : > { %v2324_v34 = vpop.permute.xlu0 %588 }
  0xcb   : > { %v585_v35 = vpop.permute.xlu1 %584  ;;  %v600_v28 = vsel %vm598_vm10, %v587_v30, %v2324_v34 }
  0xcc   : > { %847 = vrot.lane.b32.xlu0 %v2329_v38, %s1872_s10  ;;  %1069 = vmatprep.subr.bf16.mxu0 %v600_v28  ;;  %v599_v41 = vsel %vm598_vm10, %v585_v35, %v587_v30 }
  0xcd   : > { %843 = vrot.lane.b32.xlu1 %v2198_v54, %s1872_s10  ;;  %1070 = vmatpush1.bf16.msra.mxu0 %v599_v41 }
  0xce   : > { %v2338_v42 = vpop.permute.xlu0 %368 }
  0xcf   : > { %v615_v43 = vpop.permute.xlu1 %614  ;;  %v2343_v44 = vsel %vm374_vm1, %v2152_v40, %v2338_v42  ;;  %v2360_v40 = vsel %vm486_vm5, %v2220_v61, %v2257_v6 }
  0xd0   : > { %1135 = vmatprep.subr.bf16.mxu1 %v2343_v44  ;;  %674 = vrot.lane.b32.xlu0 %v1949_v11, %s1868_s14 }
  0xd1   : > { %676 = vrot.lane.b32.xlu1 %v2033_v14, %s1868_s14  ;;  %1136 = vmatpush1.bf16.msra.mxu1 %v2236_v1 }
  0xd2   : > { %v2351_v47 = vpop.permute.xlu0 %616 }
  0xd3   : > { %v2353_v48 = vpop.permute.xlu1 %342  ;;  %v628_v49 = vsel %vm626_vm11, %v615_v43, %v2351_v47 }
  0xd4   : > { %859 = vrot.lane.b32.xlu0 %v2226_v62, %s1872_s10  ;;  %1071 = vmatprep.subr.bf16.mxu0 %v628_v49 }
  0xd5   : > { %861 = vrot.lane.b32.xlu1 %v2360_v40, %s1872_s10 }
  0xd6   : > { %v613_v50 = vpop.permute.xlu0 %612 }
  0xd7   : > { %v2366_v51 = vpop.permute.xlu1 %396  ;;  %v627_v52 = vsel %vm626_vm11, %v613_v50, %v615_v43 }
  0xd8   : > { %857 = vrot.lane.b32.xlu0 %v2241_v2, %s1872_s10  ;;  %1072 = vmatpush1.bf16.msra.mxu0 %v627_v52  ;;  %v2374_v53 = vsel %vm3000_vm2, %v2175_v46, %v2366_v51 }
  0xd9   : > { %702 = vrot.lane.b32.xlu1 %v1949_v11, %s1869_s27  ;;  %1137 = vmatprep.subr.bf16.mxu1 %v2374_v53 }
  0xda   : > { %1138 = vmatpush1.bf16.msra.mxu1 %v2272_v12  ;;  %v643_v54 = vpop.permute.xlu0 %642 }
  0xdb   : > { %v2380_v55 = vpop.permute.xlu1 %644 }
  0xdc   : > { %704 = vrot.lane.b32.xlu0 %v2033_v14, %s1869_s27  ;;  %v656_v56 = vsel %vm654_vm12, %v643_v54, %v2380_v55 }
  0xdd   : > { %873 = vrot.lane.b32.xlu1 %v2252_v5, %s1872_s10  ;;  %1073 = vmatprep.subr.bf16.mxu0 %v656_v56 }
  0xde   : > { %v2388_v46 = vpop.permute.xlu0 %370 }
  0xdf   : > { %v641_v57 = vpop.permute.xlu1 %640 }
  0xe0   : > { %875 = vrot.lane.b32.xlu0 %v2393_v59, %s1872_s10  ;;  %v655_v60 = vsel %vm654_vm12, %v641_v57, %v643_v54 }
  0xe1   : > { %871 = vrot.lane.b32.xlu1 %v2262_v8, %s1872_s10  ;;  %1074 = vmatpush1.bf16.msra.mxu0 %v655_v60  ;;  %v317_v8 = vld [vmem:[%s2992_s0 + $0x68] sm:$0xff] }
  0xe2   : > { %v423_v61 = vpop.permute.xlu0 %422  ;;  %v2436_v12 = vpack.c.bf16 %v317_v8, %v310_v7 }
  0xe3   : > { %v2400_v62 = vpop.permute.xlu1 %424  ;;  %v433_v0 = vsel %vm2999_vm3, %v2173_v45, %v423_v61 }
  0xe4   : > { %730 = vrot.lane.b32.xlu0 %v1949_v11, %s1871_s9  ;;  %v434_v1 = vsel %vm2999_vm3, %v423_v61, %v2400_v62  ;;  %vm899_vm3 = vcmask 547840  }
  0xe5   : > { %732 = vrot.lane.b32.xlu1 %v2033_v14, %s1871_s9  ;;  %1139 = vmatprep.subr.bf16.mxu1 %v434_v1 }
  0xe6   : > { %1140 = vmatpush1.bf16.msra.mxu1 %v433_v0  ;;  %v671_v2 = vpop.permute.xlu0 %670 }
  0xe7   : > { %v2410_v3 = vpop.permute.xlu1 %672 }
  0xe8   : > { %887 = vrot.lane.b32.xlu0 %v2278_v13, %s1872_s10  ;;  %v684_v45 = vsel %vm682_vm13, %v671_v2, %v2410_v3 }
  0xe9   : > { %889 = vrot.lane.b32.xlu1 %v2415_v4, %s1872_s10  ;;  %1075 = vmatprep.subr.bf16.mxu0 %v684_v45 }
  0xea   : > { %v2423_v5 = vpop.permute.xlu0 %398 }
  0xeb   : > { %v669_v9 = vpop.permute.xlu1 %668  ;;  %v2497_v28 = vsel %vm3000_vm2, %v2366_v51, %v2423_v5  ;;  %vm1045_vm2 = vcmask 130048  }
  0xec   : > { %885 = vrot.lane.b32.xlu0 %v2288_v18, %s1872_s10  ;;  %v683_v10 = vsel %vm682_vm13, %v669_v9, %v671_v2 }
  0xed   : > { %779 = vrot.lane.b32.xlu1 %v1949_v11, %s1872_s10  ;;  %1076 = vmatpush1.bf16.msra.mxu0 %v683_v10 }
  0xee   : > { %v2438_v13 = vpop.permute.xlu0 %452 }
  0xef   : > { %v699_v16 = vpop.permute.xlu1 %698  ;;  %v2443_v19 = vsel %vm458_vm4, %v2231_v63, %v2438_v13  ;;  %v2460_v63 = vsel %vm346_vm0, %v2311_v29, %v2353_v48  ;;  %v2476_v29 = vsel %vm374_vm1, %v2338_v42, %v2388_v46 }
  0xf0   : > { %781 = vrot.lane.b32.xlu0 %v2033_v14, %s1872_s10  ;;  %1141 = vmatprep.subr.bf16.mxu1 %v2443_v19 }
  0xf1   : > { %344 = vrot.lane.b32.xlu1 %v2436_v12, %s1855_s15  ;;  %1142 = vmatpush1.bf16.msra.mxu1 %v2329_v38  ;;  %s2817_s15 = sshll.u32 %s3005_s22, 2 }
  0xf2   : > { %v2451_v11 = vpop.permute.xlu0 %700 }
  0xf3   : > { %v697_v18 = vpop.permute.xlu1 %696  ;;  %v712_v21 = vsel %vm710_vm14, %v699_v16, %v2451_v11 }
  0xf4   : > { %793 = vrot.lane.b32.xlu0 %v2316_v32, %s1872_s10  ;;  %1077 = vmatprep.subr.bf16.mxu0 %v712_v21  ;;  %v711_v22 = vsel %vm710_vm14, %v697_v18, %v699_v16  ;;  %v1025_v32 = vcombine.high %v2135_v36, %v2135_v36 }
  0xf5   : > { %795 = vrot.lane.b32.xlu1 %v2460_v63, %s1872_s10  ;;  %1078 = vmatpush1.bf16.msra.mxu0 %v711_v22 }
  0xf6   : > { %v761_v23 = vpop.permute.xlu0 %760  ;;  %v2502_v36 = vrot.slane %v1025_v32, %v2130_v33 }
  0xf7   : > { %v2465_v25 = vpop.permute.xlu1 %762  ;;  %v770_v50 = vsel %vm766_vm8, %v2214_v58, %v761_v23 }
  0xf8   : > { %372 = vrot.lane.b32.xlu0 %v2436_v12, %s1856_s16  ;;  %v2513_v49 = vcombine.high %v2502_v36, %v2502_v36 }
  0xf9   : > { %807 = vrot.lane.b32.xlu1 %v2343_v44, %s1872_s10 }
  0xfa   : > { %v2471_v26 = vpop.permute.xlu0 %480 }
  0xfb   : > { %v727_v27 = vpop.permute.xlu1 %726  ;;  %v490_v30 = vsel %vm486_vm5, %v2257_v6, %v2471_v26 }
  0xfc   : > { %809 = vrot.lane.b32.xlu0 %v2476_v29, %s1872_s10  ;;  %1143 = vmatprep.subr.bf16.mxu1 %v490_v30 }
  0xfd   : > { %400 = vrot.lane.b32.xlu1 %v2436_v12, %s1857_s17  ;;  %1144 = vmatpush1.bf16.msra.mxu1 %v2360_v40 }
  0xfe   : > { %v2488_v35 = vpop.permute.xlu0 %728 }
  0xff   : > { %v2490_v38 = vpop.permute.xlu1 %454  ;;  %v740_v6 = vsel %vm738_vm15, %v727_v27, %v2488_v35 }
 0x100   : > { %821 = vrot.lane.b32.xlu0 %v2374_v53, %s1872_s10  ;;  %1079 = vmatprep.subr.bf16.mxu0 %v740_v6  ;;  %v2541_v57 = vsel %vm458_vm4, %v2438_v13, %v2490_v38 }
 0x101   : > { %823 = vrot.lane.b32.xlu1 %v2497_v28, %s1872_s10 }
 0x102   : > { %v725_v41 = vpop.permute.xlu0 %724 }
 0x103   : > { %v509_v42 = vpop.permute.xlu1 %508  ;;  %v739_v43 = vsel %vm738_vm15, %v725_v41, %v727_v27 }
 0x104   : > { %426 = vrot.lane.b32.xlu0 %v2055_v17, %s1858_s18  ;;  %1080 = vmatpush1.bf16.msra.mxu0 %v739_v43  ;;  %v518_v44 = vsel %vm514_vm6, %v2283_v15, %v509_v42  ;;  %v771_v15 = vsel %vm766_vm8, %v761_v23, %v2465_v25 }
 0x105   : > { %428 = vrot.lane.b32.xlu1 %v2436_v12, %s1858_s18  ;;  %1145 = vmatprep.subr.bf16.mxu1 %v518_v44  ;;  %s289_s18 = scalar_lea.vmem %s2994_s2, %s2817_s15 }
 0x106   : > { %1146 = vmatpush1.bf16.msra.mxu1 %v2393_v59  ;;  %v776_v33 = vpop.permute.xlu0 %775 }
 0x107   : > { %v2518_v40 = vpop.permute.xlu1 %777  ;;  %1082 = vmatmul.mubr.bf16.vlgmr.msra.gmra.mrb[0].mxu0 %v2142_v37 }
 0x108   : > { %835 = vrot.lane.b32.xlu0 %v770_v50, %s1872_s10  ;;  %v901_v51 = vsel %vm899_vm3, %v776_v33, %v2518_v40  ;;  %1739 = vmatprep.mubr.msk.bf16.mxu0 %vm1045_vm2, %v2513_v49 }
 0x109   : > { %837 = vrot.lane.b32.xlu1 %v771_v15, %s1872_s10  ;;  %1090 = vmatprep.subr.bf16.mxu0 %v901_v51 }
 0x10a   : > { %v2531_v52 = vpop.permute.xlu0 %482 }
 0x10b   : > { %v774_v53 = vpop.permute.xlu1 %773 }
 0x10c   : > { %v900_v58 = vsel %vm899_vm3, %v774_v53, %v776_v33  ;;  %456 = vrot.lane.b32.xlu0 %v2436_v12, %s1859_s19 }
 0x10d   : > { %849 = vrot.lane.b32.xlu1 %v2443_v19, %s1872_s10  ;;  %1091 = vmatpush1.bf16.msra.mxu0 %v900_v58 }
 0x10e   : > { %v537_v54 = vpop.permute.xlu0 %536 }
 0x10f   : > { %v790_v56 = vpop.permute.xlu1 %789  ;;  %v546_v59 = vsel %vm542_vm7, %v2303_v24, %v537_v54 }
 0x110   : > { %851 = vrot.lane.b32.xlu0 %v2541_v57, %s1872_s10  ;;  %1147 = vmatprep.subr.bf16.mxu1 %v546_v59 }
 0x111   : > { %764 = vrot.lane.b32.xlu1 %v2436_v12, %s1860_s20  ;;  %1148 = vmatpush1.bf16.msra.mxu1 %v2415_v4  ;;  %v2563_v4 = vsel %vm486_vm5, %v2471_v26, %v2531_v52 }
 0x112   : > { %v2550_v60 = vpop.permute.xlu0 %791 }
 0x113   : > { %v2552_v61 = vpop.permute.xlu1 %510  ;;  %v907_v0 = vsel %vm899_vm3, %v790_v56, %v2550_v60 }
 0x114   : > { %484 = vrot.lane.b32.xlu0 %v2436_v12, %s1861_s23  ;;  %1092 = vmatprep.subr.bf16.mxu0 %v907_v0  ;;  %v2576_v9 = vsel %vm514_vm6, %v509_v42, %v2552_v61 }
 0x115   : > { %863 = vrot.lane.b32.xlu1 %v490_v30, %s1872_s10 }
 0x116   : > { %v788_v24 = vpop.permute.xlu0 %787 }
 0x117   : > { %v906_v1 = vsel %vm899_vm3, %v788_v24, %v790_v56  ;;  %v563_v2 = vpop.permute.xlu1 %562  ;;  %v1873_v56 = vmov 0  }
 0x118   : > { %865 = vrot.lane.b32.xlu0 %v2563_v4, %s1872_s10  ;;  %1093 = vmatpush1.bf16.msra.mxu0 %v906_v1  ;;  %v573_v10 = vsel %vm570_vm9, %v2293_v20, %v563_v2 }
 0x119   : > { %512 = vrot.lane.b32.xlu1 %v2436_v12, %s1862_s24  ;;  %1815 = vset.pattern.permute.xlu0 %v1873_v56 }
 0x11a   : > { %v2569_v45 = vpop.permute.xlu0 %564  ;;  %1814 = vset.pattern.permute.xlu1 %v1873_v56 }
 0x11b   : > { %v804_v7 = vpop.permute.xlu1 %803  ;;  %v574_v8 = vsel %vm570_vm9, %v563_v2, %v2569_v45 }
 0x11c   : > { %877 = vrot.lane.b32.xlu0 %v518_v44, %s1872_s10  ;;  %1149 = vmatprep.subr.bf16.mxu1 %v574_v8 }
 0x11d   : > { %879 = vrot.lane.b32.xlu1 %v2576_v9, %s1872_s10  ;;  %1150 = vmatpush1.bf16.msra.mxu1 %v573_v10 }
 0x11e   : > { %v2582_v13 = vpop.permute.xlu0 %805 }
 0x11f   : > { %v2584_v16 = vpop.permute.xlu1 %538  ;;  %v913_v19 = vsel %vm899_vm3, %v804_v7, %v2582_v13 }
 0x120   : > { %540 = vrot.lane.b32.xlu0 %v2436_v12, %s1863_s25  ;;  %1094 = vmatprep.subr.bf16.mxu0 %v913_v19  ;;  %v2593_v20 = vsel %vm542_vm7, %v537_v54, %v2584_v16  ;;  %s293_s25 = scalar_lea.vmem %s2995_s3, %s2817_s15 }
 0x121   : > { %891 = vrot.lane.b32.xlu1 %v546_v59, %s1872_s10 }
 0x122   : > { %v802_v18 = vpop.permute.xlu0 %801 }
 0x123   : > { %v912_v21 = vsel %vm899_vm3, %v802_v18, %v804_v7  ;;  %v591_v22 = vpop.permute.xlu1 %590 }
 0x124   : > { %893 = vrot.lane.b32.xlu0 %v2593_v20, %s1872_s10  ;;  %1095 = vmatpush1.bf16.msra.mxu0 %v912_v21  ;;  %v601_v30 = vsel %vm598_vm10, %v2324_v34, %v591_v22 }
 0x125   : > { %566 = vrot.lane.b32.xlu1 %v2055_v17, %s1864_s26 }
 0x126   : > { %v2600_v23 = vpop.permute.xlu0 %592 }
 0x127   : > { %v818_v26 = vpop.permute.xlu1 %817  ;;  %v602_v27 = vsel %vm598_vm10, %v591_v22, %v2600_v23 }
 0x128   : > { %568 = vrot.lane.b32.xlu0 %v2436_v12, %s1864_s26  ;;  %1151 = vmatprep.subr.bf16.mxu1 %v602_v27 }
 0x129   : > { %594 = vrot.lane.b32.xlu1 %v2055_v17, %s1865_s7  ;;  %1152 = vmatpush1.bf16.msra.mxu1 %v601_v30 }
 0x12a   : > { %v2610_v32 = vpop.permute.xlu0 %819 }
 0x12b   : > { %v816_v6 = vpop.permute.xlu1 %815  ;;  %v919_v41 = vsel %vm899_vm3, %v818_v26, %v2610_v32 }
 0x12c   : > { %v918_v42 = vsel %vm899_vm3, %v816_v6, %v818_v26  ;;  %596 = vrot.lane.b32.xlu0 %v2436_v12, %s1865_s7  ;;  %1096 = vmatprep.subr.bf16.mxu0 %v919_v41 }
 0x12d   : > { %622 = vrot.lane.b32.xlu1 %v2055_v17, %s1866_s12  ;;  %1097 = vmatpush1.bf16.msra.mxu0 %v918_v42 }
 0x12e   : > { %v619_v34 = vpop.permute.xlu0 %618 }
 0x12f   : > { %v2619_v43 = vpop.permute.xlu1 %620  ;;  %v629_v44 = vsel %vm626_vm11, %v2351_v47, %v619_v34 }
 0x130   : > { %624 = vrot.lane.b32.xlu0 %v2436_v12, %s1866_s12  ;;  %v630_v33 = vsel %vm626_vm11, %v619_v34, %v2619_v43  ;;  %s297_s12 = scalar_lea.vmem %s2996_s4, %s2817_s15 }
 0x131   : > { %650 = vrot.lane.b32.xlu1 %v2055_v17, %s1867_s13  ;;  %1153 = vmatprep.subr.bf16.mxu1 %v630_v33 }
 0x132   : > { %1154 = vmatpush1.bf16.msra.mxu1 %v629_v44  ;;  %v832_v50 = vpop.permute.xlu0 %831 }
 0x133   : > { %v2629_v15 = vpop.permute.xlu1 %833 }
 0x134   : > { %652 = vrot.lane.b32.xlu0 %v2436_v12, %s1867_s13  ;;  %v925_v47 = vsel %vm899_vm3, %v832_v50, %v2629_v15  ;;  %s1786_s13 = smul.u32 28, %s3005_s22 }
 0x135   : > { %678 = vrot.lane.b32.xlu1 %v2055_v17, %s1868_s14  ;;  %1098 = vmatprep.subr.bf16.mxu0 %v925_v47 }
 0x136   : > { %v830_v51 = vpop.permute.xlu0 %829  ;;  %s302_s22 = scalar_lea.vmem %s2998_s6, %s1786_s13 }
 0x137   : > { %v924_v53 = vsel %vm899_vm3, %v830_v51, %v832_v50  ;;  %v647_v58 = vpop.permute.xlu1 %646 }
 0x138   : > { %680 = vrot.lane.b32.xlu0 %v2436_v12, %s1868_s14  ;;  %1099 = vmatpush1.bf16.msra.mxu0 %v924_v53  ;;  %v657_v24 = vsel %vm654_vm12, %v2380_v55, %v647_v58 }
 0x139   : > { %706 = vrot.lane.b32.xlu1 %v2055_v17, %s1869_s27 }
 0x13a   : > { %v2642_v54 = vpop.permute.xlu0 %648 }
 0x13b   : > { %v846_v59 = vpop.permute.xlu1 %845  ;;  %v658_v0 = vsel %vm654_vm12, %v647_v58, %v2642_v54 }
 0x13c   : > { %708 = vrot.lane.b32.xlu0 %v2436_v12, %s1869_s27  ;;  %1155 = vmatprep.subr.bf16.mxu1 %v658_v0 }
 0x13d   : > { %734 = vrot.lane.b32.xlu1 %v2055_v17, %s1871_s9  ;;  %1156 = vmatpush1.bf16.msra.mxu1 %v657_v24 }
 0x13e   : > { %v2654_v1 = vpop.permute.xlu0 %847 }
 0x13f   : > { %v844_v2 = vpop.permute.xlu1 %843  ;;  %v931_v7 = vsel %vm899_vm3, %v846_v59, %v2654_v1 }
 0x140   : > { %v930_v8 = vsel %vm899_vm3, %v844_v2, %v846_v59  ;;  %736 = vrot.lane.b32.xlu0 %v2436_v12, %s1871_s9  ;;  %1100 = vmatprep.subr.bf16.mxu0 %v931_v7 }
 0x141   : > { %783 = vrot.lane.b32.xlu1 %v2055_v17, %s1872_s10  ;;  %1101 = vmatpush1.bf16.msra.mxu0 %v930_v8 }
 0x142   : > { %v675_v55 = vpop.permute.xlu0 %674 }
 0x143   : > { %v2663_v10 = vpop.permute.xlu1 %676  ;;  %v685_v19 = vsel %vm682_vm13, %v2410_v3, %v675_v55 }
 0x144   : > { %785 = vrot.lane.b32.xlu0 %v2436_v12, %s1872_s10  ;;  %v686_v18 = vsel %vm682_vm13, %v675_v55, %v2663_v10 }
 0x145   : > { %1157 = vmatprep.subr.bf16.mxu1 %v686_v18 }
 0x146   : > { %1158 = vmatpush1.bf16.msra.mxu1 %v685_v19  ;;  %v860_v21 = vpop.permute.xlu0 %859 }
 0x147   : > { %v2671_v22 = vpop.permute.xlu1 %861 }
 0x148   : > { %v937_v26 = vsel %vm899_vm3, %v860_v21, %v2671_v22 }
 0x149   : > { %1102 = vmatprep.subr.bf16.mxu0 %v937_v26 }
 0x14a   : > { %v858_v27 = vpop.permute.xlu0 %857 }
 0x14b   : > { %v936_v30 = vsel %vm899_vm3, %v858_v27, %v860_v21  ;;  %v703_v6 = vpop.permute.xlu1 %702 }
 0x14c   : > { %1103 = vmatpush1.bf16.msra.mxu0 %v936_v30  ;;  %v713_v34 = vsel %vm710_vm14, %v2451_v11, %v703_v6 }
 0x14e   : > { %v2676_v3 = vpop.permute.xlu0 %704 }
 0x14f   : > { %v874_v41 = vpop.permute.xlu1 %873  ;;  %v714_v42 = vsel %vm710_vm14, %v703_v6, %v2676_v3 }
 0x150   : > { %1159 = vmatprep.subr.bf16.mxu1 %v714_v42 }
 0x151   : > { %1160 = vmatpush1.bf16.msra.mxu1 %v713_v34 }
 0x152   : > { %v2682_v44 = vpop.permute.xlu0 %875 }
 0x153   : > { %v872_v33 = vpop.permute.xlu1 %871  ;;  %v943_v50 = vsel %vm899_vm3, %v874_v41, %v2682_v44 }
 0x154   : > { %v942_v47 = vsel %vm899_vm3, %v872_v33, %v874_v41  ;;  %1104 = vmatprep.subr.bf16.mxu0 %v943_v50 }
 0x155   : > { %1105 = vmatpush1.bf16.msra.mxu0 %v942_v47 }
 0x156   : > { %v731_v51 = vpop.permute.xlu0 %730 }
 0x157   : > { %v2687_v53 = vpop.permute.xlu1 %732  ;;  %v741_v58 = vsel %vm738_vm15, %v2488_v35, %v731_v51 }
 0x158   : > { %v742_v11 = vsel %vm738_vm15, %v731_v51, %v2687_v53 }
 0x159   : > { %1161 = vmatprep.subr.bf16.mxu1 %v742_v11 }
 0x15a   : > { %1162 = vmatpush1.bf16.msra.mxu1 %v741_v58  ;;  %v888_v59 = vpop.permute.xlu0 %887 }
 0x15b   : > { %v2693_v0 = vpop.permute.xlu1 %889 }
 0x15c   : > { %v949_v24 = vsel %vm899_vm3, %v888_v59, %v2693_v0 }
 0x15d   : > { %1106 = vmatprep.subr.bf16.mxu0 %v949_v24  ;;  %1164 = vmatmul.mubr.bf16.vlgmr.msra.gmra.mrb[0].mxu1 %v2142_v37 }
 0x15e   : > { %v886_v2 = vpop.permute.xlu0 %885  ;;  %1740 = vmatprep.mubr.msk.bf16.mxu1 %vm1045_vm2, %v2513_v49 }
 0x15f   : > { %v948_v35 = vsel %vm899_vm3, %v886_v2, %v888_v59  ;;  %v780_v7 = vpop.permute.xlu1 %779 }
 0x160   : > { %1107 = vmatpush1.bf16.msra.mxu0 %v948_v35 }
 0x161   : > { %1213 = vmatprep.subr.bf16.mxu0 %v2055_v17  ;;  %v902_v17 = vsel %vm899_vm3, %v2518_v40, %v780_v7 }
 0x162   : > { %v2702_v8 = vpop.permute.xlu0 %781 }
 0x163   : > { %v2704_v55 = vpop.permute.xlu1 %344  ;;  %v903_v19 = vsel %vm899_vm3, %v780_v7, %v2702_v8  ;;  %1123 = vmatmul.mubr.bf16.vlgmr.msra.gmra.mrb[0].mxu0 %v2502_v36 }
 0x164   : > { %799 = vrot.lane.b32.xlu0 %v2704_v55, %s1872_s10  ;;  %1172 = vmatprep.subr.bf16.mxu1 %v903_v19  ;;  %v352_v18 = vsel %vm346_vm0, %v2353_v48, %v2704_v55  ;;  %vm3001_vm0 = vcmask 1022976  }
 0x165   : > { %797 = vrot.lane.b32.xlu1 %v352_v18, %s1872_s10  ;;  %1214 = vmatpush1.bf16.msra.mxu0 %v2033_v14 }
 0x166   : > { %1173 = vmatpush1.bf16.msra.mxu1 %v902_v17  ;;  %1215 = vmatprep.subr.bf16.mxu0 %v352_v18  ;;  %v794_v21 = vpop.permute.xlu0 %793 }
 0x167   : > { %v908_v26 = vsel %vm899_vm3, %v2550_v60, %v794_v21  ;;  %v2720_v27 = vpop.permute.xlu1 %795  ;;  %1245 = vmatprep.mubr.bf16.mxu0 %v2150_v39 }
 0x168   : > { %v909_v48 = vsel %vm899_vm3, %v794_v21, %v2720_v27 }
 0x169   : > { %1174 = vmatprep.subr.bf16.mxu1 %v909_v48  ;;  %1216 = vmatpush1.bf16.msra.mxu0 %v2460_v63 }
 0x16a   : > { %1175 = vmatpush1.bf16.msra.mxu1 %v908_v26  ;;  %v2726_v40 = vpop.permute.xlu0 %372 }
 0x16b   : > { %v808_v14 = vpop.permute.xlu1 %807  ;;  %813 = vrot.lane.b32.xlu0 %v2726_v40, %s1872_s10  ;;  %v380_v60 = vsel %vm374_vm1, %v2388_v46, %v2726_v40  ;;  %vm3002_vm1 = vcmask 1014784  }
 0x16c   : > { %811 = vrot.lane.b32.xlu1 %v380_v60, %s1872_s10  ;;  %1217 = vmatprep.subr.bf16.mxu0 %v380_v60  ;;  %v914_v46 = vsel %vm899_vm3, %v2582_v13, %v808_v14 }
 0x16d   : > { %1218 = vmatpush1.bf16.msra.mxu0 %v2476_v29 }
 0x16e   : > { %v2735_v30 = vpop.permute.xlu0 %809 }
 0x16f   : > { %v2737_v6 = vpop.permute.xlu1 %400  ;;  %v915_v63 = vsel %vm899_vm3, %v808_v14, %v2735_v30  ;;  %v1018_v14 = vld [vmem:[%s289_s18] sm:$0xf] }
 0x170   : > { %827 = vrot.lane.b32.xlu0 %v2737_v6, %s1872_s10  ;;  %v408_v41 = vsel %vm3001_vm0, %v2423_v5, %v2737_v6  ;;  %1176 = vmatprep.subr.bf16.mxu1 %v915_v63  ;;  %vm3003_vm0 = vmmov %vm3002_vm1 }
 0x171   : > { %825 = vrot.lane.b32.xlu1 %v408_v41, %s1872_s10  ;;  %1219 = vmatprep.subr.bf16.mxu0 %v408_v41 }
 0x172   : > { %1177 = vmatpush1.bf16.msra.mxu1 %v914_v46  ;;  %1220 = vmatpush1.bf16.msra.mxu0 %v2497_v28  ;;  %v822_v29 = vpop.permute.xlu0 %821 }
 0x173   : > { %v920_v42 = vsel %vm899_vm3, %v2610_v32, %v822_v29  ;;  %v2752_v34 = vpop.permute.xlu1 %823 }
 0x174   : > { %v921_v33 = vsel %vm899_vm3, %v822_v29, %v2752_v34 }
 0x175   : > { %1178 = vmatprep.subr.bf16.mxu1 %v921_v33 }
 0x176   : > { %1179 = vmatpush1.bf16.msra.mxu1 %v920_v42  ;;  %v427_v5 = vpop.permute.xlu0 %426 }
 0x177   : > { %v435_v13 = vsel %vm3002_vm1, %v2400_v62, %v427_v5  ;;  %v2758_v50 = vpop.permute.xlu1 %428 }
 0x178   : > { %v436_v28 = vsel %vm3003_vm0, %v427_v5, %v2758_v50 }
 0x179   : > { %1221 = vmatprep.subr.bf16.mxu0 %v436_v28 }
 0x17a   : > { %1222 = vmatpush1.bf16.msra.mxu0 %v435_v13  ;;  %v836_v47 = vpop.permute.xlu0 %835 }
 0x17b   : > { %v926_v32 = vsel %vm899_vm3, %v2629_v15, %v836_v47  ;;  %v2764_v51 = vpop.permute.xlu1 %837 }
 0x17c   : > { %v927_v58 = vsel %vm899_vm3, %v836_v47, %v2764_v51 }
 0x17d   : > { %1180 = vmatprep.subr.bf16.mxu1 %v927_v58 }
 0x17e   : > { %1181 = vmatpush1.bf16.msra.mxu1 %v926_v32  ;;  %v2768_v11 = vpop.permute.xlu0 %456 }
 0x17f   : > { %v850_v62 = vpop.permute.xlu1 %849  ;;  %v464_v59 = vsel %vm458_vm4, %v2490_v38, %v2768_v11 }
 0x180   : > { %1223 = vmatprep.subr.bf16.mxu0 %v464_v59  ;;  %v932_v35 = vsel %vm899_vm3, %v2654_v1, %v850_v62 }
 0x181   : > { %1224 = vmatpush1.bf16.msra.mxu0 %v2541_v57 }
 0x182   : > { %v2774_v24 = vpop.permute.xlu0 %851 }
 0x183   : > { %v765_v15 = vpop.permute.xlu1 %764  ;;  %v933_v2 = vsel %vm899_vm3, %v850_v62, %v2774_v24 }
 0x184   : > { %v772_v7 = vsel %vm766_vm8, %v2465_v25, %v765_v15  ;;  %841 = vrot.lane.b32.xlu0 %v765_v15, %s1872_s10  ;;  %1182 = vmatprep.subr.bf16.mxu1 %v933_v2 }
 0x185   : > { %839 = vrot.lane.b32.xlu1 %v772_v7, %s1872_s10  ;;  %1183 = vmatpush1.bf16.msra.mxu1 %v932_v35 }
 0x186   : > { %v2784_v38 = vpop.permute.xlu0 %484 }
 0x187   : > { %v864_v57 = vpop.permute.xlu1 %863  ;;  %v492_v19 = vsel %vm486_vm5, %v2531_v52, %v2784_v38 }
 0x188   : > { %855 = vrot.lane.b32.xlu0 %v2768_v11, %s1872_s10  ;;  %1225 = vmatprep.subr.bf16.mxu0 %v492_v19  ;;  %v938_v17 = vsel %vm899_vm3, %v2671_v22, %v864_v57 }
 0x189   : > { %853 = vrot.lane.b32.xlu1 %v464_v59, %s1872_s10  ;;  %1226 = vmatpush1.bf16.msra.mxu0 %v2563_v4 }
 0x18a   : > { %v2793_v25 = vpop.permute.xlu0 %865 }
 0x18b   : > { %v2795_v1 = vpop.permute.xlu1 %512  ;;  %v939_v18 = vsel %vm899_vm3, %v864_v57, %v2793_v25 }
 0x18c   : > { %869 = vrot.lane.b32.xlu0 %v2784_v38, %s1872_s10  ;;  %1184 = vmatprep.subr.bf16.mxu1 %v939_v18  ;;  %v520_v52 = vsel %vm514_vm6, %v2552_v61, %v2795_v1 }
 0x18d   : > { %867 = vrot.lane.b32.xlu1 %v492_v19, %s1872_s10  ;;  %1227 = vmatprep.subr.bf16.mxu0 %v520_v52 }
 0x18e   : > { %1185 = vmatpush1.bf16.msra.mxu1 %v938_v17  ;;  %1228 = vmatpush1.bf16.msra.mxu0 %v2576_v9  ;;  %v878_v4 = vpop.permute.xlu0 %877 }
 0x18f   : > { %v944_v21 = vsel %vm899_vm3, %v2682_v44, %v878_v4  ;;  %v2810_v26 = vpop.permute.xlu1 %879 }
 0x190   : > { %883 = vrot.lane.b32.xlu0 %v2795_v1, %s1872_s10  ;;  %v945_v61 = vsel %vm899_vm3, %v878_v4, %v2810_v26 }
 0x191   : > { %881 = vrot.lane.b32.xlu1 %v520_v52, %s1872_s10  ;;  %1186 = vmatprep.subr.bf16.mxu1 %v945_v61 }
 0x192   : > { %1187 = vmatpush1.bf16.msra.mxu1 %v944_v21  ;;  %v541_v9 = vpop.permute.xlu0 %540 }
 0x193   : > { %v892_v22 = vpop.permute.xlu1 %891  ;;  %v548_v44 = vsel %vm542_vm7, %v2584_v16, %v541_v9 }
 0x194   : > { %897 = vrot.lane.b32.xlu0 %v541_v9, %s1872_s10  ;;  %1229 = vmatprep.subr.bf16.mxu0 %v548_v44  ;;  %v950_v16 = vsel %vm899_vm3, %v2693_v0, %v892_v22 }
 0x195   : > { %895 = vrot.lane.b32.xlu1 %v548_v44, %s1872_s10  ;;  %1230 = vmatpush1.bf16.msra.mxu0 %v2593_v20 }
 0x196   : > { %v2829_v48 = vpop.permute.xlu0 %893 }
 0x197   : > { %v567_v60 = vpop.permute.xlu1 %566  ;;  %v951_v63 = vsel %vm899_vm3, %v892_v22, %v2829_v48 }
 0x198   : > { %1188 = vmatprep.subr.bf16.mxu1 %v951_v63  ;;  %v575_v20 = vsel %vm570_vm9, %v2569_v45, %v567_v60 }
 0x199   : > { %1189 = vmatpush1.bf16.msra.mxu1 %v950_v16  ;;  %1021 = vperm.xlu1 %1814, %v1018_v14  }
 0x19a   : > { %v569_v41 = vpop.permute.xlu0 %568  ;;  %1746 = vmatprep.subr.bf16.mxu1 %v541_v9 }
 0x19b   : > { %v595_v46 = vpop.permute.xlu1 %594  ;;  %v576_v29 = vsel %vm570_vm9, %v567_v60, %v569_v41 }
 0x19c   : > { %1205 = vmatmul.mubr.bf16.vlgmr.msra.gmra.mrb[0].mxu1 %v2502_v36  ;;  %1231 = vmatprep.subr.bf16.mxu0 %v576_v29  ;;  %v603_v5 = vsel %vm598_vm10, %v2600_v23, %v595_v46 }
 0x19d   : > { %1232 = vmatpush1.bf16.msra.mxu0 %v575_v20  ;;  %1747 = vmatpush3.bf16.msra.mxu1 %v2436_v12 }
 0x19e   : > { %v597_v42 = vpop.permute.xlu0 %596  ;;  %1748 = vmatprep.subr.bf16.mxu1 %v569_v41  ;;  %1327 = vmatprep.mubr.bf16.mxu1 %v2150_v39 }
 0x19f   : > { %v623_v0 = vpop.permute.xlu1 %622  ;;  %v604_v33 = vsel %vm598_vm10, %v595_v46, %v597_v42 }
 0x1a0   : > { %1233 = vmatprep.subr.bf16.mxu0 %v604_v33  ;;  %v631_v12 = vsel %vm626_vm11, %v2619_v43, %v623_v0 }
 0x1a1   : > { %1234 = vmatpush1.bf16.msra.mxu0 %v603_v5  ;;  %1749 = vmatpush3.bf16.msra.mxu1 %v2704_v55 }
 0x1a2   : > { %v625_v45 = vpop.permute.xlu0 %624  ;;  %1750 = vmatprep.subr.bf16.mxu1 %v597_v42 }
 0x1a3   : > { %v651_v13 = vpop.permute.xlu1 %650  ;;  %v632_v28 = vsel %vm626_vm11, %v623_v0, %v625_v45 }
 0x1a4   : > { %1235 = vmatprep.subr.bf16.mxu0 %v632_v28  ;;  %v659_v55 = vsel %vm654_vm12, %v2642_v54, %v651_v13 }
 0x1a5   : > { %1236 = vmatpush1.bf16.msra.mxu0 %v631_v12  ;;  %1751 = vmatpush3.bf16.msra.mxu1 %v2726_v40 }
 0x1a6   : > { %v653_v39 = vpop.permute.xlu0 %652  ;;  %1752 = vmatprep.subr.bf16.mxu1 %v625_v45 }
 0x1a7   : > { %v679_v47 = vpop.permute.xlu1 %678  ;;  %v660_v23 = vsel %vm654_vm12, %v651_v13, %v653_v39 }
 0x1a8   : > { %1237 = vmatprep.subr.bf16.mxu0 %v660_v23  ;;  %v687_v40 = vsel %vm682_vm13, %v2663_v10, %v679_v47  ;;  %v1379_v23 = vsub.s32 0, %v2121_v31 }
 0x1a9   : > { %1238 = vmatpush1.bf16.msra.mxu0 %v659_v55  ;;  %1753 = vmatpush3.bf16.msra.mxu1 %v2737_v6  ;;  %v1383_v55 = vsub.s32 1, %v2121_v31 }
 0x1aa   : > { %v681_v32 = vpop.permute.xlu0 %680  ;;  %1754 = vmatprep.subr.bf16.mxu1 %v653_v39 }
 0x1ab   : > { %v707_v58 = vpop.permute.xlu1 %706  ;;  %v688_v43 = vsel %vm682_vm13, %v679_v47, %v681_v32 }
 0x1ac   : > { %1239 = vmatprep.subr.bf16.mxu0 %v688_v43  ;;  %v715_v6 = vsel %vm710_vm14, %v2676_v3, %v707_v58 }
 0x1ad   : > { %1240 = vmatpush1.bf16.msra.mxu0 %v687_v40  ;;  %1755 = vmatpush3.bf16.msra.mxu1 %v2758_v50 }
 0x1ae   : > { %v709_v62 = vpop.permute.xlu0 %708  ;;  %1756 = vmatprep.subr.bf16.mxu1 %v681_v32 }
 0x1af   : > { %v735_v59 = vpop.permute.xlu1 %734  ;;  %v716_v54 = vsel %vm710_vm14, %v707_v58, %v709_v62  ;;  %v1387_v58 = vsub.s32 2, %v2121_v31 }
 0x1b0   : > { %1241 = vmatprep.subr.bf16.mxu0 %v716_v54  ;;  %v743_v2 = vsel %vm738_vm15, %v2687_v53, %v735_v59 }
 0x1b1   : > { %1242 = vmatpush1.bf16.msra.mxu0 %v715_v6  ;;  %1757 = vmatpush3.bf16.msra.mxu1 %v2768_v11 }
 0x1b2   : > { %v737_v15 = vpop.permute.xlu0 %736  ;;  %1758 = vmatprep.subr.bf16.mxu1 %v709_v62 }
 0x1b3   : > { %v744_v10 = vsel %vm738_vm15, %v735_v59, %v737_v15  ;;  %v784_v50 = vpop.permute.xlu1 %783 }
 0x1b4   : > { %1243 = vmatprep.subr.bf16.mxu0 %v744_v10  ;;  %v904_v7 = vsel %vm899_vm3, %v2702_v8, %v784_v50 }
 0x1b5   : > { %1244 = vmatpush1.bf16.msra.mxu0 %v743_v2  ;;  %1759 = vmatpush3.bf16.msra.mxu1 %v2784_v38 }
 0x1b6   : > { %v786_v35 = vpop.permute.xlu0 %785  ;;  %1760 = vmatprep.subr.bf16.mxu1 %v737_v15  ;;  %v1391_v15 = vsub.s32 3, %v2121_v31 }
 0x1b7   : > { %v905_v3 = vsel %vm899_vm3, %v784_v50, %v786_v35 }
 0x1b8   : > { %1254 = vmatprep.subr.bf16.mxu0 %v905_v3  ;;  %1246 = vmatmul.mubr.bf16.vlgmr.msra.gmra.mrb[4].mxu0 %v2142_v37 }
 0x1b9   : > { %1255 = vmatpush1.bf16.msra.mxu0 %v904_v7  ;;  %1761 = vmatpush3.bf16.msra.mxu1 %v2795_v1 }
 0x1ba   : > { %1335 = vmatprep.subr.bf16.mxu1 %v1873_v56  ;;  %1741 = vmatprep.mubr.msk.bf16.mxu0 %vm1045_vm2, %v2513_v49 }
 0x1bc   : > { %1328 = vmatmul.mubr.bf16.vlgmr.msra.gmra.mrb[4].mxu1 %v2142_v37 }
 0x1bd   : > { %1336 = vmatpush1.bf16.msra.mxu1 %v786_v35  ;;  %1742 = vmatprep.mubr.msk.bf16.mxu1 %vm1045_vm2, %v2513_v49  ;;  %vm1419_vm2 = vcmask 1043456  }
 0x1be   : > { %1337 = vmatprep.subr.bf16.mxu1 %v1873_v56 }
 0x1d6   : > { %v800_v53 = vpop.permute.xlu0 %799 }
 0x1d7   : > { %v798_v8 = vpop.permute.xlu1 %797  ;;  %1338 = vmatpush1.bf16.msra.mxu1 %v800_v53 }
 0x1d8   : > { %v910_v11 = vsel %vm899_vm3, %v2720_v27, %v798_v8  ;;  %v911_v38 = vsel %vm899_vm3, %v798_v8, %v800_v53  ;;  %1339 = vmatprep.subr.bf16.mxu1 %v1873_v56  ;;  %v1395_v8 = vsub.s32 4, %v2121_v31 }
 0x1d9   : > { %1256 = vmatprep.subr.bf16.mxu0 %v911_v38  ;;  %v1399_v38 = vsub.s32 5, %v2121_v31 }
 0x1da   : > { %1257 = vmatpush1.bf16.msra.mxu0 %v910_v11 }
 0x1dd   : > { %v814_v57 = vpop.permute.xlu0 %813 }
 0x1de   : > { %v812_v37 = vpop.permute.xlu1 %811  ;;  %1340 = vmatpush1.bf16.msra.mxu1 %v814_v57 }
 0x1df   : > { %v916_v49 = vsel %vm899_vm3, %v2735_v30, %v812_v37  ;;  %v917_v19 = vsel %vm899_vm3, %v812_v37, %v814_v57  ;;  %1341 = vmatprep.subr.bf16.mxu1 %v1873_v56 }
 0x1e0   : > { %1258 = vmatprep.subr.bf16.mxu0 %v917_v19  ;;  %v1403_v19 = vsub.s32 6, %v2121_v31 }
 0x1e1   : > { %1259 = vmatpush1.bf16.msra.mxu0 %v916_v49 }
 0x1e2   : > { %v828_v1 = vpop.permute.xlu0 %827 }
 0x1e3   : > { %v826_v27 = vpop.permute.xlu1 %825  ;;  %1342 = vmatpush1.bf16.msra.mxu1 %v828_v1 }
 0x1e4   : > { %v922_v18 = vsel %vm899_vm3, %v2752_v34, %v826_v27  ;;  %v923_v52 = vsel %vm899_vm3, %v826_v27, %v828_v1  ;;  %1343 = vmatprep.subr.bf16.mxu1 %v1873_v56 }
 0x1e5   : > { %1260 = vmatprep.subr.bf16.mxu0 %v923_v52 }
 0x1e6   : > { %1261 = vmatpush1.bf16.msra.mxu0 %v922_v18 }
 0x1f6   : > { %v842_v17 = vpop.permute.xlu0 %841 }
 0x1f7   : > { %v840_v30 = vpop.permute.xlu1 %839  ;;  %1344 = vmatpush1.bf16.msra.mxu1 %v842_v17 }
 0x1f8   : > { %v928_v4 = vsel %vm899_vm3, %v2764_v51, %v840_v30  ;;  %v929_v21 = vsel %vm899_vm3, %v840_v30, %v842_v17  ;;  %1345 = vmatprep.subr.bf16.mxu1 %v1873_v56 }
 0x1f9   : > { %1262 = vmatprep.subr.bf16.mxu0 %v929_v21 }
 0x1fa   : > { %v856_v61 = vpop.permute.xlu0 %855  ;;  %1263 = vmatpush1.bf16.msra.mxu0 %v928_v4 }
 0x1fb   : > { %v854_v34 = vpop.permute.xlu1 %853  ;;  %1346 = vmatpush1.bf16.msra.mxu1 %v856_v61 }
 0x1fc   : > { %v934_v9 = vsel %vm899_vm3, %v2774_v24, %v854_v34  ;;  %v935_v22 = vsel %vm899_vm3, %v854_v34, %v856_v61  ;;  %1347 = vmatprep.subr.bf16.mxu1 %v1873_v56 }
 0x1fd   : > { %1264 = vmatprep.subr.bf16.mxu0 %v935_v22 }
 0x1fe   : > { %v870_v44 = vpop.permute.xlu0 %869  ;;  %1265 = vmatpush1.bf16.msra.mxu0 %v934_v9 }
 0x1ff   : > { %v868_v51 = vpop.permute.xlu1 %867  ;;  %1348 = vmatpush1.bf16.msra.mxu1 %v870_v44 }
 0x200   : > { %v940_v14 = vsel %vm899_vm3, %v2793_v25, %v868_v51  ;;  %v941_v60 = vsel %vm899_vm3, %v868_v51, %v870_v44  ;;  %1349 = vmatprep.subr.bf16.mxu1 %v1873_v56 }
 0x201   : > { %1266 = vmatprep.subr.bf16.mxu0 %v941_v60 }
 0x202   : > { %v884_v63 = vpop.permute.xlu0 %883  ;;  %1267 = vmatpush1.bf16.msra.mxu0 %v940_v14 }
 0x203   : > { %v882_v24 = vpop.permute.xlu1 %881  ;;  %1350 = vmatpush1.bf16.msra.mxu1 %v884_v63 }
 0x204   : > { %v946_v16 = vsel %vm899_vm3, %v2810_v26, %v882_v24  ;;  %v947_v41 = vsel %vm899_vm3, %v882_v24, %v884_v63  ;;  %1351 = vmatprep.subr.bf16.mxu1 %v1873_v56 }
 0x205   : > { %1268 = vmatprep.subr.bf16.mxu0 %v947_v41 }
 0x206   : > { %v898_v46 = vpop.permute.xlu0 %897  ;;  %1269 = vmatpush1.bf16.msra.mxu0 %v946_v16 }
 0x207   : > { %v896_v25 = vpop.permute.xlu1 %895  ;;  %1352 = vmatpush1.bf16.msra.mxu1 %v898_v46 }
 0x208   : > { %v952_v29 = vsel %vm899_vm3, %v2829_v48, %v896_v25  ;;  %v953_v20 = vsel %vm899_vm3, %v896_v25, %v898_v46  ;;  %vm1431_vm3 = vcmask 257024  }
 0x209   : > { %1270 = vmatprep.subr.bf16.mxu0 %v953_v20 }
 0x20a   : > { %1271 = vmatpush1.bf16.msra.mxu0 %v952_v29  ;;  %1368 = vmatmul.mubr.bf16.vlgmr.msra.gmra.mrb[8].mxu1 %v2502_v36 }
 0x20d   : > { %1287 = vmatmul.mubr.bf16.vlgmr.msra.gmra.mrb[4].mxu0 %v2502_v36  ;;  %v1375_v36 = vld [vmem:[%s2997_s5] sm:$0x7f] }
 0x20e   : > { %v1380_v62 = vrot.slane %v1375_v36, %v1379_v23  ;;  %v1384_v59 = vrot.slane %v1375_v36, %v1383_v55  ;;  %v1388_v6 = vrot.slane %v1375_v36, %v1387_v58  ;;  %v1392_v3 = vrot.slane %v1375_v36, %v1391_v15 }
 0x20f   : > { %v1396_v52 = vrot.slane %v1375_v36, %v1395_v8  ;;  %v1400_v21 = vrot.slane %v1375_v36, %v1399_v38  ;;  %v1404_v9 = vrot.slane %v1375_v36, %v1403_v19  ;;  %v1496_v19 = vld [vmem:[%s297_s12] sm:$0xf] }
 0x218   : > { %v1022_v32 = vpop.permute.xlu1 %1021 }
 0x236   : > { %v1124_v26 = vpop.f32.mrb[0].mxu0 }
 0x237   : > { %v1126_v42 = vpop.f32.mrb[1].mxu0  ;;  %v1768_v43 = vadd.f32 %v1124_v26, %v1022_v32 }
 0x238   : > { %v1128_v0 = vpop.f32.mrb[2].mxu0  ;;  %v1769_v40 = vadd.f32 %v1126_v42, %v1022_v32  ;;  %v1483_v42 = vld [vmem:[%s293_s25] sm:$0xf] }
 0x239   : > { %v1129_v56 = vpop.f32.mrb[3].mxu0  ;;  %v1412_v10 = vmul.f32 %v1768_v43, %v1380_v62 }
 0x23a   : > { %v1413_v2 = vmul.f32 %v1769_v40, %v1384_v59 }
 0x23b   : > { %v1420_v7 = vsel %vm1419_vm2, %v1412_v10, 0.0 }
 0x23c   : > { %v1421_v53 = vsel %vm1419_vm2, %v1413_v2, 0.0 }
 0x23d   : > { %v1422_v1 = vadd.f32 %v1421_v53, %v1420_v7 }
 0x26f   : > { %v1206_v33 = vpop.f32.mrb[0].mxu1 }
 0x270   : > { %v1208_v5 = vpop.f32.mrb[1].mxu1  ;;  %v1770_v54 = vadd.f32 %v1206_v33, %v1022_v32 }
 0x271   : > { %v1210_v45 = vpop.f32.mrb[2].mxu1  ;;  %v1771_v35 = vadd.f32 %v1208_v5, %v1022_v32 }
 0x272   : > { %v1211_v13 = vpop.f32.mrb[3].mxu1  ;;  %v1414_v50 = vmul.f32 %v1770_v54, %v1388_v6 }
 0x273   : > { %v1415_v37 = vmul.f32 %v1771_v35, %v1392_v3 }
 0x274   : > { %v1423_v57 = vsel %vm1419_vm2, %v1414_v50, 0.0 }
 0x275   : > { %v1424_v30 = vadd.f32 %v1423_v57, %v1422_v1  ;;  %v1425_v34 = vsel %vm1419_vm2, %v1415_v37, 0.0 }
 0x277   : > { %v1426_v31 = vadd.f32 %v1425_v34, %v1424_v30 }
 0x28f   : > { %v1762_v28 = vpop.f32.mrb[4].mxu1 }
 0x290   : > { %v1763_v12 = vpop.f32.mrb[5].mxu1 }
 0x291   : > { %v1764_v39 = vadd.f32 %v1763_v12, %v1762_v28  ;;  %v1765_v48 = vpop.f32.mrb[6].mxu1 }
 0x292   : > { %v1766_v47 = vpop.f32.mrb[7].mxu1 }
 0x293   : > { %v1330_v11 = vadd.f32 %v1764_v39, %v1022_v32 }
 0x2dd   : > { %v1369_v49 = vpop.f32.mrb[8].mxu1 }
 0x2de   : > { %v1370_v27 = vadd.f32 %v1369_v49, %v1330_v11  ;;  %v1371_v18 = vpop.f32.mrb[9].mxu1 }
 0x2df   : > { %v1372_v17 = vpop.f32.mrb[10].mxu1 }
 0x2e0   : > { %v1288_v4 = vpop.f32.mrb[4].mxu0  ;;  %v1373_v61 = vpop.f32.mrb[11].mxu1  ;;  %v1418_v16 = vmul.f32 %v1404_v9, %v1370_v27 }
 0x2e1   : > { %v1772_v22 = vadd.f32 %v1288_v4, %v1022_v32  ;;  %v1290_v44 = vpop.f32.mrb[5].mxu0 }
 0x2e2   : > { %v1773_v51 = vadd.f32 %v1290_v44, %v1022_v32  ;;  %v1292_v14 = vpop.f32.mrb[6].mxu0  ;;  %v1432_v20 = vsel %vm1431_vm3, %v1418_v16, 0.0 }
 0x2e3   : > { %v1416_v60 = vmul.f32 %v1772_v22, %v1396_v52  ;;  %v1293_v63 = vpop.f32.mrb[7].mxu0 }
 0x2e4   : > { %v1417_v24 = vmul.f32 %v1773_v51, %v1400_v21 }
 0x2e5   : > { %v1427_v41 = vsel %vm1419_vm2, %v1416_v60, 0.0 }
 0x2e6   : > { %v1428_v46 = vadd.f32 %v1427_v41, %v1426_v31  ;;  %v1429_v25 = vsel %vm1419_vm2, %v1417_v24, 0.0 }
 0x2e8   : > { %v1430_v29 = vadd.f32 %v1429_v25, %v1428_v46 }
 0x2ea   : > { %v1433_v26 = vadd.f32 %v1432_v20, %v1430_v29 }
 0x2ec   : > { %1434 = vadd.xlane.f32.xlu0 %v1433_v26 }
 0x302   : > { %1486 = vperm.xlu0 %1815, %v1483_v42  }
 0x379   : > { %v1435_v0 = vpop.xlane.xlu0 %1434 }
 0x37a   : > { %v1436_v56 = vmul.f32 0.001953125, %v1435_v0 }
 0x37c   : > { %v1437_v33 = vsub.f32 %v1768_v43, %v1436_v56  ;;  %v1438_v5 = vsub.f32 %v1769_v40, %v1436_v56  ;;  %v1439_v45 = vsub.f32 %v1770_v54, %v1436_v56  ;;  %v1440_v13 = vsub.f32 %v1771_v35, %v1436_v56 }
 0x37d   : > { %v1441_v28 = vsub.f32 %v1772_v22, %v1436_v56  ;;  %v1442_v12 = vsub.f32 %v1773_v51, %v1436_v56  ;;  %v1443_v55 = vsub.f32 %v1370_v27, %v1436_v56 }
 0x37e   : > { %v1444_v39 = vmul.f32 %v1437_v33, %v1380_v62  ;;  %v1445_v48 = vmul.f32 %v1438_v5, %v1384_v59  ;;  %v1446_v47 = vmul.f32 %v1439_v45, %v1388_v6  ;;  %v1447_v23 = vmul.f32 %v1440_v13, %v1392_v3 }
 0x37f   : > { %v1448_v32 = vmul.f32 %v1441_v28, %v1396_v52  ;;  %v1449_v10 = vmul.f32 %v1442_v12, %v1400_v21  ;;  %v1450_v54 = vmul.f32 %v1443_v55, %v1404_v9 }
 0x380   : > { %v1451_v36 = vmul.f32 %v1444_v39, %v1444_v39  ;;  %v1452_v58 = vmul.f32 %v1445_v48, %v1445_v48  ;;  %v1453_v15 = vmul.f32 %v1446_v47, %v1446_v47  ;;  %v1454_v2 = vmul.f32 %v1447_v23, %v1447_v23 }
 0x381   : > { %v1455_v35 = vmul.f32 %v1448_v32, %v1448_v32  ;;  %v1456_v6 = vmul.f32 %v1449_v10, %v1449_v10  ;;  %v1457_v53 = vmul.f32 %v1450_v54, %v1450_v54  ;;  %v1487_v17 = vpop.permute.xlu0 %1486 }
 0x382   : > { %v1458_v50 = vsel %vm1419_vm2, %v1451_v36, 0.0  ;;  %v1459_v43 = vsel %vm1419_vm2, %v1452_v58, 0.0  ;;  %v1461_v62 = vsel %vm1419_vm2, %v1453_v15, 0.0  ;;  %v1463_v3 = vsel %vm1419_vm2, %v1454_v2, 0.0 }
 0x383   : > { %v1460_v40 = vadd.f32 %v1459_v43, %v1458_v50  ;;  %v1465_v8 = vsel %vm1419_vm2, %v1455_v35, 0.0  ;;  %v1467_v38 = vsel %vm1419_vm2, %v1456_v6, 0.0  ;;  %v1469_v37 = vsel %vm1431_vm3, %v1457_v53, 0.0 }
 0x385   : > { %v1462_v59 = vadd.f32 %v1461_v62, %v1460_v40 }
 0x387   : > { %v1464_v7 = vadd.f32 %v1463_v3, %v1462_v59 }
 0x389   : > { %v1466_v11 = vadd.f32 %v1465_v8, %v1464_v7 }
 0x38b   : > { %v1468_v57 = vadd.f32 %v1467_v38, %v1466_v11 }
 0x38d   : > { %v1470_v49 = vadd.f32 %v1469_v37, %v1468_v57 }
 0x38f   : > { %1471 = vadd.xlane.f32.xlu1 %v1470_v49 }
 0x3a0   : > { %1499 = vperm.xlu1 %1814, %v1496_v19  }
 0x41c   : > { %v1472_v1 = vpop.xlane.xlu1 %1471 }
 0x41d   : > { %v1473_v27 = vmul.f32 0.001953125, %v1472_v1 }
 0x41f   : > { %v1474_v18 = vadd.f32 1e-05, %v1473_v27 }
 0x420   : > { %v1500_v63 = vpop.permute.xlu1 %1499 }
 0x421   : > { %1817 = vrsqrt.f32 %v1474_v18 }
 0x42b   : > { %v1818_v52 = vpop.eup %1817 }
 0x42c   : > { %v1476_v30 = vmul.f32 %v1818_v52, %v1437_v33  ;;  %v1477_v4 = vmul.f32 %v1818_v52, %v1438_v5  ;;  %v1478_v21 = vmul.f32 %v1818_v52, %v1439_v45  ;;  %v1479_v61 = vmul.f32 %v1818_v52, %v1440_v13 }
 0x42d   : > { %v1480_v34 = vmul.f32 %v1818_v52, %v1441_v28  ;;  %v1481_v9 = vmul.f32 %v1818_v52, %v1442_v12  ;;  %v1482_v22 = vmul.f32 %v1818_v52, %v1443_v55 }
 0x42e   : > { %v1489_v44 = vmul.f32 %v1487_v17, %v1476_v30  ;;  %v1490_v51 = vmul.f32 %v1487_v17, %v1477_v4  ;;  %v1491_v14 = vmul.f32 %v1487_v17, %v1478_v21  ;;  %v1492_v60 = vmul.f32 %v1487_v17, %v1479_v61 }
 0x42f   : > { %v1493_v31 = vmul.f32 %v1487_v17, %v1480_v34  ;;  %v1494_v24 = vmul.f32 %v1487_v17, %v1481_v9  ;;  %v1495_v16 = vmul.f32 %v1487_v17, %v1482_v22 }
 0x430   : > { %v1502_v41 = vadd.f32 %v1500_v63, %v1489_v44  ;;  %v1503_v46 = vadd.f32 %v1500_v63, %v1490_v51  ;;  %v1504_v25 = vadd.f32 %v1500_v63, %v1491_v14  ;;  %v1505_v29 = vadd.f32 %v1500_v63, %v1492_v60 }
 0x431   : > { %v1506_v20 = vadd.f32 %v1500_v63, %v1493_v31  ;;  %v1507_v26 = vadd.f32 %v1500_v63, %v1494_v24  ;;  %v1508_v42 = vadd.f32 %v1500_v63, %v1495_v16 }
 0x432   : > { %v2942_v0 = vmax.f32 %v1502_v41, 0.0  ;;  %v2944_v56 = vmax.f32 %v1503_v46, 0.0  ;;  %v2946_v33 = vmax.f32 %v1504_v25, 0.0  ;;  %v2948_v5 = vmax.f32 %v1505_v29, 0.0 }
 0x433   : > { %v2950_v45 = vmax.f32 %v1506_v20, 0.0  ;;  %v2952_v13 = vmax.f32 %v1507_v26, 0.0  ;;  %v2954_v28 = vmax.f32 %v1508_v42, 0.0 }
 0x434   : > { %v1516_v12 = vmul.f32 %v2942_v0, %v2942_v0  ;;  %v1517_v39 = vmul.f32 %v2944_v56, %v2944_v56  ;;  %v1518_v48 = vmul.f32 %v2946_v33, %v2946_v33  ;;  %v1519_v47 = vmul.f32 %v2948_v5, %v2948_v5 }
 0x435   : > { %v1520_v23 = vmul.f32 %v2950_v45, %v2950_v45  ;;  %v1521_v55 = vmul.f32 %v2952_v13, %v2952_v13  ;;  %v1522_v32 = vmul.f32 %v2954_v28, %v2954_v28 }
 0x436   : > { %v1523_v36 = vsel %vm1419_vm2, %v1516_v12, 0.0  ;;  %v1530_v58 = vsel %vm1419_vm2, %v1517_v39, 0.0  ;;  %v1537_v15 = vsel %vm1419_vm2, %v1518_v48, 0.0  ;;  %v1544_v10 = vsel %vm1419_vm2, %v1519_v47, 0.0 }
 0x437   : > { %v1524_v2 = vrot.slane %v1523_v36, 4  ;;  %v1531_v50 = vrot.slane %v1530_v58, 4  ;;  %v1538_v43 = vrot.slane %v1537_v15, 4  ;;  %v1545_v40 = vrot.slane %v1544_v10, 4 }
 0x438   : > { %v1551_v54 = vsel %vm1419_vm2, %v1520_v23, 0.0  ;;  %v1558_v35 = vsel %vm1419_vm2, %v1521_v55, 0.0  ;;  %v1565_v62 = vsel %vm1431_vm3, %v1522_v32, 0.0 }
 0x439   : > { %v1525_v59 = vadd.f32 %v1524_v2, %v1523_v36  ;;  %v1532_v6 = vadd.f32 %v1531_v50, %v1530_v58  ;;  %v1539_v3 = vadd.f32 %v1538_v43, %v1537_v15  ;;  %v1546_v7 = vadd.f32 %v1545_v40, %v1544_v10 }
 0x43a   : > { %v1552_v53 = vrot.slane %v1551_v54, 4  ;;  %v1559_v8 = vrot.slane %v1558_v35, 4  ;;  %v1566_v11 = vrot.slane %v1565_v62, 4 }
 0x43b   : > { %v1526_v38 = vrot.slane %v1525_v59, 2  ;;  %v1533_v57 = vrot.slane %v1532_v6, 2  ;;  %v1540_v37 = vrot.slane %v1539_v3, 2  ;;  %v1547_v49 = vrot.slane %v1546_v7, 2 }
 0x43c   : > { %v1553_v19 = vadd.f32 %v1552_v53, %v1551_v54  ;;  %v1560_v1 = vadd.f32 %v1559_v8, %v1558_v35  ;;  %v1567_v27 = vadd.f32 %v1566_v11, %v1565_v62 }
 0x43d   : > { %v1527_v18 = vadd.f32 %v1526_v38, %v1525_v59  ;;  %v1534_v52 = vadd.f32 %v1533_v57, %v1532_v6  ;;  %v1541_v17 = vadd.f32 %v1540_v37, %v1539_v3  ;;  %v1548_v30 = vadd.f32 %v1547_v49, %v1546_v7 }
 0x43e   : > { %v1554_v4 = vrot.slane %v1553_v19, 2  ;;  %v1561_v21 = vrot.slane %v1560_v1, 2  ;;  %v1568_v61 = vrot.slane %v1567_v27, 2 }
 0x43f   : > { %v1528_v34 = vrot.slane %v1527_v18, 1  ;;  %v1535_v9 = vrot.slane %v1534_v52, 1  ;;  %v1542_v22 = vrot.slane %v1541_v17, 1  ;;  %v1549_v44 = vrot.slane %v1548_v30, 1 }
 0x440   : > { %v1555_v51 = vadd.f32 %v1554_v4, %v1553_v19  ;;  %v1562_v14 = vadd.f32 %v1561_v21, %v1560_v1  ;;  %v1569_v60 = vadd.f32 %v1568_v61, %v1567_v27 }
 0x441   : > { %v1529_v63 = vadd.f32 %v1528_v34, %v1527_v18  ;;  %v1536_v31 = vadd.f32 %v1535_v9, %v1534_v52  ;;  %v1543_v24 = vadd.f32 %v1542_v22, %v1541_v17  ;;  %v1550_v16 = vadd.f32 %v1549_v44, %v1548_v30 }
 0x442   : > { %v1556_v41 = vrot.slane %v1555_v51, 1  ;;  %v1563_v46 = vrot.slane %v1562_v14, 1  ;;  %v1570_v25 = vrot.slane %v1569_v60, 1 }
 0x443   : > { %v1572_v29 = vadd.f32 1e-30, %v1529_v63  ;;  %v1573_v20 = vadd.f32 1e-30, %v1536_v31  ;;  %v1574_v26 = vadd.f32 1e-30, %v1543_v24 }
 0x444   : > { %v1557_v42 = vadd.f32 %v1556_v41, %v1555_v51  ;;  %v1564_v12 = vadd.f32 %v1563_v46, %v1562_v14  ;;  %v1571_v39 = vadd.f32 %v1570_v25, %v1569_v60  ;;  %v1575_v48 = vadd.f32 1e-30, %v1550_v16 }
 0x445   : > { %1819 = vrsqrt.f32 %v1572_v29  ;;  %v1593_v32 = vadd.f32 1.0, %v1529_v63  ;;  %v1594_v36 = vadd.f32 1.0, %v1536_v31  ;;  %v1595_v58 = vadd.f32 1.0, %v1543_v24 }
 0x446   : > { %v1576_v47 = vadd.f32 1e-30, %v1557_v42  ;;  %v1577_v23 = vadd.f32 1e-30, %v1564_v12  ;;  %1821 = vrsqrt.f32 %v1573_v20  ;;  %v1578_v55 = vadd.f32 1e-30, %v1571_v39 }
 0x447   : > { %1823 = vrsqrt.f32 %v1574_v26  ;;  %v1596_v15 = vadd.f32 1.0, %v1550_v16  ;;  %v1597_v10 = vadd.f32 1.0, %v1557_v42  ;;  %v1598_v2 = vadd.f32 1.0, %v1564_v12 }
 0x448   : > { %1825 = vrsqrt.f32 %v1575_v48  ;;  %v1599_v50 = vadd.f32 1.0, %v1571_v39 }
 0x449   : > { %1827 = vrsqrt.f32 %v1576_v47 }
 0x44a   : > { %1829 = vrsqrt.f32 %v1577_v23 }
 0x44b   : > { %1831 = vrsqrt.f32 %v1578_v55 }
 0x44c   : > { %1833 = vrcp.f32 %v1593_v32 }
 0x44d   : > { %1835 = vrcp.f32 %v1594_v36 }
 0x44e   : > { %1837 = vrcp.f32 %v1595_v58 }
 0x44f   : > { %v1820_v43 = vpop.eup %1819  ;;  %1839 = vrcp.f32 %v1596_v15 }
 0x450   : > { %v1822_v40 = vpop.eup %1821  ;;  %1841 = vrcp.f32 %v1597_v10  ;;  %v1586_v59 = vmul.f32 %v1820_v43, %v1529_v63 }
 0x451   : > { %v1824_v54 = vpop.eup %1823  ;;  %1843 = vrcp.f32 %v1598_v2  ;;  %v1587_v3 = vmul.f32 %v1822_v40, %v1536_v31 }
 0x452   : > { %v1826_v35 = vpop.eup %1825  ;;  %1845 = vrcp.f32 %v1599_v50  ;;  %v1588_v53 = vmul.f32 %v1824_v54, %v1543_v24 }
 0x453   : > { %v1828_v62 = vpop.eup %1827  ;;  %v1589_v11 = vmul.f32 %v1826_v35, %v1550_v16 }
 0x454   : > { %v1830_v6 = vpop.eup %1829  ;;  %v1590_v57 = vmul.f32 %v1828_v62, %v1557_v42 }
 0x455   : > { %v1832_v7 = vpop.eup %1831  ;;  %v1591_v19 = vmul.f32 %v1830_v6, %v1564_v12 }
 0x456   : > { %v1834_v8 = vpop.eup %1833  ;;  %v1592_v18 = vmul.f32 %v1832_v7, %v1571_v39 }
 0x457   : > { %v1836_v38 = vpop.eup %1835  ;;  %v1607_v37 = vmul.f32 %v1834_v8, %v1586_v59 }
 0x458   : > { %v1838_v49 = vpop.eup %1837  ;;  %v1608_v1 = vmul.f32 %v1836_v38, %v1587_v3 }
 0x459   : > { %v1840_v27 = vpop.eup %1839  ;;  %v1609_v52 = vmul.f32 %v1838_v49, %v1588_v53  ;;  %v1614_v17 = vmul.f32 %v1607_v37, %v2942_v0 }
 0x45a   : > { %v1842_v30 = vpop.eup %1841  ;;  %v1610_v4 = vmul.f32 %v1840_v27, %v1589_v11  ;;  %v1615_v21 = vmul.f32 %v1608_v1, %v2944_v56 }
 0x45b   : > { %v1844_v61 = vpop.eup %1843  ;;  %v1611_v34 = vmul.f32 %v1842_v30, %v1590_v57  ;;  %v1616_v9 = vmul.f32 %v1609_v52, %v2946_v33 }
 0x45c   : > { %v1846_v22 = vpop.eup %1845  ;;  %v1612_v44 = vmul.f32 %v1844_v61, %v1591_v19  ;;  %v1617_v51 = vmul.f32 %v1610_v4, %v2948_v5  ;;  %v1627_v14 = vcombine.low %v1614_v17, %v1615_v21 }
 0x45d   : > { %v1613_v60 = vmul.f32 %v1846_v22, %v1592_v18  ;;  %v1618_v0 = vmul.f32 %v1611_v34, %v2950_v45 }
 0x45e   : > { %v1619_v63 = vmul.f32 %v1612_v44, %v2952_v13  ;;  %v1628_v31 = vcombine.low %v1616_v9, %v1617_v51  ;;  %1633 = vst [vmem:[%s302_s22] sm:$0xff] %v1627_v14 }
 0x45f   : > { %v1620_v56 = vmul.f32 %v1613_v60, %v2954_v28 }
 0x460   : > { %v1629_v24 = vcombine.low %v1618_v0, %v1619_v63  ;;  %1634 = vst [vmem:[%s302_s22 + $0x8] sm:$0xff] %v1628_v31 }
 0x461   : > { %1636 = vst.msk [vmem:[%s302_s22 + $0x18] sm:$0xf] %vm1431_vm3, %v1620_v56 }
 0x462   : > { %1635 = vst [vmem:[%s302_s22 + $0x10] sm:$0xff] %v1629_v24 }
 0x463 PF: > { %s16_s21 = sadd.s32 1, %s1853_s21  }
 0x464   : > { %p13_p4 = scmp.ge.s32.totalorder %s16_s21, 6  }
 0x466   :  { %15 = sbr.rel (!%p13_p4) target bundleno = 1 (0x1), region = 83 }

</bundles_post_ra>
